<compile_context>
chip_gen: v7x
topology: tpu7x:2x2x1
jax: 0.10.0
libtpu: 0.0.40
codegen_flags: <defaults>
</compile_context>

<pallas_src>
import jax
import jax.numpy as jnp
from jax.experimental import pallas as pl
from jax.experimental.pallas import tpu as pltpu


_BN_EPS = 1e-5

# (in_dim, out_dim) of the 13 Linear+BN+ReLU stages of the five LinearBlock2Ds.
_LAYER_DIMS = [
    (9 * 128, 7 * 128), (7 * 128, 7 * 128), (7 * 128, 5 * 128),   # encoder1
    (5 * 128, 3 * 128), (3 * 128, 3 * 128), (3 * 128, 1 * 128),   # encoder2
    (128, 64), (64, 64), (64, 32),                                # encoder3
    (32, 16), (16, 16), (16, 8),                                  # encoder4
    (8, 3),                                                       # encoder5 (layers=1)
]
_BOTTLENECK = (3, 3)                                              # bottleneck Linear (no BN/ReLU)

_N_BIG = 6            # layers 0..5 are 128-aligned -> bf16 weights on the MXU
_TAIL_PAD = 128       # tiny tail layers are zero-padded to (128, 128) tiles
_BIG_SHIFT_W = max(n for _, n in _LAYER_DIMS[:_N_BIG])            # 896

_SUM_KN = sum(k * n for k, n in _LAYER_DIMS) + _BOTTLENECK[0] * _BOTTLENECK[1]


# ----------------------------------------------------------------------------
# Fused kernel (one grid step = one batch tile of `tm` rows)
# ----------------------------------------------------------------------------
def _encoder_kernel(x_ref, w0_ref, w1_ref, w2_ref, w3_ref, w4_ref, w5_ref,
                    big_shift_ref, tail_w_ref, tail_shift_ref, o_ref):
    big_refs = (w0_ref, w1_ref, w2_ref, w3_ref, w4_ref, w5_ref)

    x = x_ref[...]                                           # (tm, 1152) f32
    # --- big 128-aligned stages: bf16 weights & inter-stage activations -----
    for i, w_ref in enumerate(big_refs):
        w = w_ref[...]                                       # (K, N) bf16
        n_out = w.shape[1]
        s = big_shift_ref[i:i + 1, :n_out]                   # (1, N) f32
        y = jnp.dot(x.astype(jnp.bfloat16), w,
                    preferred_element_type=jnp.float32) + s
        y = jnp.maximum(y, 0.0)                              # ReLU in f32
        # carry bf16 between big stages; keep f32 going into the f32 tail
        x = y.astype(jnp.bfloat16) if i + 1 < len(big_refs) else y

    # --- tiny tail stages, zero-padded to (128, 128) f32 tiles --------------
    # Zero padding of weights/shifts makes the padded columns exactly zero, so
    # the math is identical to the unpadded layers; only the final slice to 3
    # columns is needed.
    n_tail = tail_w_ref.shape[0]                             # 8 (incl. bottleneck)
    for j in range(n_tail):
        w = tail_w_ref[j]                                    # (128, 128) f32
        s = tail_shift_ref[j:j + 1, :]                       # (1, 128)   f32
        y = jnp.dot(x, w, preferred_element_type=jnp.float32) + s
        if j + 1 < n_tail:                                   # no ReLU after bottleneck
            y = jnp.maximum(y, 0.0)
        x = y

    o_ref[...] = x[:, : o_ref.shape[1]].astype(o_ref.dtype)


# ----------------------------------------------------------------------------
# Wrapper: batch grid + resident weights
# ----------------------------------------------------------------------------
def encoder_forward(z1, params, *, tm=256):
    """z1: (B, ...) -> (B, 3) f32.  params = pack_params(init_raw_params(key))."""
    big_ws, big_shifts, tail_w, tail_shifts = params

    x = z1.reshape(z1.shape[0], -1).astype(jnp.float32)      # torch.view_copy(z1, (B, -1))
    B, K0 = x.shape

    # Batch tile: multiple of 8 (f32 sublane), capped; shrink for tiny batches.
    tm = int(min(max(tm, 8), 512))
    tm -= tm % 8
    if B <= tm:
        tm = max(8, -(-B // 8) * 8)
    B_pad = -(-B // tm) * tm
    if B_pad != B:
        x = jnp.pad(x, ((0, B_pad - B), (0, 0)))
    grid = (B_pad // tm,)

    # x / out tiled along batch; all parameters full-shape + constant index_map
    # (DMA'd once, resident in VMEM across grid steps).
    in_specs = [pl.BlockSpec((tm, K0), lambda i: (i, 0))]
    in_specs += [pl.BlockSpec(w.shape, lambda i: (0, 0)) for w in big_ws]
    in_specs += [
        pl.BlockSpec(big_shifts.shape, lambda i: (0, 0)),
        pl.BlockSpec(tail_w.shape, lambda i: (0, 0, 0)),
        pl.BlockSpec(tail_shifts.shape, lambda i: (0, 0)),
    ]
    out_specs = pl.BlockSpec((tm, _BOTTLENECK[1]), lambda i: (i, 0))

    param_bytes = (sum(int(w.size) * w.dtype.itemsize for w in big_ws)
                   + int(big_shifts.size) * 4
                   + int(tail_w.size) * 4
                   + int(tail_shifts.size) * 4)
    cost = pl.CostEstimate(
        flops=2 * B_pad * _SUM_KN,
        transcendentals=0,
        bytes_accessed=param_bytes + B_pad * (K0 + _BOTTLENECK[1]) * 4,
    )

    out = pl.pallas_call(
        _encoder_kernel,
        out_shape=jax.ShapeDtypeStruct((B_pad, _BOTTLENECK[1]), jnp.float32),
        grid=grid,
        in_specs=in_specs,
        out_specs=out_specs,
        compiler_params=pltpu.CompilerParams(
            dimension_semantics=("parallel",),        # batch axis: megacore / 2-TC
            vmem_limit_bytes=48 * 1024 * 1024,        # params ~6.3 MB + tiles; <64 MiB (v7x)
        ),
        cost_estimate=cost,
    )(x, *big_ws, big_shifts, tail_w, tail_shifts)
    return out[:B]


# ----------------------------------------------------------------------------
# Parameter construction (PyTorch-style init, randomized BN stats so folding
# is actually exercised) + folding/packing + pure-JAX reference.
# ----------------------------------------------------------------------------
def init_raw_params(key):
    raw = []
    for (k_in, k_out) in _LAYER_DIMS:
        key, kw, kb, kg, kbe, km, kv = jax.random.split(key, 7)
        bound = float(k_in) ** -0.5
        raw.append(dict(
            w=jax.random.uniform(kw, (k_out, k_in), jnp.float32, -bound, bound),
            b=jax.random.uniform(kb, (k_out,), jnp.float32, -bound, bound),
            gamma=jax.random.uniform(kg, (k_out,), jnp.float32, 0.5, 1.5),
            beta=0.1 * jax.random.normal(kbe, (k_out,), jnp.float32),
            mean=0.1 * jax.random.normal(km, (k_out,), jnp.float32),
            var=jax.random.uniform(kv, (k_out,), jnp.float32, 0.5, 1.5),
        ))
    key, kw, kb = jax.random.split(key, 3)
    k_in, k_out = _BOTTLENECK
    bound = float(k_in) ** -0.5
    raw.append(dict(
        w=jax.random.uniform(kw, (k_out, k_in), jnp.float32, -bound, bound),
        b=jax.random.uniform(kb, (k_out,), jnp.float32, -bound, bound),
    ))
    return raw


def pack_params(raw):
    """Fold BN into the Linears and pack into kernel-friendly buffers."""
    folded = []
    for p in raw[:len(_LAYER_DIMS)]:
        scale = p["gamma"] / jnp.sqrt(p["var"] + _BN_EPS)            # (out,)
        folded.append((p["w"].T * scale[None, :],                    # (in, out)
                       (p["b"] - p["mean"]) * scale + p["beta"]))    # (out,)
    p = raw[len(_LAYER_DIMS)]                                        # bottleneck: no BN
    folded.append((p["w"].T, p["b"]))

    # Big layers -> separate bf16 weight buffers + one (6, 896) f32 shift slab.
    big_ws = tuple(folded[i][0].astype(jnp.bfloat16) for i in range(_N_BIG))
    big_shifts = jnp.zeros((_N_BIG, _BIG_SHIFT_W), jnp.float32)
    for i in range(_N_BIG):
        s = folded[i][1]
        big_shifts = big_shifts.at[i, : s.shape[0]].set(s)

    # Tail layers (incl. bottleneck) -> one zero-padded (8,128,128) f32 slab.
    n_tail = len(folded) - _N_BIG
    tail_w = jnp.zeros((n_tail, _TAIL_PAD, _TAIL_PAD), jnp.float32)
    tail_shifts = jnp.zeros((n_tail, _TAIL_PAD), jnp.float32)
    for j in range(n_tail):
        w, s = folded[_N_BIG + j]
        tail_w = tail_w.at[j, : w.shape[0], : w.shape[1]].set(w)
        tail_shifts = tail_shifts.at[j, : s.shape[0]].set(s)

    return big_ws, big_shifts, tail_w, tail_shifts


def reference_forward(z1, raw):
    """Pure-JAX f32 reference matching the PyTorch module (eval-mode BN)."""
    x = z1.reshape(z1.shape[0], -1).astype(jnp.float32)
    for p in raw[:len(_LAYER_DIMS)]:
        x = x @ p["w"].T + p["b"]
        x = (x - p["mean"]) / jnp.sqrt(p["var"] + _BN_EPS) * p["gamma"] + p["beta"]
        x = jnp.maximum(x, 0.0)
    p = raw[len(_LAYER_DIMS)]
    return x @ p["w"].T + p["b"]


# ----------------------------------------------------------------------------
# Example run
# ----------------------------------------------------------------------------
if __name__ == "__main__":
    key = jax.random.PRNGKey(0)
    key, k_in = jax.random.split(key)

    batch = 2
    z1 = jax.random.normal(k_in, (batch, 9, 128), dtype=jnp.float32)

    raw = init_raw_params(key)
    params = pack_params(raw)

    fwd = jax.jit(lambda z, p: encoder_forward(z, p))
    out = jax.block_until_ready(fwd(z1, params))

    assert out.shape == (batch, 3), out.shape
    assert out.dtype == jnp.float32, out.dtype

    # Correctness vs f32 reference (bf16 big-layer weights -> loose tolerance).
    ref = reference_forward(z1, raw)
    err = float(jnp.max(jnp.abs(out - ref)))
    scale = float(jnp.max(jnp.abs(ref)))
    assert err <= 5e-2 * (1.0 + scale), f"max abs err {err} vs ref scale {scale}"

    print("KERNEL_OK")
</pallas_src>

<mosaic_0001>
module attributes {stable_mosaic.version = 11 : i64} {
  func.func @_encoder_kernel(%arg0: i32, %arg1: memref<8x1152xf32, #tpu.memory_space<vmem>>, %arg2: memref<1152x896xbf16, #tpu.memory_space<vmem>>, %arg3: memref<896x896xbf16, #tpu.memory_space<vmem>>, %arg4: memref<896x640xbf16, #tpu.memory_space<vmem>>, %arg5: memref<640x384xbf16, #tpu.memory_space<vmem>>, %arg6: memref<384x384xbf16, #tpu.memory_space<vmem>>, %arg7: memref<384x128xbf16, #tpu.memory_space<vmem>>, %arg8: memref<6x896xf32, #tpu.memory_space<vmem>>, %arg9: memref<8x128x128xf32, #tpu.memory_space<vmem>>, %arg10: memref<8x128xf32, #tpu.memory_space<vmem>>, %arg11: memref<8x3xf32, #tpu.memory_space<vmem>>) attributes {dimension_semantics = [#tpu.dimension_semantics<parallel>], iteration_bounds = array<i64: 1>, scalar_prefetch = 0 : i64, scratch_operands = 0 : i64, tpu.core_type = #tpu.core_type<tc>, window_params = [{transform_indices = @transform_0, window_bounds = array<i64: 8, 1152>}, {pipeline_mode = #tpu.pipeline_mode<synchronous>, transform_indices = @transform_1, window_bounds = array<i64: 1152, 896>}, {pipeline_mode = #tpu.pipeline_mode<synchronous>, transform_indices = @transform_2, window_bounds = array<i64: 896, 896>}, {pipeline_mode = #tpu.pipeline_mode<synchronous>, transform_indices = @transform_3, window_bounds = array<i64: 896, 640>}, {pipeline_mode = #tpu.pipeline_mode<synchronous>, transform_indices = @transform_4, window_bounds = array<i64: 640, 384>}, {pipeline_mode = #tpu.pipeline_mode<synchronous>, transform_indices = @transform_5, window_bounds = array<i64: 384, 384>}, {pipeline_mode = #tpu.pipeline_mode<synchronous>, transform_indices = @transform_6, window_bounds = array<i64: 384, 128>}, {pipeline_mode = #tpu.pipeline_mode<synchronous>, transform_indices = @transform_7, window_bounds = array<i64: 6, 896>}, {pipeline_mode = #tpu.pipeline_mode<synchronous>, transform_indices = @transform_8, window_bounds = array<i64: 8, 128, 128>}, {pipeline_mode = #tpu.pipeline_mode<synchronous>, transform_indices = @transform_9, window_bounds = array<i64: 8, 128>}, {transform_indices = @transform_10, window_bounds = array<i64: 8, 3>}]} {
    %c0 = arith.constant 0 : index
    %c0_0 = arith.constant 0 : index
    %0 = vector.load %arg1[%c0, %c0_0] : memref<8x1152xf32, #tpu.memory_space<vmem>>, vector<8x1152xf32>
    %c0_1 = arith.constant 0 : index
    %c0_2 = arith.constant 0 : index
    %1 = vector.load %arg2[%c0_1, %c0_2] : memref<1152x896xbf16, #tpu.memory_space<vmem>>, vector<1152x896xbf16>
    %c0_3 = arith.constant 0 : index
    %c0_4 = arith.constant 0 : index
    %2 = vector.load %arg8[%c0_3, %c0_4] : memref<6x896xf32, #tpu.memory_space<vmem>>, vector<1x896xf32>
    %3 = arith.truncf %0 : vector<8x1152xf32> to vector<8x1152xbf16>
    %cst = arith.constant dense<0.000000e+00> : vector<8x896xf32>
    %4 = tpu.matmul %3, %1, %cst {dimension_numbers = #tpu.dot_dimension_numbers<[1], [0], [0], [1], [0, 0, 1, 1], [], []>} : vector<8x1152xbf16>, vector<1152x896xbf16>, vector<8x896xf32> -> vector<8x896xf32>
    %5 = vector.broadcast %2 : vector<1x896xf32> to vector<8x896xf32>
    %6 = arith.addf %4, %5 : vector<8x896xf32>
    %cst_5 = arith.constant 0.000000e+00 : f32
    %7 = vector.broadcast %cst_5 : f32 to vector<8x896xf32>
    %8 = arith.maximumf %6, %7 : vector<8x896xf32>
    %9 = arith.truncf %8 : vector<8x896xf32> to vector<8x896xbf16>
    %c0_6 = arith.constant 0 : index
    %c0_7 = arith.constant 0 : index
    %10 = vector.load %arg3[%c0_6, %c0_7] : memref<896x896xbf16, #tpu.memory_space<vmem>>, vector<896x896xbf16>
    %c1 = arith.constant 1 : index
    %c0_8 = arith.constant 0 : index
    %11 = vector.load %arg8[%c1, %c0_8] : memref<6x896xf32, #tpu.memory_space<vmem>>, vector<1x896xf32>
    %cst_9 = arith.constant dense<0.000000e+00> : vector<8x896xf32>
    %12 = tpu.matmul %9, %10, %cst_9 {dimension_numbers = #tpu.dot_dimension_numbers<[1], [0], [0], [1], [0, 0, 1, 1], [], []>} : vector<8x896xbf16>, vector<896x896xbf16>, vector<8x896xf32> -> vector<8x896xf32>
    %13 = vector.broadcast %11 : vector<1x896xf32> to vector<8x896xf32>
    %14 = arith.addf %12, %13 : vector<8x896xf32>
    %cst_10 = arith.constant 0.000000e+00 : f32
    %15 = vector.broadcast %cst_10 : f32 to vector<8x896xf32>
    %16 = arith.maximumf %14, %15 : vector<8x896xf32>
    %17 = arith.truncf %16 : vector<8x896xf32> to vector<8x896xbf16>
    %c0_11 = arith.constant 0 : index
    %c0_12 = arith.constant 0 : index
    %18 = vector.load %arg4[%c0_11, %c0_12] : memref<896x640xbf16, #tpu.memory_space<vmem>>, vector<896x640xbf16>
    %c2 = arith.constant 2 : index
    %c0_13 = arith.constant 0 : index
    %19 = vector.load %arg8[%c2, %c0_13] : memref<6x896xf32, #tpu.memory_space<vmem>>, vector<1x640xf32>
    %cst_14 = arith.constant dense<0.000000e+00> : vector<8x640xf32>
    %20 = tpu.matmul %17, %18, %cst_14 {dimension_numbers = #tpu.dot_dimension_numbers<[1], [0], [0], [1], [0, 0, 1, 1], [], []>} : vector<8x896xbf16>, vector<896x640xbf16>, vector<8x640xf32> -> vector<8x640xf32>
    %21 = vector.broadcast %19 : vector<1x640xf32> to vector<8x640xf32>
    %22 = arith.addf %20, %21 : vector<8x640xf32>
    %cst_15 = arith.constant 0.000000e+00 : f32
    %23 = vector.broadcast %cst_15 : f32 to vector<8x640xf32>
    %24 = arith.maximumf %22, %23 : vector<8x640xf32>
    %25 = arith.truncf %24 : vector<8x640xf32> to vector<8x640xbf16>
    %c0_16 = arith.constant 0 : index
    %c0_17 = arith.constant 0 : index
    %26 = vector.load %arg5[%c0_16, %c0_17] : memref<640x384xbf16, #tpu.memory_space<vmem>>, vector<640x384xbf16>
    %c3 = arith.constant 3 : index
    %c0_18 = arith.constant 0 : index
    %27 = vector.load %arg8[%c3, %c0_18] : memref<6x896xf32, #tpu.memory_space<vmem>>, vector<1x384xf32>
    %cst_19 = arith.constant dense<0.000000e+00> : vector<8x384xf32>
    %28 = tpu.matmul %25, %26, %cst_19 {dimension_numbers = #tpu.dot_dimension_numbers<[1], [0], [0], [1], [0, 0, 1, 1], [], []>} : vector<8x640xbf16>, vector<640x384xbf16>, vector<8x384xf32> -> vector<8x384xf32>
    %29 = vector.broadcast %27 : vector<1x384xf32> to vector<8x384xf32>
    %30 = arith.addf %28, %29 : vector<8x384xf32>
    %cst_20 = arith.constant 0.000000e+00 : f32
    %31 = vector.broadcast %cst_20 : f32 to vector<8x384xf32>
    %32 = arith.maximumf %30, %31 : vector<8x384xf32>
    %33 = arith.truncf %32 : vector<8x384xf32> to vector<8x384xbf16>
    %c0_21 = arith.constant 0 : index
    %c0_22 = arith.constant 0 : index
    %34 = vector.load %arg6[%c0_21, %c0_22] : memref<384x384xbf16, #tpu.memory_space<vmem>>, vector<384x384xbf16>
    %c4 = arith.constant 4 : index
    %c0_23 = arith.constant 0 : index
    %35 = vector.load %arg8[%c4, %c0_23] : memref<6x896xf32, #tpu.memory_space<vmem>>, vector<1x384xf32>
    %cst_24 = arith.constant dense<0.000000e+00> : vector<8x384xf32>
    %36 = tpu.matmul %33, %34, %cst_24 {dimension_numbers = #tpu.dot_dimension_numbers<[1], [0], [0], [1], [0, 0, 1, 1], [], []>} : vector<8x384xbf16>, vector<384x384xbf16>, vector<8x384xf32> -> vector<8x384xf32>
    %37 = vector.broadcast %35 : vector<1x384xf32> to vector<8x384xf32>
    %38 = arith.addf %36, %37 : vector<8x384xf32>
    %cst_25 = arith.constant 0.000000e+00 : f32
    %39 = vector.broadcast %cst_25 : f32 to vector<8x384xf32>
    %40 = arith.maximumf %38, %39 : vector<8x384xf32>
    %41 = arith.truncf %40 : vector<8x384xf32> to vector<8x384xbf16>
    %c0_26 = arith.constant 0 : index
    %c0_27 = arith.constant 0 : index
    %42 = vector.load %arg7[%c0_26, %c0_27] : memref<384x128xbf16, #tpu.memory_space<vmem>>, vector<384x128xbf16>
    %c5 = arith.constant 5 : index
    %c0_28 = arith.constant 0 : index
    %43 = vector.load %arg8[%c5, %c0_28] : memref<6x896xf32, #tpu.memory_space<vmem>>, vector<1x128xf32>
    %cst_29 = arith.constant dense<0.000000e+00> : vector<8x128xf32>
    %44 = tpu.matmul %41, %42, %cst_29 {dimension_numbers = #tpu.dot_dimension_numbers<[1], [0], [0], [1], [0, 0, 1, 1], [], []>} : vector<8x384xbf16>, vector<384x128xbf16>, vector<8x128xf32> -> vector<8x128xf32>
    %45 = vector.broadcast %43 : vector<1x128xf32> to vector<8x128xf32>
    %46 = arith.addf %44, %45 : vector<8x128xf32>
    %cst_30 = arith.constant 0.000000e+00 : f32
    %47 = vector.broadcast %cst_30 : f32 to vector<8x128xf32>
    %48 = arith.maximumf %46, %47 : vector<8x128xf32>
    %c0_31 = arith.constant 0 : index
    %c0_32 = arith.constant 0 : index
    %c0_33 = arith.constant 0 : index
    %49 = vector.load %arg9[%c0_31, %c0_32, %c0_33] : memref<8x128x128xf32, #tpu.memory_space<vmem>>, vector<1x128x128xf32>
    %50 = vector.shape_cast %49 : vector<1x128x128xf32> to vector<128x128xf32>
    %c0_34 = arith.constant 0 : index
    %c0_35 = arith.constant 0 : index
    %51 = vector.load %arg10[%c0_34, %c0_35] : memref<8x128xf32, #tpu.memory_space<vmem>>, vector<1x128xf32>
    %cst_36 = arith.constant dense<0.000000e+00> : vector<8x128xf32>
    %52 = tpu.matmul %48, %50, %cst_36 {dimension_numbers = #tpu.dot_dimension_numbers<[1], [0], [0], [1], [0, 0, 1, 1], [], []>} : vector<8x128xf32>, vector<128x128xf32>, vector<8x128xf32> -> vector<8x128xf32>
    %53 = vector.broadcast %51 : vector<1x128xf32> to vector<8x128xf32>
    %54 = arith.addf %52, %53 : vector<8x128xf32>
    %cst_37 = arith.constant 0.000000e+00 : f32
    %55 = vector.broadcast %cst_37 : f32 to vector<8x128xf32>
    %56 = arith.maximumf %54, %55 : vector<8x128xf32>
    %c1_38 = arith.constant 1 : index
    %c0_39 = arith.constant 0 : index
    %c0_40 = arith.constant 0 : index
    %57 = vector.load %arg9[%c1_38, %c0_39, %c0_40] : memref<8x128x128xf32, #tpu.memory_space<vmem>>, vector<1x128x128xf32>
    %58 = vector.shape_cast %57 : vector<1x128x128xf32> to vector<128x128xf32>
    %c1_41 = arith.constant 1 : index
    %c0_42 = arith.constant 0 : index
    %59 = vector.load %arg10[%c1_41, %c0_42] : memref<8x128xf32, #tpu.memory_space<vmem>>, vector<1x128xf32>
    %cst_43 = arith.constant dense<0.000000e+00> : vector<8x128xf32>
    %60 = tpu.matmul %56, %58, %cst_43 {dimension_numbers = #tpu.dot_dimension_numbers<[1], [0], [0], [1], [0, 0, 1, 1], [], []>} : vector<8x128xf32>, vector<128x128xf32>, vector<8x128xf32> -> vector<8x128xf32>
    %61 = vector.broadcast %59 : vector<1x128xf32> to vector<8x128xf32>
    %62 = arith.addf %60, %61 : vector<8x128xf32>
    %cst_44 = arith.constant 0.000000e+00 : f32
    %63 = vector.broadcast %cst_44 : f32 to vector<8x128xf32>
    %64 = arith.maximumf %62, %63 : vector<8x128xf32>
    %c2_45 = arith.constant 2 : index
    %c0_46 = arith.constant 0 : index
    %c0_47 = arith.constant 0 : index
    %65 = vector.load %arg9[%c2_45, %c0_46, %c0_47] : memref<8x128x128xf32, #tpu.memory_space<vmem>>, vector<1x128x128xf32>
    %66 = vector.shape_cast %65 : vector<1x128x128xf32> to vector<128x128xf32>
    %c2_48 = arith.constant 2 : index
    %c0_49 = arith.constant 0 : index
    %67 = vector.load %arg10[%c2_48, %c0_49] : memref<8x128xf32, #tpu.memory_space<vmem>>, vector<1x128xf32>
    %cst_50 = arith.constant dense<0.000000e+00> : vector<8x128xf32>
    %68 = tpu.matmul %64, %66, %cst_50 {dimension_numbers = #tpu.dot_dimension_numbers<[1], [0], [0], [1], [0, 0, 1, 1], [], []>} : vector<8x128xf32>, vector<128x128xf32>, vector<8x128xf32> -> vector<8x128xf32>
    %69 = vector.broadcast %67 : vector<1x128xf32> to vector<8x128xf32>
    %70 = arith.addf %68, %69 : vector<8x128xf32>
    %cst_51 = arith.constant 0.000000e+00 : f32
    %71 = vector.broadcast %cst_51 : f32 to vector<8x128xf32>
    %72 = arith.maximumf %70, %71 : vector<8x128xf32>
    %c3_52 = arith.constant 3 : index
    %c0_53 = arith.constant 0 : index
    %c0_54 = arith.constant 0 : index
    %73 = vector.load %arg9[%c3_52, %c0_53, %c0_54] : memref<8x128x128xf32, #tpu.memory_space<vmem>>, vector<1x128x128xf32>
    %74 = vector.shape_cast %73 : vector<1x128x128xf32> to vector<128x128xf32>
    %c3_55 = arith.constant 3 : index
    %c0_56 = arith.constant 0 : index
    %75 = vector.load %arg10[%c3_55, %c0_56] : memref<8x128xf32, #tpu.memory_space<vmem>>, vector<1x128xf32>
    %cst_57 = arith.constant dense<0.000000e+00> : vector<8x128xf32>
    %76 = tpu.matmul %72, %74, %cst_57 {dimension_numbers = #tpu.dot_dimension_numbers<[1], [0], [0], [1], [0, 0, 1, 1], [], []>} : vector<8x128xf32>, vector<128x128xf32>, vector<8x128xf32> -> vector<8x128xf32>
    %77 = vector.broadcast %75 : vector<1x128xf32> to vector<8x128xf32>
    %78 = arith.addf %76, %77 : vector<8x128xf32>
    %cst_58 = arith.constant 0.000000e+00 : f32
    %79 = vector.broadcast %cst_58 : f32 to vector<8x128xf32>
    %80 = arith.maximumf %78, %79 : vector<8x128xf32>
    %c4_59 = arith.constant 4 : index
    %c0_60 = arith.constant 0 : index
    %c0_61 = arith.constant 0 : index
    %81 = vector.load %arg9[%c4_59, %c0_60, %c0_61] : memref<8x128x128xf32, #tpu.memory_space<vmem>>, vector<1x128x128xf32>
    %82 = vector.shape_cast %81 : vector<1x128x128xf32> to vector<128x128xf32>
    %c4_62 = arith.constant 4 : index
    %c0_63 = arith.constant 0 : index
    %83 = vector.load %arg10[%c4_62, %c0_63] : memref<8x128xf32, #tpu.memory_space<vmem>>, vector<1x128xf32>
    %cst_64 = arith.constant dense<0.000000e+00> : vector<8x128xf32>
    %84 = tpu.matmul %80, %82, %cst_64 {dimension_numbers = #tpu.dot_dimension_numbers<[1], [0], [0], [1], [0, 0, 1, 1], [], []>} : vector<8x128xf32>, vector<128x128xf32>, vector<8x128xf32> -> vector<8x128xf32>
    %85 = vector.broadcast %83 : vector<1x128xf32> to vector<8x128xf32>
    %86 = arith.addf %84, %85 : vector<8x128xf32>
    %cst_65 = arith.constant 0.000000e+00 : f32
    %87 = vector.broadcast %cst_65 : f32 to vector<8x128xf32>
    %88 = arith.maximumf %86, %87 : vector<8x128xf32>
    %c5_66 = arith.constant 5 : index
    %c0_67 = arith.constant 0 : index
    %c0_68 = arith.constant 0 : index
    %89 = vector.load %arg9[%c5_66, %c0_67, %c0_68] : memref<8x128x128xf32, #tpu.memory_space<vmem>>, vector<1x128x128xf32>
    %90 = vector.shape_cast %89 : vector<1x128x128xf32> to vector<128x128xf32>
    %c5_69 = arith.constant 5 : index
    %c0_70 = arith.constant 0 : index
    %91 = vector.load %arg10[%c5_69, %c0_70] : memref<8x128xf32, #tpu.memory_space<vmem>>, vector<1x128xf32>
    %cst_71 = arith.constant dense<0.000000e+00> : vector<8x128xf32>
    %92 = tpu.matmul %88, %90, %cst_71 {dimension_numbers = #tpu.dot_dimension_numbers<[1], [0], [0], [1], [0, 0, 1, 1], [], []>} : vector<8x128xf32>, vector<128x128xf32>, vector<8x128xf32> -> vector<8x128xf32>
    %93 = vector.broadcast %91 : vector<1x128xf32> to vector<8x128xf32>
    %94 = arith.addf %92, %93 : vector<8x128xf32>
    %cst_72 = arith.constant 0.000000e+00 : f32
    %95 = vector.broadcast %cst_72 : f32 to vector<8x128xf32>
    %96 = arith.maximumf %94, %95 : vector<8x128xf32>
    %c6 = arith.constant 6 : index
    %c0_73 = arith.constant 0 : index
    %c0_74 = arith.constant 0 : index
    %97 = vector.load %arg9[%c6, %c0_73, %c0_74] : memref<8x128x128xf32, #tpu.memory_space<vmem>>, vector<1x128x128xf32>
    %98 = vector.shape_cast %97 : vector<1x128x128xf32> to vector<128x128xf32>
    %c6_75 = arith.constant 6 : index
    %c0_76 = arith.constant 0 : index
    %99 = vector.load %arg10[%c6_75, %c0_76] : memref<8x128xf32, #tpu.memory_space<vmem>>, vector<1x128xf32>
    %cst_77 = arith.constant dense<0.000000e+00> : vector<8x128xf32>
    %100 = tpu.matmul %96, %98, %cst_77 {dimension_numbers = #tpu.dot_dimension_numbers<[1], [0], [0], [1], [0, 0, 1, 1], [], []>} : vector<8x128xf32>, vector<128x128xf32>, vector<8x128xf32> -> vector<8x128xf32>
    %101 = vector.broadcast %99 : vector<1x128xf32> to vector<8x128xf32>
    %102 = arith.addf %100, %101 : vector<8x128xf32>
    %cst_78 = arith.constant 0.000000e+00 : f32
    %103 = vector.broadcast %cst_78 : f32 to vector<8x128xf32>
    %104 = arith.maximumf %102, %103 : vector<8x128xf32>
    %c7 = arith.constant 7 : index
    %c0_79 = arith.constant 0 : index
    %c0_80 = arith.constant 0 : index
    %105 = vector.load %arg9[%c7, %c0_79, %c0_80] : memref<8x128x128xf32, #tpu.memory_space<vmem>>, vector<1x128x128xf32>
    %106 = vector.shape_cast %105 : vector<1x128x128xf32> to vector<128x128xf32>
    %c7_81 = arith.constant 7 : index
    %c0_82 = arith.constant 0 : index
    %107 = vector.load %arg10[%c7_81, %c0_82] : memref<8x128xf32, #tpu.memory_space<vmem>>, vector<1x128xf32>
    %cst_83 = arith.constant dense<0.000000e+00> : vector<8x128xf32>
    %108 = tpu.matmul %104, %106, %cst_83 {dimension_numbers = #tpu.dot_dimension_numbers<[1], [0], [0], [1], [0, 0, 1, 1], [], []>} : vector<8x128xf32>, vector<128x128xf32>, vector<8x128xf32> -> vector<8x128xf32>
    %109 = vector.broadcast %107 : vector<1x128xf32> to vector<8x128xf32>
    %110 = arith.addf %108, %109 : vector<8x128xf32>
    %111 = vector.extract_strided_slice %110 {offsets = [0, 0], sizes = [8, 3], strides = [1, 1]} : vector<8x128xf32> to vector<8x3xf32>
    %c0_84 = arith.constant 0 : index
    %c0_85 = arith.constant 0 : index
    %112 = vector.load %arg11[%c0_84, %c0_85] : memref<8x3xf32, #tpu.memory_space<vmem>>, vector<8x3xf32>
    tpu.vector_store %arg11[%c0_84, %c0_85], %111 {strides = array<i32>} : memref<8x3xf32, #tpu.memory_space<vmem>>, vector<8x3xf32>,
    return
  }
  func.func @transform_0(%arg0: i32) -> (i32, i32) {
    %c0_i32 = arith.constant 0 : i32
    %c0_i32_0 = arith.constant 0 : i32
    return %arg0, %c0_i32 : i32, i32
  }
  func.func @transform_1(%arg0: i32) -> (i32, i32) {
    %c0_i32 = arith.constant 0 : i32
    %c0_i32_0 = arith.constant 0 : i32
    %c0_i32_1 = arith.constant 0 : i32
    return %c0_i32, %c0_i32_0 : i32, i32
  }
  func.func @transform_2(%arg0: i32) -> (i32, i32) {
    %c0_i32 = arith.constant 0 : i32
    %c0_i32_0 = arith.constant 0 : i32
    %c0_i32_1 = arith.constant 0 : i32
    return %c0_i32, %c0_i32_0 : i32, i32
  }
  func.func @transform_3(%arg0: i32) -> (i32, i32) {
    %c0_i32 = arith.constant 0 : i32
    %c0_i32_0 = arith.constant 0 : i32
    %c0_i32_1 = arith.constant 0 : i32
    return %c0_i32, %c0_i32_0 : i32, i32
  }
  func.func @transform_4(%arg0: i32) -> (i32, i32) {
    %c0_i32 = arith.constant 0 : i32
    %c0_i32_0 = arith.constant 0 : i32
    %c0_i32_1 = arith.constant 0 : i32
    return %c0_i32, %c0_i32_0 : i32, i32
  }
  func.func @transform_5(%arg0: i32) -> (i32, i32) {
    %c0_i32 = arith.constant 0 : i32
    %c0_i32_0 = arith.constant 0 : i32
    %c0_i32_1 = arith.constant 0 : i32
    return %c0_i32, %c0_i32_0 : i32, i32
  }
  func.func @transform_6(%arg0: i32) -> (i32, i32) {
    %c0_i32 = arith.constant 0 : i32
    %c0_i32_0 = arith.constant 0 : i32
    %c0_i32_1 = arith.constant 0 : i32
    return %c0_i32, %c0_i32_0 : i32, i32
  }
  func.func @transform_7(%arg0: i32) -> (i32, i32) {
    %c0_i32 = arith.constant 0 : i32
    %c0_i32_0 = arith.constant 0 : i32
    %c0_i32_1 = arith.constant 0 : i32
    return %c0_i32, %c0_i32_0 : i32, i32
  }
  func.func @transform_8(%arg0: i32) -> (i32, i32, i32) {
    %c0_i32 = arith.constant 0 : i32
    %c0_i32_0 = arith.constant 0 : i32
    %c0_i32_1 = arith.constant 0 : i32
    %c0_i32_2 = arith.constant 0 : i32
    return %c0_i32, %c0_i32_0, %c0_i32_1 : i32, i32, i32
  }
  func.func @transform_9(%arg0: i32) -> (i32, i32) {
    %c0_i32 = arith.constant 0 : i32
    %c0_i32_0 = arith.constant 0 : i32
    %c0_i32_1 = arith.constant 0 : i32
    return %c0_i32, %c0_i32_0 : i32, i32
  }
  func.func @transform_10(%arg0: i32) -> (i32, i32) {
    %c0_i32 = arith.constant 0 : i32
    %c0_i32_0 = arith.constant 0 : i32
    return %arg0, %c0_i32 : i32, i32
  }
}

</mosaic_0001>

<bundles_post_ra>
// kernel: _lambda_.1
= control target key start
LH: loop header
LB: loop body
LE: loop exit
PB: predicated region body
PF: predicated region fallthrough
CT: control target
= control target key end

     0   :  { %15 = vsyncpa [#allocation3], 0  ;;  %s17904_s0 = inlined_call_operand.vmem [shape: f32[8,1152], index: 0, kind: input, shape index: {}]   ;;  %s17905_s1 = inlined_call_operand.hbm [shape: bf16[1152,896], index: 1, kind: input, shape index: {}]   ;;  %s17906_s2 = inlined_call_operand.hbm [shape: bf16[896,896], index: 2, kind: input, shape index: {}]   ;;  %s17907_s3 = inlined_call_operand.hbm [shape: bf16[896,640], index: 3, kind: input, shape index: {}]   ;;  %s17908_s4 = inlined_call_operand.hbm [shape: bf16[640,384], index: 4, kind: input, shape index: {}]   ;;  %s17909_s5 = inlined_call_operand.hbm [shape: bf16[384,384], index: 5, kind: input, shape index: {}]   ;;  %s17910_s6 = inlined_call_operand.hbm [shape: bf16[384,128], index: 6, kind: input, shape index: {}]   ;;  %s17911_s7 = inlined_call_operand.hbm [shape: f32[6,896], index: 7, kind: input, shape index: {}]   ;;  %s17912_s8 = inlined_call_operand.hbm [shape: f32[8,128,128], index: 8, kind: input, shape index: {}]   ;;  %s17913_s9 = inlined_call_operand.hbm [shape: f32[8,128], index: 9, kind: input, shape index: {}]   ;;  %s17914_s10 = inlined_call_operand.vmem [shape: f32[8,3], index: 10, kind: output, shape index: {}]  }
   0x1   :  { %16 = vsyncpa [#allocation5], 0 }
   0x2   :  { %17 = vsyncpa [#allocation8], 0 }
   0x3   :  { %18 = vsyncpa [#allocation11], 0 }
   0x4   :  { %19 = vsyncpa [#allocation14], 0  ;;  %s17271_s13 = smov [#allocation4]   ;;  %s17272_s15 = smov [#allocation7]  }
   0x5   :  { %s39_s14 = sshll.u32 %s17271_s13, 4  ;;  %s63_s16 = sshll.u32 %s17272_s15, 4  ;;  %s40_s14 = int_to_ptr.vmem [resolvable:$true] %s39_s14  ;;  %s17349_s16 = int_to_ptr.vmem [resolvable:$true] %s63_s16 }
   0x6   :  { %s17063_s19 = scalar_lea.hbm %s17906_s2, 50176 }
   0x7   :  { %p17064_p0 = scmp.ne.s32.totalorder %s17906_s2, %s17063_s19  ;;  %p17067_p1 = scmp.lt.u32.totalorder %s17063_s19, %s17906_s2 }
   0x9   :  { %p17069_p2 = pnand %p17067_p1, %p17064_p0 }
   0xb   :  { %17072 = shalt.err (!%p17069_p2)
}
   0xc   :  { %s17073_s24 = scalar_lea.vmem %s40_s14, 50176  ;;  %p17078_p4 = scmp.lt.s32.totalorder %s40_s14, %s40_s14 }
   0xd   :  { %p17074_p3 = scmp.ne.s32.totalorder %s40_s14, %s17073_s24  ;;  %p17079_p5 = scmp.lt.s32.totalorder %s17073_s24, %s17073_s24 }
   0xf   :  { %p17080_p6 = por %p17079_p5, %p17078_p4 }
  0x11   :  { %p17081_p7 = pnand %p17080_p6, %p17074_p3 }
  0x13   :  { %17084 = shalt.err (!%p17081_p7)
}
  0x14   :  { %s17273_s25 = smov 448   ;;  %s17274_s26 = smov 28  }
  0x15   :  { %45 = dma.hbm_to_vmem [thread:$0]  %s17906_s2, 50176, %s40_s14, [#allocation5], %s17273_s25, %s17273_s25, %s17274_s26  }
  0x16   :  { %s17085_s11 = scalar_lea.hbm %s17908_s4, 15360 }
  0x17   :  { %p17086_p8 = scmp.ne.s32.totalorder %s17908_s4, %s17085_s11  ;;  %p17089_p9 = scmp.lt.u32.totalorder %s17085_s11, %s17908_s4 }
  0x19   :  { %p17091_p10 = pnand %p17089_p9, %p17086_p8 }
  0x1b   :  { %17094 = shalt.err (!%p17091_p10)
}
  0x1c   :  { %s17095_s18 = scalar_lea.vmem %s17349_s16, 15360  ;;  %p17100_p12 = scmp.lt.s32.totalorder %s17349_s16, %s17349_s16 }
  0x1d   :  { %p17096_p11 = scmp.ne.s32.totalorder %s17349_s16, %s17095_s18  ;;  %p17101_p13 = scmp.lt.s32.totalorder %s17095_s18, %s17095_s18 }
  0x1f   :  { %p17102_p0 = por %p17101_p13, %p17100_p12 }
  0x21   :  { %p17103_p1 = pnand %p17102_p0, %p17096_p11 }
  0x23   :  { %17106 = shalt.err (!%p17103_p1)
}
  0x24   :  { %s17275_s2 = smov 192   ;;  %s17276_s14 = smov 12  }
  0x25   :  { %69 = dma.hbm_to_vmem [thread:$0]  %s17908_s4, 15360, %s17349_s16, [#allocation8], %s17275_s2, %s17275_s2, %s17276_s14  }
  0x26   :  { %s17277_s21 = smov [#allocation10]   ;;  %s17107_s27 = scalar_lea.hbm %s17910_s6, 3072 }
  0x27   :  { %s87_s22 = sshll.u32 %s17277_s21, 4  ;;  %p17108_p2 = scmp.ne.s32.totalorder %s17910_s6, %s17107_s27  ;;  %s88_s22 = int_to_ptr.vmem [resolvable:$true] %s87_s22 }
  0x28   :  { %p17111_p3 = scmp.lt.u32.totalorder %s17107_s27, %s17910_s6 }
  0x2a   :  { %p17113_p4 = pnand %p17111_p3, %p17108_p2 }
  0x2c   :  { %17116 = shalt.err (!%p17113_p4)
}
  0x2d   :  { %s17117_s12 = scalar_lea.vmem %s88_s22, 3072  ;;  %p17122_p6 = scmp.lt.s32.totalorder %s88_s22, %s88_s22 }
  0x2e   :  { %p17118_p5 = scmp.ne.s32.totalorder %s88_s22, %s17117_s12  ;;  %p17123_p7 = scmp.lt.s32.totalorder %s17117_s12, %s17117_s12 }
  0x30   :  { %p17124_p8 = por %p17123_p7, %p17122_p6 }
  0x32   :  { %p17125_p9 = pnand %p17124_p8, %p17118_p5 }
  0x34   :  { %17128 = shalt.err (!%p17125_p9)
}
  0x35   :  { %s17278_s4 = smov 64   ;;  %s17279_s16 = smov 4  }
  0x36   :  { %93 = dma.hbm_to_vmem [thread:$0]  %s17910_s6, 3072, %s88_s22, [#allocation11], %s17278_s4, %s17278_s4, %s17279_s16  }
  0x37   :  { %s17280_s17 = smov [#allocation13]   ;;  %s17129_s21 = scalar_lea.hbm %s17912_s8, 16384 }
  0x38   :  { %s109_s18 = sshll.u32 %s17280_s17, 4  ;;  %p17130_p10 = scmp.ne.s32.totalorder %s17912_s8, %s17129_s21  ;;  %s110_s18 = int_to_ptr.vmem [resolvable:$true] %s109_s18 }
  0x39   :  { %p17133_p11 = scmp.lt.u32.totalorder %s17129_s21, %s17912_s8 }
  0x3b   :  { %p17135_p12 = pnand %p17133_p11, %p17130_p10 }
  0x3d   :  { %17138 = shalt.err (!%p17135_p12)
}
  0x3e   :  { %s17139_s29 = scalar_lea.vmem %s110_s18, 16384  ;;  %p17144_p0 = scmp.lt.s32.totalorder %s110_s18, %s110_s18 }
  0x3f   :  { %p17140_p13 = scmp.ne.s32.totalorder %s110_s18, %s17139_s29  ;;  %p17145_p1 = scmp.lt.s32.totalorder %s17139_s29, %s17139_s29 }
  0x41   :  { %p17146_p2 = por %p17145_p1, %p17144_p0 }
  0x43   :  { %p17147_p3 = pnand %p17146_p2, %p17140_p13 }
  0x45   :  { %17150 = shalt.err (!%p17147_p3)
}
  0x46   :  { %s17281_s6 = smov 128   ;;  %s17282_s22 = smov 8  }
  0x47   :  { %115 = dma.hbm_to_vmem [thread:$0]  %s17912_s8, 16384, %s110_s18, [#allocation14], %s17281_s6, %s17281_s6, %s17282_s22  }
  0x48   :  { %s17283_s12 = smov [#allocation2]   ;;  %s17284_s16 = smov [#allocation6]  }
  0x49   :  { %s27_s4 = sshll.u32 %s17283_s12, 4  ;;  %s51_s13 = sshll.u32 %s17284_s16, 4  ;;  %s28_s4 = int_to_ptr.vmem [resolvable:$true] %s27_s4  ;;  %s17410_s13 = int_to_ptr.vmem [resolvable:$true] %s51_s13 }
  0x4a   :  { %s17151_s19 = scalar_lea.hbm %s17905_s1, 64512 }
  0x4b   :  { %p17152_p4 = scmp.ne.s32.totalorder %s17905_s1, %s17151_s19  ;;  %p17155_p5 = scmp.lt.u32.totalorder %s17151_s19, %s17905_s1 }
  0x4d   :  { %p17157_p6 = pnand %p17155_p5, %p17152_p4 }
  0x4f   :  { %17160 = shalt.err (!%p17157_p6)
}
  0x50   :  { %s17161_s8 = scalar_lea.vmem %s28_s4, 64512  ;;  %p17166_p8 = scmp.lt.s32.totalorder %s28_s4, %s28_s4 }
  0x51   :  { %p17162_p7 = scmp.ne.s32.totalorder %s28_s4, %s17161_s8  ;;  %p17167_p9 = scmp.lt.s32.totalorder %s17161_s8, %s17161_s8 }
  0x53   :  { %p17168_p10 = por %p17167_p9, %p17166_p8 }
  0x55   :  { %p17169_p11 = pnand %p17168_p10, %p17162_p7 }
  0x57   :  { %17172 = shalt.err (!%p17169_p11)
}
  0x58   :  { %33 = dma.hbm_to_vmem [thread:$0]  %s17905_s1, 64512, %s28_s4, [#allocation3], %s17273_s25, %s17273_s25, %s17274_s26  }
  0x59   :  { %s17173_s6 = scalar_lea.hbm %s17907_s3, 35840 }
  0x5a   :  { %p17174_p12 = scmp.ne.s32.totalorder %s17907_s3, %s17173_s6  ;;  %p17177_p13 = scmp.lt.u32.totalorder %s17173_s6, %s17907_s3 }
  0x5c   :  { %p17179_p0 = pnand %p17177_p13, %p17174_p12 }
  0x5e   :  { %17182 = shalt.err (!%p17179_p0)
}
  0x5f   :  { %s17183_s16 = scalar_lea.vmem %s17410_s13, 35840  ;;  %p17188_p2 = scmp.lt.s32.totalorder %s17410_s13, %s17410_s13 }
  0x60   :  { %p17184_p1 = scmp.ne.s32.totalorder %s17410_s13, %s17183_s16  ;;  %p17189_p3 = scmp.lt.s32.totalorder %s17183_s16, %s17183_s16 }
  0x62   :  { %p17190_p4 = por %p17189_p3, %p17188_p2 }
  0x64   :  { %p17191_p5 = pnand %p17190_p4, %p17184_p1 }
  0x66   :  { %17194 = shalt.err (!%p17191_p5)
}
  0x67   :  { %s17285_s1 = smov 320   ;;  %s17286_s25 = smov 20  }
  0x68   :  { %57 = dma.hbm_to_vmem [thread:$0]  %s17907_s3, 35840, %s17410_s13, [#allocation5], %s17285_s1, %s17285_s1, %s17286_s25  }
  0x69   :  { %s17287_s15 = smov [#allocation9]   ;;  %s17288_s19 = smov [#allocation12]  }
  0x6a   :  { %s75_s17 = sshll.u32 %s17287_s15, 4  ;;  %s100_s20 = sshll.u32 %s17288_s19, 4  ;;  %s76_s17 = int_to_ptr.vmem [resolvable:$true] %s75_s17  ;;  %s101_s20 = int_to_ptr.vmem [resolvable:$true] %s100_s20 }
  0x6b   :  { %s17195_s24 = scalar_lea.hbm %s17909_s5, 9216 }
  0x6c   :  { %p17196_p6 = scmp.ne.s32.totalorder %s17909_s5, %s17195_s24  ;;  %p17199_p7 = scmp.lt.u32.totalorder %s17195_s24, %s17909_s5 }
  0x6e   :  { %p17201_p8 = pnand %p17199_p7, %p17196_p6 }
  0x70   :  { %17204 = shalt.err (!%p17201_p8)
}
  0x71   :  { %s17205_s3 = scalar_lea.vmem %s76_s17, 9216  ;;  %p17210_p10 = scmp.lt.s32.totalorder %s76_s17, %s76_s17 }
  0x72   :  { %p17206_p9 = scmp.ne.s32.totalorder %s76_s17, %s17205_s3  ;;  %p17211_p11 = scmp.lt.s32.totalorder %s17205_s3, %s17205_s3 }
  0x74   :  { %p17212_p12 = por %p17211_p11, %p17210_p10 }
  0x76   :  { %p17213_p13 = pnand %p17212_p12, %p17206_p9 }
  0x78   :  { %17216 = shalt.err (!%p17213_p13)
}
  0x79   :  { %81 = dma.hbm_to_vmem [thread:$0]  %s17909_s5, 9216, %s76_s17, [#allocation8], %s17275_s2, %s17275_s2, %s17276_s14  }
  0x7a   :  { %s17217_s30 = scalar_lea.hbm %s17911_s7, 896 }
  0x7b   :  { %p17218_p0 = scmp.ne.s32.totalorder %s17911_s7, %s17217_s30  ;;  %p17221_p1 = scmp.lt.u32.totalorder %s17217_s30, %s17911_s7 }
  0x7d   :  { %p17223_p2 = pnand %p17221_p1, %p17218_p0 }
  0x7f   :  { %17226 = shalt.err (!%p17223_p2)
}
  0x80   :  { %s17227_s25 = scalar_lea.vmem %s101_s20, 896  ;;  %p17232_p4 = scmp.lt.s32.totalorder %s101_s20, %s101_s20 }
  0x81   :  { %p17228_p3 = scmp.ne.s32.totalorder %s101_s20, %s17227_s25  ;;  %p17233_p5 = scmp.lt.s32.totalorder %s17227_s25, %s17227_s25 }
  0x83   :  { %p17234_p6 = por %p17233_p5, %p17232_p4 }
  0x85   :  { %p17235_p7 = pnand %p17234_p6, %p17228_p3 }
  0x87   :  { %17238 = shalt.err (!%p17235_p7)
}
  0x88   :  { %103 = dma.hbm_to_vmem [thread:$0]  %s17911_s7, 896, %s101_s20, [#allocation11]  }
  0x89   :  { %s17289_s14 = smov [#allocation15]   ;;  %s17239_s17 = scalar_lea.hbm %s17913_s9, 128 }
  0x8a   :  { %s122_s26 = sshll.u32 %s17289_s14, 4  ;;  %p17240_p8 = scmp.ne.s32.totalorder %s17913_s9, %s17239_s17  ;;  %s123_s26 = int_to_ptr.vmem [resolvable:$true] %s122_s26 }
  0x8b   :  { %p17243_p9 = scmp.lt.u32.totalorder %s17239_s17, %s17913_s9 }
  0x8d   :  { %p17245_p10 = pnand %p17243_p9, %p17240_p8 }
  0x8f   :  { %17248 = shalt.err (!%p17245_p10)
}
  0x90   :  { %s17249_s8 = scalar_lea.vmem %s123_s26, 128  ;;  %p17254_p12 = scmp.lt.s32.totalorder %s123_s26, %s123_s26 }
  0x91   :  { %p17250_p11 = scmp.ne.s32.totalorder %s123_s26, %s17249_s8  ;;  %p17255_p13 = scmp.lt.s32.totalorder %s17249_s8, %s17249_s8 }
  0x93   :  { %p17256_p0 = por %p17255_p13, %p17254_p12 }
  0x95   :  { %p17257_p1 = pnand %p17256_p0, %p17250_p11 }
  0x97   :  { %17260 = shalt.err (!%p17257_p1)
}
  0x98   :  { %125 = dma.hbm_to_vmem [thread:$0]  %s17913_s9, 128, %s123_s26, [#allocation14]  }
  0x99   :  { %17261 = dma.done.wait [#allocation3], 64512  }
  0x9a   :  { %17262 = vsyncadd [#allocation3], 4294902784 }
  0x9b   :  { %17263 = dma.done.wait [#allocation5], 86016  }
  0x9c   :  { %17264 = vsyncadd [#allocation5], 4294881280 }
  0x9d   :  { %17265 = dma.done.wait [#allocation8], 24576  }
  0x9e   :  { %17266 = vsyncadd [#allocation8], 4294942720 }
  0x9f   :  { %17267 = dma.done.wait [#allocation11], 3968  }
  0xa0   :  { %17268 = vsyncadd [#allocation11], 4294963328 }
  0xa1   :  { %17269 = dma.done.wait [#allocation14], 16512  }
  0xa2   :  { %17270 = vsyncadd [#allocation14], 4294950784  ;;  %v15111_v0 = vld [vmem:[#allocation2 + $0x4] ss:$28 sps:$4 sm:$0xff]   ;;  %v15113_v1 = vld [vmem:[#allocation2 + $0xc] ss:$28 sps:$4 sm:$0xff]  }
  0xa3   :  { %3379 = vmatprep.subr.bf16.mxu0 %v15111_v0  ;;  %v15115_v2 = vld [vmem:[#allocation2] ss:$28 sps:$4 sm:$0xff]   ;;  %v15116_v3 = vld [vmem:[#allocation2 + $0x8] ss:$28 sps:$4 sm:$0xff]   ;;  %3584 = vmatprep.subr.bf16.mxu1 %v15113_v1  ;;  %v15121_v6 = vld [vmem:[#allocation2 + $0x38] ss:$28 sps:$4 sm:$0xff]  }
  0xa4   :  { %v15117_v4 = vld [vmem:[#allocation2 + $0x3c] ss:$28 sps:$4 sm:$0xff]   ;;  %3380 = vmatpush1.bf16.msra.mxu0 %v15115_v2  ;;  %3585 = vmatpush1.bf16.msra.mxu1 %v15116_v3  ;;  %v15119_v5 = vld [vmem:[#allocation2 + $0x44] ss:$28 sps:$4 sm:$0xff]   ;;  %v15123_v8 = vld [vmem:[#allocation2 + $0x74] ss:$28 sps:$4 sm:$0xff]  }
  0xa5   :  { %3381 = vmatprep.subr.bf16.mxu0 %v15117_v4  ;;  %v15122_v7 = vld [vmem:[#allocation2 + $0x40] ss:$28 sps:$4 sm:$0xff]   ;;  %3586 = vmatprep.subr.bf16.mxu1 %v15119_v5  ;;  %v15127_v10 = vld [vmem:[#allocation2 + $0x70] ss:$28 sps:$4 sm:$0xff]   ;;  %v15128_v11 = vld [vmem:[#allocation2 + $0x78] ss:$28 sps:$4 sm:$0xff]  }
  0xa6   :  { %v15125_v9 = vld [vmem:[#allocation2 + $0x7c] ss:$28 sps:$4 sm:$0xff]   ;;  %v15129_v12 = vld [vmem:[#allocation2 + $0xac] ss:$28 sps:$4 sm:$0xff]   ;;  %v15131_v13 = vld [vmem:[#allocation2 + $0xb4] ss:$28 sps:$4 sm:$0xff]  }
  0xa7   :  { %v15133_v14 = vld [vmem:[#allocation2 + $0xa8] ss:$28 sps:$4 sm:$0xff]   ;;  %v15134_v15 = vld [vmem:[#allocation2 + $0xb0] ss:$28 sps:$4 sm:$0xff]   ;;  %v15139_v18 = vld [vmem:[#allocation2 + $0xe0] ss:$28 sps:$4 sm:$0xff]  }
  0xa8   :  { %3382 = vmatpush1.bf16.msra.mxu0 %v15121_v6  ;;  %3587 = vmatpush1.bf16.msra.mxu1 %v15122_v7  ;;  %v15135_v16 = vld [vmem:[#allocation2 + $0xe4] ss:$28 sps:$4 sm:$0xff]   ;;  %v15137_v17 = vld [vmem:[#allocation2 + $0xec] ss:$28 sps:$4 sm:$0xff]   ;;  %v15141_v20 = vld [vmem:[#allocation2 + $0x11c] ss:$28 sps:$4 sm:$0xff]  }
  0xa9   :  { %3383 = vmatprep.subr.bf16.mxu0 %v15123_v8  ;;  %3588 = vmatprep.subr.bf16.mxu1 %v15125_v9  ;;  %v15140_v19 = vld [vmem:[#allocation2 + $0xe8] ss:$28 sps:$4 sm:$0xff]   ;;  %v15145_v22 = vld [vmem:[#allocation2 + $0x118] ss:$28 sps:$4 sm:$0xff]   ;;  %v15146_v23 = vld [vmem:[#allocation2 + $0x120] ss:$28 sps:$4 sm:$0xff]  }
  0xaa   :  { %v15143_v21 = vld [vmem:[#allocation2 + $0x124] ss:$28 sps:$4 sm:$0xff]   ;;  %v15147_v24 = vld [vmem:[#allocation2 + $0x154] ss:$28 sps:$4 sm:$0xff]   ;;  %v15149_v25 = vld [vmem:[#allocation2 + $0x15c] ss:$28 sps:$4 sm:$0xff]  }
  0xab   :  { %v15151_v26 = vld [vmem:[#allocation2 + $0x150] ss:$28 sps:$4 sm:$0xff]   ;;  %v15152_v27 = vld [vmem:[#allocation2 + $0x158] ss:$28 sps:$4 sm:$0xff]   ;;  %v15157_v30 = vld [vmem:[#allocation2 + $0x188] ss:$28 sps:$4 sm:$0xff]  }
  0xac   :  { %3384 = vmatpush1.bf16.msra.mxu0 %v15127_v10  ;;  %3589 = vmatpush1.bf16.msra.mxu1 %v15128_v11  ;;  %v15153_v28 = vld [vmem:[#allocation2 + $0x18c] ss:$28 sps:$4 sm:$0xff]   ;;  %v15155_v29 = vld [vmem:[#allocation2 + $0x194] ss:$28 sps:$4 sm:$0xff]   ;;  %v15159_v32 = vld [vmem:[#allocation2 + $0x1c4] ss:$28 sps:$4 sm:$0xff]  }
  0xad   :  { %3385 = vmatprep.subr.bf16.mxu0 %v15129_v12  ;;  %3590 = vmatprep.subr.bf16.mxu1 %v15131_v13  ;;  %v15158_v31 = vld [vmem:[#allocation2 + $0x190] ss:$28 sps:$4 sm:$0xff]   ;;  %v15163_v34 = vld [vmem:[#allocation2 + $0x1c0] ss:$28 sps:$4 sm:$0xff]   ;;  %v15164_v35 = vld [vmem:[#allocation2 + $0x1c8] ss:$28 sps:$4 sm:$0xff]  }
  0xae   :  { %v15161_v33 = vld [vmem:[#allocation2 + $0x1cc] ss:$28 sps:$4 sm:$0xff]   ;;  %v15165_v36 = vld [vmem:[#allocation2 + $0x1fc] ss:$28 sps:$4 sm:$0xff]   ;;  %v15167_v37 = vld [vmem:[#allocation2 + $0x204] ss:$28 sps:$4 sm:$0xff]  }
  0xaf   :  { %v15169_v38 = vld [vmem:[#allocation2 + $0x1f8] ss:$28 sps:$4 sm:$0xff]   ;;  %v15170_v39 = vld [vmem:[#allocation2 + $0x200] ss:$28 sps:$4 sm:$0xff]   ;;  %v15175_v42 = vld [vmem:[#allocation2 + $0x230] ss:$28 sps:$4 sm:$0xff]  }
  0xb0   :  { %3386 = vmatpush1.bf16.msra.mxu0 %v15133_v14  ;;  %3591 = vmatpush1.bf16.msra.mxu1 %v15134_v15  ;;  %v15171_v40 = vld [vmem:[#allocation2 + $0x234] ss:$28 sps:$4 sm:$0xff]   ;;  %v15173_v41 = vld [vmem:[#allocation2 + $0x23c] ss:$28 sps:$4 sm:$0xff]   ;;  %v15177_v44 = vld [vmem:[#allocation2 + $0x26c] ss:$28 sps:$4 sm:$0xff]  }
  0xb1   :  { %3387 = vmatprep.subr.bf16.mxu0 %v15135_v16  ;;  %3592 = vmatprep.subr.bf16.mxu1 %v15137_v17  ;;  %v15176_v43 = vld [vmem:[#allocation2 + $0x238] ss:$28 sps:$4 sm:$0xff]   ;;  %v155_v46 = vld [vmem:[%s17904_s0 + $0x8] sm:$0xff]  ;;  %v15183_v50 = vld [vmem:[#allocation2 + $0x2a4] ss:$28 sps:$4 sm:$0xff]   ;;  %vm17292_vm0 = vmmov 0  }
  0xb2   :  { %v15179_v45 = vld [vmem:[#allocation2 + $0x274] ss:$28 sps:$4 sm:$0xff]   ;;  %v15181_v47 = vld [vmem:[#allocation2 + $0x268] ss:$28 sps:$4 sm:$0xff]   ;;  %v17486_v48 = vpack.c.bf16 %v155_v46, %v155_v46  ;;  %v15187_v52 = vld [vmem:[#allocation2 + $0x2a0] ss:$28 sps:$4 sm:$0xff]  }
  0xb3   :  { %v15182_v49 = vld [vmem:[#allocation2 + $0x270] ss:$28 sps:$4 sm:$0xff]   ;;  %v15188_v53 = vld [vmem:[#allocation2 + $0x2a8] ss:$28 sps:$4 sm:$0xff]   ;;  %v15189_v54 = vld [vmem:[#allocation2 + $0x2dc] ss:$28 sps:$4 sm:$0xff]  }
  0xb4   :  { %3388 = vmatpush1.bf16.msra.mxu0 %v15139_v18  ;;  %3593 = vmatpush1.bf16.msra.mxu1 %v15140_v19  ;;  %v15185_v51 = vld [vmem:[#allocation2 + $0x2ac] ss:$28 sps:$4 sm:$0xff]   ;;  %v15191_v55 = vld [vmem:[#allocation2 + $0x2e4] ss:$28 sps:$4 sm:$0xff]   ;;  %v15193_v56 = vld [vmem:[#allocation2 + $0x2d8] ss:$28 sps:$4 sm:$0xff]  }
  0xb5   :  { %3389 = vmatprep.subr.bf16.mxu0 %v15141_v20  ;;  %3594 = vmatprep.subr.bf16.mxu1 %v15143_v21  ;;  %v15194_v57 = vld [vmem:[#allocation2 + $0x2e0] ss:$28 sps:$4 sm:$0xff]   ;;  %v15195_v58 = vld [vmem:[#allocation2 + $0x314] ss:$28 sps:$4 sm:$0xff]   ;;  %v15201_v62 = vld [vmem:[#allocation2 + $0x34c] ss:$28 sps:$4 sm:$0xff]  }
  0xb6   :  { %3411 = vmatprep.mubr.bf16.mxu0 %v17486_v48  ;;  %3616 = vmatprep.mubr.bf16.mxu1 %v17486_v48  ;;  %v15197_v59 = vld [vmem:[#allocation2 + $0x31c] ss:$28 sps:$4 sm:$0xff]   ;;  %v15199_v60 = vld [vmem:[#allocation2 + $0x310] ss:$28 sps:$4 sm:$0xff]   ;;  %v15205_v0 = vld [vmem:[#allocation2 + $0x348] ss:$28 sps:$4 sm:$0xff]  }
  0xb7   :  { %v15200_v61 = vld [vmem:[#allocation2 + $0x318] ss:$28 sps:$4 sm:$0xff]   ;;  %v15206_v1 = vld [vmem:[#allocation2 + $0x350] ss:$28 sps:$4 sm:$0xff]   ;;  %v154_v2 = vld [vmem:[%s17904_s0] sm:$0xff]  ;;  %vm12447_vm1 = vcmask 23552  }
  0xb8   :  { %3390 = vmatpush1.bf16.msra.mxu0 %v15145_v22  ;;  %3595 = vmatpush1.bf16.msra.mxu1 %v15146_v23  ;;  %v15203_v63 = vld [vmem:[#allocation2 + $0x354] ss:$28 sps:$4 sm:$0xff]   ;;  %v15209_v3 = vld [vmem:[#allocation2 + $0x384] ss:$28 sps:$4 sm:$0xff]   ;;  %v15212_v4 = vld [vmem:[#allocation2 + $0x38c] ss:$28 sps:$4 sm:$0xff]   ;;  %v17493_v5 = vpack.c.bf16 %v154_v2, %v154_v2 }
  0xb9   :  { %3391 = vmatprep.subr.bf16.mxu0 %v15147_v24  ;;  %3596 = vmatprep.subr.bf16.mxu1 %v15149_v25  ;;  %v15207_v6 = vld [vmem:[#allocation2 + $0x380] ss:$28 sps:$4 sm:$0xff]   ;;  %v15210_v7 = vld [vmem:[#allocation2 + $0x388] ss:$28 sps:$4 sm:$0xff]   ;;  %v15213_v10 = vld [vmem:[#allocation2 + $0x3b8] ss:$28 sps:$4 sm:$0xff]  }
  0xba   :  { %v15215_v8 = vld [vmem:[#allocation2 + $0x3bc] ss:$28 sps:$4 sm:$0xff]   ;;  %v15218_v9 = vld [vmem:[#allocation2 + $0x3c4] ss:$28 sps:$4 sm:$0xff]   ;;  %v15221_v12 = vld [vmem:[#allocation2 + $0x3f4] ss:$28 sps:$4 sm:$0xff]  }
  0xbb   :  { %v15216_v11 = vld [vmem:[#allocation2 + $0x3c0] ss:$28 sps:$4 sm:$0xff]   ;;  %v15219_v14 = vld [vmem:[#allocation2 + $0x3f0] ss:$28 sps:$4 sm:$0xff]   ;;  %v15222_v15 = vld [vmem:[#allocation2 + $0x3f8] ss:$28 sps:$4 sm:$0xff]  }
  0xbc   :  { %3392 = vmatpush1.bf16.msra.mxu0 %v15151_v26  ;;  %3597 = vmatpush1.bf16.msra.mxu1 %v15152_v27  ;;  %v15224_v13 = vld [vmem:[#allocation2 + $0x3fc] ss:$28 sps:$4 sm:$0xff]   ;;  %v15227_v16 = vld [vmem:[#allocation2 + $0x42c] ss:$28 sps:$4 sm:$0xff]   ;;  %v15230_v17 = vld [vmem:[#allocation2 + $0x434] ss:$28 sps:$4 sm:$0xff]  }
  0xbd   :  { %3393 = vmatprep.subr.bf16.mxu0 %v15153_v28  ;;  %3598 = vmatprep.subr.bf16.mxu1 %v15155_v29  ;;  %v15225_v18 = vld [vmem:[#allocation2 + $0x428] ss:$28 sps:$4 sm:$0xff]   ;;  %v15228_v19 = vld [vmem:[#allocation2 + $0x430] ss:$28 sps:$4 sm:$0xff]   ;;  %v15231_v22 = vld [vmem:[#allocation2 + $0x460] ss:$28 sps:$4 sm:$0xff]  }
  0xbe   :  { %v15233_v20 = vld [vmem:[#allocation2 + $0x464] ss:$28 sps:$4 sm:$0xff]   ;;  %v15236_v21 = vld [vmem:[#allocation2 + $0x46c] ss:$28 sps:$4 sm:$0xff]   ;;  %v15239_v24 = vld [vmem:[#allocation2 + $0x49c] ss:$28 sps:$4 sm:$0xff]  }
  0xbf   :  { %v15234_v23 = vld [vmem:[#allocation2 + $0x468] ss:$28 sps:$4 sm:$0xff]   ;;  %v15237_v26 = vld [vmem:[#allocation2 + $0x498] ss:$28 sps:$4 sm:$0xff]   ;;  %v15240_v27 = vld [vmem:[#allocation2 + $0x4a0] ss:$28 sps:$4 sm:$0xff]  }
  0xc0   :  { %3394 = vmatpush1.bf16.msra.mxu0 %v15157_v30  ;;  %3599 = vmatpush1.bf16.msra.mxu1 %v15158_v31  ;;  %v15242_v25 = vld [vmem:[#allocation2 + $0x4a4] ss:$28 sps:$4 sm:$0xff]   ;;  %v15245_v28 = vld [vmem:[#allocation2 + $0x4d4] ss:$28 sps:$4 sm:$0xff]   ;;  %v15248_v29 = vld [vmem:[#allocation2 + $0x4dc] ss:$28 sps:$4 sm:$0xff]  }
  0xc1   :  { %3395 = vmatprep.subr.bf16.mxu0 %v15159_v32  ;;  %3600 = vmatprep.subr.bf16.mxu1 %v15161_v33  ;;  %v157_v30 = vld [vmem:[%s17904_s0 + $0x18] sm:$0xff]  ;;  %v15243_v31 = vld [vmem:[#allocation2 + $0x4d0] ss:$28 sps:$4 sm:$0xff]  }
  0xc2   :  { %v17500_v32 = vpack.c.bf16 %v157_v30, %v157_v30  ;;  %v15246_v33 = vld [vmem:[#allocation2 + $0x4d8] ss:$28 sps:$4 sm:$0xff]   ;;  %v15327_v30 = vld [vmem:[#allocation2 + $0x7e0] ss:$28 sps:$4 sm:$0xff]  }
  0xc3   :  { %v15269_v46 = vld [vmem:[#allocation2 + $0x5b4] ss:$28 sps:$4 sm:$0xff]  }
  0xc4   :  { %3396 = vmatpush1.bf16.msra.mxu0 %v15163_v34  ;;  %3601 = vmatpush1.bf16.msra.mxu1 %v15164_v35  ;;  %v15251_v34 = vld [vmem:[#allocation2 + $0x50c] ss:$28 sps:$4 sm:$0xff]   ;;  %v15254_v35 = vld [vmem:[#allocation2 + $0x514] ss:$28 sps:$4 sm:$0xff]  }
  0xc5   :  { %3397 = vmatprep.subr.bf16.mxu0 %v15165_v36  ;;  %3602 = vmatprep.subr.bf16.mxu1 %v15167_v37  ;;  %v15249_v36 = vld [vmem:[#allocation2 + $0x508] ss:$28 sps:$4 sm:$0xff]   ;;  %v15252_v37 = vld [vmem:[#allocation2 + $0x510] ss:$28 sps:$4 sm:$0xff]   ;;  %v15294_v2 = vld [vmem:[#allocation2 + $0x698] ss:$28 sps:$4 sm:$0xff]  }
  0xc8   :  { %3398 = vmatpush1.bf16.msra.mxu0 %v15169_v38  ;;  %3603 = vmatpush1.bf16.msra.mxu1 %v15170_v39  ;;  %v15257_v38 = vld [vmem:[#allocation2 + $0x544] ss:$28 sps:$4 sm:$0xff]   ;;  %v15260_v39 = vld [vmem:[#allocation2 + $0x54c] ss:$28 sps:$4 sm:$0xff]  }
  0xc9   :  { %3399 = vmatprep.subr.bf16.mxu0 %v15171_v40  ;;  %3604 = vmatprep.subr.bf16.mxu1 %v15173_v41  ;;  %v15255_v40 = vld [vmem:[#allocation2 + $0x540] ss:$28 sps:$4 sm:$0xff]   ;;  %v15258_v41 = vld [vmem:[#allocation2 + $0x548] ss:$28 sps:$4 sm:$0xff]  }
  0xcc   :  { %3400 = vmatpush1.bf16.msra.mxu0 %v15175_v42  ;;  %3605 = vmatpush1.bf16.msra.mxu1 %v15176_v43  ;;  %v15263_v42 = vld [vmem:[#allocation2 + $0x57c] ss:$28 sps:$4 sm:$0xff]   ;;  %v15266_v43 = vld [vmem:[#allocation2 + $0x584] ss:$28 sps:$4 sm:$0xff]  }
  0xcd   :  { %3401 = vmatprep.subr.bf16.mxu0 %v15177_v44  ;;  %3606 = vmatprep.subr.bf16.mxu1 %v15179_v45  ;;  %v15261_v44 = vld [vmem:[#allocation2 + $0x578] ss:$28 sps:$4 sm:$0xff]   ;;  %v15264_v45 = vld [vmem:[#allocation2 + $0x580] ss:$28 sps:$4 sm:$0xff]  }
  0xd0   :  { %3402 = vmatpush1.bf16.msra.mxu0 %v15181_v47  ;;  %3607 = vmatpush1.bf16.msra.mxu1 %v15182_v49  ;;  %v15272_v47 = vld [vmem:[#allocation2 + $0x5bc] ss:$28 sps:$4 sm:$0xff]   ;;  %v15267_v49 = vld [vmem:[#allocation2 + $0x5b0] ss:$28 sps:$4 sm:$0xff]  }
  0xd1   :  { %3403 = vmatprep.subr.bf16.mxu0 %v15183_v50  ;;  %3608 = vmatprep.subr.bf16.mxu1 %v15185_v51  ;;  %v15270_v50 = vld [vmem:[#allocation2 + $0x5b8] ss:$28 sps:$4 sm:$0xff]   ;;  %v15275_v51 = vld [vmem:[#allocation2 + $0x5ec] ss:$28 sps:$4 sm:$0xff]  }
  0xd4   :  { %3404 = vmatpush1.bf16.msra.mxu0 %v15187_v52  ;;  %3609 = vmatpush1.bf16.msra.mxu1 %v15188_v53  ;;  %v15278_v52 = vld [vmem:[#allocation2 + $0x5f4] ss:$28 sps:$4 sm:$0xff]   ;;  %v15273_v53 = vld [vmem:[#allocation2 + $0x5e8] ss:$28 sps:$4 sm:$0xff]  }
  0xd5   :  { %3405 = vmatprep.subr.bf16.mxu0 %v15189_v54  ;;  %3610 = vmatprep.subr.bf16.mxu1 %v15191_v55  ;;  %v15276_v54 = vld [vmem:[#allocation2 + $0x5f0] ss:$28 sps:$4 sm:$0xff]   ;;  %v15281_v55 = vld [vmem:[#allocation2 + $0x624] ss:$28 sps:$4 sm:$0xff]  }
  0xd8   :  { %3406 = vmatpush1.bf16.msra.mxu0 %v15193_v56  ;;  %3611 = vmatpush1.bf16.msra.mxu1 %v15194_v57  ;;  %v15284_v56 = vld [vmem:[#allocation2 + $0x62c] ss:$28 sps:$4 sm:$0xff]   ;;  %v15279_v57 = vld [vmem:[#allocation2 + $0x620] ss:$28 sps:$4 sm:$0xff]  }
  0xd9   :  { %3407 = vmatprep.subr.bf16.mxu0 %v15195_v58  ;;  %3612 = vmatprep.subr.bf16.mxu1 %v15197_v59  ;;  %v15282_v58 = vld [vmem:[#allocation2 + $0x628] ss:$28 sps:$4 sm:$0xff]   ;;  %v15287_v59 = vld [vmem:[#allocation2 + $0x65c] ss:$28 sps:$4 sm:$0xff]  }
  0xdc   :  { %3408 = vmatpush1.bf16.msra.mxu0 %v15199_v60  ;;  %3613 = vmatpush1.bf16.msra.mxu1 %v15200_v61  ;;  %v15290_v60 = vld [vmem:[#allocation2 + $0x664] ss:$28 sps:$4 sm:$0xff]   ;;  %v15285_v61 = vld [vmem:[#allocation2 + $0x658] ss:$28 sps:$4 sm:$0xff]  }
  0xdd   :  { %3409 = vmatprep.subr.bf16.mxu0 %v15201_v62  ;;  %3614 = vmatprep.subr.bf16.mxu1 %v15203_v63  ;;  %v15288_v62 = vld [vmem:[#allocation2 + $0x660] ss:$28 sps:$4 sm:$0xff]   ;;  %v15293_v63 = vld [vmem:[#allocation2 + $0x694] ss:$28 sps:$4 sm:$0xff]  }
  0xe0   :  { %3410 = vmatpush1.bf16.msra.mxu0 %v15205_v0  ;;  %3615 = vmatpush1.bf16.msra.mxu1 %v15206_v1  ;;  %v15296_v0 = vld [vmem:[#allocation2 + $0x69c] ss:$28 sps:$4 sm:$0xff]   ;;  %v15291_v1 = vld [vmem:[#allocation2 + $0x690] ss:$28 sps:$4 sm:$0xff]  }
  0xe1   :  { %3420 = vmatprep.subr.bf16.mxu0 %v15209_v3  ;;  %3625 = vmatprep.subr.bf16.mxu1 %v15212_v4  ;;  %v15299_v3 = vld [vmem:[#allocation2 + $0x6cc] ss:$28 sps:$4 sm:$0xff]   ;;  %v15302_v4 = vld [vmem:[#allocation2 + $0x6d4] ss:$28 sps:$4 sm:$0xff]  }
  0xe3   :  { %3412 = vmatmul.mubr.bf16.vlgmr.msra.gmra.mrb[0].mxu0 %v17493_v5  ;;  %3617 = vmatmul.mubr.bf16.vlgmr.msra.gmra.mrb[0].mxu1 %v17493_v5 }
  0xe4   :  { %3421 = vmatpush1.bf16.msra.mxu0 %v15207_v6  ;;  %3626 = vmatpush1.bf16.msra.mxu1 %v15210_v7  ;;  %v15297_v6 = vld [vmem:[#allocation2 + $0x6c8] ss:$28 sps:$4 sm:$0xff]   ;;  %v15300_v7 = vld [vmem:[#allocation2 + $0x6d0] ss:$28 sps:$4 sm:$0xff]  }
  0xe5   :  { %3422 = vmatprep.subr.bf16.mxu0 %v15215_v8  ;;  %3627 = vmatprep.subr.bf16.mxu1 %v15218_v9  ;;  %v15305_v8 = vld [vmem:[#allocation2 + $0x704] ss:$28 sps:$4 sm:$0xff]   ;;  %v156_v9 = vld [vmem:[%s17904_s0 + $0x10] sm:$0xff] }
  0xe6   :  { %3452 = vmatprep.mubr.bf16.mxu0 %v17500_v32  ;;  %3657 = vmatprep.mubr.bf16.mxu1 %v17500_v32 }
  0xe8   :  { %3423 = vmatpush1.bf16.msra.mxu0 %v15213_v10  ;;  %3628 = vmatpush1.bf16.msra.mxu1 %v15216_v11  ;;  %v15308_v10 = vld [vmem:[#allocation2 + $0x70c] ss:$28 sps:$4 sm:$0xff]   ;;  %v15303_v11 = vld [vmem:[#allocation2 + $0x700] ss:$28 sps:$4 sm:$0xff]  }
  0xe9   :  { %3424 = vmatprep.subr.bf16.mxu0 %v15221_v12  ;;  %3629 = vmatprep.subr.bf16.mxu1 %v15224_v13  ;;  %v15306_v12 = vld [vmem:[#allocation2 + $0x708] ss:$28 sps:$4 sm:$0xff]   ;;  %v17507_v13 = vpack.c.bf16 %v156_v9, %v156_v9  ;;  %v15387_v9 = vld [vmem:[#allocation2 + $0xa10] ss:$28 sps:$4 sm:$0xff]  }
  0xec   :  { %3425 = vmatpush1.bf16.msra.mxu0 %v15219_v14  ;;  %3630 = vmatpush1.bf16.msra.mxu1 %v15222_v15  ;;  %v15311_v14 = vld [vmem:[#allocation2 + $0x73c] ss:$28 sps:$4 sm:$0xff]   ;;  %v15314_v15 = vld [vmem:[#allocation2 + $0x744] ss:$28 sps:$4 sm:$0xff]  }
  0xed   :  { %3426 = vmatprep.subr.bf16.mxu0 %v15227_v16  ;;  %3631 = vmatprep.subr.bf16.mxu1 %v15230_v17  ;;  %v159_v16 = vld [vmem:[%s17904_s0 + $0x28] sm:$0xff] }
  0xee   :  { %v17512_v17 = vpack.c.bf16 %v159_v16, %v159_v16  ;;  %v15401_v16 = vld [vmem:[#allocation2 + $0xa84] ss:$28 sps:$4 sm:$0xff]  }
  0xf0   :  { %3427 = vmatpush1.bf16.msra.mxu0 %v15225_v18  ;;  %3632 = vmatpush1.bf16.msra.mxu1 %v15228_v19  ;;  %v15309_v18 = vld [vmem:[#allocation2 + $0x738] ss:$28 sps:$4 sm:$0xff]   ;;  %v15312_v19 = vld [vmem:[#allocation2 + $0x740] ss:$28 sps:$4 sm:$0xff]  }
  0xf1   :  { %3428 = vmatprep.subr.bf16.mxu0 %v15233_v20  ;;  %3633 = vmatprep.subr.bf16.mxu1 %v15236_v21  ;;  %v15317_v20 = vld [vmem:[#allocation2 + $0x774] ss:$28 sps:$4 sm:$0xff]   ;;  %v15320_v21 = vld [vmem:[#allocation2 + $0x77c] ss:$28 sps:$4 sm:$0xff]  }
  0xf4   :  { %3429 = vmatpush1.bf16.msra.mxu0 %v15231_v22  ;;  %3634 = vmatpush1.bf16.msra.mxu1 %v15234_v23  ;;  %v15315_v22 = vld [vmem:[#allocation2 + $0x770] ss:$28 sps:$4 sm:$0xff]   ;;  %v15318_v23 = vld [vmem:[#allocation2 + $0x778] ss:$28 sps:$4 sm:$0xff]  }
  0xf5   :  { %3430 = vmatprep.subr.bf16.mxu0 %v15239_v24  ;;  %3635 = vmatprep.subr.bf16.mxu1 %v15242_v25  ;;  %v15323_v24 = vld [vmem:[#allocation2 + $0x7ac] ss:$28 sps:$4 sm:$0xff]   ;;  %v15326_v25 = vld [vmem:[#allocation2 + $0x7b4] ss:$28 sps:$4 sm:$0xff]  }
  0xf8   :  { %3431 = vmatpush1.bf16.msra.mxu0 %v15237_v26  ;;  %3636 = vmatpush1.bf16.msra.mxu1 %v15240_v27  ;;  %v15321_v26 = vld [vmem:[#allocation2 + $0x7a8] ss:$28 sps:$4 sm:$0xff]   ;;  %v15324_v27 = vld [vmem:[#allocation2 + $0x7b0] ss:$28 sps:$4 sm:$0xff]  }
  0xf9   :  { %3432 = vmatprep.subr.bf16.mxu0 %v15245_v28  ;;  %3637 = vmatprep.subr.bf16.mxu1 %v15248_v29  ;;  %v15329_v28 = vld [vmem:[#allocation2 + $0x7e4] ss:$28 sps:$4 sm:$0xff]   ;;  %v15332_v29 = vld [vmem:[#allocation2 + $0x7ec] ss:$28 sps:$4 sm:$0xff]  }
  0xfc   :  { %3433 = vmatpush1.bf16.msra.mxu0 %v15243_v31  ;;  %3638 = vmatpush1.bf16.msra.mxu1 %v15246_v33  ;;  %v15330_v31 = vld [vmem:[#allocation2 + $0x7e8] ss:$28 sps:$4 sm:$0xff]   ;;  %v15335_v33 = vld [vmem:[#allocation2 + $0x81c] ss:$28 sps:$4 sm:$0xff]  }
  0xfd   :  { %3434 = vmatprep.subr.bf16.mxu0 %v15251_v34  ;;  %3639 = vmatprep.subr.bf16.mxu1 %v15254_v35  ;;  %v15338_v34 = vld [vmem:[#allocation2 + $0x824] ss:$28 sps:$4 sm:$0xff]   ;;  %v15333_v35 = vld [vmem:[#allocation2 + $0x818] ss:$28 sps:$4 sm:$0xff]  }
 0x100   :  { %3435 = vmatpush1.bf16.msra.mxu0 %v15249_v36  ;;  %3640 = vmatpush1.bf16.msra.mxu1 %v15252_v37  ;;  %v15336_v36 = vld [vmem:[#allocation2 + $0x820] ss:$28 sps:$4 sm:$0xff]   ;;  %v15341_v37 = vld [vmem:[#allocation2 + $0x854] ss:$28 sps:$4 sm:$0xff]  }
 0x101   :  { %3436 = vmatprep.subr.bf16.mxu0 %v15257_v38  ;;  %3641 = vmatprep.subr.bf16.mxu1 %v15260_v39  ;;  %v15344_v38 = vld [vmem:[#allocation2 + $0x85c] ss:$28 sps:$4 sm:$0xff]   ;;  %v15339_v39 = vld [vmem:[#allocation2 + $0x850] ss:$28 sps:$4 sm:$0xff]  }
 0x104   :  { %3437 = vmatpush1.bf16.msra.mxu0 %v15255_v40  ;;  %3642 = vmatpush1.bf16.msra.mxu1 %v15258_v41  ;;  %v15342_v40 = vld [vmem:[#allocation2 + $0x858] ss:$28 sps:$4 sm:$0xff]   ;;  %v15347_v41 = vld [vmem:[#allocation2 + $0x88c] ss:$28 sps:$4 sm:$0xff]  }
 0x105   :  { %3438 = vmatprep.subr.bf16.mxu0 %v15263_v42  ;;  %3643 = vmatprep.subr.bf16.mxu1 %v15266_v43  ;;  %v15350_v42 = vld [vmem:[#allocation2 + $0x894] ss:$28 sps:$4 sm:$0xff]   ;;  %v15345_v43 = vld [vmem:[#allocation2 + $0x888] ss:$28 sps:$4 sm:$0xff]  }
 0x108   :  { %3439 = vmatpush1.bf16.msra.mxu0 %v15261_v44  ;;  %3644 = vmatpush1.bf16.msra.mxu1 %v15264_v45  ;;  %v15348_v44 = vld [vmem:[#allocation2 + $0x890] ss:$28 sps:$4 sm:$0xff]   ;;  %v15353_v45 = vld [vmem:[#allocation2 + $0x8c4] ss:$28 sps:$4 sm:$0xff]  }
 0x109   :  { %3440 = vmatprep.subr.bf16.mxu0 %v15269_v46  ;;  %3645 = vmatprep.subr.bf16.mxu1 %v15272_v47  ;;  %v15356_v46 = vld [vmem:[#allocation2 + $0x8cc] ss:$28 sps:$4 sm:$0xff]   ;;  %v15351_v47 = vld [vmem:[#allocation2 + $0x8c0] ss:$28 sps:$4 sm:$0xff]  }
 0x10c   :  { %3441 = vmatpush1.bf16.msra.mxu0 %v15267_v49  ;;  %3646 = vmatpush1.bf16.msra.mxu1 %v15270_v50  ;;  %v15354_v49 = vld [vmem:[#allocation2 + $0x8c8] ss:$28 sps:$4 sm:$0xff]   ;;  %v15359_v50 = vld [vmem:[#allocation2 + $0x8fc] ss:$28 sps:$4 sm:$0xff]  }
 0x10d   :  { %3442 = vmatprep.subr.bf16.mxu0 %v15275_v51  ;;  %3647 = vmatprep.subr.bf16.mxu1 %v15278_v52  ;;  %v15362_v51 = vld [vmem:[#allocation2 + $0x904] ss:$28 sps:$4 sm:$0xff]   ;;  %v15357_v52 = vld [vmem:[#allocation2 + $0x8f8] ss:$28 sps:$4 sm:$0xff]  }
 0x110   :  { %3443 = vmatpush1.bf16.msra.mxu0 %v15273_v53  ;;  %3648 = vmatpush1.bf16.msra.mxu1 %v15276_v54  ;;  %v15360_v53 = vld [vmem:[#allocation2 + $0x900] ss:$28 sps:$4 sm:$0xff]   ;;  %v15365_v54 = vld [vmem:[#allocation2 + $0x934] ss:$28 sps:$4 sm:$0xff]  }
 0x111   :  { %3444 = vmatprep.subr.bf16.mxu0 %v15281_v55  ;;  %3649 = vmatprep.subr.bf16.mxu1 %v15284_v56  ;;  %v15368_v55 = vld [vmem:[#allocation2 + $0x93c] ss:$28 sps:$4 sm:$0xff]   ;;  %v15363_v56 = vld [vmem:[#allocation2 + $0x930] ss:$28 sps:$4 sm:$0xff]  }
 0x114   :  { %3445 = vmatpush1.bf16.msra.mxu0 %v15279_v57  ;;  %3650 = vmatpush1.bf16.msra.mxu1 %v15282_v58  ;;  %v15366_v57 = vld [vmem:[#allocation2 + $0x938] ss:$28 sps:$4 sm:$0xff]   ;;  %v15371_v58 = vld [vmem:[#allocation2 + $0x96c] ss:$28 sps:$4 sm:$0xff]  }
 0x115   :  { %3446 = vmatprep.subr.bf16.mxu0 %v15287_v59  ;;  %3651 = vmatprep.subr.bf16.mxu1 %v15290_v60  ;;  %v15374_v59 = vld [vmem:[#allocation2 + $0x974] ss:$28 sps:$4 sm:$0xff]   ;;  %v15369_v60 = vld [vmem:[#allocation2 + $0x968] ss:$28 sps:$4 sm:$0xff]  }
 0x118   :  { %3447 = vmatpush1.bf16.msra.mxu0 %v15285_v61  ;;  %3652 = vmatpush1.bf16.msra.mxu1 %v15288_v62  ;;  %v15372_v61 = vld [vmem:[#allocation2 + $0x970] ss:$28 sps:$4 sm:$0xff]   ;;  %v15377_v62 = vld [vmem:[#allocation2 + $0x9a4] ss:$28 sps:$4 sm:$0xff]  }
 0x119   :  { %3448 = vmatprep.subr.bf16.mxu0 %v15293_v63  ;;  %3653 = vmatprep.subr.bf16.mxu1 %v15296_v0  ;;  %v15380_v63 = vld [vmem:[#allocation2 + $0x9ac] ss:$28 sps:$4 sm:$0xff]   ;;  %v15375_v0 = vld [vmem:[#allocation2 + $0x9a0] ss:$28 sps:$4 sm:$0xff]  }
 0x11c   :  { %3449 = vmatpush1.bf16.msra.mxu0 %v15291_v1  ;;  %3654 = vmatpush1.bf16.msra.mxu1 %v15294_v2  ;;  %v15378_v1 = vld [vmem:[#allocation2 + $0x9a8] ss:$28 sps:$4 sm:$0xff]   ;;  %v15383_v2 = vld [vmem:[#allocation2 + $0x9dc] ss:$28 sps:$4 sm:$0xff]  }
 0x11d   :  { %3450 = vmatprep.subr.bf16.mxu0 %v15299_v3  ;;  %3655 = vmatprep.subr.bf16.mxu1 %v15302_v4  ;;  %v15386_v3 = vld [vmem:[#allocation2 + $0x9e4] ss:$28 sps:$4 sm:$0xff]   ;;  %v15381_v4 = vld [vmem:[#allocation2 + $0x9d8] ss:$28 sps:$4 sm:$0xff]  }
 0x120   :  { %3451 = vmatpush1.bf16.msra.mxu0 %v15297_v6  ;;  %3656 = vmatpush1.bf16.msra.mxu1 %v15300_v7  ;;  %v15384_v6 = vld [vmem:[#allocation2 + $0x9e0] ss:$28 sps:$4 sm:$0xff]   ;;  %v15389_v7 = vld [vmem:[#allocation2 + $0xa14] ss:$28 sps:$4 sm:$0xff]  }
 0x121   :  { %3461 = vmatprep.subr.bf16.mxu0 %v15305_v8  ;;  %3666 = vmatprep.subr.bf16.mxu1 %v15308_v10  ;;  %v15392_v8 = vld [vmem:[#allocation2 + $0xa1c] ss:$28 sps:$4 sm:$0xff]  }
 0x122   :  { %v15390_v10 = vld [vmem:[#allocation2 + $0xa18] ss:$28 sps:$4 sm:$0xff]  }
 0x123   :  { %3453 = vmatmul.mubr.bf16.vlgmr.msra.gmra.mrb[0].mxu0 %v17507_v13  ;;  %3658 = vmatmul.mubr.bf16.vlgmr.msra.gmra.mrb[0].mxu1 %v17507_v13 }
 0x124   :  { %3462 = vmatpush1.bf16.msra.mxu0 %v15303_v11  ;;  %3667 = vmatpush1.bf16.msra.mxu1 %v15306_v12  ;;  %v15395_v11 = vld [vmem:[#allocation2 + $0xa4c] ss:$28 sps:$4 sm:$0xff]   ;;  %v15398_v12 = vld [vmem:[#allocation2 + $0xa54] ss:$28 sps:$4 sm:$0xff]  }
 0x125   :  { %3463 = vmatprep.subr.bf16.mxu0 %v15311_v14  ;;  %3668 = vmatprep.subr.bf16.mxu1 %v15314_v15  ;;  %v15393_v14 = vld [vmem:[#allocation2 + $0xa48] ss:$28 sps:$4 sm:$0xff]   ;;  %v15396_v15 = vld [vmem:[#allocation2 + $0xa50] ss:$28 sps:$4 sm:$0xff]  }
 0x126   :  { %3493 = vmatprep.mubr.bf16.mxu0 %v17512_v17  ;;  %3698 = vmatprep.mubr.bf16.mxu1 %v17512_v17 }
 0x128   :  { %3464 = vmatpush1.bf16.msra.mxu0 %v15309_v18  ;;  %3669 = vmatpush1.bf16.msra.mxu1 %v15312_v19  ;;  %v158_v18 = vld [vmem:[%s17904_s0 + $0x20] sm:$0xff]  ;;  %v15404_v19 = vld [vmem:[#allocation2 + $0xa8c] ss:$28 sps:$4 sm:$0xff]  }
 0x129   :  { %3465 = vmatprep.subr.bf16.mxu0 %v15317_v20  ;;  %3670 = vmatprep.subr.bf16.mxu1 %v15320_v21  ;;  %v15399_v20 = vld [vmem:[#allocation2 + $0xa80] ss:$28 sps:$4 sm:$0xff]   ;;  %v15402_v21 = vld [vmem:[#allocation2 + $0xa88] ss:$28 sps:$4 sm:$0xff]  }
 0x12c   :  { %3466 = vmatpush1.bf16.msra.mxu0 %v15315_v22  ;;  %3671 = vmatpush1.bf16.msra.mxu1 %v15318_v23  ;;  %v17521_v22 = vpack.c.bf16 %v158_v18, %v158_v18  ;;  %v161_v23 = vld [vmem:[%s17904_s0 + $0x38] sm:$0xff]  ;;  %v15485_v18 = vld [vmem:[#allocation2 + $0xd94] ss:$28 sps:$4 sm:$0xff]  }
 0x12d   :  { %3467 = vmatprep.subr.bf16.mxu0 %v15323_v24  ;;  %3672 = vmatprep.subr.bf16.mxu1 %v15326_v25  ;;  %v15407_v24 = vld [vmem:[#allocation2 + $0xabc] ss:$28 sps:$4 sm:$0xff]   ;;  %v15410_v25 = vld [vmem:[#allocation2 + $0xac4] ss:$28 sps:$4 sm:$0xff]  }
 0x130   :  { %3468 = vmatpush1.bf16.msra.mxu0 %v15321_v26  ;;  %3673 = vmatpush1.bf16.msra.mxu1 %v15324_v27  ;;  %v15405_v26 = vld [vmem:[#allocation2 + $0xab8] ss:$28 sps:$4 sm:$0xff]   ;;  %v17526_v27 = vpack.c.bf16 %v161_v23, %v161_v23  ;;  %v15491_v23 = vld [vmem:[#allocation2 + $0xdcc] ss:$28 sps:$4 sm:$0xff]  }
 0x131   :  { %3469 = vmatprep.subr.bf16.mxu0 %v15329_v28  ;;  %3674 = vmatprep.subr.bf16.mxu1 %v15332_v29  ;;  %v15408_v28 = vld [vmem:[#allocation2 + $0xac0] ss:$28 sps:$4 sm:$0xff]   ;;  %v15413_v29 = vld [vmem:[#allocation2 + $0xaf4] ss:$28 sps:$4 sm:$0xff]  }
 0x134   :  { %3470 = vmatpush1.bf16.msra.mxu0 %v15327_v30  ;;  %3675 = vmatpush1.bf16.msra.mxu1 %v15330_v31  ;;  %v15416_v30 = vld [vmem:[#allocation2 + $0xafc] ss:$28 sps:$4 sm:$0xff]   ;;  %v15411_v31 = vld [vmem:[#allocation2 + $0xaf0] ss:$28 sps:$4 sm:$0xff]  }
 0x135   :  { %3471 = vmatprep.subr.bf16.mxu0 %v15335_v33  ;;  %3676 = vmatprep.subr.bf16.mxu1 %v15338_v34  ;;  %v15414_v33 = vld [vmem:[#allocation2 + $0xaf8] ss:$28 sps:$4 sm:$0xff]   ;;  %v15419_v34 = vld [vmem:[#allocation2 + $0xb2c] ss:$28 sps:$4 sm:$0xff]  }
 0x138   :  { %3472 = vmatpush1.bf16.msra.mxu0 %v15333_v35  ;;  %3677 = vmatpush1.bf16.msra.mxu1 %v15336_v36  ;;  %v15422_v35 = vld [vmem:[#allocation2 + $0xb34] ss:$28 sps:$4 sm:$0xff]   ;;  %v15417_v36 = vld [vmem:[#allocation2 + $0xb28] ss:$28 sps:$4 sm:$0xff]  }
 0x139   :  { %3473 = vmatprep.subr.bf16.mxu0 %v15341_v37  ;;  %3678 = vmatprep.subr.bf16.mxu1 %v15344_v38  ;;  %v15420_v37 = vld [vmem:[#allocation2 + $0xb30] ss:$28 sps:$4 sm:$0xff]   ;;  %v15425_v38 = vld [vmem:[#allocation2 + $0xb64] ss:$28 sps:$4 sm:$0xff]  }
 0x13c   :  { %3474 = vmatpush1.bf16.msra.mxu0 %v15339_v39  ;;  %3679 = vmatpush1.bf16.msra.mxu1 %v15342_v40  ;;  %v15428_v39 = vld [vmem:[#allocation2 + $0xb6c] ss:$28 sps:$4 sm:$0xff]   ;;  %v15423_v40 = vld [vmem:[#allocation2 + $0xb60] ss:$28 sps:$4 sm:$0xff]  }
 0x13d   :  { %3475 = vmatprep.subr.bf16.mxu0 %v15347_v41  ;;  %3680 = vmatprep.subr.bf16.mxu1 %v15350_v42  ;;  %v15426_v41 = vld [vmem:[#allocation2 + $0xb68] ss:$28 sps:$4 sm:$0xff]   ;;  %v15431_v42 = vld [vmem:[#allocation2 + $0xb9c] ss:$28 sps:$4 sm:$0xff]  }
 0x140   :  { %3476 = vmatpush1.bf16.msra.mxu0 %v15345_v43  ;;  %3681 = vmatpush1.bf16.msra.mxu1 %v15348_v44  ;;  %v15434_v43 = vld [vmem:[#allocation2 + $0xba4] ss:$28 sps:$4 sm:$0xff]   ;;  %v15429_v44 = vld [vmem:[#allocation2 + $0xb98] ss:$28 sps:$4 sm:$0xff]  }
 0x141   :  { %3477 = vmatprep.subr.bf16.mxu0 %v15353_v45  ;;  %3682 = vmatprep.subr.bf16.mxu1 %v15356_v46  ;;  %v15432_v45 = vld [vmem:[#allocation2 + $0xba0] ss:$28 sps:$4 sm:$0xff]   ;;  %v15437_v46 = vld [vmem:[#allocation2 + $0xbd4] ss:$28 sps:$4 sm:$0xff]  }
 0x144   :  { %3478 = vmatpush1.bf16.msra.mxu0 %v15351_v47  ;;  %3683 = vmatpush1.bf16.msra.mxu1 %v15354_v49  ;;  %v15440_v47 = vld [vmem:[#allocation2 + $0xbdc] ss:$28 sps:$4 sm:$0xff]   ;;  %v15435_v49 = vld [vmem:[#allocation2 + $0xbd0] ss:$28 sps:$4 sm:$0xff]  }
 0x145   :  { %3479 = vmatprep.subr.bf16.mxu0 %v15359_v50  ;;  %3684 = vmatprep.subr.bf16.mxu1 %v15362_v51  ;;  %v15438_v50 = vld [vmem:[#allocation2 + $0xbd8] ss:$28 sps:$4 sm:$0xff]   ;;  %v15443_v51 = vld [vmem:[#allocation2 + $0xc0c] ss:$28 sps:$4 sm:$0xff]  }
 0x148   :  { %3480 = vmatpush1.bf16.msra.mxu0 %v15357_v52  ;;  %3685 = vmatpush1.bf16.msra.mxu1 %v15360_v53  ;;  %v15446_v52 = vld [vmem:[#allocation2 + $0xc14] ss:$28 sps:$4 sm:$0xff]   ;;  %v15441_v53 = vld [vmem:[#allocation2 + $0xc08] ss:$28 sps:$4 sm:$0xff]  }
 0x149   :  { %3481 = vmatprep.subr.bf16.mxu0 %v15365_v54  ;;  %3686 = vmatprep.subr.bf16.mxu1 %v15368_v55  ;;  %v15444_v54 = vld [vmem:[#allocation2 + $0xc10] ss:$28 sps:$4 sm:$0xff]   ;;  %v15449_v55 = vld [vmem:[#allocation2 + $0xc44] ss:$28 sps:$4 sm:$0xff]  }
 0x14c   :  { %3482 = vmatpush1.bf16.msra.mxu0 %v15363_v56  ;;  %3687 = vmatpush1.bf16.msra.mxu1 %v15366_v57  ;;  %v15452_v56 = vld [vmem:[#allocation2 + $0xc4c] ss:$28 sps:$4 sm:$0xff]   ;;  %v15447_v57 = vld [vmem:[#allocation2 + $0xc40] ss:$28 sps:$4 sm:$0xff]  }
 0x14d   :  { %3483 = vmatprep.subr.bf16.mxu0 %v15371_v58  ;;  %3688 = vmatprep.subr.bf16.mxu1 %v15374_v59  ;;  %v15450_v58 = vld [vmem:[#allocation2 + $0xc48] ss:$28 sps:$4 sm:$0xff]   ;;  %v15455_v59 = vld [vmem:[#allocation2 + $0xc7c] ss:$28 sps:$4 sm:$0xff]  }
 0x150   :  { %3484 = vmatpush1.bf16.msra.mxu0 %v15369_v60  ;;  %3689 = vmatpush1.bf16.msra.mxu1 %v15372_v61  ;;  %v15458_v60 = vld [vmem:[#allocation2 + $0xc84] ss:$28 sps:$4 sm:$0xff]   ;;  %v15453_v61 = vld [vmem:[#allocation2 + $0xc78] ss:$28 sps:$4 sm:$0xff]  }
 0x151   :  { %3485 = vmatprep.subr.bf16.mxu0 %v15377_v62  ;;  %3690 = vmatprep.subr.bf16.mxu1 %v15380_v63  ;;  %v15456_v62 = vld [vmem:[#allocation2 + $0xc80] ss:$28 sps:$4 sm:$0xff]   ;;  %v15461_v63 = vld [vmem:[#allocation2 + $0xcb4] ss:$28 sps:$4 sm:$0xff]  }
 0x154   :  { %3486 = vmatpush1.bf16.msra.mxu0 %v15375_v0  ;;  %3691 = vmatpush1.bf16.msra.mxu1 %v15378_v1  ;;  %v15464_v0 = vld [vmem:[#allocation2 + $0xcbc] ss:$28 sps:$4 sm:$0xff]   ;;  %v15459_v1 = vld [vmem:[#allocation2 + $0xcb0] ss:$28 sps:$4 sm:$0xff]  }
 0x155   :  { %3487 = vmatprep.subr.bf16.mxu0 %v15383_v2  ;;  %3692 = vmatprep.subr.bf16.mxu1 %v15386_v3  ;;  %v15462_v2 = vld [vmem:[#allocation2 + $0xcb8] ss:$28 sps:$4 sm:$0xff]   ;;  %v15467_v3 = vld [vmem:[#allocation2 + $0xcec] ss:$28 sps:$4 sm:$0xff]  }
 0x158   :  { %3488 = vmatpush1.bf16.msra.mxu0 %v15381_v4  ;;  %3693 = vmatpush1.bf16.msra.mxu1 %v15384_v6  ;;  %v15470_v4 = vld [vmem:[#allocation2 + $0xcf4] ss:$28 sps:$4 sm:$0xff]   ;;  %v15465_v6 = vld [vmem:[#allocation2 + $0xce8] ss:$28 sps:$4 sm:$0xff]  }
 0x159   :  { %3489 = vmatprep.subr.bf16.mxu0 %v15389_v7  ;;  %3694 = vmatprep.subr.bf16.mxu1 %v15392_v8  ;;  %v15468_v7 = vld [vmem:[#allocation2 + $0xcf0] ss:$28 sps:$4 sm:$0xff]   ;;  %v15473_v8 = vld [vmem:[#allocation2 + $0xd24] ss:$28 sps:$4 sm:$0xff]  }
 0x15c   :  { %3490 = vmatpush1.bf16.msra.mxu0 %v15387_v9  ;;  %3695 = vmatpush1.bf16.msra.mxu1 %v15390_v10  ;;  %v15476_v9 = vld [vmem:[#allocation2 + $0xd2c] ss:$28 sps:$4 sm:$0xff]   ;;  %v15471_v10 = vld [vmem:[#allocation2 + $0xd20] ss:$28 sps:$4 sm:$0xff]  }
 0x15d   :  { %3491 = vmatprep.subr.bf16.mxu0 %v15395_v11  ;;  %3696 = vmatprep.subr.bf16.mxu1 %v15398_v12  ;;  %v15474_v11 = vld [vmem:[#allocation2 + $0xd28] ss:$28 sps:$4 sm:$0xff]   ;;  %v15479_v12 = vld [vmem:[#allocation2 + $0xd5c] ss:$28 sps:$4 sm:$0xff]  }
 0x160   :  { %3492 = vmatpush1.bf16.msra.mxu0 %v15393_v14  ;;  %3697 = vmatpush1.bf16.msra.mxu1 %v15396_v15  ;;  %v15482_v14 = vld [vmem:[#allocation2 + $0xd64] ss:$28 sps:$4 sm:$0xff]   ;;  %v15477_v15 = vld [vmem:[#allocation2 + $0xd58] ss:$28 sps:$4 sm:$0xff]  }
 0x161   :  { %3502 = vmatprep.subr.bf16.mxu0 %v15401_v16  ;;  %3707 = vmatprep.subr.bf16.mxu1 %v15404_v19  ;;  %v15480_v16 = vld [vmem:[#allocation2 + $0xd60] ss:$28 sps:$4 sm:$0xff]  }
 0x162   :  { %v15488_v19 = vld [vmem:[#allocation2 + $0xd9c] ss:$28 sps:$4 sm:$0xff]  }
 0x163   :  { %3494 = vmatmul.mubr.bf16.vlgmr.msra.gmra.mrb[0].mxu0 %v17521_v22  ;;  %3699 = vmatmul.mubr.bf16.vlgmr.msra.gmra.mrb[0].mxu1 %v17521_v22 }
 0x164   :  { %3503 = vmatpush1.bf16.msra.mxu0 %v15399_v20  ;;  %3708 = vmatpush1.bf16.msra.mxu1 %v15402_v21  ;;  %v15483_v20 = vld [vmem:[#allocation2 + $0xd90] ss:$28 sps:$4 sm:$0xff]   ;;  %v15486_v21 = vld [vmem:[#allocation2 + $0xd98] ss:$28 sps:$4 sm:$0xff]  }
 0x165   :  { %3504 = vmatprep.subr.bf16.mxu0 %v15407_v24  ;;  %3709 = vmatprep.subr.bf16.mxu1 %v15410_v25  ;;  %v15494_v24 = vld [vmem:[#allocation2 + $0xdd4] ss:$28 sps:$4 sm:$0xff]   ;;  %v15489_v25 = vld [vmem:[#allocation2 + $0xdc8] ss:$28 sps:$4 sm:$0xff]  }
 0x166   :  { %3534 = vmatprep.mubr.bf16.mxu0 %v17526_v27  ;;  %3739 = vmatprep.mubr.bf16.mxu1 %v17526_v27 }
 0x168   :  { %3505 = vmatpush1.bf16.msra.mxu0 %v15405_v26  ;;  %3710 = vmatpush1.bf16.msra.mxu1 %v15408_v28  ;;  %v15492_v26 = vld [vmem:[#allocation2 + $0xdd0] ss:$28 sps:$4 sm:$0xff]   ;;  %v15497_v28 = vld [vmem:[#allocation2 + $0xe04] ss:$28 sps:$4 sm:$0xff]  }
 0x169   :  { %3506 = vmatprep.subr.bf16.mxu0 %v15413_v29  ;;  %3711 = vmatprep.subr.bf16.mxu1 %v15416_v30  ;;  %v160_v29 = vld [vmem:[%s17904_s0 + $0x30] sm:$0xff]  ;;  %v15500_v30 = vld [vmem:[#allocation2 + $0xe0c] ss:$28 sps:$4 sm:$0xff]  }
 0x16c   :  { %3507 = vmatpush1.bf16.msra.mxu0 %v15411_v31  ;;  %3712 = vmatpush1.bf16.msra.mxu1 %v15414_v33  ;;  %v15495_v31 = vld [vmem:[#allocation2 + $0xe00] ss:$28 sps:$4 sm:$0xff]   ;;  %v15498_v33 = vld [vmem:[#allocation2 + $0xe08] ss:$28 sps:$4 sm:$0xff]  }
 0x16d   :  { %3508 = vmatprep.subr.bf16.mxu0 %v15419_v34  ;;  %3713 = vmatprep.subr.bf16.mxu1 %v15422_v35  ;;  %v17535_v34 = vpack.c.bf16 %v160_v29, %v160_v29  ;;  %v15503_v35 = vld [vmem:[#allocation2 + $0xe3c] ss:$28 sps:$4 sm:$0xff]   ;;  %v15568_v29 = vld [vmem:[#allocation2 + $0x128] ss:$28 sps:$4 sm:$0xff]  }
 0x170   :  { %3509 = vmatpush1.bf16.msra.mxu0 %v15417_v36  ;;  %3714 = vmatpush1.bf16.msra.mxu1 %v15420_v37  ;;  %v15506_v36 = vld [vmem:[#allocation2 + $0xe44] ss:$28 sps:$4 sm:$0xff]   ;;  %v15501_v37 = vld [vmem:[#allocation2 + $0xe38] ss:$28 sps:$4 sm:$0xff]  }
 0x171   :  { %3510 = vmatprep.subr.bf16.mxu0 %v15425_v38  ;;  %3715 = vmatprep.subr.bf16.mxu1 %v15428_v39  ;;  %v15504_v38 = vld [vmem:[#allocation2 + $0xe40] ss:$28 sps:$4 sm:$0xff]   ;;  %v15509_v39 = vld [vmem:[#allocation2 + $0xe74] ss:$28 sps:$4 sm:$0xff]  }
 0x174   :  { %3511 = vmatpush1.bf16.msra.mxu0 %v15423_v40  ;;  %3716 = vmatpush1.bf16.msra.mxu1 %v15426_v41  ;;  %v15512_v40 = vld [vmem:[#allocation2 + $0xe7c] ss:$28 sps:$4 sm:$0xff]   ;;  %v15507_v41 = vld [vmem:[#allocation2 + $0xe70] ss:$28 sps:$4 sm:$0xff]  }
 0x175   :  { %3512 = vmatprep.subr.bf16.mxu0 %v15431_v42  ;;  %3717 = vmatprep.subr.bf16.mxu1 %v15434_v43  ;;  %v17290_v42 = vmov 0   ;;  %v15510_v43 = vld [vmem:[#allocation2 + $0xe78] ss:$28 sps:$4 sm:$0xff]  }
 0x178   :  { %3513 = vmatpush1.bf16.msra.mxu0 %v15429_v44  ;;  %3718 = vmatpush1.bf16.msra.mxu1 %v15432_v45  ;;  %v15515_v44 = vld [vmem:[#allocation2 + $0xeac] ss:$28 sps:$4 sm:$0xff]   ;;  %v15518_v45 = vld [vmem:[#allocation2 + $0xeb4] ss:$28 sps:$4 sm:$0xff]  }
 0x179   :  { %3514 = vmatprep.subr.bf16.mxu0 %v15437_v46  ;;  %3719 = vmatprep.subr.bf16.mxu1 %v15440_v47  ;;  %v15513_v46 = vld [vmem:[#allocation2 + $0xea8] ss:$28 sps:$4 sm:$0xff]   ;;  %v15516_v47 = vld [vmem:[#allocation2 + $0xeb0] ss:$28 sps:$4 sm:$0xff]  }
 0x17c   :  { %3515 = vmatpush1.bf16.msra.mxu0 %v15435_v49  ;;  %3720 = vmatpush1.bf16.msra.mxu1 %v15438_v50  ;;  %v15521_v49 = vld [vmem:[#allocation2 + $0xee4] ss:$28 sps:$4 sm:$0xff]   ;;  %v15524_v50 = vld [vmem:[#allocation2 + $0xeec] ss:$28 sps:$4 sm:$0xff]  }
 0x17d   :  { %3516 = vmatprep.subr.bf16.mxu0 %v15443_v51  ;;  %3721 = vmatprep.subr.bf16.mxu1 %v15446_v52  ;;  %v15519_v51 = vld [vmem:[#allocation2 + $0xee0] ss:$28 sps:$4 sm:$0xff]   ;;  %v15522_v52 = vld [vmem:[#allocation2 + $0xee8] ss:$28 sps:$4 sm:$0xff]  }
 0x180   :  { %3517 = vmatpush1.bf16.msra.mxu0 %v15441_v53  ;;  %3722 = vmatpush1.bf16.msra.mxu1 %v15444_v54  ;;  %v15527_v53 = vld [vmem:[#allocation2 + $0xf1c] ss:$28 sps:$4 sm:$0xff]   ;;  %v15530_v54 = vld [vmem:[#allocation2 + $0xf24] ss:$28 sps:$4 sm:$0xff]  }
 0x181   :  { %3518 = vmatprep.subr.bf16.mxu0 %v15449_v55  ;;  %3723 = vmatprep.subr.bf16.mxu1 %v15452_v56  ;;  %v15525_v55 = vld [vmem:[#allocation2 + $0xf18] ss:$28 sps:$4 sm:$0xff]   ;;  %v15528_v56 = vld [vmem:[#allocation2 + $0xf20] ss:$28 sps:$4 sm:$0xff]  }
 0x184   :  { %3519 = vmatpush1.bf16.msra.mxu0 %v15447_v57  ;;  %3724 = vmatpush1.bf16.msra.mxu1 %v15450_v58  ;;  %v15533_v57 = vld [vmem:[#allocation2 + $0xf54] ss:$28 sps:$4 sm:$0xff]   ;;  %v15536_v58 = vld [vmem:[#allocation2 + $0xf5c] ss:$28 sps:$4 sm:$0xff]  }
 0x185   :  { %3520 = vmatprep.subr.bf16.mxu0 %v15455_v59  ;;  %3725 = vmatprep.subr.bf16.mxu1 %v15458_v60  ;;  %v15531_v59 = vld [vmem:[#allocation2 + $0xf50] ss:$28 sps:$4 sm:$0xff]   ;;  %v15534_v60 = vld [vmem:[#allocation2 + $0xf58] ss:$28 sps:$4 sm:$0xff]  }
 0x188   :  { %3521 = vmatpush1.bf16.msra.mxu0 %v15453_v61  ;;  %3726 = vmatpush1.bf16.msra.mxu1 %v15456_v62  ;;  %v15539_v61 = vld [vmem:[#allocation2 + $0xf8c] ss:$28 sps:$4 sm:$0xff]   ;;  %v15542_v62 = vld [vmem:[#allocation2 + $0xf94] ss:$28 sps:$4 sm:$0xff]  }
 0x189   :  { %3522 = vmatprep.subr.bf16.mxu0 %v15461_v63  ;;  %3727 = vmatprep.subr.bf16.mxu1 %v15464_v0  ;;  %v15537_v63 = vld [vmem:[#allocation2 + $0xf88] ss:$28 sps:$4 sm:$0xff]   ;;  %v15540_v0 = vld [vmem:[#allocation2 + $0xf90] ss:$28 sps:$4 sm:$0xff]  }
 0x18c   :  { %3523 = vmatpush1.bf16.msra.mxu0 %v15459_v1  ;;  %3728 = vmatpush1.bf16.msra.mxu1 %v15462_v2  ;;  %v162_v1 = vld [vmem:[%s17904_s0 + $0x40] sm:$0xff]  ;;  %v15545_v2 = vld [vmem:[#allocation2 + $0x14] ss:$28 sps:$4 sm:$0xff]  }
 0x18d   :  { %3524 = vmatprep.subr.bf16.mxu0 %v15467_v3  ;;  %3729 = vmatprep.subr.bf16.mxu1 %v15470_v4  ;;  %v15546_v3 = vld [vmem:[#allocation2 + $0x1d8] ss:$28 sps:$4 sm:$0xff]   ;;  %v17544_v4 = vpack.c.bf16 %v162_v1, %v162_v1  ;;  %v15608_v1 = vld [vmem:[#allocation2 + $0x2e8] ss:$28 sps:$4 sm:$0xff]  }
 0x190   :  { %3525 = vmatpush1.bf16.msra.mxu0 %v15465_v6  ;;  %3730 = vmatpush1.bf16.msra.mxu1 %v15468_v7  ;;  %v15543_v6 = vld [vmem:[#allocation2 + $0x10] ss:$28 sps:$4 sm:$0xff]   ;;  %v15547_v7 = vld [vmem:[#allocation2 + $0x18] ss:$28 sps:$4 sm:$0xff]  }
 0x191   :  { %3526 = vmatprep.subr.bf16.mxu0 %v15473_v8  ;;  %3731 = vmatprep.subr.bf16.mxu1 %v15476_v9  ;;  %v15550_v8 = vld [vmem:[#allocation2 + $0x4c] ss:$28 sps:$4 sm:$0xff]  }
 0x192   :  { %v15551_v9 = vld [vmem:[#allocation2 + $0x210] ss:$28 sps:$4 sm:$0xff]  }
 0x194   :  { %3527 = vmatpush1.bf16.msra.mxu0 %v15471_v10  ;;  %3732 = vmatpush1.bf16.msra.mxu1 %v15474_v11  ;;  %v15548_v10 = vld [vmem:[#allocation2 + $0x48] ss:$28 sps:$4 sm:$0xff]   ;;  %v15552_v11 = vld [vmem:[#allocation2 + $0x50] ss:$28 sps:$4 sm:$0xff]  }
 0x195   :  { %3528 = vmatprep.subr.bf16.mxu0 %v15479_v12  ;;  %3733 = vmatprep.subr.bf16.mxu1 %v15482_v14  ;;  %v15555_v12 = vld [vmem:[#allocation2 + $0x84] ss:$28 sps:$4 sm:$0xff]  }
 0x196   :  { %v15556_v14 = vld [vmem:[#allocation2 + $0x248] ss:$28 sps:$4 sm:$0xff]  }
 0x198   :  { %3529 = vmatpush1.bf16.msra.mxu0 %v15477_v15  ;;  %3734 = vmatpush1.bf16.msra.mxu1 %v15480_v16  ;;  %v15553_v15 = vld [vmem:[#allocation2 + $0x80] ss:$28 sps:$4 sm:$0xff]   ;;  %v15557_v16 = vld [vmem:[#allocation2 + $0x88] ss:$28 sps:$4 sm:$0xff]  }
 0x199   :  { %3530 = vmatprep.subr.bf16.mxu0 %v15485_v18  ;;  %3735 = vmatprep.subr.bf16.mxu1 %v15488_v19  ;;  %v15560_v18 = vld [vmem:[#allocation2 + $0xbc] ss:$28 sps:$4 sm:$0xff]  }
 0x19a   :  { %v15561_v19 = vld [vmem:[#allocation2 + $0x280] ss:$28 sps:$4 sm:$0xff]  }
 0x19c   :  { %3531 = vmatpush1.bf16.msra.mxu0 %v15483_v20  ;;  %3736 = vmatpush1.bf16.msra.mxu1 %v15486_v21  ;;  %v15558_v20 = vld [vmem:[#allocation2 + $0xb8] ss:$28 sps:$4 sm:$0xff]   ;;  %v15562_v21 = vld [vmem:[#allocation2 + $0xc0] ss:$28 sps:$4 sm:$0xff]  }
 0x19d   :  { %3532 = vmatprep.subr.bf16.mxu0 %v15491_v23  ;;  %3737 = vmatprep.subr.bf16.mxu1 %v15494_v24  ;;  %v15565_v23 = vld [vmem:[#allocation2 + $0xf4] ss:$28 sps:$4 sm:$0xff]  }
 0x19e   :  { %v15566_v24 = vld [vmem:[#allocation2 + $0x2b8] ss:$28 sps:$4 sm:$0xff]  }
 0x1a0   :  { %3533 = vmatpush1.bf16.msra.mxu0 %v15489_v25  ;;  %3738 = vmatpush1.bf16.msra.mxu1 %v15492_v26  ;;  %v15563_v25 = vld [vmem:[#allocation2 + $0xf0] ss:$28 sps:$4 sm:$0xff]   ;;  %v15567_v26 = vld [vmem:[#allocation2 + $0xf8] ss:$28 sps:$4 sm:$0xff]  }
 0x1a1   :  { %3543 = vmatprep.subr.bf16.mxu0 %v15497_v28  ;;  %3748 = vmatprep.subr.bf16.mxu1 %v15500_v30  ;;  %v15571_v28 = vld [vmem:[#allocation2 + $0x2f0] ss:$28 sps:$4 sm:$0xff]  }
 0x1a2   :  { %v15572_v30 = vld [vmem:[#allocation2 + $0x130] ss:$28 sps:$4 sm:$0xff]  }
 0x1a3   :  { %3535 = vmatmul.mubr.bf16.vlgmr.msra.gmra.mrb[0].mxu0 %v17535_v34  ;;  %3740 = vmatmul.mubr.bf16.vlgmr.msra.gmra.mrb[0].mxu1 %v17535_v34 }
 0x1a4   :  { %3544 = vmatpush1.bf16.msra.mxu0 %v15495_v31  ;;  %3749 = vmatpush1.bf16.msra.mxu1 %v15498_v33  ;;  %v15575_v31 = vld [vmem:[#allocation2 + $0x164] ss:$28 sps:$4 sm:$0xff]  }
 0x1a5   :  { %3545 = vmatprep.subr.bf16.mxu0 %v15503_v35  ;;  %3750 = vmatprep.subr.bf16.mxu1 %v15506_v36  ;;  %v15576_v33 = vld [vmem:[#allocation2 + $0x328] ss:$28 sps:$4 sm:$0xff]   ;;  %v15573_v35 = vld [vmem:[#allocation2 + $0x160] ss:$28 sps:$4 sm:$0xff]  }
 0x1a6   :  { %3575 = vmatprep.mubr.bf16.mxu0 %v17290_v42  ;;  %3780 = vmatprep.mubr.bf16.mxu1 %v17290_v42  ;;  %v15577_v36 = vld [vmem:[#allocation2 + $0x168] ss:$28 sps:$4 sm:$0xff]  }
 0x1a8   :  { %3546 = vmatpush1.bf16.msra.mxu0 %v15501_v37  ;;  %3751 = vmatpush1.bf16.msra.mxu1 %v15504_v38  ;;  %v15580_v37 = vld [vmem:[#allocation2 + $0x19c] ss:$28 sps:$4 sm:$0xff]  }
 0x1a9   :  { %3547 = vmatprep.subr.bf16.mxu0 %v15509_v39  ;;  %3752 = vmatprep.subr.bf16.mxu1 %v15512_v40  ;;  %v15581_v38 = vld [vmem:[#allocation2 + $0x360] ss:$28 sps:$4 sm:$0xff]   ;;  %v15578_v39 = vld [vmem:[#allocation2 + $0x198] ss:$28 sps:$4 sm:$0xff]  }
 0x1aa   :  { %v15582_v40 = vld [vmem:[#allocation2 + $0x1a0] ss:$28 sps:$4 sm:$0xff]  }
 0x1ac   :  { %3548 = vmatpush1.bf16.msra.mxu0 %v15507_v41  ;;  %3753 = vmatpush1.bf16.msra.mxu1 %v15510_v43  ;;  %v15585_v41 = vld [vmem:[#allocation2 + $0x1d4] ss:$28 sps:$4 sm:$0xff]  }
 0x1ad   :  { %3549 = vmatprep.subr.bf16.mxu0 %v15515_v44  ;;  %3754 = vmatprep.subr.bf16.mxu1 %v15518_v45  ;;  %v15586_v43 = vld [vmem:[#allocation2 + $0x558] ss:$28 sps:$4 sm:$0xff]   ;;  %v15583_v44 = vld [vmem:[#allocation2 + $0x1d0] ss:$28 sps:$4 sm:$0xff]  }
 0x1ae   :  { %v15587_v45 = vld [vmem:[#allocation2 + $0x398] ss:$28 sps:$4 sm:$0xff]  }
 0x1b0   :  { %3550 = vmatpush1.bf16.msra.mxu0 %v15513_v46  ;;  %3755 = vmatpush1.bf16.msra.mxu1 %v15516_v47  ;;  %v15590_v46 = vld [vmem:[#allocation2 + $0x20c] ss:$28 sps:$4 sm:$0xff]  }
 0x1b1   :  { %3551 = vmatprep.subr.bf16.mxu0 %v15521_v49  ;;  %3756 = vmatprep.subr.bf16.mxu1 %v15524_v50  ;;  %v15591_v47 = vld [vmem:[#allocation2 + $0x590] ss:$28 sps:$4 sm:$0xff]   ;;  %v15588_v49 = vld [vmem:[#allocation2 + $0x208] ss:$28 sps:$4 sm:$0xff]  }
 0x1b2   :  { %v15592_v50 = vld [vmem:[#allocation2 + $0x3d0] ss:$28 sps:$4 sm:$0xff]  }
 0x1b4   :  { %3552 = vmatpush1.bf16.msra.mxu0 %v15519_v51  ;;  %3757 = vmatpush1.bf16.msra.mxu1 %v15522_v52  ;;  %v15595_v51 = vld [vmem:[#allocation2 + $0x244] ss:$28 sps:$4 sm:$0xff]  }
 0x1b5   :  { %3553 = vmatprep.subr.bf16.mxu0 %v15527_v53  ;;  %3758 = vmatprep.subr.bf16.mxu1 %v15530_v54  ;;  %v15596_v52 = vld [vmem:[#allocation2 + $0x5c8] ss:$28 sps:$4 sm:$0xff]   ;;  %v15593_v53 = vld [vmem:[#allocation2 + $0x240] ss:$28 sps:$4 sm:$0xff]  }
 0x1b6   :  { %v15597_v54 = vld [vmem:[#allocation2 + $0x408] ss:$28 sps:$4 sm:$0xff]  }
 0x1b8   :  { %3554 = vmatpush1.bf16.msra.mxu0 %v15525_v55  ;;  %3759 = vmatpush1.bf16.msra.mxu1 %v15528_v56  ;;  %v15600_v55 = vld [vmem:[#allocation2 + $0x27c] ss:$28 sps:$4 sm:$0xff]  }
 0x1b9   :  { %3555 = vmatprep.subr.bf16.mxu0 %v15533_v57  ;;  %3760 = vmatprep.subr.bf16.mxu1 %v15536_v58  ;;  %v15601_v56 = vld [vmem:[#allocation2 + $0x600] ss:$28 sps:$4 sm:$0xff]   ;;  %v15598_v57 = vld [vmem:[#allocation2 + $0x278] ss:$28 sps:$4 sm:$0xff]  }
 0x1ba   :  { %v15602_v58 = vld [vmem:[#allocation2 + $0x440] ss:$28 sps:$4 sm:$0xff]  }
 0x1bc   :  { %3556 = vmatpush1.bf16.msra.mxu0 %v15531_v59  ;;  %3761 = vmatpush1.bf16.msra.mxu1 %v15534_v60  ;;  %v15605_v59 = vld [vmem:[#allocation2 + $0x2b4] ss:$28 sps:$4 sm:$0xff]  }
 0x1bd   :  { %3557 = vmatprep.subr.bf16.mxu0 %v15539_v61  ;;  %3762 = vmatprep.subr.bf16.mxu1 %v15542_v62  ;;  %v15606_v60 = vld [vmem:[#allocation2 + $0x638] ss:$28 sps:$4 sm:$0xff]   ;;  %v15603_v61 = vld [vmem:[#allocation2 + $0x2b0] ss:$28 sps:$4 sm:$0xff]  }
 0x1be   :  { %v15607_v62 = vld [vmem:[#allocation2 + $0x478] ss:$28 sps:$4 sm:$0xff]  }
 0x1c0   :  { %3558 = vmatpush1.bf16.msra.mxu0 %v15537_v63  ;;  %3763 = vmatpush1.bf16.msra.mxu1 %v15540_v0  ;;  %v15610_v63 = vld [vmem:[#allocation2 + $0x2ec] ss:$28 sps:$4 sm:$0xff]  }
 0x1c1   :  { %3789 = vmatprep.subr.bf16.mxu0 %v15545_v2  ;;  %13858 = vmatprep.subr.bf16.mxu1 %v15546_v3  ;;  %v15611_v0 = vld [vmem:[#allocation2 + $0x670] ss:$28 sps:$4 sm:$0xff]   ;;  %v15615_v3 = vld [vmem:[#allocation2 + $0x324] ss:$28 sps:$4 sm:$0xff]  }
 0x1c2   :  { %v15612_v2 = vld [vmem:[#allocation2 + $0x4b0] ss:$28 sps:$4 sm:$0xff]  }
 0x1c3   :  { %3576 = vmatmul.mubr.bf16.vlgmr.msra.gmra.mrb[0].mxu0 %v17544_v4  ;;  %3781 = vmatmul.mubr.bf16.vlgmr.msra.gmra.mrb[0].mxu1 %v17544_v4 }
 0x1c4   :  { %3790 = vmatpush1.bf16.msra.mxu0 %v15543_v6  ;;  %13859 = vmatpush3.bf16.msra.mxu1 %v15547_v7  ;;  %v15616_v6 = vld [vmem:[#allocation2 + $0x6a8] ss:$28 sps:$4 sm:$0xff]   ;;  %v15613_v7 = vld [vmem:[#allocation2 + $0x320] ss:$28 sps:$4 sm:$0xff]  }
 0x1c5   :  { %3791 = vmatprep.subr.bf16.mxu0 %v15550_v8  ;;  %13860 = vmatprep.subr.bf16.mxu1 %v15551_v9  ;;  %v15617_v8 = vld [vmem:[#allocation2 + $0x4e8] ss:$28 sps:$4 sm:$0xff]   ;;  %v15620_v9 = vld [vmem:[#allocation2 + $0x35c] ss:$28 sps:$4 sm:$0xff]  }
 0x1c6   :  { %4026 = vmatprep.mubr.bf16.mxu1 %v17486_v48  ;;  %3821 = vmatprep.mubr.bf16.mxu0 %v17486_v48  ;;  %v15570_v48 = vld [vmem:[#allocation2 + $0x12c] ss:$28 sps:$4 sm:$0xff]  }
 0x1c8   :  { %3792 = vmatpush1.bf16.msra.mxu0 %v15548_v10  ;;  %13861 = vmatpush3.bf16.msra.mxu1 %v15552_v11  ;;  %v15621_v10 = vld [vmem:[#allocation2 + $0x6e0] ss:$28 sps:$4 sm:$0xff]   ;;  %v15618_v11 = vld [vmem:[#allocation2 + $0x358] ss:$28 sps:$4 sm:$0xff]  }
 0x1c9   :  { %3793 = vmatprep.subr.bf16.mxu0 %v15555_v12  ;;  %13862 = vmatprep.subr.bf16.mxu1 %v15556_v14  ;;  %v15622_v12 = vld [vmem:[#allocation2 + $0x520] ss:$28 sps:$4 sm:$0xff]   ;;  %v15625_v14 = vld [vmem:[#allocation2 + $0x394] ss:$28 sps:$4 sm:$0xff]  }
 0x1cc   :  { %3794 = vmatpush1.bf16.msra.mxu0 %v15553_v15  ;;  %13863 = vmatpush3.bf16.msra.mxu1 %v15557_v16  ;;  %v15626_v15 = vld [vmem:[#allocation2 + $0x8d8] ss:$28 sps:$4 sm:$0xff]   ;;  %v15623_v16 = vld [vmem:[#allocation2 + $0x390] ss:$28 sps:$4 sm:$0xff]  }
 0x1cd   :  { %3795 = vmatprep.subr.bf16.mxu0 %v15560_v18  ;;  %13864 = vmatprep.subr.bf16.mxu1 %v15561_v19  ;;  %v15627_v18 = vld [vmem:[#allocation2 + $0x718] ss:$28 sps:$4 sm:$0xff]   ;;  %v15630_v19 = vld [vmem:[#allocation2 + $0x3cc] ss:$28 sps:$4 sm:$0xff]  }
 0x1d0   :  { %3796 = vmatpush1.bf16.msra.mxu0 %v15558_v20  ;;  %13865 = vmatpush3.bf16.msra.mxu1 %v15562_v21  ;;  %v15631_v20 = vld [vmem:[#allocation2 + $0x910] ss:$28 sps:$4 sm:$0xff]   ;;  %v15628_v21 = vld [vmem:[#allocation2 + $0x3c8] ss:$28 sps:$4 sm:$0xff]  }
 0x1d1   :  { %3797 = vmatprep.subr.bf16.mxu0 %v15565_v23  ;;  %13866 = vmatprep.subr.bf16.mxu1 %v15566_v24  ;;  %v15632_v23 = vld [vmem:[#allocation2 + $0x750] ss:$28 sps:$4 sm:$0xff]   ;;  %v15635_v24 = vld [vmem:[#allocation2 + $0x404] ss:$28 sps:$4 sm:$0xff]  }
 0x1d4   :  { %3798 = vmatpush1.bf16.msra.mxu0 %v15563_v25  ;;  %13867 = vmatpush3.bf16.msra.mxu1 %v15567_v26  ;;  %v15636_v25 = vld [vmem:[#allocation2 + $0x948] ss:$28 sps:$4 sm:$0xff]   ;;  %v15633_v26 = vld [vmem:[#allocation2 + $0x400] ss:$28 sps:$4 sm:$0xff]  }
 0x1d5   :  { %3799 = vmatprep.subr.bf16.mxu0 %v15570_v48  ;;  %13868 = vmatprep.subr.bf16.mxu1 %v15571_v28  ;;  %v15637_v48 = vld [vmem:[#allocation2 + $0x788] ss:$28 sps:$4 sm:$0xff]   ;;  %v15641_v28 = vld [vmem:[#allocation2 + $0x980] ss:$28 sps:$4 sm:$0xff]  }
 0x1d8   :  { %3800 = vmatpush1.bf16.msra.mxu0 %v15568_v29  ;;  %13869 = vmatpush3.bf16.msra.mxu1 %v15572_v30  ;;  %v15638_v29 = vld [vmem:[#allocation2 + $0x438] ss:$28 sps:$4 sm:$0xff]   ;;  %v15642_v30 = vld [vmem:[#allocation2 + $0x7c0] ss:$28 sps:$4 sm:$0xff]  }
 0x1d9   :  { %3801 = vmatprep.subr.bf16.mxu0 %v15575_v31  ;;  %13870 = vmatprep.subr.bf16.mxu1 %v15576_v33  ;;  %v15645_v31 = vld [vmem:[#allocation2 + $0x474] ss:$28 sps:$4 sm:$0xff]  }
 0x1da   :  { %v15646_v33 = vld [vmem:[#allocation2 + $0x9b8] ss:$28 sps:$4 sm:$0xff]  }
 0x1dc   :  { %3802 = vmatpush1.bf16.msra.mxu0 %v15573_v35  ;;  %13871 = vmatpush3.bf16.msra.mxu1 %v15577_v36  ;;  %v15643_v35 = vld [vmem:[#allocation2 + $0x470] ss:$28 sps:$4 sm:$0xff]  }
 0x1dd   :  { %3803 = vmatprep.subr.bf16.mxu0 %v15580_v37  ;;  %13872 = vmatprep.subr.bf16.mxu1 %v15581_v38  ;;  %v15650_v36 = vld [vmem:[#allocation2 + $0x4ac] ss:$28 sps:$4 sm:$0xff]  }
 0x1de   :  { %v15651_v37 = vld [vmem:[#allocation2 + $0x9f0] ss:$28 sps:$4 sm:$0xff]   ;;  %v15648_v38 = vld [vmem:[#allocation2 + $0x4a8] ss:$28 sps:$4 sm:$0xff]  }
 0x1e0   :  { %3804 = vmatpush1.bf16.msra.mxu0 %v15578_v39  ;;  %13873 = vmatpush3.bf16.msra.mxu1 %v15582_v40  ;;  %v15652_v39 = vld [vmem:[#allocation2 + $0x830] ss:$28 sps:$4 sm:$0xff]   ;;  %v15655_v40 = vld [vmem:[#allocation2 + $0x4e4] ss:$28 sps:$4 sm:$0xff]  }
 0x1e1   :  { %3805 = vmatprep.subr.bf16.mxu0 %v15585_v41  ;;  %13880 = vmatprep.subr.bf16.mxu1 %v15586_v43  ;;  %v15656_v41 = vld [vmem:[#allocation2 + $0xa28] ss:$28 sps:$4 sm:$0xff]   ;;  %v15653_v43 = vld [vmem:[#allocation2 + $0x4e0] ss:$28 sps:$4 sm:$0xff]  }
 0x1e3   :  { %4027 = vmatmul.mubr.bf16.vlgmr.msra.gmra.mrb[4].mxu1 %v17493_v5 }
 0x1e4   :  { %3806 = vmatpush1.bf16.msra.mxu0 %v15583_v44  ;;  %13881 = vmatpush3.bf16.msra.mxu1 %v15587_v45  ;;  %v15657_v44 = vld [vmem:[#allocation2 + $0x868] ss:$28 sps:$4 sm:$0xff]   ;;  %v15660_v45 = vld [vmem:[#allocation2 + $0x51c] ss:$28 sps:$4 sm:$0xff]  }
 0x1e5   :  { %3807 = vmatprep.subr.bf16.mxu0 %v15590_v46  ;;  %13882 = vmatprep.subr.bf16.mxu1 %v15591_v47  ;;  %v15661_v46 = vld [vmem:[#allocation2 + $0xa60] ss:$28 sps:$4 sm:$0xff]   ;;  %v15658_v47 = vld [vmem:[#allocation2 + $0x518] ss:$28 sps:$4 sm:$0xff]  }
 0x1e6   :  { %4066 = vmatprep.mubr.bf16.mxu1 %v17500_v32 }
 0x1e8   :  { %3808 = vmatpush1.bf16.msra.mxu0 %v15588_v49  ;;  %13883 = vmatpush3.bf16.msra.mxu1 %v15592_v50  ;;  %v15662_v49 = vld [vmem:[#allocation2 + $0x8a0] ss:$28 sps:$4 sm:$0xff]   ;;  %v15665_v50 = vld [vmem:[#allocation2 + $0x554] ss:$28 sps:$4 sm:$0xff]  }
 0x1e9   :  { %3809 = vmatprep.subr.bf16.mxu0 %v15595_v51  ;;  %13884 = vmatprep.subr.bf16.mxu1 %v15596_v52  ;;  %v15666_v51 = vld [vmem:[#allocation2 + $0xc58] ss:$28 sps:$4 sm:$0xff]   ;;  %v15663_v52 = vld [vmem:[#allocation2 + $0x550] ss:$28 sps:$4 sm:$0xff]  }
 0x1ec   :  { %3810 = vmatpush1.bf16.msra.mxu0 %v15593_v53  ;;  %13885 = vmatpush3.bf16.msra.mxu1 %v15597_v54  ;;  %v15667_v53 = vld [vmem:[#allocation2 + $0xa98] ss:$28 sps:$4 sm:$0xff]   ;;  %v15670_v54 = vld [vmem:[#allocation2 + $0x58c] ss:$28 sps:$4 sm:$0xff]  }
 0x1ed   :  { %3811 = vmatprep.subr.bf16.mxu0 %v15600_v55  ;;  %13886 = vmatprep.subr.bf16.mxu1 %v15601_v56  ;;  %v15671_v55 = vld [vmem:[#allocation2 + $0xc90] ss:$28 sps:$4 sm:$0xff]   ;;  %v15668_v56 = vld [vmem:[#allocation2 + $0x588] ss:$28 sps:$4 sm:$0xff]  }
 0x1f0   :  { %3812 = vmatpush1.bf16.msra.mxu0 %v15598_v57  ;;  %13887 = vmatpush3.bf16.msra.mxu1 %v15602_v58  ;;  %v15672_v57 = vld [vmem:[#allocation2 + $0xad0] ss:$28 sps:$4 sm:$0xff]   ;;  %v15675_v58 = vld [vmem:[#allocation2 + $0x5c4] ss:$28 sps:$4 sm:$0xff]  }
 0x1f1   :  { %3813 = vmatprep.subr.bf16.mxu0 %v15605_v59  ;;  %13888 = vmatprep.subr.bf16.mxu1 %v15606_v60  ;;  %v15676_v59 = vld [vmem:[#allocation2 + $0xcc8] ss:$28 sps:$4 sm:$0xff]   ;;  %v15673_v60 = vld [vmem:[#allocation2 + $0x5c0] ss:$28 sps:$4 sm:$0xff]  }
 0x1f4   :  { %3814 = vmatpush1.bf16.msra.mxu0 %v15603_v61  ;;  %13889 = vmatpush3.bf16.msra.mxu1 %v15607_v62  ;;  %v15677_v61 = vld [vmem:[#allocation2 + $0xb08] ss:$28 sps:$4 sm:$0xff]   ;;  %v15680_v62 = vld [vmem:[#allocation2 + $0x5fc] ss:$28 sps:$4 sm:$0xff]  }
 0x1f5   :  { %3815 = vmatprep.subr.bf16.mxu0 %v15610_v63  ;;  %13890 = vmatprep.subr.bf16.mxu1 %v15611_v0  ;;  %v15681_v63 = vld [vmem:[#allocation2 + $0xd00] ss:$28 sps:$4 sm:$0xff]   ;;  %v15678_v0 = vld [vmem:[#allocation2 + $0x5f8] ss:$28 sps:$4 sm:$0xff]  }
 0x1f8   :  { %3816 = vmatpush1.bf16.msra.mxu0 %v15608_v1  ;;  %13891 = vmatpush3.bf16.msra.mxu1 %v15612_v2  ;;  %v15682_v1 = vld [vmem:[#allocation2 + $0xb40] ss:$28 sps:$4 sm:$0xff]   ;;  %v15685_v2 = vld [vmem:[#allocation2 + $0x634] ss:$28 sps:$4 sm:$0xff]  }
 0x1f9   :  { %3817 = vmatprep.subr.bf16.mxu0 %v15615_v3  ;;  %13892 = vmatprep.subr.bf16.mxu1 %v15616_v6  ;;  %v15686_v3 = vld [vmem:[#allocation2 + $0xd38] ss:$28 sps:$4 sm:$0xff]   ;;  %v15683_v6 = vld [vmem:[#allocation2 + $0x630] ss:$28 sps:$4 sm:$0xff]  }
 0x1fc   :  { %3818 = vmatpush1.bf16.msra.mxu0 %v15613_v7  ;;  %13893 = vmatpush3.bf16.msra.mxu1 %v15617_v8  ;;  %v15687_v7 = vld [vmem:[#allocation2 + $0xb78] ss:$28 sps:$4 sm:$0xff]   ;;  %v15690_v8 = vld [vmem:[#allocation2 + $0x66c] ss:$28 sps:$4 sm:$0xff]  }
 0x1fd   :  { %3819 = vmatprep.subr.bf16.mxu0 %v15620_v9  ;;  %13894 = vmatprep.subr.bf16.mxu1 %v15621_v10  ;;  %v15691_v9 = vld [vmem:[#allocation2 + $0xd70] ss:$28 sps:$4 sm:$0xff]   ;;  %v15688_v10 = vld [vmem:[#allocation2 + $0x668] ss:$28 sps:$4 sm:$0xff]  }
 0x200   :  { %3820 = vmatpush1.bf16.msra.mxu0 %v15618_v11  ;;  %13895 = vmatpush3.bf16.msra.mxu1 %v15622_v12  ;;  %v15692_v11 = vld [vmem:[#allocation2 + $0xbb0] ss:$28 sps:$4 sm:$0xff]   ;;  %v15695_v12 = vld [vmem:[#allocation2 + $0x6a4] ss:$28 sps:$4 sm:$0xff]  }
 0x201   :  { %3830 = vmatprep.subr.bf16.mxu0 %v15625_v14  ;;  %13902 = vmatprep.subr.bf16.mxu1 %v15626_v15  ;;  %v15696_v14 = vld [vmem:[#allocation2 + $0xda8] ss:$28 sps:$4 sm:$0xff]   ;;  %v15693_v15 = vld [vmem:[#allocation2 + $0x6a0] ss:$28 sps:$4 sm:$0xff]  }
 0x203   :  { %3822 = vmatmul.mubr.bf16.vlgmr.msra.gmra.mrb[4].mxu0 %v17493_v5  ;;  %4067 = vmatmul.mubr.bf16.vlgmr.msra.gmra.mrb[8].mxu1 %v17507_v13  ;;  %v15640_v5 = vld [vmem:[#allocation2 + $0x43c] ss:$28 sps:$4 sm:$0xff]  }
 0x204   :  { %3831 = vmatpush1.bf16.msra.mxu0 %v15623_v16  ;;  %13903 = vmatpush3.bf16.msra.mxu1 %v15627_v18  ;;  %v15697_v16 = vld [vmem:[#allocation2 + $0xbe8] ss:$28 sps:$4 sm:$0xff]   ;;  %v15700_v18 = vld [vmem:[#allocation2 + $0x6dc] ss:$28 sps:$4 sm:$0xff]  }
 0x205   :  { %3832 = vmatprep.subr.bf16.mxu0 %v15630_v19  ;;  %13904 = vmatprep.subr.bf16.mxu1 %v15631_v20  ;;  %v15701_v19 = vld [vmem:[#allocation2 + $0xde0] ss:$28 sps:$4 sm:$0xff]   ;;  %v15698_v20 = vld [vmem:[#allocation2 + $0x6d8] ss:$28 sps:$4 sm:$0xff]  }
 0x206   :  { %4106 = vmatprep.mubr.bf16.mxu1 %v17512_v17  ;;  %3862 = vmatprep.mubr.bf16.mxu0 %v17500_v32  ;;  %v15647_v32 = vld [vmem:[#allocation2 + $0x7f8] ss:$28 sps:$4 sm:$0xff]  }
 0x208   :  { %3833 = vmatpush1.bf16.msra.mxu0 %v15628_v21  ;;  %13905 = vmatpush3.bf16.msra.mxu1 %v15632_v23  ;;  %v15702_v21 = vld [vmem:[#allocation2 + $0xc20] ss:$28 sps:$4 sm:$0xff]   ;;  %v15705_v23 = vld [vmem:[#allocation2 + $0x714] ss:$28 sps:$4 sm:$0xff]  }
 0x209   :  { %3834 = vmatprep.subr.bf16.mxu0 %v15635_v24  ;;  %13906 = vmatprep.subr.bf16.mxu1 %v15636_v25  ;;  %v15703_v24 = vld [vmem:[#allocation2 + $0x710] ss:$28 sps:$4 sm:$0xff]   ;;  %v15706_v25 = vld [vmem:[#allocation2 + $0xe18] ss:$28 sps:$4 sm:$0xff]  }
 0x20c   :  { %3835 = vmatpush1.bf16.msra.mxu0 %v15633_v26  ;;  %13907 = vmatpush3.bf16.msra.mxu1 %v15637_v48  ;;  %v17291_v26 = vmov 0.0   ;;  %v15709_v48 = vld [vmem:[#allocation2 + $0x74c] ss:$28 sps:$4 sm:$0xff]  }
 0x20d   :  { %3836 = vmatprep.subr.bf16.mxu0 %v15640_v5  ;;  %13908 = vmatprep.subr.bf16.mxu1 %v15641_v28  ;;  %v15707_v5 = vld [vmem:[#allocation2 + $0x748] ss:$28 sps:$4 sm:$0xff]   ;;  %v15710_v28 = vld [vmem:[#allocation2 + $0xe50] ss:$28 sps:$4 sm:$0xff]  }
 0x210   :  { %3837 = vmatpush1.bf16.msra.mxu0 %v15638_v29  ;;  %13909 = vmatpush3.bf16.msra.mxu1 %v15642_v30  ;;  %v15713_v29 = vld [vmem:[#allocation2 + $0x784] ss:$28 sps:$4 sm:$0xff]  }
 0x211   :  { %3838 = vmatprep.subr.bf16.mxu0 %v15645_v31  ;;  %13910 = vmatprep.subr.bf16.mxu1 %v15646_v33  ;;  %v15711_v30 = vld [vmem:[#allocation2 + $0x780] ss:$28 sps:$4 sm:$0xff]   ;;  %v15715_v33 = vld [vmem:[#allocation2 + $0x7b8] ss:$28 sps:$4 sm:$0xff]  }
 0x212   :  { %v15717_v31 = vld [vmem:[#allocation2 + $0x7bc] ss:$28 sps:$4 sm:$0xff]  }
 0x214   :  { %3839 = vmatpush1.bf16.msra.mxu0 %v15643_v35  ;;  %13911 = vmatpush3.bf16.msra.mxu1 %v15647_v32  ;;  %v15718_v35 = vld [vmem:[#allocation2 + $0xec0] ss:$28 sps:$4 sm:$0xff]   ;;  %v15721_v32 = vld [vmem:[#allocation2 + $0x7f4] ss:$28 sps:$4 sm:$0xff]  }
 0x215   :  { %3840 = vmatprep.subr.bf16.mxu0 %v15650_v36  ;;  %13912 = vmatprep.subr.bf16.mxu1 %v15651_v37  ;;  %v15719_v36 = vld [vmem:[#allocation2 + $0x7f0] ss:$28 sps:$4 sm:$0xff]  }
 0x216   :  { %v15725_v37 = vld [vmem:[#allocation2 + $0x82c] ss:$28 sps:$4 sm:$0xff]  }
 0x218   :  { %3841 = vmatpush1.bf16.msra.mxu0 %v15648_v38  ;;  %13913 = vmatpush3.bf16.msra.mxu1 %v15652_v39  ;;  %v15723_v38 = vld [vmem:[#allocation2 + $0x828] ss:$28 sps:$4 sm:$0xff]   ;;  %v15726_v39 = vld [vmem:[#allocation2 + $0xf30] ss:$28 sps:$4 sm:$0xff]  }
 0x219   :  { %3842 = vmatprep.subr.bf16.mxu0 %v15655_v40  ;;  %13914 = vmatprep.subr.bf16.mxu1 %v15656_v41  ;;  %v15729_v40 = vld [vmem:[#allocation2 + $0x864] ss:$28 sps:$4 sm:$0xff]  }
 0x21a   :  { %v15727_v41 = vld [vmem:[#allocation2 + $0x860] ss:$28 sps:$4 sm:$0xff]  }
 0x21c   :  { %3843 = vmatpush1.bf16.msra.mxu0 %v15653_v43  ;;  %13915 = vmatpush3.bf16.msra.mxu1 %v15657_v44  ;;  %v15730_v43 = vld [vmem:[#allocation2 + $0xf68] ss:$28 sps:$4 sm:$0xff]   ;;  %v15733_v44 = vld [vmem:[#allocation2 + $0x89c] ss:$28 sps:$4 sm:$0xff]  }
 0x21d   :  { %3844 = vmatprep.subr.bf16.mxu0 %v15660_v45  ;;  %13916 = vmatprep.subr.bf16.mxu1 %v15661_v46  ;;  %v15731_v45 = vld [vmem:[#allocation2 + $0x898] ss:$28 sps:$4 sm:$0xff]   ;;  %v15734_v46 = vld [vmem:[#allocation2 + $0xfa0] ss:$28 sps:$4 sm:$0xff]  }
 0x220   :  { %3845 = vmatpush1.bf16.msra.mxu0 %v15658_v47  ;;  %13917 = vmatpush3.bf16.msra.mxu1 %v15662_v49  ;;  %v15737_v47 = vld [vmem:[#allocation2 + $0x8d4] ss:$28 sps:$4 sm:$0xff]   ;;  %v15740_v49 = vld [vmem:[#allocation4 + $0x4] ss:$28 sps:$4 sm:$0xff]  }
 0x221   :  { %3846 = vmatprep.subr.bf16.mxu0 %v15665_v50  ;;  %13924 = vmatprep.subr.bf16.mxu1 %v15666_v51  ;;  %v15735_v50 = vld [vmem:[#allocation2 + $0x8d0] ss:$28 sps:$4 sm:$0xff]   ;;  %v15738_v51 = vld [vmem:[#allocation4] ss:$28 sps:$4 sm:$0xff]  }
 0x223   :  { %4107 = vmatmul.mubr.bf16.vlgmr.msra.gmra.mrb[12].mxu1 %v17521_v22 }
 0x224   :  { %3847 = vmatpush1.bf16.msra.mxu0 %v15663_v52  ;;  %13925 = vmatpush3.bf16.msra.mxu1 %v15667_v53  ;;  %v15743_v52 = vld [vmem:[#allocation2 + $0x90c] ss:$28 sps:$4 sm:$0xff]   ;;  %v15746_v53 = vld [vmem:[#allocation4 + $0x3c] ss:$28 sps:$4 sm:$0xff]  }
 0x225   :  { %3848 = vmatprep.subr.bf16.mxu0 %v15670_v54  ;;  %13926 = vmatprep.subr.bf16.mxu1 %v15671_v55  ;;  %v15741_v54 = vld [vmem:[#allocation2 + $0x908] ss:$28 sps:$4 sm:$0xff]   ;;  %v15744_v55 = vld [vmem:[#allocation4 + $0x38] ss:$28 sps:$4 sm:$0xff]  }
 0x226   :  { %4146 = vmatprep.mubr.bf16.mxu1 %v17526_v27 }
 0x228   :  { %3849 = vmatpush1.bf16.msra.mxu0 %v15668_v56  ;;  %13927 = vmatpush3.bf16.msra.mxu1 %v15672_v57  ;;  %v15749_v56 = vld [vmem:[#allocation2 + $0x944] ss:$28 sps:$4 sm:$0xff]   ;;  %v15752_v57 = vld [vmem:[#allocation4 + $0x74] ss:$28 sps:$4 sm:$0xff]  }
 0x229   :  { %3850 = vmatprep.subr.bf16.mxu0 %v15675_v58  ;;  %13928 = vmatprep.subr.bf16.mxu1 %v15676_v59  ;;  %v15747_v58 = vld [vmem:[#allocation2 + $0x940] ss:$28 sps:$4 sm:$0xff]   ;;  %v15750_v59 = vld [vmem:[#allocation4 + $0x70] ss:$28 sps:$4 sm:$0xff]  }
 0x22c   :  { %3851 = vmatpush1.bf16.msra.mxu0 %v15673_v60  ;;  %13929 = vmatpush3.bf16.msra.mxu1 %v15677_v61  ;;  %v15755_v60 = vld [vmem:[#allocation2 + $0x97c] ss:$28 sps:$4 sm:$0xff]   ;;  %v15758_v61 = vld [vmem:[#allocation4 + $0xac] ss:$28 sps:$4 sm:$0xff]  }
 0x22d   :  { %3852 = vmatprep.subr.bf16.mxu0 %v15680_v62  ;;  %13930 = vmatprep.subr.bf16.mxu1 %v15681_v63  ;;  %v15753_v62 = vld [vmem:[#allocation2 + $0x978] ss:$28 sps:$4 sm:$0xff]   ;;  %v15756_v63 = vld [vmem:[#allocation4 + $0xa8] ss:$28 sps:$4 sm:$0xff]  }
 0x230   :  { %3853 = vmatpush1.bf16.msra.mxu0 %v15678_v0  ;;  %13931 = vmatpush3.bf16.msra.mxu1 %v15682_v1  ;;  %v15761_v0 = vld [vmem:[#allocation2 + $0x9b4] ss:$28 sps:$4 sm:$0xff]   ;;  %v15764_v1 = vld [vmem:[#allocation4 + $0xe4] ss:$28 sps:$4 sm:$0xff]  }
 0x231   :  { %3854 = vmatprep.subr.bf16.mxu0 %v15685_v2  ;;  %13932 = vmatprep.subr.bf16.mxu1 %v15686_v3  ;;  %v15759_v2 = vld [vmem:[#allocation2 + $0x9b0] ss:$28 sps:$4 sm:$0xff]   ;;  %v15762_v3 = vld [vmem:[#allocation4 + $0xe0] ss:$28 sps:$4 sm:$0xff]  }
 0x234   :  { %3855 = vmatpush1.bf16.msra.mxu0 %v15683_v6  ;;  %13933 = vmatpush3.bf16.msra.mxu1 %v15687_v7  ;;  %v15767_v6 = vld [vmem:[#allocation2 + $0x9ec] ss:$28 sps:$4 sm:$0xff]   ;;  %v15770_v7 = vld [vmem:[#allocation4 + $0x11c] ss:$28 sps:$4 sm:$0xff]  }
 0x235   :  { %3856 = vmatprep.subr.bf16.mxu0 %v15690_v8  ;;  %13934 = vmatprep.subr.bf16.mxu1 %v15691_v9  ;;  %v15765_v8 = vld [vmem:[#allocation2 + $0x9e8] ss:$28 sps:$4 sm:$0xff]   ;;  %v15768_v9 = vld [vmem:[#allocation4 + $0x118] ss:$28 sps:$4 sm:$0xff]  }
 0x238   :  { %3857 = vmatpush1.bf16.msra.mxu0 %v15688_v10  ;;  %13935 = vmatpush3.bf16.msra.mxu1 %v15692_v11  ;;  %v15773_v10 = vld [vmem:[#allocation2 + $0xa24] ss:$28 sps:$4 sm:$0xff]   ;;  %v15776_v11 = vld [vmem:[#allocation4 + $0x154] ss:$28 sps:$4 sm:$0xff]  }
 0x239   :  { %3858 = vmatprep.subr.bf16.mxu0 %v15695_v12  ;;  %13936 = vmatprep.subr.bf16.mxu1 %v15696_v14  ;;  %v15771_v12 = vld [vmem:[#allocation2 + $0xa20] ss:$28 sps:$4 sm:$0xff]   ;;  %v15774_v14 = vld [vmem:[#allocation4 + $0x150] ss:$28 sps:$4 sm:$0xff]  }
 0x23c   :  { %3859 = vmatpush1.bf16.msra.mxu0 %v15693_v15  ;;  %13937 = vmatpush3.bf16.msra.mxu1 %v15697_v16  ;;  %v15779_v15 = vld [vmem:[#allocation2 + $0xa5c] ss:$28 sps:$4 sm:$0xff]   ;;  %v15782_v16 = vld [vmem:[#allocation4 + $0x18c] ss:$28 sps:$4 sm:$0xff]  }
 0x23d   :  { %3860 = vmatprep.subr.bf16.mxu0 %v15700_v18  ;;  %13938 = vmatprep.subr.bf16.mxu1 %v15701_v19  ;;  %v15777_v18 = vld [vmem:[#allocation2 + $0xa58] ss:$28 sps:$4 sm:$0xff]   ;;  %v15780_v19 = vld [vmem:[#allocation4 + $0x188] ss:$28 sps:$4 sm:$0xff]  }
 0x240   :  { %3861 = vmatpush1.bf16.msra.mxu0 %v15698_v20  ;;  %13939 = vmatpush3.bf16.msra.mxu1 %v15702_v21  ;;  %v15785_v20 = vld [vmem:[#allocation2 + $0xa94] ss:$28 sps:$4 sm:$0xff]   ;;  %v15788_v21 = vld [vmem:[#allocation4 + $0x1c4] ss:$28 sps:$4 sm:$0xff]  }
 0x241   :  { %3871 = vmatprep.subr.bf16.mxu0 %v15705_v23  ;;  %14356 = vmatprep.subr.bf16.mxu1 %v17291_v26  ;;  %v15783_v23 = vld [vmem:[#allocation2 + $0xa90] ss:$28 sps:$4 sm:$0xff]  }
 0x243   :  { %3863 = vmatmul.mubr.bf16.vlgmr.msra.gmra.mrb[4].mxu0 %v17507_v13  ;;  %4147 = vmatmul.mubr.bf16.vlgmr.msra.gmra.mrb[16].mxu1 %v17535_v34  ;;  %v15714_v13 = vld [vmem:[#allocation2 + $0xe88] ss:$28 sps:$4 sm:$0xff]  }
 0x244   :  { %3872 = vmatpush1.bf16.msra.mxu0 %v15703_v24  ;;  %14357 = vmatpush3.bf16.msra.mxu1 %v15706_v25  ;;  %v15786_v24 = vld [vmem:[#allocation4 + $0x1c0] ss:$28 sps:$4 sm:$0xff]   ;;  %v15791_v25 = vld [vmem:[#allocation2 + $0xacc] ss:$28 sps:$4 sm:$0xff]  }
 0x245   :  { %3873 = vmatprep.subr.bf16.mxu0 %v15709_v48  ;;  %14358 = vmatprep.subr.bf16.mxu1 %v17291_v26  ;;  %v15794_v48 = vld [vmem:[#allocation4 + $0x1fc] ss:$28 sps:$4 sm:$0xff]  }
 0x246   :  { %14372 = vmatprep.mubr.msk.bf16.mxu1 %vm17292_vm0, %v17291_v26  ;;  %3903 = vmatprep.mubr.bf16.mxu0 %v17512_v17  ;;  %v15722_v17 = vld [vmem:[#allocation2 + $0xef8] ss:$28 sps:$4 sm:$0xff]  }
 0x248   :  { %3874 = vmatpush1.bf16.msra.mxu0 %v15707_v5  ;;  %14359 = vmatpush3.bf16.msra.mxu1 %v15710_v28  ;;  %v15789_v5 = vld [vmem:[#allocation2 + $0xac8] ss:$28 sps:$4 sm:$0xff]   ;;  %v15792_v28 = vld [vmem:[#allocation4 + $0x1f8] ss:$28 sps:$4 sm:$0xff]  }
 0x249   :  { %3875 = vmatprep.subr.bf16.mxu0 %v15713_v29  ;;  %14360 = vmatprep.subr.bf16.mxu1 %v17291_v26  ;;  %v15797_v29 = vld [vmem:[#allocation2 + $0xb04] ss:$28 sps:$4 sm:$0xff]  }
 0x24c   :  { %3876 = vmatpush1.bf16.msra.mxu0 %v15711_v30  ;;  %14361 = vmatpush3.bf16.msra.mxu1 %v15714_v13  ;;  %v15800_v30 = vld [vmem:[#allocation4 + $0x234] ss:$28 sps:$4 sm:$0xff]   ;;  %v752_v13 = vlaneseq }
 0x24d   :  { %3877 = vmatprep.subr.bf16.mxu0 %v15717_v31  ;;  %14362 = vmatprep.subr.bf16.mxu1 %v17291_v26  ;;  %v15795_v31 = vld [vmem:[#allocation2 + $0xb00] ss:$28 sps:$4 sm:$0xff]  }
 0x250   :  { %3878 = vmatpush1.bf16.msra.mxu0 %v15715_v33  ;;  %14363 = vmatpush3.bf16.msra.mxu1 %v15718_v35  ;;  %v15798_v33 = vld [vmem:[#allocation4 + $0x230] ss:$28 sps:$4 sm:$0xff]   ;;  %v15803_v35 = vld [vmem:[#allocation2 + $0xb3c] ss:$28 sps:$4 sm:$0xff]  }
 0x251   :  { %3879 = vmatprep.subr.bf16.mxu0 %v15721_v32  ;;  %14364 = vmatprep.subr.bf16.mxu1 %v17291_v26  ;;  %v15806_v32 = vld [vmem:[#allocation4 + $0x26c] ss:$28 sps:$4 sm:$0xff]  }
 0x254   :  { %3880 = vmatpush1.bf16.msra.mxu0 %v15719_v36  ;;  %14365 = vmatpush3.bf16.msra.mxu1 %v15722_v17  ;;  %v17574_v36 = vshrl.u32 %v752_v13, 7  ;;  %v15804_v17 = vld [vmem:[#allocation4 + $0x268] ss:$28 sps:$4 sm:$0xff]   ;;  %v15843_v13 = vld [vmem:[#allocation2 + $0xcc0] ss:$28 sps:$4 sm:$0xff]  }
 0x255   :  { %3881 = vmatprep.subr.bf16.mxu0 %v15725_v37  ;;  %14366 = vmatprep.subr.bf16.mxu1 %v17291_v26  ;;  %v15809_v37 = vld [vmem:[#allocation2 + $0xb74] ss:$28 sps:$4 sm:$0xff]  }
 0x258   :  { %3882 = vmatpush1.bf16.msra.mxu0 %v15723_v38  ;;  %14367 = vmatpush3.bf16.msra.mxu1 %v15726_v39  ;;  %v15812_v38 = vld [vmem:[#allocation4 + $0x2a4] ss:$28 sps:$4 sm:$0xff]  }
 0x259   :  { %3883 = vmatprep.subr.bf16.mxu0 %v15729_v40  ;;  %14368 = vmatprep.subr.bf16.mxu1 %v17291_v26  ;;  %v739_v39 = vld [vmem:[#allocation12] ss:$8 sm:$0xf] }
 0x25a   :  { %v740_v40 = vld [vmem:[#allocation12] ss:$8 sm:$0xf0] }
 0x25c   :  { %3884 = vmatpush1.bf16.msra.mxu0 %v15727_v41  ;;  %14369 = vmatpush3.bf16.msra.mxu1 %v15730_v43  ;;  %v15807_v41 = vld [vmem:[#allocation2 + $0xb70] ss:$28 sps:$4 sm:$0xff]   ;;  %v17577_v43 = vsub.s32 0, %v17574_v36 }
 0x25d   :  { %3885 = vmatprep.subr.bf16.mxu0 %v15733_v44  ;;  %14370 = vmatprep.subr.bf16.mxu1 %v17291_v26  ;;  %v17579_v44 = vor.u32 %v740_v40, %v739_v39  ;;  %v15858_v39 = vld [vmem:[#allocation4 + $0x460] ss:$28 sps:$4 sm:$0xff]   ;;  %v15863_v40 = vld [vmem:[#allocation2 + $0xd6c] ss:$28 sps:$4 sm:$0xff]  }
 0x260   :  { %3886 = vmatpush1.bf16.msra.mxu0 %v15731_v45  ;;  %14371 = vmatpush3.bf16.msra.mxu1 %v15734_v46  ;;  %v17582_v45 = vsub.s32 1, %v17574_v36  ;;  %v15815_v46 = vld [vmem:[#allocation2 + $0xbac] ss:$28 sps:$4 sm:$0xff]  }
 0x261   :  { %3887 = vmatprep.subr.bf16.mxu0 %v15737_v47  ;;  %6712 = vmatprep.subr.bf16.mxu1 %v15740_v49  ;;  %v15818_v47 = vld [vmem:[#allocation4 + $0x2dc] ss:$28 sps:$4 sm:$0xff]   ;;  %v17585_v49 = vsub.s32 3, %v17574_v36 }
 0x263   :  { %14373 = vmatmul.mubr.bf16.vlgmr.msra.gmra.mrb[20].mxu1 %v17544_v4 }
 0x264   :  { %3888 = vmatpush1.bf16.msra.mxu0 %v15735_v50  ;;  %6713 = vmatpush1.bf16.msra.mxu1 %v15738_v51  ;;  %v15813_v50 = vld [vmem:[#allocation2 + $0xba8] ss:$28 sps:$4 sm:$0xff]   ;;  %v15816_v51 = vld [vmem:[#allocation4 + $0x2d8] ss:$28 sps:$4 sm:$0xff]  }
 0x265   :  { %3889 = vmatprep.subr.bf16.mxu0 %v15743_v52  ;;  %6714 = vmatprep.subr.bf16.mxu1 %v15746_v53  ;;  %v755_v52 = vrot.slane %v17579_v44, %v17577_v43  ;;  %v759_v53 = vrot.slane %v17579_v44, %v17582_v45 }
 0x268   :  { %3890 = vmatpush1.bf16.msra.mxu0 %v15741_v54  ;;  %6715 = vmatpush1.bf16.msra.mxu1 %v15744_v55  ;;  %v15821_v54 = vld [vmem:[#allocation2 + $0xbe4] ss:$28 sps:$4 sm:$0xff]   ;;  %v15824_v55 = vld [vmem:[#allocation4 + $0x314] ss:$28 sps:$4 sm:$0xff]  }
 0x269   :  { %3891 = vmatprep.subr.bf16.mxu0 %v15749_v56  ;;  %6716 = vmatprep.subr.bf16.mxu1 %v15752_v57 }
 0x26c   :  { %3892 = vmatpush1.bf16.msra.mxu0 %v15747_v58  ;;  %6717 = vmatpush1.bf16.msra.mxu1 %v15750_v59  ;;  %v767_v58 = vrot.slane %v17579_v44, %v17585_v49  ;;  %v15819_v59 = vld [vmem:[#allocation2 + $0xbe0] ss:$28 sps:$4 sm:$0xff]  }
 0x26d   :  { %3893 = vmatprep.subr.bf16.mxu0 %v15755_v60  ;;  %6718 = vmatprep.subr.bf16.mxu1 %v15758_v61 }
 0x270   :  { %3894 = vmatpush1.bf16.msra.mxu0 %v15753_v62  ;;  %6719 = vmatpush1.bf16.msra.mxu1 %v15756_v63 }
 0x271   :  { %3895 = vmatprep.subr.bf16.mxu0 %v15761_v0  ;;  %6720 = vmatprep.subr.bf16.mxu1 %v15764_v1 }
 0x274   :  { %3896 = vmatpush1.bf16.msra.mxu0 %v15759_v2  ;;  %6721 = vmatpush1.bf16.msra.mxu1 %v15762_v3  ;;  %v15822_v2 = vld [vmem:[#allocation4 + $0x310] ss:$28 sps:$4 sm:$0xff]   ;;  %v15827_v3 = vld [vmem:[#allocation2 + $0xc1c] ss:$28 sps:$4 sm:$0xff]  }
 0x275   :  { %3897 = vmatprep.subr.bf16.mxu0 %v15767_v6  ;;  %6722 = vmatprep.subr.bf16.mxu1 %v15770_v7 }
 0x278   :  { %3898 = vmatpush1.bf16.msra.mxu0 %v15765_v8  ;;  %6723 = vmatpush1.bf16.msra.mxu1 %v15768_v9  ;;  %v15830_v8 = vld [vmem:[#allocation4 + $0x34c] ss:$28 sps:$4 sm:$0xff]  }
 0x279   :  { %3899 = vmatprep.subr.bf16.mxu0 %v15773_v10  ;;  %6724 = vmatprep.subr.bf16.mxu1 %v15776_v11  ;;  %v15825_v11 = vld [vmem:[#allocation2 + $0xc18] ss:$28 sps:$4 sm:$0xff]  }
 0x27c   :  { %3900 = vmatpush1.bf16.msra.mxu0 %v15771_v12  ;;  %6725 = vmatpush1.bf16.msra.mxu1 %v15774_v14  ;;  %v15828_v12 = vld [vmem:[#allocation4 + $0x348] ss:$28 sps:$4 sm:$0xff]  }
 0x27d   :  { %3901 = vmatprep.subr.bf16.mxu0 %v15779_v15  ;;  %6726 = vmatprep.subr.bf16.mxu1 %v15782_v16  ;;  %v15833_v16 = vld [vmem:[#allocation2 + $0xc54] ss:$28 sps:$4 sm:$0xff]  }
 0x280   :  { %3902 = vmatpush1.bf16.msra.mxu0 %v15777_v18  ;;  %6727 = vmatpush1.bf16.msra.mxu1 %v15780_v19  ;;  %v15836_v18 = vld [vmem:[#allocation4 + $0x384] ss:$28 sps:$4 sm:$0xff]  }
 0x281   :  { %3912 = vmatprep.subr.bf16.mxu0 %v15785_v20  ;;  %6728 = vmatprep.subr.bf16.mxu1 %v15788_v21  ;;  %v15831_v20 = vld [vmem:[#allocation2 + $0xc50] ss:$28 sps:$4 sm:$0xff]   ;;  %v15834_v21 = vld [vmem:[#allocation4 + $0x380] ss:$28 sps:$4 sm:$0xff]  }
 0x283   :  { %3904 = vmatmul.mubr.bf16.vlgmr.msra.gmra.mrb[4].mxu0 %v17521_v22  ;;  %v15801_v22 = vld [vmem:[#allocation2 + $0xb38] ss:$28 sps:$4 sm:$0xff]  }
 0x284   :  { %3913 = vmatpush1.bf16.msra.mxu0 %v15783_v23  ;;  %6729 = vmatpush1.bf16.msra.mxu1 %v15786_v24  ;;  %v15839_v23 = vld [vmem:[#allocation2 + $0xc8c] ss:$28 sps:$4 sm:$0xff]  }
 0x285   :  { %3914 = vmatprep.subr.bf16.mxu0 %v15791_v25  ;;  %6730 = vmatprep.subr.bf16.mxu1 %v15794_v48  ;;  %v15837_v25 = vld [vmem:[#allocation2 + $0xc88] ss:$28 sps:$4 sm:$0xff]   ;;  %v15842_v48 = vld [vmem:[#allocation4 + $0x3bc] ss:$28 sps:$4 sm:$0xff]  }
 0x286   :  { %3944 = vmatprep.mubr.bf16.mxu0 %v17526_v27  ;;  %v15810_v27 = vld [vmem:[#allocation4 + $0x2a0] ss:$28 sps:$4 sm:$0xff]  }
 0x288   :  { %3915 = vmatpush1.bf16.msra.mxu0 %v15789_v5  ;;  %6731 = vmatpush1.bf16.msra.mxu1 %v15792_v28  ;;  %v15840_v28 = vld [vmem:[#allocation4 + $0x3b8] ss:$28 sps:$4 sm:$0xff]  }
 0x289   :  { %3916 = vmatprep.subr.bf16.mxu0 %v15797_v29  ;;  %6732 = vmatprep.subr.bf16.mxu1 %v15800_v30  ;;  %v15845_v29 = vld [vmem:[#allocation2 + $0xcc4] ss:$28 sps:$4 sm:$0xff]   ;;  %v15848_v30 = vld [vmem:[#allocation4 + $0x3f4] ss:$28 sps:$4 sm:$0xff]  }
 0x28c   :  { %3917 = vmatpush1.bf16.msra.mxu0 %v15795_v31  ;;  %6733 = vmatpush1.bf16.msra.mxu1 %v15798_v33  ;;  %v15846_v31 = vld [vmem:[#allocation4 + $0x3f0] ss:$28 sps:$4 sm:$0xff]   ;;  %v15851_v33 = vld [vmem:[#allocation2 + $0xcfc] ss:$28 sps:$4 sm:$0xff]  }
 0x28d   :  { %3918 = vmatprep.subr.bf16.mxu0 %v15803_v35  ;;  %6734 = vmatprep.subr.bf16.mxu1 %v15806_v32  ;;  %v15854_v35 = vld [vmem:[#allocation4 + $0x42c] ss:$28 sps:$4 sm:$0xff]   ;;  %v15849_v32 = vld [vmem:[#allocation2 + $0xcf8] ss:$28 sps:$4 sm:$0xff]  }
 0x290   :  { %3919 = vmatpush1.bf16.msra.mxu0 %v15801_v22  ;;  %6735 = vmatpush1.bf16.msra.mxu1 %v15804_v17  ;;  %v15852_v22 = vld [vmem:[#allocation4 + $0x428] ss:$28 sps:$4 sm:$0xff]   ;;  %v15857_v17 = vld [vmem:[#allocation2 + $0xd34] ss:$28 sps:$4 sm:$0xff]  }
 0x291   :  { %3920 = vmatprep.subr.bf16.mxu0 %v15809_v37  ;;  %6736 = vmatprep.subr.bf16.mxu1 %v15812_v38  ;;  %v15860_v37 = vld [vmem:[#allocation4 + $0x464] ss:$28 sps:$4 sm:$0xff]   ;;  %v15855_v38 = vld [vmem:[#allocation2 + $0xd30] ss:$28 sps:$4 sm:$0xff]  }
 0x294   :  { %3921 = vmatpush1.bf16.msra.mxu0 %v15807_v41  ;;  %6737 = vmatpush1.bf16.msra.mxu1 %v15810_v27  ;;  %v15866_v41 = vld [vmem:[#allocation4 + $0x49c] ss:$28 sps:$4 sm:$0xff]   ;;  %v15861_v27 = vld [vmem:[#allocation2 + $0xd68] ss:$28 sps:$4 sm:$0xff]  }
 0x295   :  { %3922 = vmatprep.subr.bf16.mxu0 %v15815_v46  ;;  %6738 = vmatprep.subr.bf16.mxu1 %v15818_v47  ;;  %v15864_v46 = vld [vmem:[#allocation4 + $0x498] ss:$28 sps:$4 sm:$0xff]   ;;  %v15869_v47 = vld [vmem:[#allocation2 + $0xda4] ss:$28 sps:$4 sm:$0xff]  }
 0x296   :  { %v3577_v56 = vpop.f32.mrb[0].mxu0  ;;  %v17591_v57 = vpop.f32.mrb[0].mxu1 }
 0x297   :  { %v3579_v60 = vpop.f32.mrb[1].mxu0  ;;  %v3784_v61 = vpop.f32.mrb[1].mxu1  ;;  %v14948_v62 = vadd.f32 %v3577_v56, %v755_v52  ;;  %v15870_v52 = vld [vmem:[#allocation4 + $0x4d0] ss:$28 sps:$4 sm:$0xff]   ;;  %v15876_v56 = vld [vmem:[#allocation4 + $0x508] ss:$28 sps:$4 sm:$0xff]  }
 0x298   :  { %v14949_v63 = vadd.f32 %v3579_v60, %v759_v53  ;;  %v3581_v0 = vpop.f32.mrb[2].mxu0  ;;  %v3786_v1 = vpop.f32.mrb[2].mxu1  ;;  %3923 = vmatpush1.bf16.msra.mxu0 %v15813_v50  ;;  %6739 = vmatpush1.bf16.msra.mxu1 %v15816_v51  ;;  %v14951_v10 = vadd.f32 %v3784_v61, %v767_v58  ;;  %v15872_v50 = vld [vmem:[#allocation4 + $0x4d4] ss:$28 sps:$4 sm:$0xff]   ;;  %v15867_v51 = vld [vmem:[#allocation2 + $0xda0] ss:$28 sps:$4 sm:$0xff]  }
 0x299   :  { %v3582_v6 = vpop.f32.mrb[3].mxu0  ;;  %v3787_v7 = vpop.f32.mrb[3].mxu1  ;;  %3924 = vmatprep.subr.bf16.mxu0 %v15821_v54  ;;  %6740 = vmatprep.subr.bf16.mxu1 %v15824_v55  ;;  %v4194_v14 = vmax.f32 %v14948_v62, 0.0  ;;  %v15875_v53 = vld [vmem:[#allocation2 + $0xddc] ss:$28 sps:$4 sm:$0xff]  }
 0x29a   :  { %v4195_v9 = vmax.f32 %v14949_v63, 0.0  ;;  %v4197_v19 = vmax.f32 %v14951_v10, 0.0  ;;  %v15878_v54 = vld [vmem:[#allocation4 + $0x50c] ss:$28 sps:$4 sm:$0xff]   ;;  %v15873_v55 = vld [vmem:[#allocation2 + $0xdd8] ss:$28 sps:$4 sm:$0xff]  }
 0x29b   :  { %v17598_v24 = vpack.c.bf16 %v4194_v14, %v4194_v14  ;;  %v15881_v58 = vld [vmem:[#allocation2 + $0xe14] ss:$28 sps:$4 sm:$0xff]   ;;  %v15882_v61 = vld [vmem:[#allocation4 + $0x540] ss:$28 sps:$4 sm:$0xff]   ;;  %v15887_v62 = vld [vmem:[#allocation2 + $0xe4c] ss:$28 sps:$4 sm:$0xff]  }
 0x29c   :  { %v17595_v15 = vpack.c.bf16 %v4195_v9, %v4195_v9  ;;  %3925 = vmatpush1.bf16.msra.mxu0 %v15819_v59  ;;  %6741 = vmatpush1.bf16.msra.mxu1 %v15822_v2  ;;  %v17600_v5 = vpack.c.bf16 %v4197_v19, %v4197_v19  ;;  %v15884_v59 = vld [vmem:[#allocation4 + $0x544] ss:$28 sps:$4 sm:$0xff]   ;;  %v15879_v60 = vld [vmem:[#allocation2 + $0xe10] ss:$28 sps:$4 sm:$0xff]   ;;  %v15890_v63 = vld [vmem:[#allocation4 + $0x57c] ss:$28 sps:$4 sm:$0xff]  }
 0x29d   :  { %3926 = vmatprep.subr.bf16.mxu0 %v15827_v3  ;;  %6742 = vmatprep.subr.bf16.mxu1 %v15830_v8  ;;  %v15885_v0 = vld [vmem:[#allocation2 + $0xe48] ss:$28 sps:$4 sm:$0xff]   ;;  %v15888_v1 = vld [vmem:[#allocation4 + $0x578] ss:$28 sps:$4 sm:$0xff]   ;;  %v15891_v6 = vld [vmem:[#allocation2 + $0xe80] ss:$28 sps:$4 sm:$0xff]  }
 0x29e   :  { %6744 = vmatprep.mubr.bf16.mxu1 %v17595_v15  ;;  %v15893_v2 = vld [vmem:[#allocation2 + $0xe84] ss:$28 sps:$4 sm:$0xff]   ;;  %v15896_v3 = vld [vmem:[#allocation4 + $0x5b4] ss:$28 sps:$4 sm:$0xff]   ;;  %v15899_v8 = vld [vmem:[#allocation2 + $0xebc] ss:$28 sps:$4 sm:$0xff]  }
 0x29f   :  { %v15894_v7 = vld [vmem:[#allocation4 + $0x5b0] ss:$28 sps:$4 sm:$0xff]  }
 0x2a0   :  { %3927 = vmatpush1.bf16.msra.mxu0 %v15825_v11  ;;  %6743 = vmatpush1.bf16.msra.mxu1 %v15828_v12  ;;  %v15902_v9 = vld [vmem:[#allocation4 + $0x5ec] ss:$28 sps:$4 sm:$0xff]   ;;  %v15897_v12 = vld [vmem:[#allocation2 + $0xeb8] ss:$28 sps:$4 sm:$0xff]  }
 0x2a1   :  { %3928 = vmatprep.subr.bf16.mxu0 %v15833_v16  ;;  %6753 = vmatprep.subr.bf16.mxu1 %v15836_v18  ;;  %v15905_v19 = vld [vmem:[#allocation2 + $0xef4] ss:$28 sps:$4 sm:$0xff]  }
 0x2a3   :  { %6745 = vmatmul.mubr.bf16.vlgmr.msra.gmra.mrb[24].mxu1 %v17598_v24 }
 0x2a4   :  { %3929 = vmatpush1.bf16.msra.mxu0 %v15831_v20  ;;  %6754 = vmatpush1.bf16.msra.mxu1 %v15834_v21  ;;  %v15908_v20 = vld [vmem:[#allocation4 + $0x624] ss:$28 sps:$4 sm:$0xff]   ;;  %v15903_v21 = vld [vmem:[#allocation2 + $0xef0] ss:$28 sps:$4 sm:$0xff]  }
 0x2a5   :  { %6785 = vmatprep.mubr.bf16.mxu1 %v17600_v5  ;;  %3930 = vmatprep.subr.bf16.mxu0 %v15839_v23  ;;  %v15906_v23 = vld [vmem:[#allocation4 + $0x620] ss:$28 sps:$4 sm:$0xff]  }
 0x2a6   :  { %6755 = vmatprep.subr.bf16.mxu1 %v15842_v48  ;;  %v15911_v48 = vld [vmem:[#allocation2 + $0xf2c] ss:$28 sps:$4 sm:$0xff]  }
 0x2a8   :  { %3931 = vmatpush1.bf16.msra.mxu0 %v15837_v25  ;;  %6756 = vmatpush1.bf16.msra.mxu1 %v15840_v28  ;;  %v778_v25 = vsub.s32 6, %v17574_v36  ;;  %v15914_v28 = vld [vmem:[#allocation4 + $0x65c] ss:$28 sps:$4 sm:$0xff]  }
 0x2a9   :  { %3932 = vmatprep.subr.bf16.mxu0 %v15845_v29  ;;  %6757 = vmatprep.subr.bf16.mxu1 %v15848_v30  ;;  %v17608_v29 = vsub.s32 2, %v17574_v36  ;;  %v15909_v30 = vld [vmem:[#allocation2 + $0xf28] ss:$28 sps:$4 sm:$0xff]  }
 0x2ac   :  { %3933 = vmatpush1.bf16.msra.mxu0 %v15843_v13  ;;  %6758 = vmatpush1.bf16.msra.mxu1 %v15846_v31  ;;  %v15912_v13 = vld [vmem:[#allocation4 + $0x658] ss:$28 sps:$4 sm:$0xff]   ;;  %v779_v31 = vrot.slane %v17579_v44, %v778_v25 }
 0x2ad   :  { %3934 = vmatprep.subr.bf16.mxu0 %v15851_v33  ;;  %6759 = vmatprep.subr.bf16.mxu1 %v15854_v35  ;;  %v15917_v33 = vld [vmem:[#allocation2 + $0xf64] ss:$28 sps:$4 sm:$0xff]   ;;  %v15920_v35 = vld [vmem:[#allocation4 + $0x694] ss:$28 sps:$4 sm:$0xff]  }
 0x2b0   :  { %3935 = vmatpush1.bf16.msra.mxu0 %v15849_v32  ;;  %6760 = vmatpush1.bf16.msra.mxu1 %v15852_v22  ;;  %v763_v32 = vrot.slane %v17579_v44, %v17608_v29  ;;  %v15915_v22 = vld [vmem:[#allocation2 + $0xf60] ss:$28 sps:$4 sm:$0xff]  }
 0x2b1   :  { %3936 = vmatprep.subr.bf16.mxu0 %v15857_v17  ;;  %6761 = vmatprep.subr.bf16.mxu1 %v15860_v37  ;;  %v15918_v17 = vld [vmem:[#allocation4 + $0x690] ss:$28 sps:$4 sm:$0xff]  }
 0x2b4   :  { %3937 = vmatpush1.bf16.msra.mxu0 %v15855_v38  ;;  %6762 = vmatpush1.bf16.msra.mxu1 %v15858_v39 }
 0x2b5   :  { %3938 = vmatprep.subr.bf16.mxu0 %v15863_v40  ;;  %6763 = vmatprep.subr.bf16.mxu1 %v15866_v41  ;;  %v15923_v40 = vld [vmem:[#allocation2 + $0xf9c] ss:$28 sps:$4 sm:$0xff]   ;;  %v15926_v41 = vld [vmem:[#allocation4 + $0x6cc] ss:$28 sps:$4 sm:$0xff]  }
 0x2b6   :  { %v13874_v10 = vpop.f32.mrb[4].mxu1 }
 0x2b7   :  { %v13875_v11 = vpop.f32.mrb[5].mxu1 }
 0x2b8   :  { %3939 = vmatpush1.bf16.msra.mxu0 %v15861_v27  ;;  %6764 = vmatpush1.bf16.msra.mxu1 %v15864_v46  ;;  %v13876_v14 = vadd.f32 %v13875_v11, %v13874_v10  ;;  %v13877_v16 = vpop.f32.mrb[6].mxu1  ;;  %v15939_v10 = vld [vmem:[#allocation4 + $0xe8] ss:$28 sps:$4 sm:$0xff]  }
 0x2b9   :  { %3940 = vmatprep.subr.bf16.mxu0 %v15869_v47  ;;  %6765 = vmatprep.subr.bf16.mxu1 %v15872_v50  ;;  %v13878_v18 = vpop.f32.mrb[7].mxu1  ;;  %v14950_v47 = vadd.f32 %v17591_v57, %v763_v32  ;;  %v16023_v57 = vld [vmem:[#allocation4 + $0x700] ss:$28 sps:$4 sm:$0xff]   ;;  %v15948_v32 = vld [vmem:[#allocation4 + $0x190] ss:$28 sps:$4 sm:$0xff]  }
 0x2ba   :  { %v4029_v37 = vadd.f32 %v13876_v14, %v779_v31  ;;  %v15944_v11 = vld [vmem:[#allocation4 + $0x124] ss:$28 sps:$4 sm:$0xff]   ;;  %v15947_v16 = vld [vmem:[#allocation4 + $0x15c] ss:$28 sps:$4 sm:$0xff]  }
 0x2bb   :  { %v15942_v14 = vld [vmem:[#allocation4 + $0x120] ss:$28 sps:$4 sm:$0xff]  }
 0x2bc   :  { %3941 = vmatpush1.bf16.msra.mxu0 %v15867_v51  ;;  %6766 = vmatpush1.bf16.msra.mxu1 %v15870_v52  ;;  %v15921_v51 = vld [vmem:[#allocation2 + $0xf98] ss:$28 sps:$4 sm:$0xff]  }
 0x2bd   :  { %3942 = vmatprep.subr.bf16.mxu0 %v15875_v53  ;;  %6767 = vmatprep.subr.bf16.mxu1 %v15878_v54  ;;  %v15924_v53 = vld [vmem:[#allocation4 + $0x6c8] ss:$28 sps:$4 sm:$0xff]   ;;  %v16055_v18 = vld [vmem:[#allocation4 + $0x81c] ss:$28 sps:$4 sm:$0xff]  }
 0x2be   :  { %v15929_v54 = vld [vmem:[#allocation4 + $0xc] ss:$28 sps:$4 sm:$0xff]  }
 0x2c0   :  { %3943 = vmatpush1.bf16.msra.mxu0 %v15873_v55  ;;  %6768 = vmatpush1.bf16.msra.mxu1 %v15876_v56  ;;  %v4196_v55 = vmax.f32 %v14950_v47, 0.0  ;;  %v15927_v56 = vld [vmem:[#allocation4 + $0x8] ss:$28 sps:$4 sm:$0xff]   ;;  %v16079_v47 = vld [vmem:[#allocation4 + $0x8fc] ss:$28 sps:$4 sm:$0xff]  }
 0x2c1   :  { %3953 = vmatprep.subr.bf16.mxu0 %v15881_v58  ;;  %6769 = vmatprep.subr.bf16.mxu1 %v15884_v59  ;;  %v15932_v58 = vld [vmem:[#allocation4 + $0x44] ss:$28 sps:$4 sm:$0xff]  }
 0x2c2   :  { %v17618_v59 = vpack.c.bf16 %v4196_v55, %v4196_v55  ;;  %v15960_v55 = vld [vmem:[#allocation4 + $0x270] ss:$28 sps:$4 sm:$0xff]  }
 0x2c3   :  { %3945 = vmatmul.mubr.bf16.vlgmr.msra.gmra.mrb[4].mxu0 %v17535_v34  ;;  %v15900_v34 = vld [vmem:[#allocation4 + $0x5e8] ss:$28 sps:$4 sm:$0xff]  }
 0x2c4   :  { %3954 = vmatpush1.bf16.msra.mxu0 %v15879_v60  ;;  %6770 = vmatpush1.bf16.msra.mxu1 %v15882_v61  ;;  %v16025_v60 = vld [vmem:[#allocation4 + $0x704] ss:$28 sps:$4 sm:$0xff]  }
 0x2c5   :  { %3955 = vmatprep.subr.bf16.mxu0 %v15887_v62  ;;  %6771 = vmatprep.subr.bf16.mxu1 %v15890_v63  ;;  %v15930_v61 = vld [vmem:[#allocation4 + $0x40] ss:$28 sps:$4 sm:$0xff]  }
 0x2c6   :  { %3985 = vmatprep.mubr.bf16.mxu0 %v17290_v42  ;;  %v16031_v62 = vld [vmem:[#allocation4 + $0x73c] ss:$28 sps:$4 sm:$0xff]  }
 0x2c7   :  { %v15935_v63 = vld [vmem:[#allocation4 + $0x7c] ss:$28 sps:$4 sm:$0xff]  }
 0x2c8   :  { %3956 = vmatpush1.bf16.msra.mxu0 %v15885_v0  ;;  %6772 = vmatpush1.bf16.msra.mxu1 %v15888_v1  ;;  %v16029_v0 = vld [vmem:[#allocation4 + $0x738] ss:$28 sps:$4 sm:$0xff]  }
 0x2c9   :  { %3957 = vmatprep.subr.bf16.mxu0 %v15893_v2  ;;  %6773 = vmatprep.subr.bf16.mxu1 %v15896_v3  ;;  %v15933_v1 = vld [vmem:[#allocation4 + $0x78] ss:$28 sps:$4 sm:$0xff]  }
 0x2ca   :  { %v15938_v2 = vld [vmem:[#allocation4 + $0xb4] ss:$28 sps:$4 sm:$0xff]  }
 0x2cb   :  { %v16037_v3 = vld [vmem:[#allocation4 + $0x774] ss:$28 sps:$4 sm:$0xff]  }
 0x2cc   :  { %3958 = vmatpush1.bf16.msra.mxu0 %v15891_v6  ;;  %6774 = vmatpush1.bf16.msra.mxu1 %v15894_v7  ;;  %v15936_v6 = vld [vmem:[#allocation4 + $0xb0] ss:$28 sps:$4 sm:$0xff]  }
 0x2cd   :  { %3959 = vmatprep.subr.bf16.mxu0 %v15899_v8  ;;  %6775 = vmatprep.subr.bf16.mxu1 %v15902_v9  ;;  %v15941_v7 = vld [vmem:[#allocation4 + $0xec] ss:$28 sps:$4 sm:$0xff]  }
 0x2ce   :  { %v16043_v8 = vld [vmem:[#allocation4 + $0x7ac] ss:$28 sps:$4 sm:$0xff]  }
 0x2cf   :  { %v16041_v9 = vld [vmem:[#allocation4 + $0x7a8] ss:$28 sps:$4 sm:$0xff]  }
 0x2d0   :  { %3960 = vmatpush1.bf16.msra.mxu0 %v15897_v12  ;;  %6776 = vmatpush1.bf16.msra.mxu1 %v15900_v34  ;;  %v16049_v12 = vld [vmem:[#allocation4 + $0x7e4] ss:$28 sps:$4 sm:$0xff]  }
 0x2d1   :  { %3961 = vmatprep.subr.bf16.mxu0 %v15905_v19  ;;  %6777 = vmatprep.subr.bf16.mxu1 %v15908_v20  ;;  %v16047_v34 = vld [vmem:[#allocation4 + $0x7e0] ss:$28 sps:$4 sm:$0xff]   ;;  %v16053_v19 = vld [vmem:[#allocation4 + $0x818] ss:$28 sps:$4 sm:$0xff]  }
 0x2d4   :  { %3962 = vmatpush1.bf16.msra.mxu0 %v15903_v21  ;;  %6778 = vmatpush1.bf16.msra.mxu1 %v15906_v23  ;;  %v15945_v23 = vld [vmem:[#allocation4 + $0x158] ss:$28 sps:$4 sm:$0xff]  }
 0x2d5   :  { %3963 = vmatprep.subr.bf16.mxu0 %v15911_v48  ;;  %6779 = vmatprep.subr.bf16.mxu1 %v15914_v28 }
 0x2d6   :  { %v13896_v38 = vpop.f32.mrb[8].mxu1 }
 0x2d7   :  { %v13897_v39 = vpop.f32.mrb[9].mxu1 }
 0x2d8   :  { %3964 = vmatpush1.bf16.msra.mxu0 %v15909_v30  ;;  %6780 = vmatpush1.bf16.msra.mxu1 %v15912_v13  ;;  %v13898_v27 = vadd.f32 %v13897_v39, %v13896_v38  ;;  %v13899_v46 = vpop.f32.mrb[10].mxu1  ;;  %v16061_v30 = vld [vmem:[#allocation4 + $0x854] ss:$28 sps:$4 sm:$0xff]   ;;  %v15951_v38 = vld [vmem:[#allocation4 + $0x1c8] ss:$28 sps:$4 sm:$0xff]  }
 0x2d9   :  { %3965 = vmatprep.subr.bf16.mxu0 %v15917_v33  ;;  %6781 = vmatprep.subr.bf16.mxu1 %v15920_v35  ;;  %v13900_v50 = vpop.f32.mrb[11].mxu1  ;;  %v15950_v13 = vld [vmem:[#allocation4 + $0x194] ss:$28 sps:$4 sm:$0xff]   ;;  %v15956_v39 = vld [vmem:[#allocation4 + $0x204] ss:$28 sps:$4 sm:$0xff]  }
 0x2da   :  { %v17616_v52 = vadd.f32 %v13898_v27, %v4029_v37  ;;  %v16059_v33 = vld [vmem:[#allocation4 + $0x850] ss:$28 sps:$4 sm:$0xff]   ;;  %v16065_v37 = vld [vmem:[#allocation4 + $0x888] ss:$28 sps:$4 sm:$0xff]   ;;  %v15954_v27 = vld [vmem:[#allocation4 + $0x200] ss:$28 sps:$4 sm:$0xff]  }
 0x2db   :  { %v15959_v46 = vld [vmem:[#allocation4 + $0x23c] ss:$28 sps:$4 sm:$0xff]  }
 0x2dc   :  { %3966 = vmatpush1.bf16.msra.mxu0 %v15915_v22  ;;  %6782 = vmatpush1.bf16.msra.mxu1 %v15918_v17  ;;  %v15953_v22 = vld [vmem:[#allocation4 + $0x1cc] ss:$28 sps:$4 sm:$0xff]   ;;  %v16077_v50 = vld [vmem:[#allocation4 + $0x8f8] ss:$28 sps:$4 sm:$0xff]  }
 0x2dd   :  { %3967 = vmatprep.subr.bf16.mxu0 %v15923_v40  ;;  %6783 = vmatprep.subr.bf16.mxu1 %v15926_v41  ;;  %v16067_v17 = vld [vmem:[#allocation4 + $0x88c] ss:$28 sps:$4 sm:$0xff]   ;;  %v16073_v40 = vld [vmem:[#allocation4 + $0x8c4] ss:$28 sps:$4 sm:$0xff]  }
 0x2de   :  { %v16071_v41 = vld [vmem:[#allocation4 + $0x8c0] ss:$28 sps:$4 sm:$0xff]  }
 0x2e0   :  { %3968 = vmatpush1.bf16.msra.mxu0 %v15921_v51  ;;  %6784 = vmatpush1.bf16.msra.mxu1 %v15924_v53  ;;  %v15957_v51 = vld [vmem:[#allocation4 + $0x238] ss:$28 sps:$4 sm:$0xff]  }
 0x2e1   :  { %6876 = vmatprep.subr.bf16.mxu0 %v15929_v54  ;;  %6794 = vmatprep.subr.bf16.mxu1 %v16025_v60  ;;  %v16085_v53 = vld [vmem:[#allocation4 + $0x934] ss:$28 sps:$4 sm:$0xff]   ;;  %v15963_v60 = vld [vmem:[#allocation4 + $0x2a8] ss:$28 sps:$4 sm:$0xff]  }
 0x2e2   :  { %v16083_v54 = vld [vmem:[#allocation4 + $0x930] ss:$28 sps:$4 sm:$0xff]  }
 0x2e3   :  { %3986 = vmatmul.mubr.bf16.vlgmr.msra.gmra.mrb[4].mxu0 %v17544_v4  ;;  %6786 = vmatmul.mubr.bf16.vlgmr.msra.gmra.mrb[24].mxu1 %v17618_v59  ;;  %v16035_v4 = vld [vmem:[#allocation4 + $0x770] ss:$28 sps:$4 sm:$0xff]  }
 0x2e4   :  { %6877 = vmatpush1.bf16.msra.mxu0 %v15927_v56  ;;  %6908 = vmatprep.mubr.bf16.mxu0 %v17595_v15  ;;  %v15965_v56 = vld [vmem:[#allocation4 + $0x2ac] ss:$28 sps:$4 sm:$0xff]  }
 0x2e5   :  { %6878 = vmatprep.subr.bf16.mxu0 %v15932_v58  ;;  %6795 = vmatpush1.bf16.msra.mxu1 %v16023_v57  ;;  %v16091_v58 = vld [vmem:[#allocation4 + $0x96c] ss:$28 sps:$4 sm:$0xff]  }
 0x2e6   :  { %6796 = vmatprep.subr.bf16.mxu1 %v16031_v62  ;;  %v16089_v57 = vld [vmem:[#allocation4 + $0x968] ss:$28 sps:$4 sm:$0xff]  }
 0x2e7   :  { %v16097_v62 = vld [vmem:[#allocation4 + $0x9a4] ss:$28 sps:$4 sm:$0xff]  }
 0x2e8   :  { %6879 = vmatpush1.bf16.msra.mxu0 %v15930_v61  ;;  %v15968_v61 = vld [vmem:[#allocation4 + $0x2e4] ss:$28 sps:$4 sm:$0xff]  }
 0x2e9   :  { %6880 = vmatprep.subr.bf16.mxu0 %v15935_v63  ;;  %6797 = vmatpush1.bf16.msra.mxu1 %v16029_v0  ;;  %v16095_v63 = vld [vmem:[#allocation4 + $0x9a0] ss:$28 sps:$4 sm:$0xff]  }
 0x2ea   :  { %6798 = vmatprep.subr.bf16.mxu1 %v16037_v3  ;;  %v15966_v0 = vld [vmem:[#allocation4 + $0x2e0] ss:$28 sps:$4 sm:$0xff]   ;;  %v16101_v3 = vld [vmem:[#allocation4 + $0x9d8] ss:$28 sps:$4 sm:$0xff]  }
 0x2ec   :  { %6881 = vmatpush1.bf16.msra.mxu0 %v15933_v1  ;;  %v15971_v1 = vld [vmem:[#allocation4 + $0x31c] ss:$28 sps:$4 sm:$0xff]  }
 0x2ed   :  { %6882 = vmatprep.subr.bf16.mxu0 %v15938_v2  ;;  %6799 = vmatpush1.bf16.msra.mxu1 %v16035_v4  ;;  %v16103_v2 = vld [vmem:[#allocation4 + $0x9dc] ss:$28 sps:$4 sm:$0xff]  }
 0x2ee   :  { %6800 = vmatprep.subr.bf16.mxu1 %v16043_v8  ;;  %v15969_v4 = vld [vmem:[#allocation4 + $0x318] ss:$28 sps:$4 sm:$0xff]  }
 0x2f0   :  { %6883 = vmatpush1.bf16.msra.mxu0 %v15936_v6 }
 0x2f1   :  { %6884 = vmatprep.subr.bf16.mxu0 %v15941_v7  ;;  %6801 = vmatpush1.bf16.msra.mxu1 %v16041_v9  ;;  %v15974_v7 = vld [vmem:[#allocation4 + $0x354] ss:$28 sps:$4 sm:$0xff]  }
 0x2f2   :  { %6802 = vmatprep.subr.bf16.mxu1 %v16049_v12  ;;  %v15972_v12 = vld [vmem:[#allocation4 + $0x350] ss:$28 sps:$4 sm:$0xff]  }
 0x2f4   :  { %6885 = vmatpush1.bf16.msra.mxu0 %v15939_v10 }
 0x2f5   :  { %6886 = vmatprep.subr.bf16.mxu0 %v15944_v11  ;;  %6803 = vmatpush1.bf16.msra.mxu1 %v16047_v34 }
 0x2f6   :  { %v13918_v20 = vpop.f32.mrb[12].mxu1  ;;  %6804 = vmatprep.subr.bf16.mxu1 %v16055_v18  ;;  %v15980_v18 = vld [vmem:[#allocation4 + $0x3c4] ss:$28 sps:$4 sm:$0xff]  }
 0x2f7   :  { %v13919_v21 = vpop.f32.mrb[13].mxu1 }
 0x2f8   :  { %6887 = vmatpush1.bf16.msra.mxu0 %v15942_v14  ;;  %v13920_v48 = vadd.f32 %v13919_v21, %v13918_v20  ;;  %v13921_v28 = vpop.f32.mrb[14].mxu1  ;;  %v15977_v14 = vld [vmem:[#allocation4 + $0x38c] ss:$28 sps:$4 sm:$0xff]   ;;  %v15983_v20 = vld [vmem:[#allocation4 + $0x3fc] ss:$28 sps:$4 sm:$0xff]  }
 0x2f9   :  { %6888 = vmatprep.subr.bf16.mxu0 %v15947_v16  ;;  %v13922_v31 = vpop.f32.mrb[15].mxu1  ;;  %6805 = vmatpush1.bf16.msra.mxu1 %v16053_v19  ;;  %v15975_v16 = vld [vmem:[#allocation4 + $0x388] ss:$28 sps:$4 sm:$0xff]   ;;  %v15978_v19 = vld [vmem:[#allocation4 + $0x3c0] ss:$28 sps:$4 sm:$0xff]  }
 0x2fa   :  { %v17624_v35 = vadd.f32 %v13920_v48, %v17616_v52  ;;  %6806 = vmatprep.subr.bf16.mxu1 %v16061_v30  ;;  %v15962_v52 = vld [vmem:[#allocation4 + $0x274] ss:$28 sps:$4 sm:$0xff]   ;;  %v15989_v28 = vld [vmem:[#allocation4 + $0x46c] ss:$28 sps:$4 sm:$0xff]   ;;  %v15990_v31 = vld [vmem:[#allocation4 + $0x4a0] ss:$28 sps:$4 sm:$0xff]  }
 0x2fb   :  { %v15981_v21 = vld [vmem:[#allocation4 + $0x3f8] ss:$28 sps:$4 sm:$0xff]   ;;  %v15984_v48 = vld [vmem:[#allocation4 + $0x430] ss:$28 sps:$4 sm:$0xff]   ;;  %v15987_v30 = vld [vmem:[#allocation4 + $0x468] ss:$28 sps:$4 sm:$0xff]  }
 0x2fc   :  { %6889 = vmatpush1.bf16.msra.mxu0 %v15945_v23  ;;  %v15986_v23 = vld [vmem:[#allocation4 + $0x434] ss:$28 sps:$4 sm:$0xff]  }
 0x2fd   :  { %6890 = vmatprep.subr.bf16.mxu0 %v15950_v13  ;;  %6807 = vmatpush1.bf16.msra.mxu1 %v16059_v33  ;;  %v15992_v13 = vld [vmem:[#allocation4 + $0x4a4] ss:$28 sps:$4 sm:$0xff]   ;;  %v15995_v33 = vld [vmem:[#allocation4 + $0x4dc] ss:$28 sps:$4 sm:$0xff]  }
 0x2fe   :  { %6808 = vmatprep.subr.bf16.mxu1 %v16067_v17  ;;  %v16107_v17 = vld [vmem:[#allocation4 + $0xa10] ss:$28 sps:$4 sm:$0xff]  }
 0x300   :  { %6891 = vmatpush1.bf16.msra.mxu0 %v15948_v32  ;;  %v15993_v32 = vld [vmem:[#allocation4 + $0x4d8] ss:$28 sps:$4 sm:$0xff]  }
 0x301   :  { %6892 = vmatprep.subr.bf16.mxu0 %v15953_v22  ;;  %6809 = vmatpush1.bf16.msra.mxu1 %v16065_v37 }
 0x302   :  { %6810 = vmatprep.subr.bf16.mxu1 %v16073_v40  ;;  %v15998_v40 = vld [vmem:[#allocation4 + $0x514] ss:$28 sps:$4 sm:$0xff]  }
 0x304   :  { %6893 = vmatpush1.bf16.msra.mxu0 %v15951_v38 }
 0x305   :  { %6894 = vmatprep.subr.bf16.mxu0 %v15956_v39  ;;  %6811 = vmatpush1.bf16.msra.mxu1 %v16071_v41  ;;  %v16115_v41 = vld [vmem:[#allocation4 + $0xa4c] ss:$28 sps:$4 sm:$0xff]  }
 0x306   :  { %6812 = vmatprep.subr.bf16.mxu1 %v16079_v47  ;;  %v16113_v47 = vld [vmem:[#allocation4 + $0xa48] ss:$28 sps:$4 sm:$0xff]  }
 0x308   :  { %6895 = vmatpush1.bf16.msra.mxu0 %v15954_v27 }
 0x309   :  { %6896 = vmatprep.subr.bf16.mxu0 %v15959_v46  ;;  %6813 = vmatpush1.bf16.msra.mxu1 %v16077_v50  ;;  %v15996_v46 = vld [vmem:[#allocation4 + $0x510] ss:$28 sps:$4 sm:$0xff]  }
 0x30a   :  { %6814 = vmatprep.subr.bf16.mxu1 %v16085_v53  ;;  %v16001_v50 = vld [vmem:[#allocation4 + $0x54c] ss:$28 sps:$4 sm:$0xff]   ;;  %v16004_v53 = vld [vmem:[#allocation4 + $0x584] ss:$28 sps:$4 sm:$0xff]  }
 0x30c   :  { %6897 = vmatpush1.bf16.msra.mxu0 %v15957_v51  ;;  %v16121_v51 = vld [vmem:[#allocation4 + $0xa84] ss:$28 sps:$4 sm:$0xff]  }
 0x30d   :  { %6898 = vmatprep.subr.bf16.mxu0 %v15962_v52  ;;  %6815 = vmatpush1.bf16.msra.mxu1 %v16083_v54  ;;  %v15999_v52 = vld [vmem:[#allocation4 + $0x548] ss:$28 sps:$4 sm:$0xff]   ;;  %v16002_v54 = vld [vmem:[#allocation4 + $0x580] ss:$28 sps:$4 sm:$0xff]  }
 0x30e   :  { %6816 = vmatprep.subr.bf16.mxu1 %v16091_v58  ;;  %v16010_v58 = vld [vmem:[#allocation4 + $0x5f4] ss:$28 sps:$4 sm:$0xff]  }
 0x310   :  { %6899 = vmatpush1.bf16.msra.mxu0 %v15960_v55  ;;  %v16007_v55 = vld [vmem:[#allocation4 + $0x5bc] ss:$28 sps:$4 sm:$0xff]  }
 0x311   :  { %6900 = vmatprep.subr.bf16.mxu0 %v15965_v56  ;;  %6817 = vmatpush1.bf16.msra.mxu1 %v16089_v57  ;;  %v16005_v56 = vld [vmem:[#allocation4 + $0x5b8] ss:$28 sps:$4 sm:$0xff]   ;;  %v16008_v57 = vld [vmem:[#allocation4 + $0x5f0] ss:$28 sps:$4 sm:$0xff]  }
 0x312   :  { %6818 = vmatprep.subr.bf16.mxu1 %v16097_v62  ;;  %v16016_v62 = vld [vmem:[#allocation4 + $0x664] ss:$28 sps:$4 sm:$0xff]  }
 0x314   :  { %6901 = vmatpush1.bf16.msra.mxu0 %v15963_v60  ;;  %v16013_v60 = vld [vmem:[#allocation4 + $0x62c] ss:$28 sps:$4 sm:$0xff]  }
 0x315   :  { %6902 = vmatprep.subr.bf16.mxu0 %v15968_v61  ;;  %6819 = vmatpush1.bf16.msra.mxu1 %v16095_v63  ;;  %v16011_v61 = vld [vmem:[#allocation4 + $0x628] ss:$28 sps:$4 sm:$0xff]   ;;  %v16014_v63 = vld [vmem:[#allocation4 + $0x660] ss:$28 sps:$4 sm:$0xff]  }
 0x316   :  { %v13940_v6 = vpop.f32.mrb[16].mxu1  ;;  %6820 = vmatprep.subr.bf16.mxu1 %v16103_v2  ;;  %v16022_v2 = vld [vmem:[#allocation4 + $0x6d4] ss:$28 sps:$4 sm:$0xff]  }
 0x317   :  { %v13941_v8 = vpop.f32.mrb[17].mxu1 }
 0x318   :  { %6903 = vmatpush1.bf16.msra.mxu0 %v15966_v0  ;;  %v13942_v9 = vadd.f32 %v13941_v8, %v13940_v6  ;;  %v13943_v10 = vpop.f32.mrb[18].mxu1  ;;  %v16019_v0 = vld [vmem:[#allocation4 + $0x69c] ss:$28 sps:$4 sm:$0xff]   ;;  %v16026_v6 = vld [vmem:[#allocation4 + $0x708] ss:$28 sps:$4 sm:$0xff]  }
 0x319   :  { %6904 = vmatprep.subr.bf16.mxu0 %v15971_v1  ;;  %v13944_v11 = vpop.f32.mrb[19].mxu1  ;;  %6821 = vmatpush1.bf16.msra.mxu1 %v16101_v3  ;;  %v16017_v1 = vld [vmem:[#allocation4 + $0x698] ss:$28 sps:$4 sm:$0xff]   ;;  %v16020_v3 = vld [vmem:[#allocation4 + $0x6d0] ss:$28 sps:$4 sm:$0xff]  }
 0x31a   :  { %v4149_v34 = vadd.f32 %v13942_v9, %v17624_v35  ;;  %v16109_v35 = vld [vmem:[#allocation4 + $0xa14] ss:$28 sps:$4 sm:$0xff]   ;;  %v16032_v8 = vld [vmem:[#allocation4 + $0x740] ss:$28 sps:$4 sm:$0xff]  }
 0x31b   :  { %6822 = vmatprep.subr.bf16.mxu1 %v16109_v35  ;;  %v16040_v9 = vld [vmem:[#allocation4 + $0x77c] ss:$28 sps:$4 sm:$0xff]   ;;  %v16046_v11 = vld [vmem:[#allocation4 + $0x7b4] ss:$28 sps:$4 sm:$0xff]  }
 0x31c   :  { %6905 = vmatpush1.bf16.msra.mxu0 %v15969_v4  ;;  %v16028_v4 = vld [vmem:[#allocation4 + $0x70c] ss:$28 sps:$4 sm:$0xff]   ;;  %v16038_v10 = vld [vmem:[#allocation4 + $0x778] ss:$28 sps:$4 sm:$0xff]  }
 0x31d   :  { %6906 = vmatprep.subr.bf16.mxu0 %v15974_v7  ;;  %6823 = vmatpush1.bf16.msra.mxu1 %v16107_v17  ;;  %v16034_v7 = vld [vmem:[#allocation4 + $0x744] ss:$28 sps:$4 sm:$0xff]   ;;  %v16094_v35 = vld [vmem:[#allocation4 + $0x974] ss:$28 sps:$4 sm:$0xff]  }
 0x31e   :  { %6824 = vmatprep.subr.bf16.mxu1 %v16115_v41  ;;  %v16098_v17 = vld [vmem:[#allocation4 + $0x9a8] ss:$28 sps:$4 sm:$0xff]   ;;  %v16110_v41 = vld [vmem:[#allocation4 + $0xa18] ss:$28 sps:$4 sm:$0xff]  }
 0x320   :  { %6907 = vmatpush1.bf16.msra.mxu0 %v15972_v12  ;;  %v16044_v12 = vld [vmem:[#allocation4 + $0x7b0] ss:$28 sps:$4 sm:$0xff]  }
 0x321   :  { %6917 = vmatprep.subr.bf16.mxu0 %v15977_v14  ;;  %6825 = vmatpush1.bf16.msra.mxu1 %v16113_v47  ;;  %v16050_v14 = vld [vmem:[#allocation4 + $0x7e8] ss:$28 sps:$4 sm:$0xff]  }
 0x322   :  { %6835 = vmatprep.subr.bf16.mxu1 %v16121_v51  ;;  %v16124_v47 = vld [vmem:[#allocation4 + $0xa8c] ss:$28 sps:$4 sm:$0xff]   ;;  %v774_v51 = vsub.s32 5, %v17574_v36 }
 0x323   :  { %6909 = vmatmul.mubr.bf16.vlgmr.msra.gmra.mrb[8].mxu0 %v17598_v24 }
 0x324   :  { %6918 = vmatpush1.bf16.msra.mxu0 %v15975_v16  ;;  %6949 = vmatprep.mubr.bf16.mxu0 %v17600_v5  ;;  %v16058_v16 = vld [vmem:[#allocation4 + $0x824] ss:$28 sps:$4 sm:$0xff]  }
 0x325   :  { %6919 = vmatprep.subr.bf16.mxu0 %v15980_v18  ;;  %v16056_v18 = vld [vmem:[#allocation4 + $0x820] ss:$28 sps:$4 sm:$0xff]  }
 0x328   :  { %6920 = vmatpush1.bf16.msra.mxu0 %v15978_v19  ;;  %v16064_v19 = vld [vmem:[#allocation4 + $0x85c] ss:$28 sps:$4 sm:$0xff]  }
 0x329   :  { %6921 = vmatprep.subr.bf16.mxu0 %v15983_v20  ;;  %v16062_v20 = vld [vmem:[#allocation4 + $0x858] ss:$28 sps:$4 sm:$0xff]  }
 0x32c   :  { %6922 = vmatpush1.bf16.msra.mxu0 %v15981_v21  ;;  %v16070_v21 = vld [vmem:[#allocation4 + $0x894] ss:$28 sps:$4 sm:$0xff]  }
 0x32d   :  { %6923 = vmatprep.subr.bf16.mxu0 %v15986_v23  ;;  %v16068_v23 = vld [vmem:[#allocation4 + $0x890] ss:$28 sps:$4 sm:$0xff]  }
 0x330   :  { %6924 = vmatpush1.bf16.msra.mxu0 %v15984_v48  ;;  %v16076_v48 = vld [vmem:[#allocation4 + $0x8cc] ss:$28 sps:$4 sm:$0xff]  }
 0x331   :  { %6925 = vmatprep.subr.bf16.mxu0 %v15989_v28  ;;  %v16074_v28 = vld [vmem:[#allocation4 + $0x8c8] ss:$28 sps:$4 sm:$0xff]  }
 0x334   :  { %6926 = vmatpush1.bf16.msra.mxu0 %v15987_v30  ;;  %v16082_v30 = vld [vmem:[#allocation4 + $0x904] ss:$28 sps:$4 sm:$0xff]  }
 0x335   :  { %6927 = vmatprep.subr.bf16.mxu0 %v15992_v13  ;;  %v16080_v13 = vld [vmem:[#allocation4 + $0x900] ss:$28 sps:$4 sm:$0xff]  }
 0x336   :  { %v4188_v22 = vpop.f32.mrb[20].mxu1 }
 0x337   :  { %v17629_v37 = vadd.f32 %v4188_v22, %v4149_v34  ;;  %v14374_v38 = vpop.f32.mrb[21].mxu1  ;;  %v16052_v34 = vld [vmem:[#allocation4 + $0x7ec] ss:$28 sps:$4 sm:$0xff]  }
 0x338   :  { %6928 = vmatpush1.bf16.msra.mxu0 %v15990_v31  ;;  %v4191_v39 = vpop.f32.mrb[22].mxu1  ;;  %v16088_v31 = vld [vmem:[#allocation4 + $0x93c] ss:$28 sps:$4 sm:$0xff]   ;;  %v16100_v22 = vld [vmem:[#allocation4 + $0x9ac] ss:$28 sps:$4 sm:$0xff]  }
 0x339   :  { %6929 = vmatprep.subr.bf16.mxu0 %v15995_v33  ;;  %v14375_v27 = vpop.f32.mrb[23].mxu1  ;;  %v16086_v33 = vld [vmem:[#allocation4 + $0x938] ss:$28 sps:$4 sm:$0xff]   ;;  %v16106_v38 = vld [vmem:[#allocation4 + $0x9e4] ss:$28 sps:$4 sm:$0xff]  }
 0x33a   :  { %v16104_v39 = vld [vmem:[#allocation4 + $0x9e0] ss:$28 sps:$4 sm:$0xff]   ;;  %v16118_v27 = vld [vmem:[#allocation4 + $0xa54] ss:$28 sps:$4 sm:$0xff]  }
 0x33c   :  { %6930 = vmatpush1.bf16.msra.mxu0 %v15993_v32  ;;  %v16092_v32 = vld [vmem:[#allocation4 + $0x970] ss:$28 sps:$4 sm:$0xff]  }
 0x33d   :  { %6931 = vmatprep.subr.bf16.mxu0 %v15998_v40  ;;  %v16112_v40 = vld [vmem:[#allocation4 + $0xa1c] ss:$28 sps:$4 sm:$0xff]  }
 0x340   :  { %6932 = vmatpush1.bf16.msra.mxu0 %v15996_v46  ;;  %v16116_v46 = vld [vmem:[#allocation4 + $0xa50] ss:$28 sps:$4 sm:$0xff]  }
 0x341   :  { %6933 = vmatprep.subr.bf16.mxu0 %v16001_v50  ;;  %v17633_v50 = vsub.s32 4, %v17574_v36  ;;  %v16685_v36 = vld [vmem:[#allocation6 + $0x7a8] ss:$20 sps:$4 sm:$0xff]  }
 0x344   :  { %6934 = vmatpush1.bf16.msra.mxu0 %v15999_v52  ;;  %v771_v52 = vrot.slane %v17579_v44, %v17633_v50 }
 0x345   :  { %6935 = vmatprep.subr.bf16.mxu0 %v16004_v53  ;;  %v775_v53 = vrot.slane %v17579_v44, %v774_v51  ;;  %v16125_v44 = vld [vmem:[#allocation4 + $0xab8] ss:$28 sps:$4 sm:$0xff]  }
 0x348   :  { %6936 = vmatpush1.bf16.msra.mxu0 %v16002_v54 }
 0x349   :  { %6937 = vmatprep.subr.bf16.mxu0 %v16007_v55 }
 0x34c   :  { %6938 = vmatpush1.bf16.msra.mxu0 %v16005_v56 }
 0x34d   :  { %6939 = vmatprep.subr.bf16.mxu0 %v16010_v58 }
 0x350   :  { %6940 = vmatpush1.bf16.msra.mxu0 %v16008_v57 }
 0x351   :  { %6941 = vmatprep.subr.bf16.mxu0 %v16013_v60 }
 0x354   :  { %6942 = vmatpush1.bf16.msra.mxu0 %v16011_v61 }
 0x355   :  { %6943 = vmatprep.subr.bf16.mxu0 %v16016_v62 }
 0x358   :  { %6944 = vmatpush1.bf16.msra.mxu0 %v16014_v63  ;;  %v16119_v63 = vld [vmem:[#allocation4 + $0xa80] ss:$28 sps:$4 sm:$0xff]  }
 0x359   :  { %6945 = vmatprep.subr.bf16.mxu0 %v16019_v0 }
 0x35c   :  { %6946 = vmatpush1.bf16.msra.mxu0 %v16017_v1  ;;  %v16122_v1 = vld [vmem:[#allocation4 + $0xa88] ss:$28 sps:$4 sm:$0xff]  }
 0x35d   :  { %6947 = vmatprep.subr.bf16.mxu0 %v16022_v2 }
 0x360   :  { %6948 = vmatpush1.bf16.msra.mxu0 %v16020_v3  ;;  %v16127_v3 = vld [vmem:[#allocation4 + $0xabc] ss:$28 sps:$4 sm:$0xff]  }
 0x361   :  { %6958 = vmatprep.subr.bf16.mxu0 %v16028_v4  ;;  %v16130_v4 = vld [vmem:[#allocation4 + $0xac4] ss:$28 sps:$4 sm:$0xff]  }
 0x363   :  { %6950 = vmatmul.mubr.bf16.vlgmr.msra.gmra.mrb[8].mxu0 %v17618_v59 }
 0x364   :  { %6959 = vmatpush1.bf16.msra.mxu0 %v16026_v6  ;;  %v16128_v6 = vld [vmem:[#allocation4 + $0xac0] ss:$28 sps:$4 sm:$0xff]  }
 0x365   :  { %6960 = vmatprep.subr.bf16.mxu0 %v16034_v7  ;;  %v16133_v7 = vld [vmem:[#allocation4 + $0xaf4] ss:$28 sps:$4 sm:$0xff]  }
 0x368   :  { %6961 = vmatpush1.bf16.msra.mxu0 %v16032_v8  ;;  %v16136_v8 = vld [vmem:[#allocation4 + $0xafc] ss:$28 sps:$4 sm:$0xff]  }
 0x369   :  { %6962 = vmatprep.subr.bf16.mxu0 %v16040_v9  ;;  %v16131_v9 = vld [vmem:[#allocation4 + $0xaf0] ss:$28 sps:$4 sm:$0xff]  }
 0x36c   :  { %6963 = vmatpush1.bf16.msra.mxu0 %v16038_v10  ;;  %v16134_v10 = vld [vmem:[#allocation4 + $0xaf8] ss:$28 sps:$4 sm:$0xff]  }
 0x36d   :  { %6964 = vmatprep.subr.bf16.mxu0 %v16046_v11  ;;  %v16139_v11 = vld [vmem:[#allocation4 + $0xb2c] ss:$28 sps:$4 sm:$0xff]  }
 0x370   :  { %6965 = vmatpush1.bf16.msra.mxu0 %v16044_v12  ;;  %v16142_v12 = vld [vmem:[#allocation4 + $0xb34] ss:$28 sps:$4 sm:$0xff]  }
 0x371   :  { %6966 = vmatprep.subr.bf16.mxu0 %v16052_v34  ;;  %v16137_v34 = vld [vmem:[#allocation4 + $0xb28] ss:$28 sps:$4 sm:$0xff]  }
 0x374   :  { %6967 = vmatpush1.bf16.msra.mxu0 %v16050_v14  ;;  %v16140_v14 = vld [vmem:[#allocation4 + $0xb30] ss:$28 sps:$4 sm:$0xff]  }
 0x375   :  { %6968 = vmatprep.subr.bf16.mxu0 %v16058_v16  ;;  %v16145_v16 = vld [vmem:[#allocation4 + $0xb64] ss:$28 sps:$4 sm:$0xff]  }
 0x378   :  { %6969 = vmatpush1.bf16.msra.mxu0 %v16056_v18  ;;  %v16148_v18 = vld [vmem:[#allocation4 + $0xb6c] ss:$28 sps:$4 sm:$0xff]  }
 0x379   :  { %6970 = vmatprep.subr.bf16.mxu0 %v16064_v19  ;;  %v16143_v19 = vld [vmem:[#allocation4 + $0xb60] ss:$28 sps:$4 sm:$0xff]  }
 0x37c   :  { %6971 = vmatpush1.bf16.msra.mxu0 %v16062_v20  ;;  %v16146_v20 = vld [vmem:[#allocation4 + $0xb68] ss:$28 sps:$4 sm:$0xff]  }
 0x37d   :  { %6972 = vmatprep.subr.bf16.mxu0 %v16070_v21  ;;  %v16151_v21 = vld [vmem:[#allocation4 + $0xb9c] ss:$28 sps:$4 sm:$0xff]  }
 0x380   :  { %6973 = vmatpush1.bf16.msra.mxu0 %v16068_v23  ;;  %v16154_v23 = vld [vmem:[#allocation4 + $0xba4] ss:$28 sps:$4 sm:$0xff]  }
 0x381   :  { %6974 = vmatprep.subr.bf16.mxu0 %v16076_v48  ;;  %v16149_v48 = vld [vmem:[#allocation4 + $0xb98] ss:$28 sps:$4 sm:$0xff]  }
 0x384   :  { %6975 = vmatpush1.bf16.msra.mxu0 %v16074_v28  ;;  %v16152_v28 = vld [vmem:[#allocation4 + $0xba0] ss:$28 sps:$4 sm:$0xff]  }
 0x385   :  { %6976 = vmatprep.subr.bf16.mxu0 %v16082_v30  ;;  %v16157_v30 = vld [vmem:[#allocation4 + $0xbd4] ss:$28 sps:$4 sm:$0xff]  }
 0x388   :  { %6977 = vmatpush1.bf16.msra.mxu0 %v16080_v13  ;;  %v16160_v13 = vld [vmem:[#allocation4 + $0xbdc] ss:$28 sps:$4 sm:$0xff]  }
 0x389   :  { %6978 = vmatprep.subr.bf16.mxu0 %v16088_v31  ;;  %v16155_v31 = vld [vmem:[#allocation4 + $0xbd0] ss:$28 sps:$4 sm:$0xff]  }
 0x38c   :  { %6979 = vmatpush1.bf16.msra.mxu0 %v16086_v33  ;;  %v16158_v33 = vld [vmem:[#allocation4 + $0xbd8] ss:$28 sps:$4 sm:$0xff]  }
 0x38d   :  { %6980 = vmatprep.subr.bf16.mxu0 %v16094_v35  ;;  %v16163_v35 = vld [vmem:[#allocation4 + $0xc0c] ss:$28 sps:$4 sm:$0xff]  }
 0x390   :  { %6981 = vmatpush1.bf16.msra.mxu0 %v16092_v32  ;;  %v16166_v32 = vld [vmem:[#allocation4 + $0xc14] ss:$28 sps:$4 sm:$0xff]  }
 0x391   :  { %6982 = vmatprep.subr.bf16.mxu0 %v16100_v22  ;;  %v16161_v22 = vld [vmem:[#allocation4 + $0xc08] ss:$28 sps:$4 sm:$0xff]  }
 0x394   :  { %6983 = vmatpush1.bf16.msra.mxu0 %v16098_v17  ;;  %v4200_v17 = vmax.f32 %v17629_v37, 0.0  ;;  %v16172_v37 = vld [vmem:[#allocation4 + $0x48] ss:$28 sps:$4 sm:$0xff]  }
 0x395   :  { %6984 = vmatprep.subr.bf16.mxu0 %v16106_v38  ;;  %v16164_v38 = vld [vmem:[#allocation4 + $0xc10] ss:$28 sps:$4 sm:$0xff]  }
 0x398   :  { %6985 = vmatpush1.bf16.msra.mxu0 %v16104_v39  ;;  %v16169_v39 = vld [vmem:[#allocation4 + $0x14] ss:$28 sps:$4 sm:$0xff]  }
 0x399   :  { %6986 = vmatprep.subr.bf16.mxu0 %v16112_v40  ;;  %v16170_v40 = vld [vmem:[#allocation4 + $0x1d8] ss:$28 sps:$4 sm:$0xff]  }
 0x39c   :  { %6987 = vmatpush1.bf16.msra.mxu0 %v16110_v41  ;;  %v16167_v41 = vld [vmem:[#allocation4 + $0x10] ss:$28 sps:$4 sm:$0xff]  }
 0x39d   :  { %6988 = vmatprep.subr.bf16.mxu0 %v16118_v27  ;;  %v16171_v27 = vld [vmem:[#allocation4 + $0x18] ss:$28 sps:$4 sm:$0xff]  }
 0x3a0   :  { %6989 = vmatpush1.bf16.msra.mxu0 %v16116_v46  ;;  %v16174_v46 = vld [vmem:[#allocation4 + $0x4c] ss:$28 sps:$4 sm:$0xff]  }
 0x3a1   :  { %6999 = vmatprep.subr.bf16.mxu0 %v16124_v47  ;;  %v16175_v47 = vld [vmem:[#allocation4 + $0x210] ss:$28 sps:$4 sm:$0xff]  }
 0x3b6   :  { %v3987_v54 = vpop.f32.mrb[4].mxu0 }
 0x3b7   :  { %v14952_v55 = vadd.f32 %v3987_v54, %v771_v52  ;;  %v3989_v56 = vpop.f32.mrb[5].mxu0  ;;  %v17652_v52 = vpack.c.bf16 %v4200_v17, %v4200_v17  ;;  %v16179_v54 = vld [vmem:[#allocation4 + $0x84] ss:$28 sps:$4 sm:$0xff]   ;;  %v16222_v17 = vld [vmem:[#allocation4 + $0x278] ss:$28 sps:$4 sm:$0xff]  }
 0x3b8   :  { %v14953_v58 = vadd.f32 %v3989_v56, %v775_v53  ;;  %v3991_v57 = vpop.f32.mrb[6].mxu0  ;;  %v16176_v53 = vld [vmem:[#allocation4 + $0x50] ss:$28 sps:$4 sm:$0xff]   ;;  %v16177_v56 = vld [vmem:[#allocation4 + $0x80] ss:$28 sps:$4 sm:$0xff]  }
 0x3b9   :  { %v4198_v60 = vmax.f32 %v14952_v55, 0.0  ;;  %v3992_v61 = vpop.f32.mrb[7].mxu0  ;;  %v16180_v55 = vld [vmem:[#allocation4 + $0x248] ss:$28 sps:$4 sm:$0xff]   ;;  %v16184_v57 = vld [vmem:[#allocation4 + $0xbc] ss:$28 sps:$4 sm:$0xff]  }
 0x3ba   :  { %v4199_v62 = vmax.f32 %v14953_v58, 0.0  ;;  %v16181_v58 = vld [vmem:[#allocation4 + $0x88] ss:$28 sps:$4 sm:$0xff]   ;;  %v16182_v61 = vld [vmem:[#allocation4 + $0xb8] ss:$28 sps:$4 sm:$0xff]  }
 0x3bb   :  { %v17643_v2 = vpack.c.bf16 %v4198_v60, %v4198_v60  ;;  %v16185_v60 = vld [vmem:[#allocation4 + $0x280] ss:$28 sps:$4 sm:$0xff]  }
 0x3bc   :  { %v17641_v0 = vpack.c.bf16 %v4199_v62, %v4199_v62  ;;  %v16186_v62 = vld [vmem:[#allocation4 + $0xc0] ss:$28 sps:$4 sm:$0xff]  }
 0x3be   :  { %6826 = vmatprep.mubr.bf16.mxu1 %v17641_v0  ;;  %6990 = vmatprep.mubr.bf16.mxu0 %v17641_v0 }
 0x3bf   :  { %6827 = vmatmul.mubr.bf16.vlgmr.msra.gmra.mrb[24].mxu1 %v17643_v2  ;;  %6991 = vmatmul.mubr.bf16.vlgmr.msra.gmra.mrb[8].mxu0 %v17643_v2 }
 0x3c0   :  { %6836 = vmatpush1.bf16.msra.mxu1 %v16119_v63  ;;  %7000 = vmatpush1.bf16.msra.mxu0 %v16122_v1  ;;  %v16189_v63 = vld [vmem:[#allocation4 + $0xf4] ss:$28 sps:$4 sm:$0xff]  }
 0x3c1   :  { %6837 = vmatprep.subr.bf16.mxu1 %v16127_v3  ;;  %7001 = vmatprep.subr.bf16.mxu0 %v16130_v4  ;;  %v16190_v1 = vld [vmem:[#allocation4 + $0x2b8] ss:$28 sps:$4 sm:$0xff]   ;;  %v16194_v4 = vld [vmem:[#allocation4 + $0x12c] ss:$28 sps:$4 sm:$0xff]  }
 0x3c2   :  { %6867 = vmatprep.mubr.bf16.mxu1 %v17290_v42  ;;  %7031 = vmatprep.mubr.bf16.mxu0 %v17290_v42  ;;  %v16191_v3 = vld [vmem:[#allocation4 + $0xf8] ss:$28 sps:$4 sm:$0xff]  }
 0x3c4   :  { %6838 = vmatpush1.bf16.msra.mxu1 %v16125_v44  ;;  %7002 = vmatpush1.bf16.msra.mxu0 %v16128_v6  ;;  %v16195_v44 = vld [vmem:[#allocation4 + $0x2f0] ss:$28 sps:$4 sm:$0xff]   ;;  %v16192_v6 = vld [vmem:[#allocation4 + $0x128] ss:$28 sps:$4 sm:$0xff]  }
 0x3c5   :  { %6839 = vmatprep.subr.bf16.mxu1 %v16133_v7  ;;  %7003 = vmatprep.subr.bf16.mxu0 %v16136_v8  ;;  %v16196_v7 = vld [vmem:[#allocation4 + $0x130] ss:$28 sps:$4 sm:$0xff]   ;;  %v16199_v8 = vld [vmem:[#allocation4 + $0x164] ss:$28 sps:$4 sm:$0xff]  }
 0x3c8   :  { %6840 = vmatpush1.bf16.msra.mxu1 %v16131_v9  ;;  %7004 = vmatpush1.bf16.msra.mxu0 %v16134_v10  ;;  %v16200_v9 = vld [vmem:[#allocation4 + $0x328] ss:$28 sps:$4 sm:$0xff]   ;;  %v16197_v10 = vld [vmem:[#allocation4 + $0x160] ss:$28 sps:$4 sm:$0xff]  }
 0x3c9   :  { %6841 = vmatprep.subr.bf16.mxu1 %v16139_v11  ;;  %7005 = vmatprep.subr.bf16.mxu0 %v16142_v12  ;;  %v16201_v11 = vld [vmem:[#allocation4 + $0x168] ss:$28 sps:$4 sm:$0xff]   ;;  %v16204_v12 = vld [vmem:[#allocation4 + $0x19c] ss:$28 sps:$4 sm:$0xff]  }
 0x3cc   :  { %6842 = vmatpush1.bf16.msra.mxu1 %v16137_v34  ;;  %7006 = vmatpush1.bf16.msra.mxu0 %v16140_v14  ;;  %v16205_v34 = vld [vmem:[#allocation4 + $0x360] ss:$28 sps:$4 sm:$0xff]   ;;  %v16202_v14 = vld [vmem:[#allocation4 + $0x198] ss:$28 sps:$4 sm:$0xff]  }
 0x3cd   :  { %6843 = vmatprep.subr.bf16.mxu1 %v16145_v16  ;;  %7007 = vmatprep.subr.bf16.mxu0 %v16148_v18  ;;  %v16206_v16 = vld [vmem:[#allocation4 + $0x1a0] ss:$28 sps:$4 sm:$0xff]   ;;  %v16209_v18 = vld [vmem:[#allocation4 + $0x1d4] ss:$28 sps:$4 sm:$0xff]  }
 0x3d0   :  { %6844 = vmatpush1.bf16.msra.mxu1 %v16143_v19  ;;  %7008 = vmatpush1.bf16.msra.mxu0 %v16146_v20  ;;  %v16210_v19 = vld [vmem:[#allocation4 + $0x558] ss:$28 sps:$4 sm:$0xff]   ;;  %v16207_v20 = vld [vmem:[#allocation4 + $0x1d0] ss:$28 sps:$4 sm:$0xff]  }
 0x3d1   :  { %6845 = vmatprep.subr.bf16.mxu1 %v16151_v21  ;;  %7009 = vmatprep.subr.bf16.mxu0 %v16154_v23  ;;  %v16211_v21 = vld [vmem:[#allocation4 + $0x398] ss:$28 sps:$4 sm:$0xff]   ;;  %v16214_v23 = vld [vmem:[#allocation4 + $0x20c] ss:$28 sps:$4 sm:$0xff]  }
 0x3d4   :  { %6846 = vmatpush1.bf16.msra.mxu1 %v16149_v48  ;;  %7010 = vmatpush1.bf16.msra.mxu0 %v16152_v28  ;;  %v16215_v48 = vld [vmem:[#allocation4 + $0x590] ss:$28 sps:$4 sm:$0xff]   ;;  %v16212_v28 = vld [vmem:[#allocation4 + $0x208] ss:$28 sps:$4 sm:$0xff]  }
 0x3d5   :  { %6847 = vmatprep.subr.bf16.mxu1 %v16157_v30  ;;  %7011 = vmatprep.subr.bf16.mxu0 %v16160_v13  ;;  %v16216_v30 = vld [vmem:[#allocation4 + $0x3d0] ss:$28 sps:$4 sm:$0xff]   ;;  %v16219_v13 = vld [vmem:[#allocation4 + $0x244] ss:$28 sps:$4 sm:$0xff]  }
 0x3d8   :  { %6848 = vmatpush1.bf16.msra.mxu1 %v16155_v31  ;;  %7012 = vmatpush1.bf16.msra.mxu0 %v16158_v33  ;;  %v16220_v31 = vld [vmem:[#allocation4 + $0x5c8] ss:$28 sps:$4 sm:$0xff]   ;;  %v16217_v33 = vld [vmem:[#allocation4 + $0x240] ss:$28 sps:$4 sm:$0xff]  }
 0x3d9   :  { %6849 = vmatprep.subr.bf16.mxu1 %v16163_v35  ;;  %7013 = vmatprep.subr.bf16.mxu0 %v16166_v32  ;;  %v16221_v35 = vld [vmem:[#allocation4 + $0x408] ss:$28 sps:$4 sm:$0xff]   ;;  %v16224_v32 = vld [vmem:[#allocation4 + $0x27c] ss:$28 sps:$4 sm:$0xff]  }
 0x3dc   :  { %6850 = vmatpush1.bf16.msra.mxu1 %v16161_v22  ;;  %7014 = vmatpush1.bf16.msra.mxu0 %v16164_v38  ;;  %v16225_v22 = vld [vmem:[#allocation4 + $0x600] ss:$28 sps:$4 sm:$0xff]  }
 0x3dd   :  { %7040 = vmatprep.subr.bf16.mxu1 %v16169_v39  ;;  %13955 = vmatprep.subr.bf16.mxu0 %v16170_v40  ;;  %v16226_v38 = vld [vmem:[#allocation4 + $0x440] ss:$28 sps:$4 sm:$0xff]   ;;  %v16229_v39 = vld [vmem:[#allocation4 + $0x2b4] ss:$28 sps:$4 sm:$0xff]  }
 0x3de   :  { %v16230_v40 = vld [vmem:[#allocation4 + $0x638] ss:$28 sps:$4 sm:$0xff]  }
 0x3df   :  { %6868 = vmatmul.mubr.bf16.vlgmr.msra.gmra.mrb[24].mxu1 %v17652_v52  ;;  %7032 = vmatmul.mubr.bf16.vlgmr.msra.gmra.mrb[8].mxu0 %v17652_v52 }
 0x3e0   :  { %7041 = vmatpush1.bf16.msra.mxu1 %v16167_v41  ;;  %7072 = vmatprep.mubr.bf16.mxu1 %v17595_v15  ;;  %v16227_v41 = vld [vmem:[#allocation4 + $0x2b0] ss:$28 sps:$4 sm:$0xff]  }
 0x3e1   :  { %13956 = vmatpush3.bf16.msra.mxu0 %v16171_v27  ;;  %7236 = vmatprep.mubr.bf16.mxu0 %v17595_v15  ;;  %v16187_v15 = vld [vmem:[#allocation4 + $0xf0] ss:$28 sps:$4 sm:$0xff]   ;;  %v16231_v27 = vld [vmem:[#allocation4 + $0x478] ss:$28 sps:$4 sm:$0xff]  }
 0x3e2   :  { %7042 = vmatprep.subr.bf16.mxu1 %v16174_v46  ;;  %13957 = vmatprep.subr.bf16.mxu0 %v16175_v47  ;;  %v16234_v46 = vld [vmem:[#allocation4 + $0x2ec] ss:$28 sps:$4 sm:$0xff]  }
 0x3e3   :  { %v16235_v47 = vld [vmem:[#allocation4 + $0x670] ss:$28 sps:$4 sm:$0xff]  }
 0x3e4   :  { %7043 = vmatpush1.bf16.msra.mxu1 %v16172_v37  ;;  %v16232_v37 = vld [vmem:[#allocation4 + $0x2e8] ss:$28 sps:$4 sm:$0xff]  }
 0x3e5   :  { %13958 = vmatpush3.bf16.msra.mxu0 %v16176_v53  ;;  %7044 = vmatprep.subr.bf16.mxu1 %v16179_v54  ;;  %v16236_v53 = vld [vmem:[#allocation4 + $0x4b0] ss:$28 sps:$4 sm:$0xff]   ;;  %v16239_v54 = vld [vmem:[#allocation4 + $0x324] ss:$28 sps:$4 sm:$0xff]  }
 0x3e6   :  { %13959 = vmatprep.subr.bf16.mxu0 %v16180_v55  ;;  %v16240_v55 = vld [vmem:[#allocation4 + $0x6a8] ss:$28 sps:$4 sm:$0xff]  }
 0x3e8   :  { %7045 = vmatpush1.bf16.msra.mxu1 %v16177_v56  ;;  %v16237_v56 = vld [vmem:[#allocation4 + $0x320] ss:$28 sps:$4 sm:$0xff]  }
 0x3e9   :  { %13960 = vmatpush3.bf16.msra.mxu0 %v16181_v58  ;;  %7046 = vmatprep.subr.bf16.mxu1 %v16184_v57  ;;  %v16241_v58 = vld [vmem:[#allocation4 + $0x4e8] ss:$28 sps:$4 sm:$0xff]   ;;  %v16244_v57 = vld [vmem:[#allocation4 + $0x35c] ss:$28 sps:$4 sm:$0xff]  }
 0x3ea   :  { %13961 = vmatprep.subr.bf16.mxu0 %v16185_v60  ;;  %v16245_v60 = vld [vmem:[#allocation4 + $0x6e0] ss:$28 sps:$4 sm:$0xff]  }
 0x3ec   :  { %7047 = vmatpush1.bf16.msra.mxu1 %v16182_v61  ;;  %v16242_v61 = vld [vmem:[#allocation4 + $0x358] ss:$28 sps:$4 sm:$0xff]  }
 0x3ed   :  { %13962 = vmatpush3.bf16.msra.mxu0 %v16186_v62  ;;  %7048 = vmatprep.subr.bf16.mxu1 %v16189_v63  ;;  %v16246_v62 = vld [vmem:[#allocation4 + $0x520] ss:$28 sps:$4 sm:$0xff]   ;;  %v16249_v63 = vld [vmem:[#allocation4 + $0x394] ss:$28 sps:$4 sm:$0xff]  }
 0x3ee   :  { %13963 = vmatprep.subr.bf16.mxu0 %v16190_v1  ;;  %v16250_v1 = vld [vmem:[#allocation4 + $0x8d8] ss:$28 sps:$4 sm:$0xff]  }
 0x3f0   :  { %7049 = vmatpush1.bf16.msra.mxu1 %v16187_v15  ;;  %v16247_v15 = vld [vmem:[#allocation4 + $0x390] ss:$28 sps:$4 sm:$0xff]  }
 0x3f1   :  { %13964 = vmatpush3.bf16.msra.mxu0 %v16191_v3  ;;  %7050 = vmatprep.subr.bf16.mxu1 %v16194_v4  ;;  %v16251_v3 = vld [vmem:[#allocation4 + $0x718] ss:$28 sps:$4 sm:$0xff]   ;;  %v16254_v4 = vld [vmem:[#allocation4 + $0x3cc] ss:$28 sps:$4 sm:$0xff]  }
 0x3f2   :  { %13965 = vmatprep.subr.bf16.mxu0 %v16195_v44  ;;  %v16255_v44 = vld [vmem:[#allocation4 + $0x910] ss:$28 sps:$4 sm:$0xff]  }
 0x3f4   :  { %7051 = vmatpush1.bf16.msra.mxu1 %v16192_v6  ;;  %v16252_v6 = vld [vmem:[#allocation4 + $0x3c8] ss:$28 sps:$4 sm:$0xff]  }
 0x3f5   :  { %13966 = vmatpush3.bf16.msra.mxu0 %v16196_v7  ;;  %7052 = vmatprep.subr.bf16.mxu1 %v16199_v8  ;;  %v16256_v7 = vld [vmem:[#allocation4 + $0x750] ss:$28 sps:$4 sm:$0xff]   ;;  %v16259_v8 = vld [vmem:[#allocation4 + $0x404] ss:$28 sps:$4 sm:$0xff]  }
 0x3f6   :  { %13967 = vmatprep.subr.bf16.mxu0 %v16200_v9  ;;  %v16260_v9 = vld [vmem:[#allocation4 + $0x948] ss:$28 sps:$4 sm:$0xff]  }
 0x3f8   :  { %7053 = vmatpush1.bf16.msra.mxu1 %v16197_v10  ;;  %v16257_v10 = vld [vmem:[#allocation4 + $0x400] ss:$28 sps:$4 sm:$0xff]  }
 0x3f9   :  { %13968 = vmatpush3.bf16.msra.mxu0 %v16201_v11  ;;  %7054 = vmatprep.subr.bf16.mxu1 %v16204_v12  ;;  %v16264_v11 = vld [vmem:[#allocation4 + $0x43c] ss:$28 sps:$4 sm:$0xff]  }
 0x3fa   :  { %13969 = vmatprep.subr.bf16.mxu0 %v16205_v34  ;;  %v16265_v12 = vld [vmem:[#allocation4 + $0x980] ss:$28 sps:$4 sm:$0xff]   ;;  %v16262_v34 = vld [vmem:[#allocation4 + $0x438] ss:$28 sps:$4 sm:$0xff]  }
 0x3fc   :  { %7055 = vmatpush1.bf16.msra.mxu1 %v16202_v14  ;;  %v16269_v14 = vld [vmem:[#allocation4 + $0x474] ss:$28 sps:$4 sm:$0xff]  }
 0x3fd   :  { %13970 = vmatpush3.bf16.msra.mxu0 %v16206_v16  ;;  %7056 = vmatprep.subr.bf16.mxu1 %v16209_v18  ;;  %v16270_v16 = vld [vmem:[#allocation4 + $0x9b8] ss:$28 sps:$4 sm:$0xff]   ;;  %v16267_v18 = vld [vmem:[#allocation4 + $0x470] ss:$28 sps:$4 sm:$0xff]  }
 0x3fe   :  { %13977 = vmatprep.subr.bf16.mxu0 %v16210_v19  ;;  %v16271_v19 = vld [vmem:[#allocation4 + $0x7f8] ss:$28 sps:$4 sm:$0xff]  }
 0x400   :  { %7237 = vmatmul.mubr.bf16.vlgmr.msra.gmra.mrb[12].mxu0 %v17598_v24  ;;  %7057 = vmatpush1.bf16.msra.mxu1 %v16207_v20  ;;  %v16274_v20 = vld [vmem:[#allocation4 + $0x4ac] ss:$28 sps:$4 sm:$0xff]  }
 0x401   :  { %13978 = vmatpush3.bf16.msra.mxu0 %v16211_v21  ;;  %7276 = vmatprep.mubr.bf16.mxu0 %v17600_v5  ;;  %v16275_v21 = vld [vmem:[#allocation4 + $0x9f0] ss:$28 sps:$4 sm:$0xff]  }
 0x402   :  { %7058 = vmatprep.subr.bf16.mxu1 %v16214_v23  ;;  %13979 = vmatprep.subr.bf16.mxu0 %v16215_v48  ;;  %v16272_v23 = vld [vmem:[#allocation4 + $0x4a8] ss:$28 sps:$4 sm:$0xff]   ;;  %v16276_v48 = vld [vmem:[#allocation4 + $0x830] ss:$28 sps:$4 sm:$0xff]  }
 0x404   :  { %7059 = vmatpush1.bf16.msra.mxu1 %v16212_v28  ;;  %v16279_v28 = vld [vmem:[#allocation4 + $0x4e4] ss:$28 sps:$4 sm:$0xff]  }
 0x405   :  { %13980 = vmatpush3.bf16.msra.mxu0 %v16216_v30  ;;  %7060 = vmatprep.subr.bf16.mxu1 %v16219_v13  ;;  %v16280_v30 = vld [vmem:[#allocation4 + $0xa28] ss:$28 sps:$4 sm:$0xff]   ;;  %v16277_v13 = vld [vmem:[#allocation4 + $0x4e0] ss:$28 sps:$4 sm:$0xff]  }
 0x406   :  { %13981 = vmatprep.subr.bf16.mxu0 %v16220_v31  ;;  %v16281_v31 = vld [vmem:[#allocation4 + $0x868] ss:$28 sps:$4 sm:$0xff]  }
 0x408   :  { %7061 = vmatpush1.bf16.msra.mxu1 %v16217_v33  ;;  %v16284_v33 = vld [vmem:[#allocation4 + $0x51c] ss:$28 sps:$4 sm:$0xff]  }
 0x409   :  { %13982 = vmatpush3.bf16.msra.mxu0 %v16221_v35  ;;  %7062 = vmatprep.subr.bf16.mxu1 %v16224_v32  ;;  %v16285_v35 = vld [vmem:[#allocation4 + $0xa60] ss:$28 sps:$4 sm:$0xff]   ;;  %v16282_v32 = vld [vmem:[#allocation4 + $0x518] ss:$28 sps:$4 sm:$0xff]  }
 0x40a   :  { %13983 = vmatprep.subr.bf16.mxu0 %v16225_v22  ;;  %v16286_v22 = vld [vmem:[#allocation4 + $0x8a0] ss:$28 sps:$4 sm:$0xff]  }
 0x40c   :  { %7063 = vmatpush1.bf16.msra.mxu1 %v16222_v17  ;;  %v16289_v17 = vld [vmem:[#allocation4 + $0x554] ss:$28 sps:$4 sm:$0xff]  }
 0x40d   :  { %13984 = vmatpush3.bf16.msra.mxu0 %v16226_v38  ;;  %7064 = vmatprep.subr.bf16.mxu1 %v16229_v39  ;;  %v16287_v38 = vld [vmem:[#allocation4 + $0x550] ss:$28 sps:$4 sm:$0xff]   ;;  %v16290_v39 = vld [vmem:[#allocation4 + $0xa98] ss:$28 sps:$4 sm:$0xff]  }
 0x40e   :  { %13985 = vmatprep.subr.bf16.mxu0 %v16230_v40  ;;  %v16293_v40 = vld [vmem:[#allocation4 + $0x58c] ss:$28 sps:$4 sm:$0xff]  }
 0x410   :  { %7065 = vmatpush1.bf16.msra.mxu1 %v16227_v41  ;;  %v16291_v41 = vld [vmem:[#allocation4 + $0x588] ss:$28 sps:$4 sm:$0xff]  }
 0x411   :  { %13986 = vmatpush3.bf16.msra.mxu0 %v16231_v27  ;;  %7066 = vmatprep.subr.bf16.mxu1 %v16234_v46  ;;  %v16294_v27 = vld [vmem:[#allocation4 + $0xad0] ss:$28 sps:$4 sm:$0xff]   ;;  %v16297_v46 = vld [vmem:[#allocation4 + $0x5c4] ss:$28 sps:$4 sm:$0xff]  }
 0x412   :  { %13987 = vmatprep.subr.bf16.mxu0 %v16235_v47  ;;  %v16295_v47 = vld [vmem:[#allocation4 + $0x5c0] ss:$28 sps:$4 sm:$0xff]  }
 0x414   :  { %7067 = vmatpush1.bf16.msra.mxu1 %v16232_v37  ;;  %v16298_v37 = vld [vmem:[#allocation4 + $0xb08] ss:$28 sps:$4 sm:$0xff]  }
 0x415   :  { %13988 = vmatpush3.bf16.msra.mxu0 %v16236_v53  ;;  %7068 = vmatprep.subr.bf16.mxu1 %v16239_v54  ;;  %v16301_v53 = vld [vmem:[#allocation4 + $0x5fc] ss:$28 sps:$4 sm:$0xff]  }
 0x416   :  { %13989 = vmatprep.subr.bf16.mxu0 %v16240_v55  ;;  %v16299_v54 = vld [vmem:[#allocation4 + $0x5f8] ss:$28 sps:$4 sm:$0xff]   ;;  %v16302_v55 = vld [vmem:[#allocation4 + $0xb40] ss:$28 sps:$4 sm:$0xff]  }
 0x418   :  { %7069 = vmatpush1.bf16.msra.mxu1 %v16237_v56  ;;  %v16305_v56 = vld [vmem:[#allocation4 + $0x634] ss:$28 sps:$4 sm:$0xff]  }
 0x419   :  { %13990 = vmatpush3.bf16.msra.mxu0 %v16241_v58  ;;  %7070 = vmatprep.subr.bf16.mxu1 %v16244_v57  ;;  %v16303_v58 = vld [vmem:[#allocation4 + $0x630] ss:$28 sps:$4 sm:$0xff]   ;;  %v16306_v57 = vld [vmem:[#allocation4 + $0xb78] ss:$28 sps:$4 sm:$0xff]  }
 0x41a   :  { %13991 = vmatprep.subr.bf16.mxu0 %v16245_v60  ;;  %v16309_v60 = vld [vmem:[#allocation4 + $0x66c] ss:$28 sps:$4 sm:$0xff]  }
 0x41c   :  { %7071 = vmatpush1.bf16.msra.mxu1 %v16242_v61  ;;  %v16307_v61 = vld [vmem:[#allocation4 + $0x668] ss:$28 sps:$4 sm:$0xff]  }
 0x41d   :  { %13992 = vmatpush3.bf16.msra.mxu0 %v16246_v62  ;;  %7081 = vmatprep.subr.bf16.mxu1 %v16249_v63  ;;  %v16310_v62 = vld [vmem:[#allocation4 + $0xbb0] ss:$28 sps:$4 sm:$0xff]   ;;  %v16313_v63 = vld [vmem:[#allocation4 + $0x6a4] ss:$28 sps:$4 sm:$0xff]  }
 0x41e   :  { %13999 = vmatprep.subr.bf16.mxu0 %v16250_v1  ;;  %v16311_v1 = vld [vmem:[#allocation4 + $0x6a0] ss:$28 sps:$4 sm:$0xff]  }
 0x41f   :  { %7073 = vmatmul.mubr.bf16.vlgmr.msra.gmra.mrb[28].mxu1 %v17598_v24  ;;  %v16261_v24 = vld [vmem:[#allocation4 + $0x788] ss:$28 sps:$4 sm:$0xff]  }
 0x420   :  { %7277 = vmatmul.mubr.bf16.vlgmr.msra.gmra.mrb[16].mxu0 %v17618_v59  ;;  %7082 = vmatpush1.bf16.msra.mxu1 %v16247_v15  ;;  %v16314_v15 = vld [vmem:[#allocation4 + $0xbe8] ss:$28 sps:$4 sm:$0xff]  }
 0x421   :  { %7113 = vmatprep.mubr.bf16.mxu1 %v17600_v5  ;;  %14000 = vmatpush3.bf16.msra.mxu0 %v16251_v3  ;;  %v16266_v5 = vld [vmem:[#allocation4 + $0x7c0] ss:$28 sps:$4 sm:$0xff]  }
 0x422   :  { %7316 = vmatprep.mubr.bf16.mxu0 %v17641_v0  ;;  %7083 = vmatprep.subr.bf16.mxu1 %v16254_v4  ;;  %v16317_v3 = vld [vmem:[#allocation4 + $0x6dc] ss:$28 sps:$4 sm:$0xff]  }
 0x423   :  { %14001 = vmatprep.subr.bf16.mxu0 %v16255_v44  ;;  %v16315_v4 = vld [vmem:[#allocation4 + $0x6d8] ss:$28 sps:$4 sm:$0xff]   ;;  %v16318_v44 = vld [vmem:[#allocation4 + $0xc20] ss:$28 sps:$4 sm:$0xff]  }
 0x424   :  { %7084 = vmatpush1.bf16.msra.mxu1 %v16252_v6  ;;  %v16321_v6 = vld [vmem:[#allocation4 + $0x714] ss:$28 sps:$4 sm:$0xff]  }
 0x425   :  { %14002 = vmatpush3.bf16.msra.mxu0 %v16256_v7  ;;  %7085 = vmatprep.subr.bf16.mxu1 %v16259_v8  ;;  %v16342_v7 = vld [vmem:[#allocation6 + $0xc] ss:$20 sps:$4 sm:$0xff]  }
 0x426   :  { %14003 = vmatprep.subr.bf16.mxu0 %v16260_v9  ;;  %v16319_v8 = vld [vmem:[#allocation4 + $0x710] ss:$28 sps:$4 sm:$0xff]  }
 0x427   :  { %v16324_v9 = vld [vmem:[#allocation4 + $0x74c] ss:$28 sps:$4 sm:$0xff]  }
 0x428   :  { %7086 = vmatpush1.bf16.msra.mxu1 %v16257_v10  ;;  %v16340_v10 = vld [vmem:[#allocation6 + $0x8] ss:$20 sps:$4 sm:$0xff]  }
 0x429   :  { %14004 = vmatpush3.bf16.msra.mxu0 %v16261_v24  ;;  %7087 = vmatprep.subr.bf16.mxu1 %v16264_v11  ;;  %v16348_v24 = vld [vmem:[#allocation6 + $0x34] ss:$20 sps:$4 sm:$0xff]  }
 0x42a   :  { %14005 = vmatprep.subr.bf16.mxu0 %v16265_v12  ;;  %v16322_v11 = vld [vmem:[#allocation4 + $0x748] ss:$28 sps:$4 sm:$0xff]  }
 0x42b   :  { %v16327_v12 = vld [vmem:[#allocation4 + $0x784] ss:$28 sps:$4 sm:$0xff]  }
 0x42c   :  { %7088 = vmatpush1.bf16.msra.mxu1 %v16262_v34  ;;  %v16346_v34 = vld [vmem:[#allocation6 + $0x30] ss:$20 sps:$4 sm:$0xff]  }
 0x42d   :  { %14006 = vmatpush3.bf16.msra.mxu0 %v16266_v5  ;;  %7089 = vmatprep.subr.bf16.mxu1 %v16269_v14  ;;  %v16354_v5 = vld [vmem:[#allocation6 + $0x5c] ss:$20 sps:$4 sm:$0xff]  }
 0x42e   :  { %14007 = vmatprep.subr.bf16.mxu0 %v16270_v16  ;;  %v16325_v14 = vld [vmem:[#allocation4 + $0x780] ss:$28 sps:$4 sm:$0xff]  }
 0x42f   :  { %v16330_v16 = vld [vmem:[#allocation4 + $0x7bc] ss:$28 sps:$4 sm:$0xff]  }
 0x430   :  { %7090 = vmatpush1.bf16.msra.mxu1 %v16267_v18  ;;  %v16352_v18 = vld [vmem:[#allocation6 + $0x58] ss:$20 sps:$4 sm:$0xff]  }
 0x431   :  { %14008 = vmatpush3.bf16.msra.mxu0 %v16271_v19  ;;  %7091 = vmatprep.subr.bf16.mxu1 %v16274_v20  ;;  %v16328_v19 = vld [vmem:[#allocation4 + $0x7b8] ss:$28 sps:$4 sm:$0xff]  }
 0x432   :  { %14009 = vmatprep.subr.bf16.mxu0 %v16275_v21  ;;  %v16333_v20 = vld [vmem:[#allocation4 + $0x7f4] ss:$28 sps:$4 sm:$0xff]   ;;  %v16366_v21 = vld [vmem:[#allocation6 + $0xac] ss:$20 sps:$4 sm:$0xff]  }
 0x434   :  { %7092 = vmatpush1.bf16.msra.mxu1 %v16272_v23  ;;  %v16331_v23 = vld [vmem:[#allocation4 + $0x7f0] ss:$28 sps:$4 sm:$0xff]  }
 0x435   :  { %14010 = vmatpush3.bf16.msra.mxu0 %v16276_v48  ;;  %7093 = vmatprep.subr.bf16.mxu1 %v16279_v28  ;;  %v16336_v48 = vld [vmem:[#allocation4 + $0x82c] ss:$28 sps:$4 sm:$0xff]  }
 0x436   :  { %14011 = vmatprep.subr.bf16.mxu0 %v16280_v30  ;;  %v16364_v28 = vld [vmem:[#allocation6 + $0xa8] ss:$20 sps:$4 sm:$0xff]  }
 0x437   :  { %v16372_v30 = vld [vmem:[#allocation6 + $0xd4] ss:$20 sps:$4 sm:$0xff]  }
 0x438   :  { %7094 = vmatpush1.bf16.msra.mxu1 %v16277_v13  ;;  %v16334_v13 = vld [vmem:[#allocation4 + $0x828] ss:$28 sps:$4 sm:$0xff]  }
 0x439   :  { %14012 = vmatpush3.bf16.msra.mxu0 %v16281_v31  ;;  %7095 = vmatprep.subr.bf16.mxu1 %v16284_v33  ;;  %v16339_v31 = vld [vmem:[#allocation4 + $0x864] ss:$28 sps:$4 sm:$0xff]  }
 0x43a   :  { %14013 = vmatprep.subr.bf16.mxu0 %v16285_v35  ;;  %v16370_v33 = vld [vmem:[#allocation6 + $0xd0] ss:$20 sps:$4 sm:$0xff]  }
 0x43b   :  { %v16378_v35 = vld [vmem:[#allocation6 + $0xfc] ss:$20 sps:$4 sm:$0xff]  }
 0x43c   :  { %7096 = vmatpush1.bf16.msra.mxu1 %v16282_v32  ;;  %v16337_v32 = vld [vmem:[#allocation4 + $0x860] ss:$28 sps:$4 sm:$0xff]  }
 0x43d   :  { %14014 = vmatpush3.bf16.msra.mxu0 %v16286_v22  ;;  %7097 = vmatprep.subr.bf16.mxu1 %v16289_v17  ;;  %v16345_v22 = vld [vmem:[#allocation4 + $0x89c] ss:$28 sps:$4 sm:$0xff]  }
 0x43e   :  { %14376 = vmatprep.subr.bf16.mxu0 %v17291_v26  ;;  %v16376_v17 = vld [vmem:[#allocation6 + $0xf8] ss:$20 sps:$4 sm:$0xff]  }
 0x440   :  { %7317 = vmatmul.mubr.bf16.vlgmr.msra.gmra.mrb[20].mxu0 %v17643_v2  ;;  %7098 = vmatpush1.bf16.msra.mxu1 %v16287_v38  ;;  %v16384_v38 = vld [vmem:[#allocation6 + $0x124] ss:$20 sps:$4 sm:$0xff]  }
 0x441   :  { %14377 = vmatpush3.bf16.msra.mxu0 %v16290_v39  ;;  %7099 = vmatprep.subr.bf16.mxu1 %v16293_v40  ;;  %v16343_v39 = vld [vmem:[#allocation4 + $0x898] ss:$28 sps:$4 sm:$0xff]  }
 0x442   :  { %14378 = vmatprep.subr.bf16.mxu0 %v17291_v26  ;;  %14392 = vmatprep.mubr.msk.bf16.mxu0 %vm17292_vm0, %v17291_v26  ;;  %v16351_v40 = vld [vmem:[#allocation4 + $0x8d4] ss:$28 sps:$4 sm:$0xff]  }
 0x444   :  { %7100 = vmatpush1.bf16.msra.mxu1 %v16291_v41  ;;  %v16382_v41 = vld [vmem:[#allocation6 + $0x120] ss:$20 sps:$4 sm:$0xff]  }
 0x445   :  { %14379 = vmatpush3.bf16.msra.mxu0 %v16294_v27  ;;  %7101 = vmatprep.subr.bf16.mxu1 %v16297_v46  ;;  %v16390_v27 = vld [vmem:[#allocation6 + $0x14c] ss:$20 sps:$4 sm:$0xff]  }
 0x446   :  { %14380 = vmatprep.subr.bf16.mxu0 %v17291_v26  ;;  %v16349_v46 = vld [vmem:[#allocation4 + $0x8d0] ss:$28 sps:$4 sm:$0xff]  }
 0x448   :  { %7102 = vmatpush1.bf16.msra.mxu1 %v16295_v47  ;;  %v16357_v47 = vld [vmem:[#allocation4 + $0x90c] ss:$28 sps:$4 sm:$0xff]  }
 0x449   :  { %14381 = vmatpush3.bf16.msra.mxu0 %v16298_v37  ;;  %7103 = vmatprep.subr.bf16.mxu1 %v16301_v53  ;;  %v16388_v37 = vld [vmem:[#allocation6 + $0x148] ss:$20 sps:$4 sm:$0xff]  }
 0x44a   :  { %14382 = vmatprep.subr.bf16.mxu0 %v17291_v26  ;;  %v16396_v53 = vld [vmem:[#allocation6 + $0x174] ss:$20 sps:$4 sm:$0xff]  }
 0x44c   :  { %7104 = vmatpush1.bf16.msra.mxu1 %v16299_v54  ;;  %v16355_v54 = vld [vmem:[#allocation4 + $0x908] ss:$28 sps:$4 sm:$0xff]  }
 0x44d   :  { %14383 = vmatpush3.bf16.msra.mxu0 %v16302_v55  ;;  %7105 = vmatprep.subr.bf16.mxu1 %v16305_v56  ;;  %v16363_v55 = vld [vmem:[#allocation4 + $0x944] ss:$28 sps:$4 sm:$0xff]  }
 0x44e   :  { %14384 = vmatprep.subr.bf16.mxu0 %v17291_v26  ;;  %v16394_v56 = vld [vmem:[#allocation6 + $0x170] ss:$20 sps:$4 sm:$0xff]  }
 0x450   :  { %7106 = vmatpush1.bf16.msra.mxu1 %v16303_v58  ;;  %v16402_v58 = vld [vmem:[#allocation6 + $0x19c] ss:$20 sps:$4 sm:$0xff]  }
 0x451   :  { %14385 = vmatpush3.bf16.msra.mxu0 %v16306_v57  ;;  %7107 = vmatprep.subr.bf16.mxu1 %v16309_v60  ;;  %v16361_v57 = vld [vmem:[#allocation4 + $0x940] ss:$28 sps:$4 sm:$0xff]  }
 0x452   :  { %14386 = vmatprep.subr.bf16.mxu0 %v17291_v26  ;;  %v16369_v60 = vld [vmem:[#allocation4 + $0x97c] ss:$28 sps:$4 sm:$0xff]  }
 0x454   :  { %7108 = vmatpush1.bf16.msra.mxu1 %v16307_v61  ;;  %v16400_v61 = vld [vmem:[#allocation6 + $0x198] ss:$20 sps:$4 sm:$0xff]  }
 0x455   :  { %14387 = vmatpush3.bf16.msra.mxu0 %v16310_v62  ;;  %7109 = vmatprep.subr.bf16.mxu1 %v16313_v63  ;;  %v16408_v62 = vld [vmem:[#allocation6 + $0x1c4] ss:$20 sps:$4 sm:$0xff]  }
 0x456   :  { %14388 = vmatprep.subr.bf16.mxu0 %v17291_v26  ;;  %v16367_v63 = vld [vmem:[#allocation4 + $0x978] ss:$28 sps:$4 sm:$0xff]  }
 0x458   :  { %7110 = vmatpush1.bf16.msra.mxu1 %v16311_v1  ;;  %v16375_v1 = vld [vmem:[#allocation4 + $0x9b4] ss:$28 sps:$4 sm:$0xff]  }
 0x459   :  { %14389 = vmatpush3.bf16.msra.mxu0 %v16314_v15  ;;  %7111 = vmatprep.subr.bf16.mxu1 %v16317_v3  ;;  %v16406_v15 = vld [vmem:[#allocation6 + $0x1c0] ss:$20 sps:$4 sm:$0xff]  }
 0x45a   :  { %14390 = vmatprep.subr.bf16.mxu0 %v17291_v26  ;;  %v16414_v3 = vld [vmem:[#allocation6 + $0x1ec] ss:$20 sps:$4 sm:$0xff]  }
 0x45c   :  { %7112 = vmatpush1.bf16.msra.mxu1 %v16315_v4  ;;  %v16373_v4 = vld [vmem:[#allocation4 + $0x9b0] ss:$28 sps:$4 sm:$0xff]  }
 0x45d   :  { %14391 = vmatpush3.bf16.msra.mxu0 %v16318_v44  ;;  %7122 = vmatprep.subr.bf16.mxu1 %v16321_v6  ;;  %v16381_v44 = vld [vmem:[#allocation4 + $0x9ec] ss:$28 sps:$4 sm:$0xff]  }
 0x45e   :  { %9364 = vmatprep.subr.bf16.mxu0 %v16342_v7  ;;  %v16412_v6 = vld [vmem:[#allocation6 + $0x1e8] ss:$20 sps:$4 sm:$0xff]  }
 0x45f   :  { %7114 = vmatmul.mubr.bf16.vlgmr.msra.gmra.mrb[28].mxu1 %v17618_v59  ;;  %v16360_v59 = vld [vmem:[#allocation6 + $0x84] ss:$20 sps:$4 sm:$0xff]   ;;  %v16420_v7 = vld [vmem:[#allocation6 + $0x214] ss:$20 sps:$4 sm:$0xff]  }
 0x460   :  { %14393 = vmatmul.mubr.bf16.vlgmr.msra.gmra.mrb[24].mxu0 %v17652_v52  ;;  %7123 = vmatpush1.bf16.msra.mxu1 %v16319_v8  ;;  %v16379_v8 = vld [vmem:[#allocation4 + $0x9e8] ss:$28 sps:$4 sm:$0xff]  }
 0x461   :  { %7154 = vmatprep.mubr.bf16.mxu1 %v17641_v0  ;;  %7124 = vmatprep.subr.bf16.mxu1 %v16324_v9  ;;  %v16358_v0 = vld [vmem:[#allocation6 + $0x80] ss:$20 sps:$4 sm:$0xff]  }
 0x462   :  { %9365 = vmatpush1.bf16.msra.mxu0 %v16340_v10  ;;  %v16387_v9 = vld [vmem:[#allocation4 + $0xa24] ss:$28 sps:$4 sm:$0xff]  }
 0x463   :  { %9366 = vmatprep.subr.bf16.mxu0 %v16348_v24  ;;  %v16418_v10 = vld [vmem:[#allocation6 + $0x210] ss:$20 sps:$4 sm:$0xff]  }
 0x464   :  { %7125 = vmatpush1.bf16.msra.mxu1 %v16322_v11  ;;  %v16426_v24 = vld [vmem:[#allocation6 + $0x23c] ss:$20 sps:$4 sm:$0xff]  }
 0x465   :  { %7126 = vmatprep.subr.bf16.mxu1 %v16327_v12  ;;  %v16385_v11 = vld [vmem:[#allocation4 + $0xa20] ss:$28 sps:$4 sm:$0xff]  }
 0x466   :  { %9367 = vmatpush1.bf16.msra.mxu0 %v16346_v34  ;;  %v16393_v12 = vld [vmem:[#allocation4 + $0xa5c] ss:$28 sps:$4 sm:$0xff]  }
 0x467   :  { %9368 = vmatprep.subr.bf16.mxu0 %v16354_v5  ;;  %v16424_v34 = vld [vmem:[#allocation6 + $0x238] ss:$20 sps:$4 sm:$0xff]  }
 0x468   :  { %7127 = vmatpush1.bf16.msra.mxu1 %v16325_v14  ;;  %v16432_v5 = vld [vmem:[#allocation6 + $0x264] ss:$20 sps:$4 sm:$0xff]  }
 0x469   :  { %7128 = vmatprep.subr.bf16.mxu1 %v16330_v16  ;;  %v16391_v14 = vld [vmem:[#allocation4 + $0xa58] ss:$28 sps:$4 sm:$0xff]  }
 0x46a   :  { %9369 = vmatpush1.bf16.msra.mxu0 %v16352_v18  ;;  %v16399_v16 = vld [vmem:[#allocation4 + $0xa94] ss:$28 sps:$4 sm:$0xff]  }
 0x46b   :  { %9370 = vmatprep.subr.bf16.mxu0 %v16360_v59  ;;  %v16430_v18 = vld [vmem:[#allocation6 + $0x260] ss:$20 sps:$4 sm:$0xff]  }
 0x46c   :  { %7129 = vmatpush1.bf16.msra.mxu1 %v16328_v19  ;;  %v16438_v59 = vld [vmem:[#allocation6 + $0x28c] ss:$20 sps:$4 sm:$0xff]  }
 0x46d   :  { %7130 = vmatprep.subr.bf16.mxu1 %v16333_v20  ;;  %v16397_v19 = vld [vmem:[#allocation4 + $0xa90] ss:$28 sps:$4 sm:$0xff]  }
 0x46e   :  { %9371 = vmatpush1.bf16.msra.mxu0 %v16358_v0  ;;  %v16405_v20 = vld [vmem:[#allocation4 + $0xacc] ss:$28 sps:$4 sm:$0xff]  }
 0x46f   :  { %9372 = vmatprep.subr.bf16.mxu0 %v16366_v21  ;;  %v16403_v0 = vld [vmem:[#allocation4 + $0xac8] ss:$28 sps:$4 sm:$0xff]  }
 0x470   :  { %7131 = vmatpush1.bf16.msra.mxu1 %v16331_v23  ;;  %v16411_v21 = vld [vmem:[#allocation4 + $0xb04] ss:$28 sps:$4 sm:$0xff]  }
 0x471   :  { %7132 = vmatprep.subr.bf16.mxu1 %v16336_v48  ;;  %v16409_v23 = vld [vmem:[#allocation4 + $0xb00] ss:$28 sps:$4 sm:$0xff]  }
 0x472   :  { %9373 = vmatpush1.bf16.msra.mxu0 %v16364_v28  ;;  %v16417_v48 = vld [vmem:[#allocation4 + $0xb3c] ss:$28 sps:$4 sm:$0xff]  }
 0x473   :  { %9374 = vmatprep.subr.bf16.mxu0 %v16372_v30  ;;  %v16415_v28 = vld [vmem:[#allocation4 + $0xb38] ss:$28 sps:$4 sm:$0xff]  }
 0x474   :  { %7133 = vmatpush1.bf16.msra.mxu1 %v16334_v13  ;;  %v4657_v30 = vld [vmem:[#allocation12 + $0x1] ss:$8 sm:$0xf] }
 0x475   :  { %7134 = vmatprep.subr.bf16.mxu1 %v16339_v31  ;;  %v4658_v13 = vld [vmem:[#allocation12 + $0x1] ss:$8 sm:$0xf0] }
 0x476   :  { %9375 = vmatpush1.bf16.msra.mxu0 %v16370_v33  ;;  %v16423_v31 = vld [vmem:[#allocation4 + $0xb74] ss:$28 sps:$4 sm:$0xff]   ;;  %v17680_v33 = vor.u32 %v4658_v13, %v4657_v30  ;;  %v16472_v30 = vld [vmem:[#allocation6 + $0x378] ss:$20 sps:$4 sm:$0xff]   ;;  %v16475_v13 = vld [vmem:[#allocation6 + $0xc8] ss:$20 sps:$4 sm:$0xff]  }
 0x477   :  { %9376 = vmatprep.subr.bf16.mxu0 %v16378_v35  ;;  %v16429_v35 = vld [vmem:[#allocation4 + $0xbac] ss:$28 sps:$4 sm:$0xff]  }
 0x478   :  { %7135 = vmatpush1.bf16.msra.mxu1 %v16337_v32  ;;  %v4664_v32 = vrot.slane %v17680_v33, %v17577_v43 }
 0x479   :  { %7136 = vmatprep.subr.bf16.mxu1 %v16345_v22  ;;  %v4668_v22 = vrot.slane %v17680_v33, %v17582_v45 }
 0x47a   :  { %9377 = vmatpush1.bf16.msra.mxu0 %v16376_v17  ;;  %v4676_v17 = vrot.slane %v17680_v33, %v17585_v49 }
 0x47b   :  { %9378 = vmatprep.subr.bf16.mxu0 %v16384_v38  ;;  %v16427_v38 = vld [vmem:[#allocation4 + $0xba8] ss:$28 sps:$4 sm:$0xff]  }
 0x47c   :  { %7137 = vmatpush1.bf16.msra.mxu1 %v16343_v39  ;;  %v16435_v39 = vld [vmem:[#allocation4 + $0xbe4] ss:$28 sps:$4 sm:$0xff]  }
 0x47d   :  { %7138 = vmatprep.subr.bf16.mxu1 %v16351_v40 }
 0x47e   :  { %9379 = vmatpush1.bf16.msra.mxu0 %v16382_v41 }
 0x47f   :  { %9380 = vmatprep.subr.bf16.mxu0 %v16390_v27 }
 0x480   :  { %7139 = vmatpush1.bf16.msra.mxu1 %v16349_v46 }
 0x481   :  { %7140 = vmatprep.subr.bf16.mxu1 %v16357_v47 }
 0x482   :  { %9381 = vmatpush1.bf16.msra.mxu0 %v16388_v37 }
 0x483   :  { %9382 = vmatprep.subr.bf16.mxu0 %v16396_v53 }
 0x484   :  { %7141 = vmatpush1.bf16.msra.mxu1 %v16355_v54 }
 0x485   :  { %7142 = vmatprep.subr.bf16.mxu1 %v16363_v55 }
 0x486   :  { %9383 = vmatpush1.bf16.msra.mxu0 %v16394_v56  ;;  %v16433_v56 = vld [vmem:[#allocation4 + $0xbe0] ss:$28 sps:$4 sm:$0xff]  }
 0x487   :  { %9384 = vmatprep.subr.bf16.mxu0 %v16402_v58 }
 0x488   :  { %7143 = vmatpush1.bf16.msra.mxu1 %v16361_v57 }
 0x489   :  { %7144 = vmatprep.subr.bf16.mxu1 %v16369_v60 }
 0x48a   :  { %9385 = vmatpush1.bf16.msra.mxu0 %v16400_v61  ;;  %v16441_v61 = vld [vmem:[#allocation4 + $0xc1c] ss:$28 sps:$4 sm:$0xff]  }
 0x48b   :  { %9386 = vmatprep.subr.bf16.mxu0 %v16408_v62 }
 0x48c   :  { %7145 = vmatpush1.bf16.msra.mxu1 %v16367_v63 }
 0x48d   :  { %7146 = vmatprep.subr.bf16.mxu1 %v16375_v1 }
 0x48e   :  { %9387 = vmatpush1.bf16.msra.mxu0 %v16406_v15  ;;  %v16436_v15 = vld [vmem:[#allocation6 + $0x288] ss:$20 sps:$4 sm:$0xff]  }
 0x48f   :  { %9388 = vmatprep.subr.bf16.mxu0 %v16414_v3  ;;  %v16439_v3 = vld [vmem:[#allocation4 + $0xc18] ss:$28 sps:$4 sm:$0xff]  }
 0x490   :  { %7147 = vmatpush1.bf16.msra.mxu1 %v16373_v4 }
 0x491   :  { %7148 = vmatprep.subr.bf16.mxu1 %v16381_v44  ;;  %v16444_v44 = vld [vmem:[#allocation6 + $0x2b4] ss:$20 sps:$4 sm:$0xff]  }
 0x492   :  { %9389 = vmatpush1.bf16.msra.mxu0 %v16412_v6  ;;  %v16447_v6 = vld [vmem:[#allocation6 + $0x4] ss:$20 sps:$4 sm:$0xff]  }
 0x493   :  { %9390 = vmatprep.subr.bf16.mxu0 %v16420_v7 }
 0x494   :  { %7149 = vmatpush1.bf16.msra.mxu1 %v16379_v8  ;;  %v16442_v8 = vld [vmem:[#allocation6 + $0x2b0] ss:$20 sps:$4 sm:$0xff]  }
 0x495   :  { %7150 = vmatprep.subr.bf16.mxu1 %v16387_v9  ;;  %v16445_v9 = vld [vmem:[#allocation6] ss:$20 sps:$4 sm:$0xff]  }
 0x496   :  { %9391 = vmatpush1.bf16.msra.mxu0 %v16418_v10  ;;  %v16450_v10 = vld [vmem:[#allocation6 + $0x2dc] ss:$20 sps:$4 sm:$0xff]  }
 0x497   :  { %9392 = vmatprep.subr.bf16.mxu0 %v16426_v24  ;;  %v16453_v24 = vld [vmem:[#allocation6 + $0x2c] ss:$20 sps:$4 sm:$0xff]  }
 0x498   :  { %7151 = vmatpush1.bf16.msra.mxu1 %v16385_v11  ;;  %v16448_v11 = vld [vmem:[#allocation6 + $0x2d8] ss:$20 sps:$4 sm:$0xff]  }
 0x499   :  { %7152 = vmatprep.subr.bf16.mxu1 %v16393_v12  ;;  %v16451_v12 = vld [vmem:[#allocation6 + $0x28] ss:$20 sps:$4 sm:$0xff]  }
 0x49a   :  { %9393 = vmatpush1.bf16.msra.mxu0 %v16424_v34  ;;  %v16456_v34 = vld [vmem:[#allocation6 + $0x304] ss:$20 sps:$4 sm:$0xff]  }
 0x49b   :  { %9394 = vmatprep.subr.bf16.mxu0 %v16432_v5  ;;  %v16459_v5 = vld [vmem:[#allocation6 + $0x54] ss:$20 sps:$4 sm:$0xff]  }
 0x49c   :  { %7153 = vmatpush1.bf16.msra.mxu1 %v16391_v14  ;;  %v16454_v14 = vld [vmem:[#allocation6 + $0x300] ss:$20 sps:$4 sm:$0xff]  }
 0x49d   :  { %7163 = vmatprep.subr.bf16.mxu1 %v16399_v16  ;;  %v16457_v16 = vld [vmem:[#allocation6 + $0x50] ss:$20 sps:$4 sm:$0xff]  }
 0x49e   :  { %9395 = vmatpush1.bf16.msra.mxu0 %v16430_v18  ;;  %v16462_v18 = vld [vmem:[#allocation6 + $0x32c] ss:$20 sps:$4 sm:$0xff]  }
 0x49f   :  { %7155 = vmatmul.mubr.bf16.vlgmr.msra.gmra.mrb[28].mxu1 %v17643_v2  ;;  %9405 = vmatprep.subr.bf16.mxu0 %v16438_v59  ;;  %v16421_v2 = vld [vmem:[#allocation4 + $0xb70] ss:$28 sps:$4 sm:$0xff]  }
 0x4a0   :  { %7164 = vmatpush1.bf16.msra.mxu1 %v16397_v19  ;;  %7195 = vmatprep.mubr.bf16.mxu1 %v17290_v42  ;;  %v16465_v59 = vld [vmem:[#allocation6 + $0x7c] ss:$20 sps:$4 sm:$0xff]   ;;  %v16463_v19 = vld [vmem:[#allocation6 + $0x78] ss:$20 sps:$4 sm:$0xff]  }
 0x4a1   :  { %7165 = vmatprep.subr.bf16.mxu1 %v16405_v20  ;;  %v16468_v20 = vld [vmem:[#allocation6 + $0x354] ss:$20 sps:$4 sm:$0xff]  }
 0x4a4   :  { %7166 = vmatpush1.bf16.msra.mxu1 %v16403_v0  ;;  %v16471_v0 = vld [vmem:[#allocation6 + $0xa4] ss:$20 sps:$4 sm:$0xff]  }
 0x4a5   :  { %7167 = vmatprep.subr.bf16.mxu1 %v16411_v21  ;;  %v16466_v21 = vld [vmem:[#allocation6 + $0x350] ss:$20 sps:$4 sm:$0xff]  }
 0x4a8   :  { %7168 = vmatpush1.bf16.msra.mxu1 %v16409_v23  ;;  %v16469_v23 = vld [vmem:[#allocation6 + $0xa0] ss:$20 sps:$4 sm:$0xff]  }
 0x4a9   :  { %7169 = vmatprep.subr.bf16.mxu1 %v16417_v48  ;;  %v16474_v48 = vld [vmem:[#allocation6 + $0x37c] ss:$20 sps:$4 sm:$0xff]  }
 0x4ac   :  { %7170 = vmatpush1.bf16.msra.mxu1 %v16415_v28  ;;  %v16477_v28 = vld [vmem:[#allocation6 + $0xcc] ss:$20 sps:$4 sm:$0xff]  }
 0x4ad   :  { %7171 = vmatprep.subr.bf16.mxu1 %v16423_v31  ;;  %v16480_v31 = vld [vmem:[#allocation6 + $0x3a4] ss:$20 sps:$4 sm:$0xff]  }
 0x4b0   :  { %7172 = vmatpush1.bf16.msra.mxu1 %v16421_v2  ;;  %v16483_v2 = vld [vmem:[#allocation6 + $0xf4] ss:$20 sps:$4 sm:$0xff]  }
 0x4b1   :  { %7173 = vmatprep.subr.bf16.mxu1 %v16429_v35 }
 0x4b2   :  { %v6869_v40 = vpop.f32.mrb[24].mxu1  ;;  %v17688_v41 = vpop.f32.mrb[8].mxu0 }
 0x4b3   :  { %v14954_v27 = vadd.f32 %v6869_v40, %v4664_v32  ;;  %v6871_v46 = vpop.f32.mrb[25].mxu1  ;;  %v7035_v47 = vpop.f32.mrb[9].mxu0  ;;  %v16486_v40 = vld [vmem:[#allocation6 + $0x3cc] ss:$20 sps:$4 sm:$0xff]  }
 0x4b4   :  { %v14955_v37 = vadd.f32 %v6871_v46, %v4668_v22  ;;  %v14957_v53 = vadd.f32 %v7035_v47, %v4676_v17  ;;  %v6873_v54 = vpop.f32.mrb[26].mxu1  ;;  %v7037_v55 = vpop.f32.mrb[10].mxu0  ;;  %7174 = vmatpush1.bf16.msra.mxu1 %v16427_v38  ;;  %v16478_v22 = vld [vmem:[#allocation6 + $0x3a0] ss:$20 sps:$4 sm:$0xff]   ;;  %v16481_v17 = vld [vmem:[#allocation6 + $0xf0] ss:$20 sps:$4 sm:$0xff]  }
 0x4b5   :  { %v7364_v58 = vmax.f32 %v14954_v27, 0.0  ;;  %v6874_v57 = vpop.f32.mrb[27].mxu1  ;;  %v7038_v60 = vpop.f32.mrb[11].mxu0  ;;  %7175 = vmatprep.subr.bf16.mxu1 %v16435_v39  ;;  %v16489_v27 = vld [vmem:[#allocation6 + $0x11c] ss:$20 sps:$4 sm:$0xff]  }
 0x4b6   :  { %v7365_v62 = vmax.f32 %v14955_v37, 0.0  ;;  %v7367_v63 = vmax.f32 %v14957_v53, 0.0  ;;  %v16484_v47 = vld [vmem:[#allocation6 + $0x3c8] ss:$20 sps:$4 sm:$0xff]   ;;  %v16487_v37 = vld [vmem:[#allocation6 + $0x118] ss:$20 sps:$4 sm:$0xff]  }
 0x4b7   :  { %v17692_v4 = vpack.c.bf16 %v7364_v58, %v7364_v58  ;;  %v16492_v53 = vld [vmem:[#allocation6 + $0x3f4] ss:$20 sps:$4 sm:$0xff]   ;;  %v16495_v54 = vld [vmem:[#allocation6 + $0x144] ss:$20 sps:$4 sm:$0xff]   ;;  %v16498_v58 = vld [vmem:[#allocation6 + $0x41c] ss:$20 sps:$4 sm:$0xff]  }
 0x4b8   :  { %v17690_v1 = vpack.c.bf16 %v7365_v62, %v7365_v62  ;;  %7176 = vmatpush1.bf16.msra.mxu1 %v16433_v56  ;;  %v17695_v7 = vpack.c.bf16 %v7367_v63, %v7367_v63  ;;  %v16490_v55 = vld [vmem:[#allocation6 + $0x3f0] ss:$20 sps:$4 sm:$0xff]   ;;  %v16493_v56 = vld [vmem:[#allocation6 + $0x140] ss:$20 sps:$4 sm:$0xff]   ;;  %v16496_v60 = vld [vmem:[#allocation6 + $0x418] ss:$20 sps:$4 sm:$0xff]  }
 0x4b9   :  { %7177 = vmatprep.subr.bf16.mxu1 %v16441_v61  ;;  %v16501_v57 = vld [vmem:[#allocation6 + $0x16c] ss:$20 sps:$4 sm:$0xff]   ;;  %v16499_v61 = vld [vmem:[#allocation6 + $0x168] ss:$20 sps:$4 sm:$0xff]   ;;  %v16504_v62 = vld [vmem:[#allocation6 + $0x444] ss:$20 sps:$4 sm:$0xff]  }
 0x4ba   :  { %9396 = vmatprep.mubr.bf16.mxu0 %v17690_v1  ;;  %v16507_v63 = vld [vmem:[#allocation6 + $0x194] ss:$20 sps:$4 sm:$0xff]  }
 0x4bb   :  { %9397 = vmatmul.mubr.bf16.vlgmr.msra.gmra.mrb[28].mxu0 %v17692_v4 }
 0x4bc   :  { %9406 = vmatpush1.bf16.msra.mxu0 %v16436_v15  ;;  %7178 = vmatpush1.bf16.msra.mxu1 %v16439_v3  ;;  %v16502_v15 = vld [vmem:[#allocation6 + $0x440] ss:$20 sps:$4 sm:$0xff]   ;;  %v16505_v3 = vld [vmem:[#allocation6 + $0x190] ss:$20 sps:$4 sm:$0xff]  }
 0x4bd   :  { %9437 = vmatprep.mubr.bf16.mxu0 %v17695_v7  ;;  %9407 = vmatprep.subr.bf16.mxu0 %v16444_v44  ;;  %v16510_v44 = vld [vmem:[#allocation6 + $0x46c] ss:$20 sps:$4 sm:$0xff]  }
 0x4be   :  { %9200 = vmatprep.subr.bf16.mxu1 %v16447_v6  ;;  %v16513_v6 = vld [vmem:[#allocation6 + $0x1bc] ss:$20 sps:$4 sm:$0xff]  }
 0x4bf   :  { %7196 = vmatmul.mubr.bf16.vlgmr.msra.gmra.mrb[28].mxu1 %v17652_v52  ;;  %v16460_v52 = vld [vmem:[#allocation6 + $0x328] ss:$20 sps:$4 sm:$0xff]  }
 0x4c0   :  { %9408 = vmatpush1.bf16.msra.mxu0 %v16442_v8  ;;  %9201 = vmatpush1.bf16.msra.mxu1 %v16445_v9  ;;  %v16508_v8 = vld [vmem:[#allocation6 + $0x468] ss:$20 sps:$4 sm:$0xff]   ;;  %v16511_v9 = vld [vmem:[#allocation6 + $0x1b8] ss:$20 sps:$4 sm:$0xff]  }
 0x4c1   :  { %9232 = vmatprep.mubr.bf16.mxu1 %v17690_v1  ;;  %9409 = vmatprep.subr.bf16.mxu0 %v16450_v10  ;;  %v16516_v10 = vld [vmem:[#allocation6 + $0x494] ss:$20 sps:$4 sm:$0xff]  }
 0x4c2   :  { %9202 = vmatprep.subr.bf16.mxu1 %v16453_v24  ;;  %v16519_v24 = vld [vmem:[#allocation6 + $0x1e4] ss:$20 sps:$4 sm:$0xff]  }
 0x4c4   :  { %9410 = vmatpush1.bf16.msra.mxu0 %v16448_v11  ;;  %9203 = vmatpush1.bf16.msra.mxu1 %v16451_v12  ;;  %v16514_v11 = vld [vmem:[#allocation6 + $0x490] ss:$20 sps:$4 sm:$0xff]   ;;  %v16517_v12 = vld [vmem:[#allocation6 + $0x1e0] ss:$20 sps:$4 sm:$0xff]  }
 0x4c5   :  { %9411 = vmatprep.subr.bf16.mxu0 %v16456_v34  ;;  %9204 = vmatprep.subr.bf16.mxu1 %v16459_v5  ;;  %v4672_v34 = vrot.slane %v17680_v33, %v17608_v29  ;;  %v16522_v5 = vld [vmem:[#allocation6 + $0x4bc] ss:$20 sps:$4 sm:$0xff]  }
 0x4c8   :  { %9412 = vmatpush1.bf16.msra.mxu0 %v16454_v14  ;;  %9205 = vmatpush1.bf16.msra.mxu1 %v16457_v16  ;;  %v16525_v14 = vld [vmem:[#allocation6 + $0x20c] ss:$20 sps:$4 sm:$0xff]  }
 0x4c9   :  { %9413 = vmatprep.subr.bf16.mxu0 %v16462_v18  ;;  %9206 = vmatprep.subr.bf16.mxu1 %v16465_v59  ;;  %v16520_v16 = vld [vmem:[#allocation6 + $0x4b8] ss:$20 sps:$4 sm:$0xff]   ;;  %v16523_v18 = vld [vmem:[#allocation6 + $0x208] ss:$20 sps:$4 sm:$0xff]   ;;  %v14956_v59 = vadd.f32 %v17688_v41, %v4672_v34 }
 0x4ca   :  { %v16534_v41 = vld [vmem:[#allocation6 + $0x25c] ss:$20 sps:$4 sm:$0xff]  }
 0x4cc   :  { %9414 = vmatpush1.bf16.msra.mxu0 %v16460_v52  ;;  %9207 = vmatpush1.bf16.msra.mxu1 %v16463_v19  ;;  %v4688_v52 = vrot.slane %v17680_v33, %v778_v25  ;;  %v16528_v19 = vld [vmem:[#allocation6 + $0x4e4] ss:$20 sps:$4 sm:$0xff]  }
 0x4cd   :  { %9415 = vmatprep.subr.bf16.mxu0 %v16468_v20  ;;  %9208 = vmatprep.subr.bf16.mxu1 %v16471_v0  ;;  %v16531_v20 = vld [vmem:[#allocation6 + $0x234] ss:$20 sps:$4 sm:$0xff]  }
 0x4d0   :  { %9416 = vmatpush1.bf16.msra.mxu0 %v16466_v21  ;;  %9209 = vmatpush1.bf16.msra.mxu1 %v16469_v23  ;;  %v16526_v23 = vld [vmem:[#allocation6 + $0x4e0] ss:$20 sps:$4 sm:$0xff]  }
 0x4d1   :  { %9417 = vmatprep.subr.bf16.mxu0 %v16474_v48  ;;  %9210 = vmatprep.subr.bf16.mxu1 %v16477_v28  ;;  %v16529_v48 = vld [vmem:[#allocation6 + $0x230] ss:$20 sps:$4 sm:$0xff]   ;;  %v7366_v28 = vmax.f32 %v14956_v59, 0.0  ;;  %v16628_v59 = vld [vmem:[#allocation6 + $0x620] ss:$20 sps:$4 sm:$0xff]  }
 0x4d3   :  { %v13971_v35 = vpop.f32.mrb[12].mxu0 }
 0x4d4   :  { %v13972_v32 = vpop.f32.mrb[13].mxu0  ;;  %9418 = vmatpush1.bf16.msra.mxu0 %v16472_v30  ;;  %9211 = vmatpush1.bf16.msra.mxu1 %v16475_v13 }
 0x4d5   :  { %v17701_v38 = vadd.f32 %v13972_v32, %v13971_v35  ;;  %v13974_v39 = vpop.f32.mrb[14].mxu0  ;;  %9419 = vmatprep.subr.bf16.mxu0 %v16480_v31  ;;  %9212 = vmatprep.subr.bf16.mxu1 %v16483_v2  ;;  %v16588_v2 = vld [vmem:[#allocation6 + $0x50c] ss:$20 sps:$4 sm:$0xff]  }
 0x4d6   :  { %v13975_v46 = vpop.f32.mrb[15].mxu0  ;;  %v16532_v32 = vld [vmem:[#allocation6 + $0x258] ss:$20 sps:$4 sm:$0xff]  }
 0x4d7   :  { %v7239_v30 = vadd.f32 %v17701_v38, %v4688_v52  ;;  %v16537_v39 = vld [vmem:[#allocation6 + $0x284] ss:$20 sps:$4 sm:$0xff]   ;;  %v16535_v38 = vld [vmem:[#allocation6 + $0x280] ss:$20 sps:$4 sm:$0xff]  }
 0x4d8   :  { %9420 = vmatpush1.bf16.msra.mxu0 %v16478_v22  ;;  %9213 = vmatpush1.bf16.msra.mxu1 %v16481_v17  ;;  %v16586_v22 = vld [vmem:[#allocation6 + $0x508] ss:$20 sps:$4 sm:$0xff]   ;;  %v17712_v17 = vpack.c.bf16 %v7366_v28, %v7366_v28  ;;  %v16592_v46 = vld [vmem:[#allocation6 + $0x530] ss:$20 sps:$4 sm:$0xff]   ;;  %v16559_v28 = vld [vmem:[#allocation6 + $0x3c0] ss:$20 sps:$4 sm:$0xff]  }
 0x4d9   :  { %9421 = vmatprep.subr.bf16.mxu0 %v16486_v40  ;;  %9214 = vmatprep.subr.bf16.mxu1 %v16489_v27  ;;  %v16594_v40 = vld [vmem:[#allocation6 + $0x534] ss:$20 sps:$4 sm:$0xff]   ;;  %v16540_v27 = vld [vmem:[#allocation6 + $0x2ac] ss:$20 sps:$4 sm:$0xff]  }
 0x4dc   :  { %9422 = vmatpush1.bf16.msra.mxu0 %v16484_v47  ;;  %9215 = vmatpush1.bf16.msra.mxu1 %v16487_v37  ;;  %v16600_v47 = vld [vmem:[#allocation6 + $0x55c] ss:$20 sps:$4 sm:$0xff]  }
 0x4dd   :  { %9423 = vmatprep.subr.bf16.mxu0 %v16492_v53  ;;  %9216 = vmatprep.subr.bf16.mxu1 %v16495_v54  ;;  %v16538_v37 = vld [vmem:[#allocation6 + $0x2a8] ss:$20 sps:$4 sm:$0xff]   ;;  %v16598_v54 = vld [vmem:[#allocation6 + $0x558] ss:$20 sps:$4 sm:$0xff]  }
 0x4de   :  { %v16543_v53 = vld [vmem:[#allocation6 + $0x2d4] ss:$20 sps:$4 sm:$0xff]  }
 0x4e0   :  { %9424 = vmatpush1.bf16.msra.mxu0 %v16490_v55  ;;  %9217 = vmatpush1.bf16.msra.mxu1 %v16493_v56  ;;  %v16606_v55 = vld [vmem:[#allocation6 + $0x584] ss:$20 sps:$4 sm:$0xff]  }
 0x4e1   :  { %9425 = vmatprep.subr.bf16.mxu0 %v16498_v58  ;;  %9218 = vmatprep.subr.bf16.mxu1 %v16501_v57  ;;  %v16541_v56 = vld [vmem:[#allocation6 + $0x2d0] ss:$20 sps:$4 sm:$0xff]   ;;  %v16604_v57 = vld [vmem:[#allocation6 + $0x580] ss:$20 sps:$4 sm:$0xff]  }
 0x4e2   :  { %v16546_v58 = vld [vmem:[#allocation6 + $0x2fc] ss:$20 sps:$4 sm:$0xff]  }
 0x4e4   :  { %9426 = vmatpush1.bf16.msra.mxu0 %v16496_v60  ;;  %9219 = vmatpush1.bf16.msra.mxu1 %v16499_v61  ;;  %v16612_v60 = vld [vmem:[#allocation6 + $0x5ac] ss:$20 sps:$4 sm:$0xff]  }
 0x4e5   :  { %9427 = vmatprep.subr.bf16.mxu0 %v16504_v62  ;;  %9220 = vmatprep.subr.bf16.mxu1 %v16507_v63  ;;  %v16544_v61 = vld [vmem:[#allocation6 + $0x2f8] ss:$20 sps:$4 sm:$0xff]   ;;  %v16610_v63 = vld [vmem:[#allocation6 + $0x5a8] ss:$20 sps:$4 sm:$0xff]  }
 0x4e6   :  { %v16549_v62 = vld [vmem:[#allocation6 + $0x324] ss:$20 sps:$4 sm:$0xff]  }
 0x4e8   :  { %9428 = vmatpush1.bf16.msra.mxu0 %v16502_v15  ;;  %9221 = vmatpush1.bf16.msra.mxu1 %v16505_v3  ;;  %v16618_v15 = vld [vmem:[#allocation6 + $0x5d4] ss:$20 sps:$4 sm:$0xff]  }
 0x4e9   :  { %9429 = vmatprep.subr.bf16.mxu0 %v16510_v44  ;;  %9222 = vmatprep.subr.bf16.mxu1 %v16513_v6  ;;  %v16547_v3 = vld [vmem:[#allocation6 + $0x320] ss:$20 sps:$4 sm:$0xff]   ;;  %v16616_v6 = vld [vmem:[#allocation6 + $0x5d0] ss:$20 sps:$4 sm:$0xff]  }
 0x4ea   :  { %v16552_v44 = vld [vmem:[#allocation6 + $0x34c] ss:$20 sps:$4 sm:$0xff]  }
 0x4ec   :  { %9430 = vmatpush1.bf16.msra.mxu0 %v16508_v8  ;;  %9223 = vmatpush1.bf16.msra.mxu1 %v16511_v9  ;;  %v16624_v8 = vld [vmem:[#allocation6 + $0x5fc] ss:$20 sps:$4 sm:$0xff]  }
 0x4ed   :  { %9431 = vmatprep.subr.bf16.mxu0 %v16516_v10  ;;  %9224 = vmatprep.subr.bf16.mxu1 %v16519_v24  ;;  %v16550_v9 = vld [vmem:[#allocation6 + $0x348] ss:$20 sps:$4 sm:$0xff]   ;;  %v16622_v24 = vld [vmem:[#allocation6 + $0x5f8] ss:$20 sps:$4 sm:$0xff]  }
 0x4ee   :  { %v16555_v10 = vld [vmem:[#allocation6 + $0x374] ss:$20 sps:$4 sm:$0xff]  }
 0x4f0   :  { %9432 = vmatpush1.bf16.msra.mxu0 %v16514_v11  ;;  %9225 = vmatpush1.bf16.msra.mxu1 %v16517_v12  ;;  %v16630_v11 = vld [vmem:[#allocation6 + $0x624] ss:$20 sps:$4 sm:$0xff]  }
 0x4f1   :  { %9433 = vmatprep.subr.bf16.mxu0 %v16522_v5  ;;  %9226 = vmatprep.subr.bf16.mxu1 %v16525_v14  ;;  %v16553_v5 = vld [vmem:[#allocation6 + $0x370] ss:$20 sps:$4 sm:$0xff]  }
 0x4f3   :  { %v13993_v0 = vpop.f32.mrb[16].mxu0 }
 0x4f4   :  { %v13994_v21 = vpop.f32.mrb[17].mxu0  ;;  %9434 = vmatpush1.bf16.msra.mxu0 %v16520_v16  ;;  %9227 = vmatpush1.bf16.msra.mxu1 %v16523_v18  ;;  %v16558_v18 = vld [vmem:[#allocation6 + $0x39c] ss:$20 sps:$4 sm:$0xff]  }
 0x4f5   :  { %v13995_v13 = vadd.f32 %v13994_v21, %v13993_v0  ;;  %v13996_v31 = vpop.f32.mrb[18].mxu0  ;;  %9435 = vmatprep.subr.bf16.mxu0 %v16528_v19  ;;  %9228 = vmatprep.subr.bf16.mxu1 %v16531_v20  ;;  %v16636_v19 = vld [vmem:[#allocation6 + $0x64c] ss:$20 sps:$4 sm:$0xff]   ;;  %v16561_v21 = vld [vmem:[#allocation6 + $0x3c4] ss:$20 sps:$4 sm:$0xff]  }
 0x4f6   :  { %v13997_v25 = vpop.f32.mrb[19].mxu0  ;;  %v16556_v0 = vld [vmem:[#allocation6 + $0x398] ss:$20 sps:$4 sm:$0xff]   ;;  %v16648_v31 = vld [vmem:[#allocation6 + $0x69c] ss:$20 sps:$4 sm:$0xff]  }
 0x4f7   :  { %v17710_v35 = vadd.f32 %v13995_v13, %v7239_v30  ;;  %v16564_v30 = vld [vmem:[#allocation6 + $0x3ec] ss:$20 sps:$4 sm:$0xff]   ;;  %v16640_v13 = vld [vmem:[#allocation6 + $0x670] ss:$20 sps:$4 sm:$0xff]  }
 0x4f8   :  { %9436 = vmatpush1.bf16.msra.mxu0 %v16526_v23  ;;  %9229 = vmatpush1.bf16.msra.mxu1 %v16529_v48  ;;  %v16634_v23 = vld [vmem:[#allocation6 + $0x648] ss:$20 sps:$4 sm:$0xff]   ;;  %v16646_v25 = vld [vmem:[#allocation6 + $0x698] ss:$20 sps:$4 sm:$0xff]  }
 0x4f9   :  { %9230 = vmatprep.subr.bf16.mxu1 %v16534_v41  ;;  %9446 = vmatprep.subr.bf16.mxu0 %v16588_v2  ;;  %v16642_v48 = vld [vmem:[#allocation6 + $0x674] ss:$20 sps:$4 sm:$0xff]  }
 0x4fa   :  { %v16562_v41 = vld [vmem:[#allocation6 + $0x3e8] ss:$20 sps:$4 sm:$0xff]  }
 0x4fb   :  { %9438 = vmatmul.mubr.bf16.vlgmr.msra.gmra.mrb[28].mxu0 %v17712_v17  ;;  %v16567_v2 = vld [vmem:[#allocation6 + $0x414] ss:$20 sps:$4 sm:$0xff]  }
 0x4fc   :  { %9231 = vmatpush1.bf16.msra.mxu1 %v16532_v32  ;;  %9447 = vmatpush1.bf16.msra.mxu0 %v16586_v22  ;;  %v16565_v32 = vld [vmem:[#allocation6 + $0x410] ss:$20 sps:$4 sm:$0xff]  }
 0x4fd   :  { %9241 = vmatprep.subr.bf16.mxu1 %v16537_v39  ;;  %9448 = vmatprep.subr.bf16.mxu0 %v16594_v40  ;;  %v16570_v22 = vld [vmem:[#allocation6 + $0x43c] ss:$20 sps:$4 sm:$0xff]   ;;  %v16652_v39 = vld [vmem:[#allocation6 + $0x6c0] ss:$20 sps:$4 sm:$0xff]  }
 0x4fe   :  { %v16660_v40 = vld [vmem:[#allocation6 + $0x6ec] ss:$20 sps:$4 sm:$0xff]  }
 0x4ff   :  { %9233 = vmatmul.mubr.bf16.vlgmr.msra.gmra.mrb[32].mxu1 %v17692_v4 }
 0x500   :  { %9242 = vmatpush1.bf16.msra.mxu1 %v16535_v38  ;;  %9273 = vmatprep.mubr.bf16.mxu1 %v17695_v7  ;;  %v16568_v38 = vld [vmem:[#allocation6 + $0x438] ss:$20 sps:$4 sm:$0xff]  }
 0x501   :  { %9243 = vmatprep.subr.bf16.mxu1 %v16540_v27  ;;  %9449 = vmatpush1.bf16.msra.mxu0 %v16592_v46  ;;  %v16573_v27 = vld [vmem:[#allocation6 + $0x464] ss:$20 sps:$4 sm:$0xff]   ;;  %v16658_v46 = vld [vmem:[#allocation6 + $0x6e8] ss:$20 sps:$4 sm:$0xff]  }
 0x502   :  { %9450 = vmatprep.subr.bf16.mxu0 %v16600_v47  ;;  %v16666_v47 = vld [vmem:[#allocation6 + $0x714] ss:$20 sps:$4 sm:$0xff]  }
 0x504   :  { %9244 = vmatpush1.bf16.msra.mxu1 %v16538_v37  ;;  %v16571_v37 = vld [vmem:[#allocation6 + $0x460] ss:$20 sps:$4 sm:$0xff]  }
 0x505   :  { %9245 = vmatprep.subr.bf16.mxu1 %v16543_v53  ;;  %9451 = vmatpush1.bf16.msra.mxu0 %v16598_v54  ;;  %v16576_v53 = vld [vmem:[#allocation6 + $0x48c] ss:$20 sps:$4 sm:$0xff]   ;;  %v16664_v54 = vld [vmem:[#allocation6 + $0x710] ss:$20 sps:$4 sm:$0xff]  }
 0x506   :  { %9452 = vmatprep.subr.bf16.mxu0 %v16606_v55  ;;  %v16672_v55 = vld [vmem:[#allocation6 + $0x73c] ss:$20 sps:$4 sm:$0xff]  }
 0x508   :  { %9246 = vmatpush1.bf16.msra.mxu1 %v16541_v56  ;;  %v16574_v56 = vld [vmem:[#allocation6 + $0x488] ss:$20 sps:$4 sm:$0xff]  }
 0x509   :  { %9247 = vmatprep.subr.bf16.mxu1 %v16546_v58  ;;  %9453 = vmatpush1.bf16.msra.mxu0 %v16604_v57  ;;  %v16579_v58 = vld [vmem:[#allocation6 + $0x4b4] ss:$20 sps:$4 sm:$0xff]   ;;  %v16670_v57 = vld [vmem:[#allocation6 + $0x738] ss:$20 sps:$4 sm:$0xff]  }
 0x50a   :  { %9454 = vmatprep.subr.bf16.mxu0 %v16612_v60  ;;  %v16678_v60 = vld [vmem:[#allocation6 + $0x764] ss:$20 sps:$4 sm:$0xff]  }
 0x50c   :  { %9248 = vmatpush1.bf16.msra.mxu1 %v16544_v61 }
 0x50d   :  { %9249 = vmatprep.subr.bf16.mxu1 %v16549_v62  ;;  %9455 = vmatpush1.bf16.msra.mxu0 %v16610_v63 }
 0x50e   :  { %9456 = vmatprep.subr.bf16.mxu0 %v16618_v15  ;;  %v16577_v15 = vld [vmem:[#allocation6 + $0x4b0] ss:$20 sps:$4 sm:$0xff]  }
 0x510   :  { %9250 = vmatpush1.bf16.msra.mxu1 %v16547_v3 }
 0x511   :  { %9251 = vmatprep.subr.bf16.mxu1 %v16552_v44  ;;  %9457 = vmatpush1.bf16.msra.mxu0 %v16616_v6  ;;  %v16582_v44 = vld [vmem:[#allocation6 + $0x4dc] ss:$20 sps:$4 sm:$0xff]   ;;  %v16676_v6 = vld [vmem:[#allocation6 + $0x760] ss:$20 sps:$4 sm:$0xff]  }
 0x512   :  { %9458 = vmatprep.subr.bf16.mxu0 %v16624_v8 }
 0x513   :  { %v14015_v12 = vpop.f32.mrb[20].mxu0 }
 0x514   :  { %v14016_v34 = vpop.f32.mrb[21].mxu0  ;;  %9252 = vmatpush1.bf16.msra.mxu1 %v16550_v9  ;;  %v16684_v9 = vld [vmem:[#allocation6 + $0x78c] ss:$20 sps:$4 sm:$0xff]  }
 0x515   :  { %v14017_v14 = vadd.f32 %v14016_v34, %v14015_v12  ;;  %v14018_v16 = vpop.f32.mrb[22].mxu0  ;;  %9253 = vmatprep.subr.bf16.mxu1 %v16555_v10  ;;  %9459 = vmatpush1.bf16.msra.mxu0 %v16622_v24  ;;  %v16580_v10 = vld [vmem:[#allocation6 + $0x4d8] ss:$20 sps:$4 sm:$0xff]   ;;  %v16589_v34 = vld [vmem:[#allocation6 + $0x528] ss:$20 sps:$4 sm:$0xff]  }
 0x516   :  { %v14019_v52 = vpop.f32.mrb[23].mxu0  ;;  %9460 = vmatprep.subr.bf16.mxu0 %v16630_v11  ;;  %v16585_v24 = vld [vmem:[#allocation6 + $0x504] ss:$20 sps:$4 sm:$0xff]   ;;  %v16583_v11 = vld [vmem:[#allocation6 + $0x500] ss:$20 sps:$4 sm:$0xff]  }
 0x517   :  { %v7319_v20 = vadd.f32 %v14017_v14, %v17710_v35  ;;  %v16654_v35 = vld [vmem:[#allocation6 + $0x6c4] ss:$20 sps:$4 sm:$0xff]   ;;  %v16591_v12 = vld [vmem:[#allocation6 + $0x52c] ss:$20 sps:$4 sm:$0xff]   ;;  %v16603_v16 = vld [vmem:[#allocation6 + $0x57c] ss:$20 sps:$4 sm:$0xff]  }
 0x518   :  { %9254 = vmatpush1.bf16.msra.mxu1 %v16553_v5  ;;  %v16597_v5 = vld [vmem:[#allocation6 + $0x554] ss:$20 sps:$4 sm:$0xff]   ;;  %v16595_v14 = vld [vmem:[#allocation6 + $0x550] ss:$20 sps:$4 sm:$0xff]  }
 0x519   :  { %9255 = vmatprep.subr.bf16.mxu1 %v16558_v18  ;;  %9461 = vmatpush1.bf16.msra.mxu0 %v16628_v59  ;;  %v16601_v18 = vld [vmem:[#allocation6 + $0x578] ss:$20 sps:$4 sm:$0xff]   ;;  %v16607_v52 = vld [vmem:[#allocation6 + $0x5a0] ss:$20 sps:$4 sm:$0xff]  }
 0x51a   :  { %9462 = vmatprep.subr.bf16.mxu0 %v16636_v19  ;;  %v16609_v59 = vld [vmem:[#allocation6 + $0x5a4] ss:$20 sps:$4 sm:$0xff]   ;;  %v16615_v19 = vld [vmem:[#allocation6 + $0x5cc] ss:$20 sps:$4 sm:$0xff]  }
 0x51c   :  { %9256 = vmatpush1.bf16.msra.mxu1 %v16556_v0  ;;  %v16621_v0 = vld [vmem:[#allocation6 + $0x5f4] ss:$20 sps:$4 sm:$0xff]  }
 0x51d   :  { %9257 = vmatprep.subr.bf16.mxu1 %v16561_v21  ;;  %9463 = vmatpush1.bf16.msra.mxu0 %v16634_v23  ;;  %v16619_v21 = vld [vmem:[#allocation6 + $0x5f0] ss:$20 sps:$4 sm:$0xff]  }
 0x51e   :  { %9464 = vmatprep.subr.bf16.mxu0 %v16642_v48  ;;  %v16627_v23 = vld [vmem:[#allocation6 + $0x61c] ss:$20 sps:$4 sm:$0xff]   ;;  %v16625_v48 = vld [vmem:[#allocation6 + $0x618] ss:$20 sps:$4 sm:$0xff]  }
 0x520   :  { %9258 = vmatpush1.bf16.msra.mxu1 %v16559_v28  ;;  %v16633_v28 = vld [vmem:[#allocation6 + $0x644] ss:$20 sps:$4 sm:$0xff]  }
 0x521   :  { %9259 = vmatprep.subr.bf16.mxu1 %v16564_v30  ;;  %9465 = vmatpush1.bf16.msra.mxu0 %v16640_v13  ;;  %v16631_v30 = vld [vmem:[#allocation6 + $0x640] ss:$20 sps:$4 sm:$0xff]  }
 0x522   :  { %9466 = vmatprep.subr.bf16.mxu0 %v16648_v31  ;;  %v16639_v13 = vld [vmem:[#allocation6 + $0x66c] ss:$20 sps:$4 sm:$0xff]   ;;  %v16637_v31 = vld [vmem:[#allocation6 + $0x668] ss:$20 sps:$4 sm:$0xff]  }
 0x524   :  { %9260 = vmatpush1.bf16.msra.mxu1 %v16562_v41  ;;  %v16645_v41 = vld [vmem:[#allocation6 + $0x694] ss:$20 sps:$4 sm:$0xff]  }
 0x525   :  { %9261 = vmatprep.subr.bf16.mxu1 %v16567_v2  ;;  %9467 = vmatpush1.bf16.msra.mxu0 %v16646_v25  ;;  %v16643_v2 = vld [vmem:[#allocation6 + $0x690] ss:$20 sps:$4 sm:$0xff]  }
 0x526   :  { %9468 = vmatprep.subr.bf16.mxu0 %v16654_v35  ;;  %v16651_v25 = vld [vmem:[#allocation6 + $0x6bc] ss:$20 sps:$4 sm:$0xff]   ;;  %v16649_v35 = vld [vmem:[#allocation6 + $0x6b8] ss:$20 sps:$4 sm:$0xff]  }
 0x528   :  { %9262 = vmatpush1.bf16.msra.mxu1 %v16565_v32  ;;  %v16657_v32 = vld [vmem:[#allocation6 + $0x6e4] ss:$20 sps:$4 sm:$0xff]  }
 0x529   :  { %9263 = vmatprep.subr.bf16.mxu1 %v16570_v22  ;;  %9469 = vmatpush1.bf16.msra.mxu0 %v16652_v39  ;;  %v16655_v22 = vld [vmem:[#allocation6 + $0x6e0] ss:$20 sps:$4 sm:$0xff]  }
 0x52a   :  { %9470 = vmatprep.subr.bf16.mxu0 %v16660_v40  ;;  %v16663_v39 = vld [vmem:[#allocation6 + $0x70c] ss:$20 sps:$4 sm:$0xff]   ;;  %v16661_v40 = vld [vmem:[#allocation6 + $0x708] ss:$20 sps:$4 sm:$0xff]  }
 0x52c   :  { %9264 = vmatpush1.bf16.msra.mxu1 %v16568_v38  ;;  %v16669_v38 = vld [vmem:[#allocation6 + $0x734] ss:$20 sps:$4 sm:$0xff]  }
 0x52d   :  { %9265 = vmatprep.subr.bf16.mxu1 %v16573_v27  ;;  %9471 = vmatpush1.bf16.msra.mxu0 %v16658_v46  ;;  %v16667_v27 = vld [vmem:[#allocation6 + $0x730] ss:$20 sps:$4 sm:$0xff]  }
 0x52e   :  { %9472 = vmatprep.subr.bf16.mxu0 %v16666_v47  ;;  %v16675_v46 = vld [vmem:[#allocation6 + $0x75c] ss:$20 sps:$4 sm:$0xff]   ;;  %v16673_v47 = vld [vmem:[#allocation6 + $0x758] ss:$20 sps:$4 sm:$0xff]  }
 0x530   :  { %9266 = vmatpush1.bf16.msra.mxu1 %v16571_v37  ;;  %v16681_v37 = vld [vmem:[#allocation6 + $0x784] ss:$20 sps:$4 sm:$0xff]  }
 0x531   :  { %9267 = vmatprep.subr.bf16.mxu1 %v16576_v53  ;;  %9473 = vmatpush1.bf16.msra.mxu0 %v16664_v54  ;;  %v4680_v53 = vrot.slane %v17680_v33, %v17633_v50  ;;  %v4684_v54 = vrot.slane %v17680_v33, %v774_v51  ;;  %v16688_v51 = vld [vmem:[#allocation6 + $0x7b0] ss:$20 sps:$4 sm:$0xff]   ;;  %v16693_v33 = vld [vmem:[#allocation6 + $0x7d4] ss:$20 sps:$4 sm:$0xff]  }
 0x532   :  { %9474 = vmatprep.subr.bf16.mxu0 %v16672_v55 }
 0x533   :  { %v7358_v61 = vpop.f32.mrb[24].mxu0 }
 0x534   :  { %v17718_v62 = vadd.f32 %v7358_v61, %v7319_v20  ;;  %v14394_v63 = vpop.f32.mrb[25].mxu0  ;;  %9268 = vmatpush1.bf16.msra.mxu1 %v16574_v56  ;;  %v16613_v20 = vld [vmem:[#allocation6 + $0x5c8] ss:$20 sps:$4 sm:$0xff]  }
 0x535   :  { %v7361_v3 = vpop.f32.mrb[26].mxu0  ;;  %9269 = vmatprep.subr.bf16.mxu1 %v16579_v58  ;;  %9475 = vmatpush1.bf16.msra.mxu0 %v16670_v57 }
 0x536   :  { %v14395_v8 = vpop.f32.mrb[27].mxu0  ;;  %9476 = vmatprep.subr.bf16.mxu0 %v16678_v60 }
 0x538   :  { %9270 = vmatpush1.bf16.msra.mxu1 %v16577_v15 }
 0x539   :  { %9271 = vmatprep.subr.bf16.mxu1 %v16582_v44  ;;  %9477 = vmatpush1.bf16.msra.mxu0 %v16676_v6  ;;  %v16679_v44 = vld [vmem:[#allocation6 + $0x780] ss:$20 sps:$4 sm:$0xff]   ;;  %v16682_v6 = vld [vmem:[#allocation6 + $0x788] ss:$20 sps:$4 sm:$0xff]  }
 0x53a   :  { %9487 = vmatprep.subr.bf16.mxu0 %v16684_v9  ;;  %v16687_v9 = vld [vmem:[#allocation6 + $0x7ac] ss:$20 sps:$4 sm:$0xff]  }
 0x53c   :  { %9272 = vmatpush1.bf16.msra.mxu1 %v16580_v10  ;;  %v16690_v10 = vld [vmem:[#allocation6 + $0x7b4] ss:$20 sps:$4 sm:$0xff]  }
 0x53d   :  { %9282 = vmatprep.subr.bf16.mxu1 %v16585_v24  ;;  %v16696_v24 = vld [vmem:[#allocation6 + $0x7dc] ss:$20 sps:$4 sm:$0xff]  }
 0x53f   :  { %9274 = vmatmul.mubr.bf16.vlgmr.msra.gmra.mrb[32].mxu1 %v17712_v17 }
 0x540   :  { %9283 = vmatpush1.bf16.msra.mxu1 %v16583_v11  ;;  %v16691_v11 = vld [vmem:[#allocation6 + $0x7d0] ss:$20 sps:$4 sm:$0xff]  }
 0x541   :  { %9284 = vmatprep.subr.bf16.mxu1 %v16591_v12  ;;  %v16694_v12 = vld [vmem:[#allocation6 + $0x7d8] ss:$20 sps:$4 sm:$0xff]  }
 0x544   :  { %9285 = vmatpush1.bf16.msra.mxu1 %v16589_v34  ;;  %v16699_v34 = vld [vmem:[#allocation6 + $0x7fc] ss:$20 sps:$4 sm:$0xff]  }
 0x545   :  { %9286 = vmatprep.subr.bf16.mxu1 %v16597_v5  ;;  %v16702_v5 = vld [vmem:[#allocation6 + $0x804] ss:$20 sps:$4 sm:$0xff]  }
 0x548   :  { %9287 = vmatpush1.bf16.msra.mxu1 %v16595_v14  ;;  %v16697_v14 = vld [vmem:[#allocation6 + $0x7f8] ss:$20 sps:$4 sm:$0xff]  }
 0x549   :  { %9288 = vmatprep.subr.bf16.mxu1 %v16603_v16  ;;  %v16700_v16 = vld [vmem:[#allocation6 + $0x800] ss:$20 sps:$4 sm:$0xff]  }
 0x54c   :  { %9289 = vmatpush1.bf16.msra.mxu1 %v16601_v18  ;;  %v16705_v18 = vld [vmem:[#allocation6 + $0x824] ss:$20 sps:$4 sm:$0xff]  }
 0x54d   :  { %9290 = vmatprep.subr.bf16.mxu1 %v16609_v59  ;;  %v16708_v59 = vld [vmem:[#allocation6 + $0x82c] ss:$20 sps:$4 sm:$0xff]  }
 0x550   :  { %9291 = vmatpush1.bf16.msra.mxu1 %v16607_v52  ;;  %v16703_v52 = vld [vmem:[#allocation6 + $0x820] ss:$20 sps:$4 sm:$0xff]  }
 0x551   :  { %9292 = vmatprep.subr.bf16.mxu1 %v16615_v19  ;;  %v16706_v19 = vld [vmem:[#allocation6 + $0x828] ss:$20 sps:$4 sm:$0xff]  }
 0x554   :  { %9293 = vmatpush1.bf16.msra.mxu1 %v16613_v20  ;;  %v16711_v20 = vld [vmem:[#allocation6 + $0x84c] ss:$20 sps:$4 sm:$0xff]  }
 0x555   :  { %9294 = vmatprep.subr.bf16.mxu1 %v16621_v0  ;;  %v16714_v0 = vld [vmem:[#allocation6 + $0x854] ss:$20 sps:$4 sm:$0xff]  }
 0x558   :  { %9295 = vmatpush1.bf16.msra.mxu1 %v16619_v21  ;;  %v16709_v21 = vld [vmem:[#allocation6 + $0x848] ss:$20 sps:$4 sm:$0xff]  }
 0x559   :  { %9296 = vmatprep.subr.bf16.mxu1 %v16627_v23  ;;  %v16712_v23 = vld [vmem:[#allocation6 + $0x850] ss:$20 sps:$4 sm:$0xff]  }
 0x55c   :  { %9297 = vmatpush1.bf16.msra.mxu1 %v16625_v48  ;;  %v16717_v48 = vld [vmem:[#allocation6 + $0x874] ss:$20 sps:$4 sm:$0xff]  }
 0x55d   :  { %9298 = vmatprep.subr.bf16.mxu1 %v16633_v28  ;;  %v16720_v28 = vld [vmem:[#allocation6 + $0x87c] ss:$20 sps:$4 sm:$0xff]  }
 0x560   :  { %9299 = vmatpush1.bf16.msra.mxu1 %v16631_v30  ;;  %v16715_v30 = vld [vmem:[#allocation6 + $0x870] ss:$20 sps:$4 sm:$0xff]  }
 0x561   :  { %9300 = vmatprep.subr.bf16.mxu1 %v16639_v13  ;;  %v16718_v13 = vld [vmem:[#allocation6 + $0x878] ss:$20 sps:$4 sm:$0xff]  }
 0x564   :  { %9301 = vmatpush1.bf16.msra.mxu1 %v16637_v31  ;;  %v16723_v31 = vld [vmem:[#allocation6 + $0x89c] ss:$20 sps:$4 sm:$0xff]  }
 0x565   :  { %9302 = vmatprep.subr.bf16.mxu1 %v16645_v41  ;;  %v16726_v41 = vld [vmem:[#allocation6 + $0x8a4] ss:$20 sps:$4 sm:$0xff]  }
 0x568   :  { %9303 = vmatpush1.bf16.msra.mxu1 %v16643_v2  ;;  %v16721_v2 = vld [vmem:[#allocation6 + $0x898] ss:$20 sps:$4 sm:$0xff]  }
 0x569   :  { %9304 = vmatprep.subr.bf16.mxu1 %v16651_v25  ;;  %v16724_v25 = vld [vmem:[#allocation6 + $0x8a0] ss:$20 sps:$4 sm:$0xff]  }
 0x56c   :  { %9305 = vmatpush1.bf16.msra.mxu1 %v16649_v35  ;;  %v7370_v35 = vmax.f32 %v17718_v62, 0.0  ;;  %v16733_v62 = vld [vmem:[#allocation6 + $0x38] ss:$20 sps:$4 sm:$0xff]  }
 0x56d   :  { %9306 = vmatprep.subr.bf16.mxu1 %v16657_v32  ;;  %v16727_v32 = vld [vmem:[#allocation6 + $0x150] ss:$20 sps:$4 sm:$0xff]  }
 0x570   :  { %9307 = vmatpush1.bf16.msra.mxu1 %v16655_v22  ;;  %v16728_v22 = vld [vmem:[#allocation6 + $0x3d0] ss:$20 sps:$4 sm:$0xff]  }
 0x571   :  { %9308 = vmatprep.subr.bf16.mxu1 %v16663_v39  ;;  %v16729_v39 = vld [vmem:[#allocation6 + $0x10] ss:$20 sps:$4 sm:$0xff]  }
 0x574   :  { %9309 = vmatpush1.bf16.msra.mxu1 %v16661_v40  ;;  %v17737_v40 = vpack.c.bf16 %v7370_v35, %v7370_v35  ;;  %v16781_v35 = vld [vmem:[#allocation6 + $0x628] ss:$20 sps:$4 sm:$0xff]  }
 0x575   :  { %9310 = vmatprep.subr.bf16.mxu1 %v16669_v38  ;;  %v16730_v38 = vld [vmem:[#allocation6 + $0x290] ss:$20 sps:$4 sm:$0xff]  }
 0x578   :  { %9311 = vmatpush1.bf16.msra.mxu1 %v16667_v27  ;;  %v16731_v27 = vld [vmem:[#allocation6 + $0x178] ss:$20 sps:$4 sm:$0xff]  }
 0x579   :  { %9312 = vmatprep.subr.bf16.mxu1 %v16675_v46  ;;  %v16732_v46 = vld [vmem:[#allocation6 + $0x3f8] ss:$20 sps:$4 sm:$0xff]  }
 0x57c   :  { %9313 = vmatpush1.bf16.msra.mxu1 %v16673_v47  ;;  %v16734_v47 = vld [vmem:[#allocation6 + $0x2b8] ss:$20 sps:$4 sm:$0xff]  }
 0x57d   :  { %9323 = vmatprep.subr.bf16.mxu1 %v16681_v37  ;;  %v16735_v37 = vld [vmem:[#allocation6 + $0x1a0] ss:$20 sps:$4 sm:$0xff]  }
 0x592   :  { %v7197_v55 = vpop.f32.mrb[28].mxu1 }
 0x593   :  { %v14958_v56 = vadd.f32 %v7197_v55, %v4680_v53  ;;  %v7199_v58 = vpop.f32.mrb[29].mxu1  ;;  %v16736_v53 = vld [vmem:[#allocation6 + $0x420] ss:$20 sps:$4 sm:$0xff]  }
 0x594   :  { %v14959_v57 = vadd.f32 %v7199_v58, %v4684_v54  ;;  %v7201_v60 = vpop.f32.mrb[30].mxu1  ;;  %v16737_v54 = vld [vmem:[#allocation6 + $0x60] ss:$20 sps:$4 sm:$0xff]   ;;  %v16740_v58 = vld [vmem:[#allocation6 + $0x448] ss:$20 sps:$4 sm:$0xff]  }
 0x595   :  { %v7368_v61 = vmax.f32 %v14958_v56, 0.0  ;;  %v7202_v63 = vpop.f32.mrb[31].mxu1  ;;  %v16738_v55 = vld [vmem:[#allocation6 + $0x2e0] ss:$20 sps:$4 sm:$0xff]   ;;  %v16739_v56 = vld [vmem:[#allocation6 + $0x1c8] ss:$20 sps:$4 sm:$0xff]  }
 0x596   :  { %v7369_v15 = vmax.f32 %v14959_v57, 0.0  ;;  %v16741_v57 = vld [vmem:[#allocation6 + $0x88] ss:$20 sps:$4 sm:$0xff]   ;;  %v16743_v60 = vld [vmem:[#allocation6 + $0x1f0] ss:$20 sps:$4 sm:$0xff]  }
 0x597   :  { %v17728_v8 = vpack.c.bf16 %v7368_v61, %v7368_v61  ;;  %v16745_v61 = vld [vmem:[#allocation6 + $0xb0] ss:$20 sps:$4 sm:$0xff]  }
 0x598   :  { %v17726_v3 = vpack.c.bf16 %v7369_v15, %v7369_v15  ;;  %v16746_v63 = vld [vmem:[#allocation6 + $0x330] ss:$20 sps:$4 sm:$0xff]   ;;  %v16747_v15 = vld [vmem:[#allocation6 + $0x218] ss:$20 sps:$4 sm:$0xff]  }
 0x59a   :  { %9314 = vmatprep.mubr.bf16.mxu1 %v17726_v3  ;;  %9478 = vmatprep.mubr.bf16.mxu0 %v17726_v3 }
 0x59b   :  { %9315 = vmatmul.mubr.bf16.vlgmr.msra.gmra.mrb[32].mxu1 %v17728_v8  ;;  %9479 = vmatmul.mubr.bf16.vlgmr.msra.gmra.mrb[28].mxu0 %v17728_v8 }
 0x59c   :  { %9324 = vmatpush1.bf16.msra.mxu1 %v16679_v44  ;;  %9488 = vmatpush1.bf16.msra.mxu0 %v16682_v6  ;;  %v16748_v44 = vld [vmem:[#allocation6 + $0x498] ss:$20 sps:$4 sm:$0xff]  }
 0x59d   :  { %9325 = vmatprep.subr.bf16.mxu1 %v16687_v9  ;;  %9489 = vmatprep.subr.bf16.mxu0 %v16690_v10  ;;  %v16749_v6 = vld [vmem:[#allocation6 + $0xd8] ss:$20 sps:$4 sm:$0xff]   ;;  %v16751_v10 = vld [vmem:[#allocation6 + $0x240] ss:$20 sps:$4 sm:$0xff]  }
 0x59e   :  { %9355 = vmatprep.mubr.bf16.mxu1 %v17290_v42  ;;  %9519 = vmatprep.mubr.bf16.mxu0 %v17290_v42  ;;  %v16750_v9 = vld [vmem:[#allocation6 + $0x358] ss:$20 sps:$4 sm:$0xff]  }
 0x5a0   :  { %9326 = vmatpush1.bf16.msra.mxu1 %v16685_v36  ;;  %9490 = vmatpush1.bf16.msra.mxu0 %v16688_v51  ;;  %v16752_v36 = vld [vmem:[#allocation6 + $0x4c0] ss:$20 sps:$4 sm:$0xff]  }
 0x5a1   :  { %9327 = vmatprep.subr.bf16.mxu1 %v16693_v33  ;;  %9491 = vmatprep.subr.bf16.mxu0 %v16696_v24  ;;  %v16753_v51 = vld [vmem:[#allocation6 + $0x100] ss:$20 sps:$4 sm:$0xff]   ;;  %v16755_v24 = vld [vmem:[#allocation6 + $0x268] ss:$20 sps:$4 sm:$0xff]  }
 0x5a2   :  { %v16754_v33 = vld [vmem:[#allocation6 + $0x380] ss:$20 sps:$4 sm:$0xff]  }
 0x5a4   :  { %9328 = vmatpush1.bf16.msra.mxu1 %v16691_v11  ;;  %9492 = vmatpush1.bf16.msra.mxu0 %v16694_v12  ;;  %v16756_v11 = vld [vmem:[#allocation6 + $0x4e8] ss:$20 sps:$4 sm:$0xff]  }
 0x5a5   :  { %9329 = vmatprep.subr.bf16.mxu1 %v16699_v34  ;;  %9493 = vmatprep.subr.bf16.mxu0 %v16702_v5  ;;  %v16757_v12 = vld [vmem:[#allocation6 + $0x128] ss:$20 sps:$4 sm:$0xff]   ;;  %v16759_v5 = vld [vmem:[#allocation6 + $0x650] ss:$20 sps:$4 sm:$0xff]  }
 0x5a6   :  { %v16758_v34 = vld [vmem:[#allocation6 + $0x3a8] ss:$20 sps:$4 sm:$0xff]  }
 0x5a8   :  { %9330 = vmatpush1.bf16.msra.mxu1 %v16697_v14  ;;  %9494 = vmatpush1.bf16.msra.mxu0 %v16700_v16  ;;  %v16760_v14 = vld [vmem:[#allocation6 + $0x510] ss:$20 sps:$4 sm:$0xff]  }
 0x5a9   :  { %9331 = vmatprep.subr.bf16.mxu1 %v16705_v18  ;;  %9495 = vmatprep.subr.bf16.mxu0 %v16708_v59  ;;  %v16761_v16 = vld [vmem:[#allocation6 + $0x790] ss:$20 sps:$4 sm:$0xff]   ;;  %v16762_v18 = vld [vmem:[#allocation6 + $0x678] ss:$20 sps:$4 sm:$0xff]  }
 0x5aa   :  { %v16763_v59 = vld [vmem:[#allocation6 + $0x538] ss:$20 sps:$4 sm:$0xff]  }
 0x5ac   :  { %9332 = vmatpush1.bf16.msra.mxu1 %v16703_v52  ;;  %9496 = vmatpush1.bf16.msra.mxu0 %v16706_v19  ;;  %v16764_v52 = vld [vmem:[#allocation6 + $0x7b8] ss:$20 sps:$4 sm:$0xff]   ;;  %v16765_v19 = vld [vmem:[#allocation6 + $0x6a0] ss:$20 sps:$4 sm:$0xff]  }
 0x5ad   :  { %9333 = vmatprep.subr.bf16.mxu1 %v16711_v20  ;;  %9497 = vmatprep.subr.bf16.mxu0 %v16714_v0  ;;  %v16766_v20 = vld [vmem:[#allocation6 + $0x560] ss:$20 sps:$4 sm:$0xff]   ;;  %v16768_v0 = vld [vmem:[#allocation6 + $0x6c8] ss:$20 sps:$4 sm:$0xff]  }
 0x5b0   :  { %9334 = vmatpush1.bf16.msra.mxu1 %v16709_v21  ;;  %9498 = vmatpush1.bf16.msra.mxu0 %v16712_v23  ;;  %v16771_v21 = vld [vmem:[#allocation6 + $0x6f0] ss:$20 sps:$4 sm:$0xff]  }
 0x5b1   :  { %9335 = vmatprep.subr.bf16.mxu1 %v16717_v48  ;;  %9499 = vmatprep.subr.bf16.mxu0 %v16720_v28  ;;  %v16772_v23 = vld [vmem:[#allocation6 + $0x5b0] ss:$20 sps:$4 sm:$0xff]   ;;  %v16774_v28 = vld [vmem:[#allocation6 + $0x718] ss:$20 sps:$4 sm:$0xff]  }
 0x5b2   :  { %v16773_v48 = vld [vmem:[#allocation6 + $0x830] ss:$20 sps:$4 sm:$0xff]  }
 0x5b4   :  { %9336 = vmatpush1.bf16.msra.mxu1 %v16715_v30  ;;  %9500 = vmatpush1.bf16.msra.mxu0 %v16718_v13  ;;  %v16775_v30 = vld [vmem:[#allocation6 + $0x5d8] ss:$20 sps:$4 sm:$0xff]  }
 0x5b5   :  { %9337 = vmatprep.subr.bf16.mxu1 %v16723_v31  ;;  %9501 = vmatprep.subr.bf16.mxu0 %v16726_v41  ;;  %v16776_v13 = vld [vmem:[#allocation6 + $0x858] ss:$20 sps:$4 sm:$0xff]   ;;  %v16777_v31 = vld [vmem:[#allocation6 + $0x740] ss:$20 sps:$4 sm:$0xff]  }
 0x5b6   :  { %v16778_v41 = vld [vmem:[#allocation6 + $0x600] ss:$20 sps:$4 sm:$0xff]  }
 0x5b8   :  { %9338 = vmatpush1.bf16.msra.mxu1 %v16721_v2  ;;  %9502 = vmatpush1.bf16.msra.mxu0 %v16724_v25  ;;  %v16779_v2 = vld [vmem:[#allocation6 + $0x880] ss:$20 sps:$4 sm:$0xff]   ;;  %v16780_v25 = vld [vmem:[#allocation6 + $0x768] ss:$20 sps:$4 sm:$0xff]  }
 0x5b9   :  { %14030 = vmatprep.subr.bf16.mxu1 %v16727_v32  ;;  %14052 = vmatprep.subr.bf16.mxu0 %v16728_v22  ;;  %v16782_v32 = vld [vmem:[#allocation6 + $0x8a8] ss:$20 sps:$4 sm:$0xff]   ;;  %v16785_v22 = vld [vmem:[#allocation7 + $0x4] ss:$12 sps:$4 sm:$0xff]  }
 0x5bb   :  { %9356 = vmatmul.mubr.bf16.vlgmr.msra.gmra.mrb[32].mxu1 %v17737_v40  ;;  %9520 = vmatmul.mubr.bf16.vlgmr.msra.gmra.mrb[28].mxu0 %v17737_v40 }
 0x5bc   :  { %14031 = vmatpush3.bf16.msra.mxu1 %v16729_v39  ;;  %9560 = vmatprep.mubr.bf16.mxu1 %v17690_v1  ;;  %v16742_v1 = vld [vmem:[#allocation6 + $0x308] ss:$20 sps:$4 sm:$0xff]  }
 0x5bd   :  { %14053 = vmatpush3.bf16.msra.mxu0 %v16730_v38  ;;  %9600 = vmatprep.mubr.bf16.mxu0 %v17695_v7  ;;  %v16744_v7 = vld [vmem:[#allocation6 + $0x470] ss:$20 sps:$4 sm:$0xff]   ;;  %v16810_v39 = vld [vmem:[#allocation7 + $0xc8] ss:$12 sps:$4 sm:$0xff]   ;;  %v16783_v38 = vld [vmem:[#allocation7] ss:$12 sps:$4 sm:$0xff]  }
 0x5be   :  { %14032 = vmatprep.subr.bf16.mxu1 %v16731_v27  ;;  %14054 = vmatprep.subr.bf16.mxu0 %v16732_v46  ;;  %v16788_v27 = vld [vmem:[#allocation7 + $0x1c] ss:$12 sps:$4 sm:$0xff]  }
 0x5bf   :  { %v16811_v46 = vld [vmem:[#allocation7 + $0x8] ss:$12 sps:$4 sm:$0xff]  }
 0x5c0   :  { %14033 = vmatpush3.bf16.msra.mxu1 %v16733_v62  ;;  %v16815_v62 = vld [vmem:[#allocation7 + $0xe0] ss:$12 sps:$4 sm:$0xff]  }
 0x5c1   :  { %14055 = vmatpush3.bf16.msra.mxu0 %v16734_v47  ;;  %14034 = vmatprep.subr.bf16.mxu1 %v16735_v37  ;;  %v16786_v47 = vld [vmem:[#allocation7 + $0x18] ss:$12 sps:$4 sm:$0xff]   ;;  %v16791_v37 = vld [vmem:[#allocation7 + $0x34] ss:$12 sps:$4 sm:$0xff]  }
 0x5c2   :  { %14056 = vmatprep.subr.bf16.mxu0 %v16736_v53  ;;  %v16816_v53 = vld [vmem:[#allocation7 + $0x20] ss:$12 sps:$4 sm:$0xff]  }
 0x5c4   :  { %14035 = vmatpush3.bf16.msra.mxu1 %v16737_v54  ;;  %v16820_v54 = vld [vmem:[#allocation7 + $0xf8] ss:$12 sps:$4 sm:$0xff]  }
 0x5c5   :  { %14057 = vmatpush3.bf16.msra.mxu0 %v16738_v55  ;;  %14036 = vmatprep.subr.bf16.mxu1 %v16739_v56  ;;  %v16789_v55 = vld [vmem:[#allocation7 + $0x30] ss:$12 sps:$4 sm:$0xff]   ;;  %v16794_v56 = vld [vmem:[#allocation7 + $0x4c] ss:$12 sps:$4 sm:$0xff]  }
 0x5c6   :  { %14058 = vmatprep.subr.bf16.mxu0 %v16740_v58  ;;  %v16821_v58 = vld [vmem:[#allocation7 + $0x38] ss:$12 sps:$4 sm:$0xff]  }
 0x5c8   :  { %14037 = vmatpush3.bf16.msra.mxu1 %v16741_v57  ;;  %v16825_v57 = vld [vmem:[#allocation7 + $0x110] ss:$12 sps:$4 sm:$0xff]  }
 0x5c9   :  { %14059 = vmatpush3.bf16.msra.mxu0 %v16742_v1  ;;  %14038 = vmatprep.subr.bf16.mxu1 %v16743_v60  ;;  %v16826_v1 = vld [vmem:[#allocation7 + $0x50] ss:$12 sps:$4 sm:$0xff]   ;;  %v16830_v60 = vld [vmem:[#allocation7 + $0x128] ss:$12 sps:$4 sm:$0xff]  }
 0x5ca   :  { %14060 = vmatprep.subr.bf16.mxu0 %v16744_v7  ;;  %v16795_v7 = vld [vmem:[#allocation7 + $0x60] ss:$12 sps:$4 sm:$0xff]  }
 0x5cc   :  { %14039 = vmatpush3.bf16.msra.mxu1 %v16745_v61  ;;  %v16800_v61 = vld [vmem:[#allocation7 + $0x7c] ss:$12 sps:$4 sm:$0xff]  }
 0x5cd   :  { %14061 = vmatpush3.bf16.msra.mxu0 %v16746_v63  ;;  %14040 = vmatprep.subr.bf16.mxu1 %v16747_v15  ;;  %v16831_v63 = vld [vmem:[#allocation7 + $0x68] ss:$12 sps:$4 sm:$0xff]   ;;  %v16835_v15 = vld [vmem:[#allocation7 + $0x140] ss:$12 sps:$4 sm:$0xff]  }
 0x5ce   :  { %14062 = vmatprep.subr.bf16.mxu0 %v16748_v44  ;;  %v16798_v44 = vld [vmem:[#allocation7 + $0x78] ss:$12 sps:$4 sm:$0xff]  }
 0x5d0   :  { %14041 = vmatpush3.bf16.msra.mxu1 %v16749_v6  ;;  %v16803_v6 = vld [vmem:[#allocation7 + $0x94] ss:$12 sps:$4 sm:$0xff]  }
 0x5d1   :  { %14063 = vmatpush3.bf16.msra.mxu0 %v16750_v9  ;;  %14042 = vmatprep.subr.bf16.mxu1 %v16751_v10  ;;  %v16836_v9 = vld [vmem:[#allocation7 + $0x80] ss:$12 sps:$4 sm:$0xff]   ;;  %v16840_v10 = vld [vmem:[#allocation7 + $0x158] ss:$12 sps:$4 sm:$0xff]  }
 0x5d2   :  { %14064 = vmatprep.subr.bf16.mxu0 %v16752_v36  ;;  %v16801_v36 = vld [vmem:[#allocation7 + $0x90] ss:$12 sps:$4 sm:$0xff]  }
 0x5d4   :  { %14043 = vmatpush3.bf16.msra.mxu1 %v16753_v51  ;;  %v16806_v51 = vld [vmem:[#allocation7 + $0xac] ss:$12 sps:$4 sm:$0xff]  }
 0x5d5   :  { %14065 = vmatpush3.bf16.msra.mxu0 %v16754_v33  ;;  %14044 = vmatprep.subr.bf16.mxu1 %v16755_v24  ;;  %v16841_v33 = vld [vmem:[#allocation7 + $0x98] ss:$12 sps:$4 sm:$0xff]   ;;  %v16845_v24 = vld [vmem:[#allocation7 + $0x170] ss:$12 sps:$4 sm:$0xff]  }
 0x5d6   :  { %14066 = vmatprep.subr.bf16.mxu0 %v16756_v11  ;;  %v16804_v11 = vld [vmem:[#allocation7 + $0xa8] ss:$12 sps:$4 sm:$0xff]  }
 0x5d8   :  { %14045 = vmatpush3.bf16.msra.mxu1 %v16757_v12  ;;  %v16809_v12 = vld [vmem:[#allocation7 + $0xc4] ss:$12 sps:$4 sm:$0xff]  }
 0x5d9   :  { %14067 = vmatpush3.bf16.msra.mxu0 %v16758_v34  ;;  %14074 = vmatprep.subr.bf16.mxu1 %v16759_v5  ;;  %v16846_v34 = vld [vmem:[#allocation7 + $0xb0] ss:$12 sps:$4 sm:$0xff]   ;;  %v16850_v5 = vld [vmem:[#allocation7 + $0x248] ss:$12 sps:$4 sm:$0xff]  }
 0x5da   :  { %14396 = vmatprep.subr.bf16.mxu0 %v17291_v26 }
 0x5db   :  { %9561 = vmatmul.mubr.bf16.vlgmr.msra.gmra.mrb[36].mxu1 %v17692_v4  ;;  %v16767_v4 = vld [vmem:[#allocation6 + $0x7e0] ss:$20 sps:$4 sm:$0xff]  }
 0x5dc   :  { %9601 = vmatmul.mubr.bf16.vlgmr.msra.gmra.mrb[32].mxu0 %v17712_v17  ;;  %14075 = vmatpush3.bf16.msra.mxu1 %v16760_v14  ;;  %v16769_v17 = vld [vmem:[#allocation6 + $0x588] ss:$20 sps:$4 sm:$0xff]   ;;  %v16807_v14 = vld [vmem:[#allocation7 + $0xc0] ss:$12 sps:$4 sm:$0xff]  }
 0x5dd   :  { %9640 = vmatprep.mubr.bf16.mxu1 %v17726_v3  ;;  %14397 = vmatpush3.bf16.msra.mxu0 %v16761_v16  ;;  %v16770_v3 = vld [vmem:[#allocation6 + $0x808] ss:$20 sps:$4 sm:$0xff]  }
 0x5de   :  { %14076 = vmatprep.subr.bf16.mxu1 %v16762_v18  ;;  %14398 = vmatprep.subr.bf16.mxu0 %v17291_v26  ;;  %v16814_v16 = vld [vmem:[#allocation7 + $0xdc] ss:$12 sps:$4 sm:$0xff]   ;;  %v16812_v18 = vld [vmem:[#allocation7 + $0xd8] ss:$12 sps:$4 sm:$0xff]  }
 0x5df   :  { %14412 = vmatprep.mubr.msk.bf16.mxu0 %vm17292_vm0, %v17291_v26 }
 0x5e0   :  { %14077 = vmatpush3.bf16.msra.mxu1 %v16763_v59  ;;  %v16819_v59 = vld [vmem:[#allocation7 + $0xf4] ss:$12 sps:$4 sm:$0xff]  }
 0x5e1   :  { %14399 = vmatpush3.bf16.msra.mxu0 %v16764_v52  ;;  %14078 = vmatprep.subr.bf16.mxu1 %v16765_v19  ;;  %v16817_v52 = vld [vmem:[#allocation7 + $0xf0] ss:$12 sps:$4 sm:$0xff]   ;;  %v16824_v19 = vld [vmem:[#allocation7 + $0x10c] ss:$12 sps:$4 sm:$0xff]  }
 0x5e2   :  { %14400 = vmatprep.subr.bf16.mxu0 %v17291_v26 }
 0x5e4   :  { %14079 = vmatpush3.bf16.msra.mxu1 %v16766_v20  ;;  %v16822_v20 = vld [vmem:[#allocation7 + $0x108] ss:$12 sps:$4 sm:$0xff]  }
 0x5e5   :  { %14401 = vmatpush3.bf16.msra.mxu0 %v16767_v4  ;;  %14080 = vmatprep.subr.bf16.mxu1 %v16768_v0  ;;  %v16829_v4 = vld [vmem:[#allocation7 + $0x124] ss:$12 sps:$4 sm:$0xff]   ;;  %v16827_v0 = vld [vmem:[#allocation7 + $0x120] ss:$12 sps:$4 sm:$0xff]  }
 0x5e6   :  { %14402 = vmatprep.subr.bf16.mxu0 %v17291_v26 }
 0x5e8   :  { %14081 = vmatpush3.bf16.msra.mxu1 %v16769_v17  ;;  %v16834_v17 = vld [vmem:[#allocation7 + $0x13c] ss:$12 sps:$4 sm:$0xff]  }
 0x5e9   :  { %14403 = vmatpush3.bf16.msra.mxu0 %v16770_v3  ;;  %14082 = vmatprep.subr.bf16.mxu1 %v16771_v21  ;;  %v16832_v3 = vld [vmem:[#allocation7 + $0x138] ss:$12 sps:$4 sm:$0xff]   ;;  %v16839_v21 = vld [vmem:[#allocation7 + $0x154] ss:$12 sps:$4 sm:$0xff]  }
 0x5ea   :  { %14404 = vmatprep.subr.bf16.mxu0 %v17291_v26 }
 0x5ec   :  { %14083 = vmatpush3.bf16.msra.mxu1 %v16772_v23  ;;  %v16837_v23 = vld [vmem:[#allocation7 + $0x150] ss:$12 sps:$4 sm:$0xff]  }
 0x5ed   :  { %14405 = vmatpush3.bf16.msra.mxu0 %v16773_v48  ;;  %14084 = vmatprep.subr.bf16.mxu1 %v16774_v28  ;;  %v16844_v48 = vld [vmem:[#allocation7 + $0x16c] ss:$12 sps:$4 sm:$0xff]   ;;  %v16842_v28 = vld [vmem:[#allocation7 + $0x168] ss:$12 sps:$4 sm:$0xff]  }
 0x5ee   :  { %14406 = vmatprep.subr.bf16.mxu0 %v17291_v26 }
 0x5f0   :  { %14085 = vmatpush3.bf16.msra.mxu1 %v16775_v30  ;;  %v16849_v30 = vld [vmem:[#allocation7 + $0x184] ss:$12 sps:$4 sm:$0xff]  }
 0x5f1   :  { %14407 = vmatpush3.bf16.msra.mxu0 %v16776_v13  ;;  %14086 = vmatprep.subr.bf16.mxu1 %v16777_v31  ;;  %v7715_v13 = vld [vmem:[#allocation12 + $0x2] ss:$8 sm:$0xf] }
 0x5f2   :  { %14408 = vmatprep.subr.bf16.mxu0 %v17291_v26  ;;  %v7716_v31 = vld [vmem:[#allocation12 + $0x2] ss:$8 sm:$0x10] }
 0x5f4   :  { %14087 = vmatpush3.bf16.msra.mxu1 %v16778_v41  ;;  %v17758_v41 = vor.u32 %v7716_v31, %v7715_v13 }
 0x5f5   :  { %14409 = vmatpush3.bf16.msra.mxu0 %v16779_v2  ;;  %14088 = vmatprep.subr.bf16.mxu1 %v16780_v25 }
 0x5f6   :  { %14410 = vmatprep.subr.bf16.mxu0 %v17291_v26  ;;  %v7722_v2 = vrot.slane %v17758_v41, %v17577_v43  ;;  %v7726_v25 = vrot.slane %v17758_v41, %v17582_v45 }
 0x5f8   :  { %14089 = vmatpush3.bf16.msra.mxu1 %v16781_v35  ;;  %v7734_v35 = vrot.slane %v17758_v41, %v17585_v49  ;;  %v16854_v49 = vld [vmem:[#allocation7 + $0x19c] ss:$12 sps:$4 sm:$0xff]  }
 0x5f9   :  { %14411 = vmatpush3.bf16.msra.mxu0 %v16782_v32  ;;  %10516 = vmatprep.subr.bf16.mxu1 %v16785_v22 }
 0x5fa   :  { %14105 = vmatprep.subr.bf16.mxu0 %v16810_v39 }
 0x5fb   :  { %9641 = vmatmul.mubr.bf16.vlgmr.msra.gmra.mrb[40].mxu1 %v17728_v8  ;;  %v16792_v8 = vld [vmem:[#allocation7 + $0x48] ss:$12 sps:$4 sm:$0xff]  }
 0x5fc   :  { %14413 = vmatmul.mubr.bf16.vlgmr.msra.gmra.mrb[36].mxu0 %v17737_v40  ;;  %10517 = vmatpush1.bf16.msra.mxu1 %v16783_v38  ;;  %v16797_v40 = vld [vmem:[#allocation7 + $0x64] ss:$12 sps:$4 sm:$0xff]  }
 0x5fd   :  { %10518 = vmatprep.subr.bf16.mxu1 %v16788_v27  ;;  %14106 = vmatpush3.bf16.msra.mxu0 %v16811_v46 }
 0x5fe   :  { %14107 = vmatprep.subr.bf16.mxu0 %v16815_v62 }
 0x600   :  { %10519 = vmatpush1.bf16.msra.mxu1 %v16786_v47 }
 0x601   :  { %10520 = vmatprep.subr.bf16.mxu1 %v16791_v37  ;;  %14108 = vmatpush3.bf16.msra.mxu0 %v16816_v53 }
 0x602   :  { %14109 = vmatprep.subr.bf16.mxu0 %v16820_v54 }
 0x604   :  { %10521 = vmatpush1.bf16.msra.mxu1 %v16789_v55 }
 0x605   :  { %10522 = vmatprep.subr.bf16.mxu1 %v16794_v56  ;;  %14110 = vmatpush3.bf16.msra.mxu0 %v16821_v58 }
 0x606   :  { %14111 = vmatprep.subr.bf16.mxu0 %v16825_v57 }
 0x608   :  { %10523 = vmatpush1.bf16.msra.mxu1 %v16792_v8  ;;  %v16847_v8 = vld [vmem:[#allocation7 + $0x180] ss:$12 sps:$4 sm:$0xff]  }
 0x609   :  { %10524 = vmatprep.subr.bf16.mxu1 %v16797_v40  ;;  %14112 = vmatpush3.bf16.msra.mxu0 %v16826_v1  ;;  %v16851_v40 = vld [vmem:[#allocation7 + $0x188] ss:$12 sps:$4 sm:$0xff]  }
 0x60a   :  { %14113 = vmatprep.subr.bf16.mxu0 %v16830_v60  ;;  %v16855_v60 = vld [vmem:[#allocation7 + $0x260] ss:$12 sps:$4 sm:$0xff]  }
 0x60c   :  { %10525 = vmatpush1.bf16.msra.mxu1 %v16795_v7 }
 0x60d   :  { %10526 = vmatprep.subr.bf16.mxu1 %v16800_v61  ;;  %14114 = vmatpush3.bf16.msra.mxu0 %v16831_v63  ;;  %v16852_v61 = vld [vmem:[#allocation7 + $0x198] ss:$12 sps:$4 sm:$0xff]   ;;  %v16856_v63 = vld [vmem:[#allocation7 + $0x1a0] ss:$12 sps:$4 sm:$0xff]  }
 0x60e   :  { %14115 = vmatprep.subr.bf16.mxu0 %v16835_v15  ;;  %v16859_v15 = vld [vmem:[#allocation7 + $0x1b4] ss:$12 sps:$4 sm:$0xff]  }
 0x610   :  { %10527 = vmatpush1.bf16.msra.mxu1 %v16798_v44  ;;  %v16860_v44 = vld [vmem:[#allocation7 + $0x278] ss:$12 sps:$4 sm:$0xff]  }
 0x611   :  { %10528 = vmatprep.subr.bf16.mxu1 %v16803_v6  ;;  %14116 = vmatpush3.bf16.msra.mxu0 %v16836_v9  ;;  %v16857_v6 = vld [vmem:[#allocation7 + $0x1b0] ss:$12 sps:$4 sm:$0xff]   ;;  %v16861_v9 = vld [vmem:[#allocation7 + $0x1b8] ss:$12 sps:$4 sm:$0xff]  }
 0x612   :  { %14117 = vmatprep.subr.bf16.mxu0 %v16840_v10  ;;  %v16864_v10 = vld [vmem:[#allocation7 + $0x1cc] ss:$12 sps:$4 sm:$0xff]  }
 0x614   :  { %10529 = vmatpush1.bf16.msra.mxu1 %v16801_v36  ;;  %v16865_v36 = vld [vmem:[#allocation7 + $0x290] ss:$12 sps:$4 sm:$0xff]  }
 0x615   :  { %10530 = vmatprep.subr.bf16.mxu1 %v16806_v51  ;;  %14118 = vmatpush3.bf16.msra.mxu0 %v16841_v33  ;;  %v16862_v51 = vld [vmem:[#allocation7 + $0x1c8] ss:$12 sps:$4 sm:$0xff]   ;;  %v16866_v33 = vld [vmem:[#allocation7 + $0x1d0] ss:$12 sps:$4 sm:$0xff]  }
 0x616   :  { %14119 = vmatprep.subr.bf16.mxu0 %v16845_v24  ;;  %v16869_v24 = vld [vmem:[#allocation7 + $0x1e4] ss:$12 sps:$4 sm:$0xff]  }
 0x618   :  { %10531 = vmatpush1.bf16.msra.mxu1 %v16804_v11  ;;  %v16870_v11 = vld [vmem:[#allocation7 + $0x2a8] ss:$12 sps:$4 sm:$0xff]  }
 0x619   :  { %10532 = vmatprep.subr.bf16.mxu1 %v16809_v12  ;;  %14120 = vmatpush3.bf16.msra.mxu0 %v16846_v34  ;;  %v16867_v12 = vld [vmem:[#allocation7 + $0x1e0] ss:$12 sps:$4 sm:$0xff]   ;;  %v16871_v34 = vld [vmem:[#allocation7 + $0x1e8] ss:$12 sps:$4 sm:$0xff]  }
 0x61a   :  { %14127 = vmatprep.subr.bf16.mxu0 %v16850_v5  ;;  %v16874_v5 = vld [vmem:[#allocation7 + $0x1fc] ss:$12 sps:$4 sm:$0xff]  }
 0x61c   :  { %10533 = vmatpush1.bf16.msra.mxu1 %v16807_v14  ;;  %v16875_v14 = vld [vmem:[#allocation7 + $0x2c0] ss:$12 sps:$4 sm:$0xff]  }
 0x61d   :  { %10534 = vmatprep.subr.bf16.mxu1 %v16814_v16  ;;  %v16872_v16 = vld [vmem:[#allocation7 + $0x1f8] ss:$12 sps:$4 sm:$0xff]  }
 0x620   :  { %10535 = vmatpush1.bf16.msra.mxu1 %v16812_v18  ;;  %v16876_v18 = vld [vmem:[#allocation7 + $0x200] ss:$12 sps:$4 sm:$0xff]  }
 0x621   :  { %10536 = vmatprep.subr.bf16.mxu1 %v16819_v59  ;;  %v7730_v59 = vrot.slane %v17758_v41, %v17608_v29 }
 0x624   :  { %10537 = vmatpush1.bf16.msra.mxu1 %v16817_v52  ;;  %v16879_v52 = vld [vmem:[#allocation7 + $0x214] ss:$12 sps:$4 sm:$0xff]  }
 0x625   :  { %10538 = vmatprep.subr.bf16.mxu1 %v16824_v19  ;;  %v16880_v19 = vld [vmem:[#allocation7 + $0x2d8] ss:$12 sps:$4 sm:$0xff]  }
 0x628   :  { %10539 = vmatpush1.bf16.msra.mxu1 %v16822_v20  ;;  %v16877_v20 = vld [vmem:[#allocation7 + $0x210] ss:$12 sps:$4 sm:$0xff]  }
 0x629   :  { %10540 = vmatprep.subr.bf16.mxu1 %v16829_v4  ;;  %v16881_v4 = vld [vmem:[#allocation7 + $0x218] ss:$12 sps:$4 sm:$0xff]  }
 0x62c   :  { %10541 = vmatpush1.bf16.msra.mxu1 %v16827_v0 }
 0x62d   :  { %10542 = vmatprep.subr.bf16.mxu1 %v16834_v17  ;;  %v16884_v17 = vld [vmem:[#allocation7 + $0x22c] ss:$12 sps:$4 sm:$0xff]  }
 0x630   :  { %10543 = vmatpush1.bf16.msra.mxu1 %v16832_v3  ;;  %v16885_v3 = vld [vmem:[#allocation7 + $0x2f0] ss:$12 sps:$4 sm:$0xff]  }
 0x631   :  { %10544 = vmatprep.subr.bf16.mxu1 %v16839_v21 }
 0x634   :  { %10545 = vmatpush1.bf16.msra.mxu1 %v16837_v23  ;;  %v7738_v23 = vrot.slane %v17758_v41, %v17633_v50  ;;  %v16887_v50 = vld [vmem:[#allocation7 + $0x240] ss:$12 sps:$4 sm:$0xff]   ;;  %v16893_v41 = vld [vmem:[#allocation7 + $0x308] ss:$12 sps:$4 sm:$0xff]  }
 0x635   :  { %10546 = vmatprep.subr.bf16.mxu1 %v16844_v48 }
 0x638   :  { %10547 = vmatpush1.bf16.msra.mxu1 %v16842_v28 }
 0x639   :  { %10557 = vmatprep.subr.bf16.mxu1 %v16849_v30 }
 0x68e   :  { %v9357_v32 = vpop.f32.mrb[32].mxu1  ;;  %v17766_v22 = vpop.f32.mrb[28].mxu0 }
 0x68f   :  { %v14960_v39 = vadd.f32 %v9357_v32, %v7722_v2  ;;  %v9359_v38 = vpop.f32.mrb[33].mxu1  ;;  %v9523_v27 = vpop.f32.mrb[29].mxu0  ;;  %v14962_v0 = vadd.f32 %v17766_v22, %v7730_v59  ;;  %v16882_v2 = vld [vmem:[#allocation7 + $0x228] ss:$12 sps:$4 sm:$0xff]  }
 0x690   :  { %v14961_v46 = vadd.f32 %v9359_v38, %v7726_v25  ;;  %v14963_v62 = vadd.f32 %v9523_v27, %v7734_v35  ;;  %v9361_v47 = vpop.f32.mrb[34].mxu1  ;;  %v9525_v37 = vpop.f32.mrb[30].mxu0  ;;  %v16886_v25 = vld [vmem:[#allocation7 + $0x230] ss:$12 sps:$4 sm:$0xff]  }
 0x691   :  { %v9688_v53 = vmax.f32 %v14960_v39, 0.0  ;;  %v9362_v54 = vpop.f32.mrb[35].mxu1  ;;  %v9526_v55 = vpop.f32.mrb[31].mxu0  ;;  %v9690_v35 = vmax.f32 %v14962_v0, 0.0  ;;  %v16889_v38 = vld [vmem:[#allocation7 + $0x244] ss:$12 sps:$4 sm:$0xff]  }
 0x692   :  { %v9689_v56 = vmax.f32 %v14961_v46, 0.0  ;;  %v9691_v58 = vmax.f32 %v14963_v62, 0.0  ;;  %v16892_v37 = vld [vmem:[#allocation7 + $0x25c] ss:$12 sps:$4 sm:$0xff]   ;;  %v16897_v54 = vld [vmem:[#allocation7 + $0x320] ss:$12 sps:$4 sm:$0xff]  }
 0x693   :  { %v9693_v1 = vpack.c.bf16 %v9688_v53, %v9688_v53  ;;  %v17775_v47 = vpack.c.bf16 %v9690_v35, %v9690_v35  ;;  %v16890_v53 = vld [vmem:[#allocation7 + $0x258] ss:$12 sps:$4 sm:$0xff]   ;;  %v16896_v55 = vld [vmem:[#allocation7 + $0x274] ss:$12 sps:$4 sm:$0xff]  }
 0x694   :  { %v9694_v57 = vpack.c.bf16 %v9689_v56, %v9689_v56  ;;  %v9696_v7 = vpack.c.bf16 %v9691_v58, %v9691_v58  ;;  %v16894_v56 = vld [vmem:[#allocation7 + $0x270] ss:$12 sps:$4 sm:$0xff]   ;;  %v16901_v58 = vld [vmem:[#allocation7 + $0x338] ss:$12 sps:$4 sm:$0xff]  }
 0x695   :  { %v16942_v35 = vld [vmem:[#allocation7 + $0x3ac] ss:$12 sps:$4 sm:$0xff]  }
 0x696   :  { %10548 = vmatprep.mubr.bf16.mxu1 %v9694_v57  ;;  %10671 = vmatprep.mubr.bf16.mxu0 %v9694_v57  ;;  %v16900_v57 = vld [vmem:[#allocation7 + $0x28c] ss:$12 sps:$4 sm:$0xff]  }
 0x697   :  { %10549 = vmatmul.mubr.bf16.vlgmr.msra.gmra.mrb[44].mxu1 %v9693_v1  ;;  %10672 = vmatmul.mubr.bf16.vlgmr.msra.gmra.mrb[40].mxu0 %v9693_v1  ;;  %v16904_v1 = vld [vmem:[#allocation7 + $0x2a4] ss:$12 sps:$4 sm:$0xff]  }
 0x698   :  { %10558 = vmatpush1.bf16.msra.mxu1 %v16847_v8  ;;  %14128 = vmatpush3.bf16.msra.mxu0 %v16851_v40  ;;  %v16898_v8 = vld [vmem:[#allocation7 + $0x288] ss:$12 sps:$4 sm:$0xff]   ;;  %v16905_v40 = vld [vmem:[#allocation7 + $0x350] ss:$12 sps:$4 sm:$0xff]  }
 0x699   :  { %10589 = vmatprep.mubr.bf16.mxu1 %v9696_v7  ;;  %10711 = vmatprep.mubr.bf16.mxu0 %v9696_v7  ;;  %v16908_v7 = vld [vmem:[#allocation7 + $0x2bc] ss:$12 sps:$4 sm:$0xff]  }
 0x69a   :  { %10559 = vmatprep.subr.bf16.mxu1 %v16854_v49  ;;  %14129 = vmatprep.subr.bf16.mxu0 %v16855_v60  ;;  %v16902_v49 = vld [vmem:[#allocation7 + $0x2a0] ss:$12 sps:$4 sm:$0xff]   ;;  %v16909_v60 = vld [vmem:[#allocation7 + $0x368] ss:$12 sps:$4 sm:$0xff]  }
 0x69c   :  { %10560 = vmatpush1.bf16.msra.mxu1 %v16852_v61  ;;  %14130 = vmatpush3.bf16.msra.mxu0 %v16856_v63  ;;  %v16906_v61 = vld [vmem:[#allocation7 + $0x2b8] ss:$12 sps:$4 sm:$0xff]   ;;  %v16913_v63 = vld [vmem:[#allocation7 + $0x380] ss:$12 sps:$4 sm:$0xff]  }
 0x69d   :  { %10561 = vmatprep.subr.bf16.mxu1 %v16859_v15  ;;  %14131 = vmatprep.subr.bf16.mxu0 %v16860_v44  ;;  %v16912_v15 = vld [vmem:[#allocation7 + $0x2d4] ss:$12 sps:$4 sm:$0xff]   ;;  %v16910_v44 = vld [vmem:[#allocation7 + $0x2d0] ss:$12 sps:$4 sm:$0xff]  }
 0x6a0   :  { %10562 = vmatpush1.bf16.msra.mxu1 %v16857_v6  ;;  %14132 = vmatpush3.bf16.msra.mxu0 %v16861_v9  ;;  %v16917_v6 = vld [vmem:[#allocation7 + $0x398] ss:$12 sps:$4 sm:$0xff]  }
 0x6a1   :  { %10563 = vmatprep.subr.bf16.mxu1 %v16864_v10  ;;  %14133 = vmatprep.subr.bf16.mxu0 %v16865_v36  ;;  %v16916_v9 = vld [vmem:[#allocation7 + $0x2ec] ss:$12 sps:$4 sm:$0xff]  }
 0x6a4   :  { %10564 = vmatpush1.bf16.msra.mxu1 %v16862_v51  ;;  %14134 = vmatpush3.bf16.msra.mxu0 %v16866_v33 }
 0x6a5   :  { %10565 = vmatprep.subr.bf16.mxu1 %v16869_v24  ;;  %14135 = vmatprep.subr.bf16.mxu0 %v16870_v11 }
 0x6a8   :  { %10566 = vmatpush1.bf16.msra.mxu1 %v16867_v12  ;;  %14136 = vmatpush3.bf16.msra.mxu0 %v16871_v34  ;;  %v16914_v12 = vld [vmem:[#allocation7 + $0x2e8] ss:$12 sps:$4 sm:$0xff]   ;;  %v16921_v34 = vld [vmem:[#allocation7 + $0x3b0] ss:$12 sps:$4 sm:$0xff]  }
 0x6a9   :  { %10567 = vmatprep.subr.bf16.mxu1 %v16874_v5  ;;  %14137 = vmatprep.subr.bf16.mxu0 %v16875_v14 }
 0x6ac   :  { %10568 = vmatpush1.bf16.msra.mxu1 %v16872_v16  ;;  %14138 = vmatpush3.bf16.msra.mxu0 %v16876_v18  ;;  %v16920_v16 = vld [vmem:[#allocation7 + $0x304] ss:$12 sps:$4 sm:$0xff]  }
 0x6ad   :  { %10569 = vmatprep.subr.bf16.mxu1 %v16879_v52  ;;  %14139 = vmatprep.subr.bf16.mxu0 %v16880_v19  ;;  %v16918_v19 = vld [vmem:[#allocation7 + $0x300] ss:$12 sps:$4 sm:$0xff]  }
 0x6ae   :  { %v14046_v21 = vpop.f32.mrb[36].mxu1 }
 0x6af   :  { %v14068_v48 = vpop.f32.mrb[32].mxu0  ;;  %v14047_v28 = vpop.f32.mrb[37].mxu1 }
 0x6b0   :  { %v14048_v30 = vadd.f32 %v14047_v28, %v14046_v21  ;;  %v14069_v13 = vpop.f32.mrb[33].mxu0  ;;  %10570 = vmatpush1.bf16.msra.mxu1 %v16877_v20  ;;  %14140 = vmatpush3.bf16.msra.mxu0 %v16881_v4  ;;  %v14049_v31 = vpop.f32.mrb[38].mxu1  ;;  %v16924_v20 = vld [vmem:[#allocation7 + $0x31c] ss:$12 sps:$4 sm:$0xff]   ;;  %v16933_v28 = vld [vmem:[#allocation7 + $0x364] ss:$12 sps:$4 sm:$0xff]  }
 0x6b1   :  { %v14070_v32 = vadd.f32 %v14069_v13, %v14068_v48  ;;  %v14071_v22 = vpop.f32.mrb[34].mxu0  ;;  %v14050_v39 = vpop.f32.mrb[39].mxu1  ;;  %10571 = vmatprep.subr.bf16.mxu1 %v16884_v17  ;;  %14141 = vmatprep.subr.bf16.mxu0 %v16885_v3  ;;  %v16922_v17 = vld [vmem:[#allocation7 + $0x318] ss:$12 sps:$4 sm:$0xff]   ;;  %v16927_v3 = vld [vmem:[#allocation7 + $0x334] ss:$12 sps:$4 sm:$0xff]  }
 0x6b2   :  { %v9563_v27 = vadd.f32 %v14048_v30, %v7738_v23  ;;  %v14072_v46 = vpop.f32.mrb[35].mxu0  ;;  %v16925_v21 = vld [vmem:[#allocation7 + $0x330] ss:$12 sps:$4 sm:$0xff]   ;;  %v16930_v23 = vld [vmem:[#allocation7 + $0x34c] ss:$12 sps:$4 sm:$0xff]  }
 0x6b3   :  { %v16928_v48 = vld [vmem:[#allocation7 + $0x348] ss:$12 sps:$4 sm:$0xff]   ;;  %v16931_v30 = vld [vmem:[#allocation7 + $0x360] ss:$12 sps:$4 sm:$0xff]   ;;  %v16934_v31 = vld [vmem:[#allocation7 + $0x378] ss:$12 sps:$4 sm:$0xff]  }
 0x6b4   :  { %v17773_v62 = vadd.f32 %v14070_v32, %v9563_v27  ;;  %10572 = vmatpush1.bf16.msra.mxu1 %v16882_v2  ;;  %14142 = vmatpush3.bf16.msra.mxu0 %v16886_v25  ;;  %v16936_v13 = vld [vmem:[#allocation7 + $0x37c] ss:$12 sps:$4 sm:$0xff]   ;;  %v16939_v2 = vld [vmem:[#allocation7 + $0x394] ss:$12 sps:$4 sm:$0xff]   ;;  %v16945_v39 = vld [vmem:[#allocation9 + $0x4] ss:$12 sps:$4 sm:$0xff]  }
 0x6b5   :  { %10573 = vmatprep.subr.bf16.mxu1 %v16889_v38  ;;  %14416 = vmatprep.subr.bf16.mxu0 %v17291_v26  ;;  %v16937_v25 = vld [vmem:[#allocation7 + $0x390] ss:$12 sps:$4 sm:$0xff]   ;;  %v16940_v32 = vld [vmem:[#allocation7 + $0x3a8] ss:$12 sps:$4 sm:$0xff]   ;;  %v16943_v22 = vld [vmem:[#allocation9] ss:$12 sps:$4 sm:$0xff]  }
 0x6b6   :  { %v16948_v38 = vld [vmem:[#allocation9 + $0x1c] ss:$12 sps:$4 sm:$0xff]   ;;  %v16946_v27 = vld [vmem:[#allocation9 + $0x18] ss:$12 sps:$4 sm:$0xff]   ;;  %v16951_v46 = vld [vmem:[#allocation9 + $0x34] ss:$12 sps:$4 sm:$0xff]  }
 0x6b7   :  { %10712 = vmatmul.mubr.bf16.vlgmr.msra.gmra.mrb[44].mxu0 %v17775_v47 }
 0x6b8   :  { %10574 = vmatpush1.bf16.msra.mxu1 %v16887_v50  ;;  %14417 = vmatpush3.bf16.msra.mxu0 %v16893_v41  ;;  %v16954_v50 = vld [vmem:[#allocation9 + $0x4c] ss:$12 sps:$4 sm:$0xff]   ;;  %v16952_v41 = vld [vmem:[#allocation9 + $0x48] ss:$12 sps:$4 sm:$0xff]  }
 0x6b9   :  { %10575 = vmatprep.subr.bf16.mxu1 %v16892_v37  ;;  %14418 = vmatprep.subr.bf16.mxu0 %v17291_v26  ;;  %v16955_v37 = vld [vmem:[#allocation9 + $0x60] ss:$12 sps:$4 sm:$0xff]  }
 0x6ba   :  { %14432 = vmatprep.mubr.msk.bf16.mxu0 %vm17292_vm0, %v17291_v26 }
 0x6bc   :  { %10576 = vmatpush1.bf16.msra.mxu1 %v16890_v53  ;;  %14419 = vmatpush3.bf16.msra.mxu0 %v16897_v54  ;;  %v16960_v53 = vld [vmem:[#allocation9 + $0x7c] ss:$12 sps:$4 sm:$0xff]   ;;  %v16958_v54 = vld [vmem:[#allocation9 + $0x78] ss:$12 sps:$4 sm:$0xff]  }
 0x6bd   :  { %10577 = vmatprep.subr.bf16.mxu1 %v16896_v55  ;;  %14420 = vmatprep.subr.bf16.mxu0 %v17291_v26  ;;  %v16963_v55 = vld [vmem:[#allocation9 + $0x94] ss:$12 sps:$4 sm:$0xff]  }
 0x6c0   :  { %10578 = vmatpush1.bf16.msra.mxu1 %v16894_v56  ;;  %14421 = vmatpush3.bf16.msra.mxu0 %v16901_v58  ;;  %v16961_v56 = vld [vmem:[#allocation9 + $0x90] ss:$12 sps:$4 sm:$0xff]   ;;  %v16966_v58 = vld [vmem:[#allocation9 + $0xac] ss:$12 sps:$4 sm:$0xff]  }
 0x6c1   :  { %10579 = vmatprep.subr.bf16.mxu1 %v16900_v57  ;;  %14422 = vmatprep.subr.bf16.mxu0 %v17291_v26  ;;  %v16964_v57 = vld [vmem:[#allocation9 + $0xa8] ss:$12 sps:$4 sm:$0xff]  }
 0x6c4   :  { %10580 = vmatpush1.bf16.msra.mxu1 %v16898_v8  ;;  %14423 = vmatpush3.bf16.msra.mxu0 %v16905_v40  ;;  %v16969_v8 = vld [vmem:[#allocation9 + $0xc4] ss:$12 sps:$4 sm:$0xff]   ;;  %v16970_v40 = vld [vmem:[#allocation9 + $0xc8] ss:$12 sps:$4 sm:$0xff]  }
 0x6c5   :  { %10581 = vmatprep.subr.bf16.mxu1 %v16904_v1  ;;  %14424 = vmatprep.subr.bf16.mxu0 %v17291_v26  ;;  %v16967_v1 = vld [vmem:[#allocation9 + $0xc0] ss:$12 sps:$4 sm:$0xff]  }
 0x6c8   :  { %10582 = vmatpush1.bf16.msra.mxu1 %v16902_v49  ;;  %14425 = vmatpush3.bf16.msra.mxu0 %v16909_v60  ;;  %v16971_v49 = vld [vmem:[#allocation9 + $0x8] ss:$12 sps:$4 sm:$0xff]  }
 0x6c9   :  { %10583 = vmatprep.subr.bf16.mxu1 %v16908_v7  ;;  %14426 = vmatprep.subr.bf16.mxu0 %v17291_v26  ;;  %v16974_v60 = vld [vmem:[#allocation9 + $0xdc] ss:$12 sps:$4 sm:$0xff]   ;;  %v16975_v7 = vld [vmem:[#allocation9 + $0xe0] ss:$12 sps:$4 sm:$0xff]  }
 0x6cc   :  { %10584 = vmatpush1.bf16.msra.mxu1 %v16906_v61  ;;  %14427 = vmatpush3.bf16.msra.mxu0 %v16913_v63  ;;  %v16972_v61 = vld [vmem:[#allocation9 + $0xd8] ss:$12 sps:$4 sm:$0xff]   ;;  %v16976_v63 = vld [vmem:[#allocation9 + $0x20] ss:$12 sps:$4 sm:$0xff]  }
 0x6cd   :  { %10585 = vmatprep.subr.bf16.mxu1 %v16912_v15  ;;  %14428 = vmatprep.subr.bf16.mxu0 %v17291_v26  ;;  %v16979_v15 = vld [vmem:[#allocation9 + $0xf4] ss:$12 sps:$4 sm:$0xff]  }
 0x6ce   :  { %v14090_v10 = vpop.f32.mrb[40].mxu1 }
 0x6cf   :  { %v9682_v36 = vpop.f32.mrb[36].mxu0  ;;  %v14091_v51 = vpop.f32.mrb[41].mxu1 }
 0x6d0   :  { %v14092_v33 = vadd.f32 %v14091_v51, %v14090_v10  ;;  %v14414_v24 = vpop.f32.mrb[37].mxu0  ;;  %10586 = vmatpush1.bf16.msra.mxu1 %v16910_v44  ;;  %v14093_v11 = vpop.f32.mrb[42].mxu1  ;;  %14429 = vmatpush3.bf16.msra.mxu0 %v16917_v6  ;;  %v16980_v44 = vld [vmem:[#allocation9 + $0xf8] ss:$12 sps:$4 sm:$0xff]   ;;  %v16977_v6 = vld [vmem:[#allocation9 + $0xf0] ss:$12 sps:$4 sm:$0xff]  }
 0x6d1   :  { %v9685_v5 = vpop.f32.mrb[38].mxu0  ;;  %v14094_v14 = vpop.f32.mrb[43].mxu1  ;;  %10587 = vmatprep.subr.bf16.mxu1 %v16916_v9  ;;  %14430 = vmatprep.subr.bf16.mxu0 %v17291_v26  ;;  %v16981_v9 = vld [vmem:[#allocation9 + $0x38] ss:$12 sps:$4 sm:$0xff]   ;;  %v16982_v51 = vld [vmem:[#allocation9 + $0x108] ss:$12 sps:$4 sm:$0xff]  }
 0x6d2   :  { %v9643_v18 = vadd.f32 %v14092_v33, %v17773_v62  ;;  %v14415_v59 = vpop.f32.mrb[39].mxu0  ;;  %v16949_v62 = vld [vmem:[#allocation9 + $0x30] ss:$12 sps:$4 sm:$0xff]   ;;  %v16984_v10 = vld [vmem:[#allocation9 + $0x10c] ss:$12 sps:$4 sm:$0xff]  }
 0x6d3   :  { %v16986_v33 = vld [vmem:[#allocation9 + $0x50] ss:$12 sps:$4 sm:$0xff]   ;;  %v16990_v11 = vld [vmem:[#allocation9 + $0x128] ss:$12 sps:$4 sm:$0xff]   ;;  %v16995_v14 = vld [vmem:[#allocation9 + $0x140] ss:$12 sps:$4 sm:$0xff]  }
 0x6d4   :  { %v9683_v52 = vadd.f32 %v9682_v36, %v9643_v18  ;;  %10588 = vmatpush1.bf16.msra.mxu1 %v16914_v12  ;;  %14431 = vmatpush3.bf16.msra.mxu0 %v16921_v34  ;;  %v16985_v36 = vld [vmem:[#allocation9 + $0x110] ss:$12 sps:$4 sm:$0xff]   ;;  %v16987_v12 = vld [vmem:[#allocation9 + $0x120] ss:$12 sps:$4 sm:$0xff]   ;;  %v16991_v34 = vld [vmem:[#allocation9 + $0x68] ss:$12 sps:$4 sm:$0xff]  }
 0x6d5   :  { %10598 = vmatprep.subr.bf16.mxu1 %v16920_v16  ;;  %11263 = vmatprep.subr.bf16.mxu0 %v16945_v39  ;;  %v16989_v24 = vld [vmem:[#allocation9 + $0x124] ss:$12 sps:$4 sm:$0xff]   ;;  %v16994_v5 = vld [vmem:[#allocation9 + $0x13c] ss:$12 sps:$4 sm:$0xff]   ;;  %v16996_v18 = vld [vmem:[#allocation9 + $0x80] ss:$12 sps:$4 sm:$0xff]  }
 0x6d6   :  { %v9692_v4 = vmax.f32 %v9683_v52, 0.0  ;;  %v16992_v16 = vld [vmem:[#allocation9 + $0x138] ss:$12 sps:$4 sm:$0xff]   ;;  %v16999_v59 = vld [vmem:[#allocation9 + $0x154] ss:$12 sps:$4 sm:$0xff]  }
 0x6d7   :  { %10590 = vmatmul.mubr.bf16.vlgmr.msra.gmra.mrb[44].mxu1 %v17775_v47  ;;  %v16957_v47 = vld [vmem:[#allocation9 + $0x64] ss:$12 sps:$4 sm:$0xff]  }
 0x6d8   :  { %v9697_v0 = vpack.c.bf16 %v9692_v4, %v9692_v4  ;;  %10599 = vmatpush1.bf16.msra.mxu1 %v16918_v19  ;;  %10630 = vmatprep.mubr.bf16.mxu1 %v17290_v42  ;;  %v17000_v52 = vld [vmem:[#allocation9 + $0x158] ss:$12 sps:$4 sm:$0xff]   ;;  %v16997_v19 = vld [vmem:[#allocation9 + $0x150] ss:$12 sps:$4 sm:$0xff]  }
 0x6d9   :  { %10600 = vmatprep.subr.bf16.mxu1 %v16924_v20  ;;  %v17001_v20 = vld [vmem:[#allocation9 + $0x98] ss:$12 sps:$4 sm:$0xff]  }
 0x6da   :  { %14433 = vmatmul.mubr.bf16.vlgmr.msra.gmra.mrb[48].mxu0 %v9697_v0  ;;  %v17004_v4 = vld [vmem:[#allocation9 + $0x16c] ss:$12 sps:$4 sm:$0xff]  }
 0x6db   :  { %11264 = vmatpush1.bf16.msra.mxu0 %v16943_v22 }
 0x6dc   :  { %10601 = vmatpush1.bf16.msra.mxu1 %v16922_v17  ;;  %11265 = vmatprep.subr.bf16.mxu0 %v16948_v38  ;;  %v17002_v17 = vld [vmem:[#allocation9 + $0x168] ss:$12 sps:$4 sm:$0xff]  }
 0x6dd   :  { %10602 = vmatprep.subr.bf16.mxu1 %v16927_v3  ;;  %v17006_v3 = vld [vmem:[#allocation9 + $0xb0] ss:$12 sps:$4 sm:$0xff]  }
 0x6df   :  { %11266 = vmatpush1.bf16.msra.mxu0 %v16946_v27 }
 0x6e0   :  { %10603 = vmatpush1.bf16.msra.mxu1 %v16925_v21  ;;  %11267 = vmatprep.subr.bf16.mxu0 %v16951_v46  ;;  %v17009_v21 = vld [vmem:[#allocation9 + $0x184] ss:$12 sps:$4 sm:$0xff]  }
 0x6e1   :  { %10604 = vmatprep.subr.bf16.mxu1 %v16930_v23 }
 0x6e3   :  { %11268 = vmatpush1.bf16.msra.mxu0 %v16949_v62 }
 0x6e4   :  { %10605 = vmatpush1.bf16.msra.mxu1 %v16928_v48  ;;  %11269 = vmatprep.subr.bf16.mxu0 %v16954_v50 }
 0x6e5   :  { %10606 = vmatprep.subr.bf16.mxu1 %v16933_v28 }
 0x6e7   :  { %11270 = vmatpush1.bf16.msra.mxu0 %v16952_v41 }
 0x6e8   :  { %10607 = vmatpush1.bf16.msra.mxu1 %v16931_v30  ;;  %11271 = vmatprep.subr.bf16.mxu0 %v16957_v47 }
 0x6e9   :  { %10608 = vmatprep.subr.bf16.mxu1 %v16936_v13 }
 0x6eb   :  { %11272 = vmatpush1.bf16.msra.mxu0 %v16955_v37 }
 0x6ec   :  { %10609 = vmatpush1.bf16.msra.mxu1 %v16934_v31  ;;  %11273 = vmatprep.subr.bf16.mxu0 %v16960_v53  ;;  %v9859_v31 = vld [vmem:[#allocation12 + $0x3] ss:$8 sm:$0x7] }
 0x6ed   :  { %10610 = vmatprep.subr.bf16.mxu1 %v16939_v2  ;;  %v9872_v2 = vrot.slane %v9859_v31, %v17608_v29  ;;  %v9864_v37 = vrot.slane %v9859_v31, %v17577_v43  ;;  %v9868_v53 = vrot.slane %v9859_v31, %v17582_v45  ;;  %v17049_v31 = vld [vmem:[#allocation10 + $0x58] sm:$0xff]  }
 0x6ef   :  { %11274 = vmatpush1.bf16.msra.mxu0 %v16958_v54 }
 0x6f0   :  { %10611 = vmatpush1.bf16.msra.mxu1 %v16937_v25  ;;  %11275 = vmatprep.subr.bf16.mxu0 %v16963_v55 }
 0x6f1   :  { %10612 = vmatprep.subr.bf16.mxu1 %v16942_v35 }
 0x6f3   :  { %11276 = vmatpush1.bf16.msra.mxu0 %v16961_v56 }
 0x6f4   :  { %10613 = vmatpush1.bf16.msra.mxu1 %v16940_v32  ;;  %11277 = vmatprep.subr.bf16.mxu0 %v16966_v58 }
 0x6f5   :  { %14158 = vmatprep.subr.bf16.mxu1 %v16970_v40 }
 0x6f7   :  { %10631 = vmatmul.mubr.bf16.vlgmr.msra.gmra.mrb[44].mxu1 %v9697_v0  ;;  %11278 = vmatpush1.bf16.msra.mxu0 %v16964_v57  ;;  %v17005_v0 = vld [vmem:[#allocation9 + $0x170] ss:$12 sps:$4 sm:$0xff]  }
 0x6f8   :  { %11279 = vmatprep.subr.bf16.mxu0 %v16969_v8  ;;  %14159 = vmatpush3.bf16.msra.mxu1 %v16971_v49 }
 0x6f9   :  { %14160 = vmatprep.subr.bf16.mxu1 %v16975_v7  ;;  %v17010_v7 = vld [vmem:[#allocation9 + $0x188] ss:$12 sps:$4 sm:$0xff]  }
 0x6fb   :  { %11280 = vmatpush1.bf16.msra.mxu0 %v16967_v1 }
 0x6fc   :  { %11281 = vmatprep.subr.bf16.mxu0 %v16974_v60  ;;  %14161 = vmatpush3.bf16.msra.mxu1 %v16976_v63  ;;  %v17007_v60 = vld [vmem:[#allocation9 + $0x180] ss:$12 sps:$4 sm:$0xff]   ;;  %v17013_v63 = vld [vmem:[#allocation9 + $0x19c] ss:$12 sps:$4 sm:$0xff]  }
 0x6fd   :  { %14162 = vmatprep.subr.bf16.mxu1 %v16980_v44  ;;  %v17014_v44 = vld [vmem:[#allocation9 + $0x1a0] ss:$12 sps:$4 sm:$0xff]  }
 0x6ff   :  { %11282 = vmatpush1.bf16.msra.mxu0 %v16972_v61 }
 0x700   :  { %11283 = vmatprep.subr.bf16.mxu0 %v16979_v15  ;;  %14163 = vmatpush3.bf16.msra.mxu1 %v16981_v9  ;;  %v17011_v15 = vld [vmem:[#allocation9 + $0x198] ss:$12 sps:$4 sm:$0xff]   ;;  %v17015_v9 = vld [vmem:[#allocation9 + $0x1b0] ss:$12 sps:$4 sm:$0xff]  }
 0x701   :  { %14164 = vmatprep.subr.bf16.mxu1 %v16985_v36  ;;  %v17021_v36 = vld [vmem:[#allocation9 + $0x1cc] ss:$12 sps:$4 sm:$0xff]  }
 0x703   :  { %11284 = vmatpush1.bf16.msra.mxu0 %v16977_v6  ;;  %v17017_v6 = vld [vmem:[#allocation9 + $0x1b4] ss:$12 sps:$4 sm:$0xff]  }
 0x704   :  { %11285 = vmatprep.subr.bf16.mxu0 %v16984_v10  ;;  %14165 = vmatpush3.bf16.msra.mxu1 %v16986_v33  ;;  %v17018_v10 = vld [vmem:[#allocation9 + $0x1b8] ss:$12 sps:$4 sm:$0xff]   ;;  %v17022_v33 = vld [vmem:[#allocation9 + $0x1d0] ss:$12 sps:$4 sm:$0xff]  }
 0x705   :  { %14166 = vmatprep.subr.bf16.mxu1 %v16990_v11  ;;  %v17026_v11 = vld [vmem:[#allocation9 + $0x1e8] ss:$12 sps:$4 sm:$0xff]  }
 0x707   :  { %11286 = vmatpush1.bf16.msra.mxu0 %v16982_v51  ;;  %v17019_v51 = vld [vmem:[#allocation9 + $0x1c8] ss:$12 sps:$4 sm:$0xff]  }
 0x708   :  { %11287 = vmatprep.subr.bf16.mxu0 %v16989_v24  ;;  %14167 = vmatpush3.bf16.msra.mxu1 %v16991_v34  ;;  %v17025_v24 = vld [vmem:[#allocation9 + $0x1e4] ss:$12 sps:$4 sm:$0xff]  }
 0x709   :  { %14168 = vmatprep.subr.bf16.mxu1 %v16995_v14  ;;  %v17027_v34 = vld [vmem:[#allocation9 + $0x1f8] ss:$12 sps:$4 sm:$0xff]   ;;  %v17033_v14 = vld [vmem:[#allocation9 + $0x214] ss:$12 sps:$4 sm:$0xff]  }
 0x70b   :  { %11288 = vmatpush1.bf16.msra.mxu0 %v16987_v12  ;;  %v17029_v12 = vld [vmem:[#allocation9 + $0x1fc] ss:$12 sps:$4 sm:$0xff]  }
 0x70c   :  { %11289 = vmatprep.subr.bf16.mxu0 %v16994_v5  ;;  %14169 = vmatpush3.bf16.msra.mxu1 %v16996_v18  ;;  %v17030_v5 = vld [vmem:[#allocation9 + $0x200] ss:$12 sps:$4 sm:$0xff]   ;;  %v17034_v18 = vld [vmem:[#allocation9 + $0x218] ss:$12 sps:$4 sm:$0xff]  }
 0x70d   :  { %14170 = vmatprep.subr.bf16.mxu1 %v17000_v52  ;;  %v17035_v52 = vld [vmem:[#allocation9 + $0x228] ss:$12 sps:$4 sm:$0xff]  }
 0x70f   :  { %11290 = vmatpush1.bf16.msra.mxu0 %v16992_v16  ;;  %v17031_v16 = vld [vmem:[#allocation9 + $0x210] ss:$12 sps:$4 sm:$0xff]  }
 0x710   :  { %11291 = vmatprep.subr.bf16.mxu0 %v16999_v59  ;;  %14171 = vmatpush3.bf16.msra.mxu1 %v17001_v20  ;;  %v17037_v59 = vld [vmem:[#allocation9 + $0x22c] ss:$12 sps:$4 sm:$0xff]  }
 0x711   :  { %14172 = vmatprep.subr.bf16.mxu1 %v17005_v0  ;;  %v17039_v0 = vld [vmem:[#allocation10 + $0x80] sm:$0xff]  }
 0x713   :  { %11292 = vmatpush1.bf16.msra.mxu0 %v16997_v19  ;;  %v17038_v19 = vld [vmem:[#allocation9 + $0x230] ss:$12 sps:$4 sm:$0xff]  }
 0x714   :  { %11293 = vmatprep.subr.bf16.mxu0 %v17004_v4  ;;  %14173 = vmatpush3.bf16.msra.mxu1 %v17006_v3  ;;  %v17041_v3 = vld [vmem:[#allocation10] sm:$0xff]  }
 0x715   :  { %14436 = vmatprep.subr.bf16.mxu1 %v17291_v26 }
 0x717   :  { %11294 = vmatpush1.bf16.msra.mxu0 %v17002_v17  ;;  %v17040_v17 = vld [vmem:[#allocation10 + $0x40] sm:$0xff]  }
 0x718   :  { %11304 = vmatprep.subr.bf16.mxu0 %v17009_v21  ;;  %v17043_v21 = vld [vmem:[#allocation10 + $0x48] sm:$0xff]  }
 0x76a   :  { %v14121_v23 = vpop.f32.mrb[40].mxu0 }
 0x76b   :  { %v14122_v48 = vpop.f32.mrb[41].mxu0 }
 0x76c   :  { %v14123_v28 = vadd.f32 %v14122_v48, %v14121_v23  ;;  %v14124_v30 = vpop.f32.mrb[42].mxu0  ;;  %v17042_v23 = vld [vmem:[#allocation10 + $0x88] sm:$0xff]  }
 0x76d   :  { %v14125_v13 = vpop.f32.mrb[43].mxu0  ;;  %v17044_v48 = vld [vmem:[#allocation10 + $0x8] sm:$0xff]   ;;  %v17045_v30 = vld [vmem:[#allocation10 + $0x90] sm:$0xff]  }
 0x76e   :  { %v10674_v32 = vadd.f32 %v14123_v28, %v9872_v2  ;;  %v17046_v28 = vld [vmem:[#allocation10 + $0x50] sm:$0xff]   ;;  %v17048_v2 = vld [vmem:[#allocation10 + $0x98] sm:$0xff]  }
 0x76f   :  { %v17047_v13 = vld [vmem:[#allocation10 + $0x10] sm:$0xff]  }
 0x78a   :  { %v14143_v25 = vpop.f32.mrb[44].mxu0 }
 0x78b   :  { %v14144_v35 = vpop.f32.mrb[45].mxu0 }
 0x78c   :  { %v14145_v22 = vadd.f32 %v14144_v35, %v14143_v25  ;;  %v14146_v39 = vpop.f32.mrb[46].mxu0  ;;  %v17050_v25 = vld [vmem:[#allocation10 + $0x18] sm:$0xff]   ;;  %v17052_v35 = vld [vmem:[#allocation10 + $0x60] sm:$0xff]  }
 0x78d   :  { %v14147_v38 = vpop.f32.mrb[47].mxu0  ;;  %v17055_v39 = vld [vmem:[#allocation10 + $0x68] sm:$0xff]  }
 0x78e   :  { %v10714_v27 = vadd.f32 %v14145_v22, %v10674_v32  ;;  %v17051_v32 = vld [vmem:[#allocation10 + $0xa0] sm:$0xff]   ;;  %v17054_v38 = vld [vmem:[#allocation10 + $0xa8] sm:$0xff]  }
 0x78f   :  { %v17053_v22 = vld [vmem:[#allocation10 + $0x20] sm:$0xff]  }
 0x7ad   :  { %v10753_v46 = vpop.f32.mrb[48].mxu0 }
 0x7ae   :  { %v17793_v62 = vadd.f32 %v10753_v46, %v10714_v27  ;;  %v14434_v50 = vpop.f32.mrb[49].mxu0  ;;  %v17056_v27 = vld [vmem:[#allocation10 + $0x28] sm:$0xff]   ;;  %v17057_v46 = vld [vmem:[#allocation10 + $0xb0] sm:$0xff]  }
 0x7af   :  { %v10756_v41 = vpop.f32.mrb[50].mxu0  ;;  %v17059_v50 = vld [vmem:[#allocation10 + $0x30] sm:$0xff]  }
 0x7b0   :  { %v14435_v47 = vpop.f32.mrb[51].mxu0  ;;  %v10761_v20 = vmax.f32 %v17793_v62, 0.0  ;;  %v17058_v62 = vld [vmem:[#allocation10 + $0x70] sm:$0xff]   ;;  %v17060_v41 = vld [vmem:[#allocation10 + $0xb8] sm:$0xff]  }
 0x7b1   :  { %v17061_v47 = vld [vmem:[#allocation10 + $0x78] sm:$0xff]  }
 0x7b2   :  { %v10764_v4 = vpack.c.bf16 %v10761_v20, %v10761_v20  ;;  %v11711_v20 = vld [vmem:[#allocation13 + $0x30] sm:$0xff] }
 0x7ca   :  { %v10632_v54 = vpop.f32.mrb[44].mxu1 }
 0x7cb   :  { %v14964_v55 = vadd.f32 %v10632_v54, %v9864_v37  ;;  %v10634_v56 = vpop.f32.mrb[45].mxu1  ;;  %v17062_v37 = vld [vmem:[#allocation10 + $0x38] sm:$0xff]  }
 0x7cc   :  { %v14965_v58 = vadd.f32 %v10634_v56, %v9868_v53  ;;  %v10636_v57 = vpop.f32.mrb[46].mxu1  ;;  %v17293_v53 = vmov 0.0|0.0  }
 0x7cd   :  { %v10759_v8 = vmax.f32 %v14964_v55, 0.0  ;;  %v10637_v40 = vpop.f32.mrb[47].mxu1 }
 0x7ce   :  { %v10760_v1 = vmax.f32 %v14965_v58, 0.0 }
 0x7cf   :  { %v10762_v61 = vpack.c.bf16 %v10759_v8, %v10759_v8  ;;  %v10862_v8 = vld [vmem:[#allocation12 + $0x4] ss:$8 sm:$0x7] }
 0x7d0   :  { %v10763_v49 = vpack.c.bf16 %v10760_v1, %v10760_v1  ;;  %v10875_v40 = vrot.slane %v10862_v8, %v17608_v29  ;;  %v10867_v1 = vrot.slane %v10862_v8, %v17577_v43  ;;  %v11706_v29 = vld [vmem:[#allocation13 + $0x8] sm:$0xff] }
 0x7d2   :  { %11295 = vmatprep.mubr.bf16.mxu0 %v10763_v49  ;;  %11377 = vmatprep.mubr.bf16.mxu1 %v10763_v49  ;;  %v10871_v49 = vrot.slane %v10862_v8, %v17582_v45  ;;  %v11809_v8 = vld [vmem:[#allocation13 + $0xd8] sm:$0xff] }
 0x7d3   :  { %11296 = vmatmul.mubr.bf16.vlgmr.msra.gmra.mrb[52].mxu0 %v10762_v61  ;;  %11378 = vmatmul.mubr.bf16.vlgmr.msra.gmra.mrb[48].mxu1 %v10762_v61 }
 0x7d4   :  { %11305 = vmatpush1.bf16.msra.mxu0 %v17007_v60  ;;  %14437 = vmatpush3.bf16.msra.mxu1 %v17010_v7 }
 0x7d5   :  { %11306 = vmatprep.subr.bf16.mxu0 %v17013_v63  ;;  %14438 = vmatprep.subr.bf16.mxu1 %v17291_v26 }
 0x7d6   :  { %11336 = vmatprep.mubr.bf16.mxu0 %v17290_v42  ;;  %14452 = vmatprep.mubr.msk.bf16.mxu1 %vm17292_vm0, %v17291_v26  ;;  %v17023_v42 = vld [vmem:[#allocation9 + $0x1e0] ss:$12 sps:$4 sm:$0xff]  }
 0x7d8   :  { %11307 = vmatpush1.bf16.msra.mxu0 %v17011_v15  ;;  %14439 = vmatpush3.bf16.msra.mxu1 %v17014_v44 }
 0x7d9   :  { %11308 = vmatprep.subr.bf16.mxu0 %v17017_v6  ;;  %14440 = vmatprep.subr.bf16.mxu1 %v17291_v26 }
 0x7dc   :  { %11309 = vmatpush1.bf16.msra.mxu0 %v17015_v9  ;;  %14441 = vmatpush3.bf16.msra.mxu1 %v17018_v10 }
 0x7dd   :  { %11310 = vmatprep.subr.bf16.mxu0 %v17021_v36  ;;  %14442 = vmatprep.subr.bf16.mxu1 %v17291_v26 }
 0x7e0   :  { %11311 = vmatpush1.bf16.msra.mxu0 %v17019_v51  ;;  %14443 = vmatpush3.bf16.msra.mxu1 %v17022_v33 }
 0x7e1   :  { %11312 = vmatprep.subr.bf16.mxu0 %v17025_v24  ;;  %14444 = vmatprep.subr.bf16.mxu1 %v17291_v26 }
 0x7e4   :  { %11313 = vmatpush1.bf16.msra.mxu0 %v17023_v42  ;;  %14445 = vmatpush3.bf16.msra.mxu1 %v17026_v11  ;;  %v11705_v11 = vld [vmem:[#allocation13] sm:$0xff] }
 0x7e5   :  { %11314 = vmatprep.subr.bf16.mxu0 %v17029_v12  ;;  %14446 = vmatprep.subr.bf16.mxu1 %v17291_v26  ;;  %v14757_v45 = vpack.c.bf16 %v11706_v29, %v11705_v11  ;;  %v11812_v11 = vld [vmem:[#allocation13 + $0xf0] sm:$0xff]  ;;  %v11813_v29 = vld [vmem:[#allocation13 + $0xf8] sm:$0xff] }
 0x7e8   :  { %11315 = vmatpush1.bf16.msra.mxu0 %v17027_v34  ;;  %14447 = vmatpush3.bf16.msra.mxu1 %v17030_v5 }
 0x7e9   :  { %11316 = vmatprep.subr.bf16.mxu0 %v17033_v14  ;;  %14448 = vmatprep.subr.bf16.mxu1 %v17291_v26  ;;  %v11707_v14 = vld [vmem:[#allocation13 + $0x10] sm:$0xff] }
 0x7ec   :  { %11317 = vmatpush1.bf16.msra.mxu0 %v17031_v16  ;;  %14449 = vmatpush3.bf16.msra.mxu1 %v17034_v18  ;;  %v11708_v16 = vld [vmem:[#allocation13 + $0x18] sm:$0xff] }
 0x7ed   :  { %11318 = vmatprep.subr.bf16.mxu0 %v17037_v59  ;;  %14450 = vmatprep.subr.bf16.mxu1 %v17291_v26  ;;  %v14760_v18 = vpack.c.bf16 %v11708_v16, %v11707_v14  ;;  %v11709_v59 = vld [vmem:[#allocation13 + $0x20] sm:$0xff]  ;;  %v11894_v14 = vld [vmem:[#allocation13 + $0x118] sm:$0xff] }
 0x7f0   :  { %11319 = vmatpush1.bf16.msra.mxu0 %v17035_v52  ;;  %14451 = vmatpush3.bf16.msra.mxu1 %v17038_v19  ;;  %v11710_v52 = vld [vmem:[#allocation13 + $0x28] sm:$0xff] }
 0x7f1   :  { %14456 = vmatprep.subr.bf16.mxu1 %v17291_v26  ;;  %14189 = vmatprep.subr.bf16.mxu0 %v17040_v17  ;;  %v14763_v19 = vpack.c.bf16 %v11710_v52, %v11709_v59  ;;  %v11713_v17 = vld [vmem:[#allocation13 + $0x40] sm:$0xff]  ;;  %v11896_v59 = vld [vmem:[#allocation13 + $0x128] sm:$0xff] }
 0x7f3   :  { %11337 = vmatmul.mubr.bf16.vlgmr.msra.gmra.mrb[52].mxu0 %v10764_v4  ;;  %14453 = vmatmul.mubr.bf16.vlgmr.msra.gmra.mrb[52].mxu1 %v10764_v4  ;;  %v11712_v4 = vld [vmem:[#allocation13 + $0x38] sm:$0xff] }
 0x7f4   :  { %14472 = vmatprep.mubr.msk.bf16.mxu1 %vm17292_vm0, %v17291_v26  ;;  %14457 = vmatpush3.bf16.msra.mxu1 %v17039_v0  ;;  %v14766_v0 = vpack.c.bf16 %v11712_v4, %v11711_v20  ;;  %v11898_v20 = vld [vmem:[#allocation13 + $0x138] sm:$0xff] }
 0x7f5   :  { %14190 = vmatpush3.bf16.msra.mxu0 %v17041_v3  ;;  %14458 = vmatprep.subr.bf16.mxu1 %v17291_v26  ;;  %v11714_v3 = vld [vmem:[#allocation13 + $0x48] sm:$0xff] }
 0x7f6   :  { %14191 = vmatprep.subr.bf16.mxu0 %v17043_v21  ;;  %v14769_v21 = vpack.c.bf16 %v11714_v3, %v11713_v17  ;;  %v11900_v17 = vld [vmem:[#allocation13 + $0x148] sm:$0xff] }
 0x7f8   :  { %14459 = vmatpush3.bf16.msra.mxu1 %v17042_v23  ;;  %v11715_v23 = vld [vmem:[#allocation13 + $0x50] sm:$0xff] }
 0x7f9   :  { %14192 = vmatpush3.bf16.msra.mxu0 %v17044_v48  ;;  %14460 = vmatprep.subr.bf16.mxu1 %v17291_v26  ;;  %v11716_v48 = vld [vmem:[#allocation13 + $0x58] sm:$0xff] }
 0x7fa   :  { %14193 = vmatprep.subr.bf16.mxu0 %v17046_v28  ;;  %v14772_v28 = vpack.c.bf16 %v11716_v48, %v11715_v23  ;;  %v11902_v23 = vld [vmem:[#allocation13 + $0x158] sm:$0xff] }
 0x7fc   :  { %14461 = vmatpush3.bf16.msra.mxu1 %v17045_v30  ;;  %v11717_v30 = vld [vmem:[#allocation13 + $0x60] sm:$0xff] }
 0x7fd   :  { %14194 = vmatpush3.bf16.msra.mxu0 %v17047_v13  ;;  %14462 = vmatprep.subr.bf16.mxu1 %v17291_v26  ;;  %v11718_v13 = vld [vmem:[#allocation13 + $0x68] sm:$0xff] }
 0x7fe   :  { %14195 = vmatprep.subr.bf16.mxu0 %v17049_v31  ;;  %v14775_v31 = vpack.c.bf16 %v11718_v13, %v11717_v30  ;;  %v11904_v30 = vld [vmem:[#allocation13 + $0x168] sm:$0xff] }
 0x800   :  { %14463 = vmatpush3.bf16.msra.mxu1 %v17048_v2  ;;  %v11719_v2 = vld [vmem:[#allocation13 + $0x70] sm:$0xff] }
 0x801   :  { %14196 = vmatpush3.bf16.msra.mxu0 %v17050_v25  ;;  %14464 = vmatprep.subr.bf16.mxu1 %v17291_v26  ;;  %v11720_v25 = vld [vmem:[#allocation13 + $0x78] sm:$0xff] }
 0x802   :  { %14197 = vmatprep.subr.bf16.mxu0 %v17052_v35  ;;  %v14778_v35 = vpack.c.bf16 %v11720_v25, %v11719_v2 }
 0x804   :  { %14465 = vmatpush3.bf16.msra.mxu1 %v17051_v32  ;;  %v11798_v32 = vld [vmem:[#allocation13 + $0x80] sm:$0xff] }
 0x805   :  { %14198 = vmatpush3.bf16.msra.mxu0 %v17053_v22  ;;  %14466 = vmatprep.subr.bf16.mxu1 %v17291_v26  ;;  %v11799_v22 = vld [vmem:[#allocation13 + $0x88] sm:$0xff] }
 0x806   :  { %14199 = vmatprep.subr.bf16.mxu0 %v17055_v39  ;;  %v11800_v39 = vld [vmem:[#allocation13 + $0x90] sm:$0xff] }
 0x808   :  { %14467 = vmatpush3.bf16.msra.mxu1 %v17054_v38  ;;  %v14781_v38 = vpack.c.bf16 %v11799_v22, %v11798_v32  ;;  %v11905_v22 = vld [vmem:[#allocation13 + $0x170] sm:$0xff] }
 0x809   :  { %14200 = vmatpush3.bf16.msra.mxu0 %v17056_v27  ;;  %14468 = vmatprep.subr.bf16.mxu1 %v17291_v26  ;;  %v11801_v27 = vld [vmem:[#allocation13 + $0x98] sm:$0xff] }
 0x80a   :  { %14201 = vmatprep.subr.bf16.mxu0 %v17058_v62  ;;  %v11802_v62 = vld [vmem:[#allocation13 + $0xa0] sm:$0xff] }
 0x80c   :  { %14469 = vmatpush3.bf16.msra.mxu1 %v17057_v46  ;;  %v14784_v46 = vpack.c.bf16 %v11801_v27, %v11800_v39  ;;  %v11906_v39 = vld [vmem:[#allocation13 + $0x178] sm:$0xff]  ;;  %v11984_v27 = vld [vmem:[#allocation13 + $0x180] sm:$0xff] }
 0x80d   :  { %14470 = vmatprep.subr.bf16.mxu1 %v17291_v26  ;;  %14202 = vmatpush3.bf16.msra.mxu0 %v17059_v50  ;;  %v11803_v50 = vld [vmem:[#allocation13 + $0xa8] sm:$0xff] }
 0x80e   :  { %14203 = vmatprep.subr.bf16.mxu0 %v17061_v47  ;;  %v11804_v47 = vld [vmem:[#allocation13 + $0xb0] sm:$0xff] }
 0x810   :  { %14471 = vmatpush3.bf16.msra.mxu1 %v17060_v41  ;;  %v14787_v41 = vpack.c.bf16 %v11803_v50, %v11802_v62  ;;  %v11986_v62 = vld [vmem:[#allocation13 + $0x190] sm:$0xff] }
 0x811   :  { %14204 = vmatpush3.bf16.msra.mxu0 %v17062_v37  ;;  %14780 = vmatprep.subr.bf16.mxu1 %v17293_v53  ;;  %v11805_v37 = vld [vmem:[#allocation13 + $0xb8] sm:$0xff] }
 0x812   :  { %14756 = vmatprep.subr.bf16.mxu0 %v17293_v53 }
 0x8a6   :  { %v14174_v54 = vpop.f32.mrb[48].mxu1 }
 0x8a7   :  { %v14175_v55 = vpop.f32.mrb[49].mxu1 }
 0x8a8   :  { %v14176_v56 = vadd.f32 %v14175_v55, %v14174_v54  ;;  %v14177_v58 = vpop.f32.mrb[50].mxu1  ;;  %v14790_v54 = vpack.c.bf16 %v11805_v37, %v11804_v47  ;;  %v11806_v55 = vld [vmem:[#allocation13 + $0xc0] sm:$0xff] }
 0x8a9   :  { %v14178_v57 = vpop.f32.mrb[51].mxu1  ;;  %v11988_v37 = vld [vmem:[#allocation13 + $0x1a0] sm:$0xff] }
 0x8aa   :  { %v11380_v60 = vadd.f32 %v14176_v56, %v10875_v40  ;;  %v11807_v56 = vld [vmem:[#allocation13 + $0xc8] sm:$0xff]  ;;  %v11808_v57 = vld [vmem:[#allocation13 + $0xd0] sm:$0xff] }
 0x8ab   :  { %v14793_v58 = vpack.c.bf16 %v11807_v56, %v11806_v55  ;;  %v14796_v40 = vpack.c.bf16 %v11809_v8, %v11808_v57  ;;  %v11990_v56 = vld [vmem:[#allocation13 + $0x1b0] sm:$0xff]  ;;  %v11992_v8 = vld [vmem:[#allocation13 + $0x1c0] sm:$0xff] }
 0x8c6   :  { %v11338_v7 = vpop.f32.mrb[52].mxu0  ;;  %v11419_v61 = vpop.f32.mrb[52].mxu1 }
 0x8c7   :  { %v14966_v63 = vadd.f32 %v11338_v7, %v10867_v1  ;;  %v11420_v15 = vadd.f32 %v11419_v61, %v11380_v60  ;;  %v11340_v44 = vpop.f32.mrb[53].mxu0  ;;  %v14454_v6 = vpop.f32.mrb[53].mxu1  ;;  %v11810_v1 = vld [vmem:[#allocation13 + $0xe0] sm:$0xff] }
 0x8c8   :  { %v14967_v9 = vadd.f32 %v11340_v44, %v10871_v49  ;;  %v11342_v10 = vpop.f32.mrb[54].mxu0  ;;  %v11422_v36 = vpop.f32.mrb[54].mxu1  ;;  %v11811_v49 = vld [vmem:[#allocation13 + $0xe8] sm:$0xff] }
 0x8c9   :  { %v11425_v51 = vmax.f32 %v14966_v63, 0.0  ;;  %v11427_v33 = vmax.f32 %v11420_v15, 0.0  ;;  %v11343_v24 = vpop.f32.mrb[55].mxu0  ;;  %v14455_v42 = vpop.f32.mrb[55].mxu1  ;;  %v14799_v60 = vpack.c.bf16 %v11811_v49, %v11810_v1  ;;  %v11479_v44 = vld [vmem:[#allocation12 + $0x5] ss:$0 sm:$0xff] }
 0x8ca   :  { %v11426_v12 = vmax.f32 %v14967_v9, 0.0  ;;  %v11994_v49 = vld [vmem:[#allocation13 + $0x1d0] sm:$0xff] }
 0x8cb   :  { %v11430_v43 = vpack.c.bf16 %v11427_v33, %v11427_v33  ;;  %v11428_v5 = vpack.c.bf16 %v11425_v51, %v11425_v51 }
 0x8cc   :  { %v11429_v34 = vpack.c.bf16 %v11426_v12, %v11426_v12  ;;  %v14802_v12 = vpack.c.bf16 %v11813_v29, %v11812_v11  ;;  %v12078_v11 = vld [vmem:[#allocation13 + $0x208] sm:$0xff]  ;;  %v12079_v29 = vld [vmem:[#allocation13 + $0x210] sm:$0xff] }
 0x8cd   :  { %14473 = vmatmul.mubr.bf16.vlgmr.msra.gmra.mrb[56].mxu1 %v11430_v43  ;;  %v11891_v43 = vld [vmem:[#allocation13 + $0x100] sm:$0xff] }
 0x8ce   :  { %11656 = vmatprep.mubr.bf16.mxu0 %v11429_v34  ;;  %14543 = vmatprep.mubr.msk.f32.mxu1 %vm17292_vm0, %v17291_v26  ;;  %v11892_v34 = vld [vmem:[#allocation13 + $0x108] sm:$0xff] }
 0x8cf   :  { %11657 = vmatmul.mubr.bf16.vlgmr.msra.gmra.mrb[56].mxu0 %v11428_v5  ;;  %14782 = vmatpush3.bf16.msra.mxu1 %v14781_v38  ;;  %v14805_v5 = vpack.c.bf16 %v11892_v34, %v11891_v43  ;;  %v14826_v38 = vpack.c.bf16 %v11906_v39, %v11905_v22  ;;  %v12080_v43 = vld [vmem:[#allocation13 + $0x218] sm:$0xff]  ;;  %v12171_v22 = vld [vmem:[#allocation13 + $0x288] sm:$0xff]  ;;  %v12172_v39 = vld [vmem:[#allocation13 + $0x290] sm:$0xff] }
 0x8d0   :  { %14758 = vmatpush3.bf16.msra.mxu0 %v14757_v45  ;;  %14508 = vmatprep.mubr.msk.f32.mxu0 %vm17292_vm0, %v17291_v26  ;;  %v11893_v45 = vld [vmem:[#allocation13 + $0x110] sm:$0xff]  ;;  %v14856_v34 = vpack.c.bf16 %v12080_v43, %v12079_v29  ;;  %v12267_v29 = vld [vmem:[#allocation13 + $0x320] sm:$0xff] }
 0x8d1   :  { %14759 = vmatprep.subr.bf16.mxu0 %v17293_v53  ;;  %14783 = vmatprep.subr.bf16.mxu1 %v17293_v53  ;;  %v14808_v16 = vpack.c.bf16 %v11894_v14, %v11893_v45  ;;  %v12081_v45 = vld [vmem:[#allocation13 + $0x220] sm:$0xff] }
 0x8d3   :  { %14785 = vmatpush3.bf16.msra.mxu1 %v14784_v46  ;;  %v11985_v46 = vld [vmem:[#allocation13 + $0x188] sm:$0xff] }
 0x8d4   :  { %14761 = vmatpush3.bf16.msra.mxu0 %v14760_v18  ;;  %14786 = vmatprep.subr.bf16.mxu1 %v17293_v53  ;;  %v11895_v18 = vld [vmem:[#allocation13 + $0x120] sm:$0xff]  ;;  %v14829_v50 = vpack.c.bf16 %v11985_v46, %v11984_v27  ;;  %v12173_v27 = vld [vmem:[#allocation13 + $0x298] sm:$0xff] }
 0x8d5   :  { %14762 = vmatprep.subr.bf16.mxu0 %v17293_v53  ;;  %v14811_v52 = vpack.c.bf16 %v11896_v59, %v11895_v18  ;;  %v12084_v18 = vld [vmem:[#allocation13 + $0x238] sm:$0xff]  ;;  %v14880_v46 = vpack.c.bf16 %v12173_v27, %v12172_v39  ;;  %v12360_v39 = vld [vmem:[#allocation13 + $0x3a0] sm:$0xff] }
 0x8d7   :  { %14788 = vmatpush3.bf16.msra.mxu1 %v14787_v41  ;;  %v11987_v41 = vld [vmem:[#allocation13 + $0x198] sm:$0xff] }
 0x8d8   :  { %14764 = vmatpush3.bf16.msra.mxu0 %v14763_v19  ;;  %14789 = vmatprep.subr.bf16.mxu1 %v17293_v53  ;;  %v11897_v19 = vld [vmem:[#allocation13 + $0x130] sm:$0xff]  ;;  %v14832_v47 = vpack.c.bf16 %v11987_v41, %v11986_v62  ;;  %v12174_v62 = vld [vmem:[#allocation13 + $0x2a0] sm:$0xff] }
 0x8d9   :  { %14765 = vmatprep.subr.bf16.mxu0 %v17293_v53  ;;  %v14814_v4 = vpack.c.bf16 %v11898_v20, %v11897_v19  ;;  %v12086_v19 = vld [vmem:[#allocation13 + $0x248] sm:$0xff] }
 0x8db   :  { %14791 = vmatpush3.bf16.msra.mxu1 %v14790_v54  ;;  %v11989_v54 = vld [vmem:[#allocation13 + $0x1a8] sm:$0xff] }
 0x8dc   :  { %14767 = vmatpush3.bf16.msra.mxu0 %v14766_v0  ;;  %14792 = vmatprep.subr.bf16.mxu1 %v17293_v53  ;;  %v11899_v0 = vld [vmem:[#allocation13 + $0x140] sm:$0xff]  ;;  %v14835_v55 = vpack.c.bf16 %v11989_v54, %v11988_v37  ;;  %v12177_v37 = vld [vmem:[#allocation13 + $0x2b8] sm:$0xff] }
 0x8dd   :  { %14768 = vmatprep.subr.bf16.mxu0 %v17293_v53  ;;  %v14817_v3 = vpack.c.bf16 %v11900_v17, %v11899_v0  ;;  %v12088_v0 = vld [vmem:[#allocation13 + $0x258] sm:$0xff] }
 0x8df   :  { %14794 = vmatpush3.bf16.msra.mxu1 %v14793_v58  ;;  %v11991_v58 = vld [vmem:[#allocation13 + $0x1b8] sm:$0xff] }
 0x8e0   :  { %14770 = vmatpush3.bf16.msra.mxu0 %v14769_v21  ;;  %14795 = vmatprep.subr.bf16.mxu1 %v17293_v53  ;;  %v11901_v21 = vld [vmem:[#allocation13 + $0x150] sm:$0xff]  ;;  %v14838_v57 = vpack.c.bf16 %v11991_v58, %v11990_v56  ;;  %v12179_v56 = vld [vmem:[#allocation13 + $0x2c8] sm:$0xff] }
 0x8e1   :  { %14771 = vmatprep.subr.bf16.mxu0 %v17293_v53  ;;  %v14820_v48 = vpack.c.bf16 %v11902_v23, %v11901_v21  ;;  %v12090_v21 = vld [vmem:[#allocation13 + $0x268] sm:$0xff] }
 0x8e3   :  { %14797 = vmatpush3.bf16.msra.mxu1 %v14796_v40  ;;  %v11993_v40 = vld [vmem:[#allocation13 + $0x1c8] sm:$0xff] }
 0x8e4   :  { %14773 = vmatpush3.bf16.msra.mxu0 %v14772_v28  ;;  %14798 = vmatprep.subr.bf16.mxu1 %v17293_v53  ;;  %v11903_v28 = vld [vmem:[#allocation13 + $0x160] sm:$0xff]  ;;  %v14841_v1 = vpack.c.bf16 %v11993_v40, %v11992_v8  ;;  %v12181_v8 = vld [vmem:[#allocation13 + $0x2d8] sm:$0xff] }
 0x8e5   :  { %14774 = vmatprep.subr.bf16.mxu0 %v17293_v53  ;;  %v14823_v13 = vpack.c.bf16 %v11904_v30, %v11903_v28 }
 0x8e7   :  { %14800 = vmatpush3.bf16.msra.mxu1 %v14799_v60  ;;  %v11995_v60 = vld [vmem:[#allocation13 + $0x1d8] sm:$0xff] }
 0x8e8   :  { %14776 = vmatpush3.bf16.msra.mxu0 %v14775_v31  ;;  %14801 = vmatprep.subr.bf16.mxu1 %v17293_v53  ;;  %v13850_v31 = vld [vmem:[#allocation15] ss:$0 sm:$0xff] }
 0x8e9   :  { %14777 = vmatprep.subr.bf16.mxu0 %v17293_v53 }
 0x8eb   :  { %14803 = vmatpush3.bf16.msra.mxu1 %v14802_v12 }
 0x8ec   :  { %14779 = vmatpush3.bf16.msra.mxu0 %v14778_v35  ;;  %14828 = vmatprep.subr.bf16.mxu1 %v17293_v53 }
 0x8ed   :  { %14804 = vmatprep.subr.bf16.mxu0 %v17293_v53 }
 0x9a0   :  { %v11698_v7 = vpop.f32.mrb[56].mxu1 }
 0x9a1   :  { %v14474_v61 = vpop.f32.mrb[57].mxu1 }
 0x9a2   :  { %v14205_v63 = vpop.f32.mrb[56].mxu0  ;;  %v11701_v15 = vpop.f32.mrb[58].mxu1  ;;  %v11996_v61 = vld [vmem:[#allocation13 + $0x1e0] sm:$0xff] }
 0x9a3   :  { %v14206_v6 = vpop.f32.mrb[57].mxu0  ;;  %v14475_v9 = vpop.f32.mrb[59].mxu1 }
 0x9a4   :  { %v14207_v10 = vadd.f32 %v14206_v6, %v14205_v63  ;;  %v14208_v36 = vpop.f32.mrb[58].mxu0  ;;  %v11997_v63 = vld [vmem:[#allocation13 + $0x1e8] sm:$0xff] }
 0x9a5   :  { %v14209_v51 = vpop.f32.mrb[59].mxu0  ;;  %v14847_v15 = vpack.c.bf16 %v11997_v63, %v11996_v61 }
 0x9a6   :  { %v11659_v33 = vadd.f32 %v14207_v10, %v11479_v44  ;;  %v13851_v44 = vld [vmem:[#allocation15 + $0x1] ss:$0 sm:$0xff]  ;;  %v11998_v51 = vld [vmem:[#allocation13 + $0x1f0] sm:$0xff] }
 0x9a8   :  { %v11699_v24 = vadd.f32 %v11698_v7, %v11659_v33  ;;  %v14844_v7 = vpack.c.bf16 %v11995_v60, %v11994_v49  ;;  %v11999_v33 = vld [vmem:[#allocation13 + $0x1f8] sm:$0xff]  ;;  %v12183_v49 = vld [vmem:[#allocation13 + $0x2e8] sm:$0xff] }
 0x9aa   :  { %v11704_v42 = vmax.f32 %v11699_v24, 0.0  ;;  %v14850_v24 = vpack.c.bf16 %v11999_v33, %v11998_v51  ;;  %v12264_v51 = vld [vmem:[#allocation13 + $0x308] sm:$0xff]  ;;  %v12265_v33 = vld [vmem:[#allocation13 + $0x310] sm:$0xff] }
 0x9ac   :  { %14509 = vmatmul.mubr.f32.vlgmr.msra.gmra.mrb[60].mxu0 %v11704_v42  ;;  %v12077_v42 = vld [vmem:[#allocation13 + $0x200] sm:$0xff] }
 0x9ad   :  { %14578 = vmatprep.mubr.msk.f32.mxu0 %vm17292_vm0, %v17291_v26  ;;  %14806 = vmatpush3.bf16.msra.mxu0 %v14805_v5  ;;  %v14853_v12 = vpack.c.bf16 %v12078_v11, %v12077_v42  ;;  %v12082_v5 = vld [vmem:[#allocation13 + $0x228] sm:$0xff]  ;;  %v12266_v42 = vld [vmem:[#allocation13 + $0x318] sm:$0xff] }
 0x9ae   :  { %14807 = vmatprep.subr.bf16.mxu0 %v17293_v53  ;;  %v14859_v14 = vpack.c.bf16 %v12082_v5, %v12081_v45  ;;  %v14904_v11 = vpack.c.bf16 %v12266_v42, %v12265_v33  ;;  %v12270_v45 = vld [vmem:[#allocation13 + $0x338] sm:$0xff] }
 0x9b1   :  { %14809 = vmatpush3.bf16.msra.mxu0 %v14808_v16  ;;  %v12083_v16 = vld [vmem:[#allocation13 + $0x230] sm:$0xff] }
 0x9b2   :  { %14810 = vmatprep.subr.bf16.mxu0 %v17293_v53  ;;  %v14862_v59 = vpack.c.bf16 %v12084_v18, %v12083_v16  ;;  %v12272_v16 = vld [vmem:[#allocation13 + $0x348] sm:$0xff] }
 0x9b5   :  { %14812 = vmatpush3.bf16.msra.mxu0 %v14811_v52  ;;  %v12085_v52 = vld [vmem:[#allocation13 + $0x240] sm:$0xff] }
 0x9b6   :  { %14813 = vmatprep.subr.bf16.mxu0 %v17293_v53  ;;  %v14865_v20 = vpack.c.bf16 %v12086_v19, %v12085_v52  ;;  %v12274_v52 = vld [vmem:[#allocation13 + $0x358] sm:$0xff] }
 0x9b9   :  { %14815 = vmatpush3.bf16.msra.mxu0 %v14814_v4  ;;  %v12087_v4 = vld [vmem:[#allocation13 + $0x250] sm:$0xff] }
 0x9ba   :  { %14816 = vmatprep.subr.bf16.mxu0 %v17293_v53  ;;  %v14868_v17 = vpack.c.bf16 %v12088_v0, %v12087_v4  ;;  %v12276_v4 = vld [vmem:[#allocation13 + $0x368] sm:$0xff] }
 0x9bd   :  { %14818 = vmatpush3.bf16.msra.mxu0 %v14817_v3  ;;  %v12089_v3 = vld [vmem:[#allocation13 + $0x260] sm:$0xff] }
 0x9be   :  { %14819 = vmatprep.subr.bf16.mxu0 %v17293_v53  ;;  %v14871_v23 = vpack.c.bf16 %v12090_v21, %v12089_v3 }
 0x9c1   :  { %14821 = vmatpush3.bf16.msra.mxu0 %v14820_v48  ;;  %v13852_v48 = vld [vmem:[#allocation15 + $0x2] ss:$0 sm:$0xff] }
 0x9c2   :  { %14822 = vmatprep.subr.bf16.mxu0 %v17293_v53 }
 0x9c5   :  { %14824 = vmatpush3.bf16.msra.mxu0 %v14823_v13 }
 0x9c6   :  { %14825 = vmatprep.subr.bf16.mxu0 %v17293_v53 }
 0x9c9   :  { %14827 = vmatpush3.bf16.msra.mxu0 %v14826_v38 }
 0x9ca   :  { %14852 = vmatprep.subr.bf16.mxu0 %v17293_v53 }
 0xa7f   :  { %v11792_v2 = vpop.f32.mrb[60].mxu0 }
 0xa80   :  { %v11793_v25 = vadd.f32 %v13850_v31, %v11792_v2  ;;  %v14510_v35 = vpop.f32.mrb[61].mxu0  ;;  %v12091_v2 = vld [vmem:[#allocation13 + $0x270] sm:$0xff] }
 0xa82   :  { %v11796_v32 = vmax.f32 %v11793_v25, 0.0  ;;  %v12092_v25 = vld [vmem:[#allocation13 + $0x278] sm:$0xff] }
 0xa83   :  { %v14874_v35 = vpack.c.bf16 %v12092_v25, %v12091_v2  ;;  %v12357_v2 = vld [vmem:[#allocation13 + $0x388] sm:$0xff]  ;;  %v12358_v25 = vld [vmem:[#allocation13 + $0x390] sm:$0xff] }
 0xa84   :  { %14544 = vmatmul.mubr.f32.vlgmr.msra.gmra.mrb[60].mxu1 %v11796_v32  ;;  %v12170_v32 = vld [vmem:[#allocation13 + $0x280] sm:$0xff] }
 0xa85   :  { %14613 = vmatprep.mubr.msk.f32.mxu1 %vm17292_vm0, %v17291_v26  ;;  %14830 = vmatpush3.bf16.msra.mxu1 %v14829_v50  ;;  %v14877_v38 = vpack.c.bf16 %v12171_v22, %v12170_v32  ;;  %v12175_v50 = vld [vmem:[#allocation13 + $0x2a8] sm:$0xff]  ;;  %v12359_v32 = vld [vmem:[#allocation13 + $0x398] sm:$0xff] }
 0xa86   :  { %14831 = vmatprep.subr.bf16.mxu1 %v17293_v53  ;;  %v14883_v41 = vpack.c.bf16 %v12175_v50, %v12174_v62  ;;  %v14928_v22 = vpack.c.bf16 %v12359_v32, %v12358_v25  ;;  %v12364_v50 = vld [vmem:[#allocation13 + $0x3c0] sm:$0xff] }
 0xa89   :  { %14833 = vmatpush3.bf16.msra.mxu1 %v14832_v47  ;;  %v12176_v47 = vld [vmem:[#allocation13 + $0x2b0] sm:$0xff] }
 0xa8a   :  { %14834 = vmatprep.subr.bf16.mxu1 %v17293_v53  ;;  %v14886_v54 = vpack.c.bf16 %v12177_v37, %v12176_v47  ;;  %v12366_v37 = vld [vmem:[#allocation13 + $0x3d0] sm:$0xff] }
 0xa8d   :  { %14836 = vmatpush3.bf16.msra.mxu1 %v14835_v55  ;;  %v12178_v55 = vld [vmem:[#allocation13 + $0x2c0] sm:$0xff] }
 0xa8e   :  { %14837 = vmatprep.subr.bf16.mxu1 %v17293_v53  ;;  %v14889_v58 = vpack.c.bf16 %v12179_v56, %v12178_v55  ;;  %v12368_v56 = vld [vmem:[#allocation13 + $0x3e0] sm:$0xff] }
 0xa91   :  { %14839 = vmatpush3.bf16.msra.mxu1 %v14838_v57  ;;  %v12180_v57 = vld [vmem:[#allocation13 + $0x2d0] sm:$0xff] }
 0xa92   :  { %14840 = vmatprep.subr.bf16.mxu1 %v17293_v53  ;;  %v14892_v40 = vpack.c.bf16 %v12181_v8, %v12180_v57  ;;  %v13855_v8 = vld [vmem:[#allocation15 + $0x5] ss:$0 sm:$0xff] }
 0xa95   :  { %14842 = vmatpush3.bf16.msra.mxu1 %v14841_v1  ;;  %v12182_v1 = vld [vmem:[#allocation13 + $0x2e0] sm:$0xff] }
 0xa96   :  { %14843 = vmatprep.subr.bf16.mxu1 %v17293_v53  ;;  %v14895_v60 = vpack.c.bf16 %v12183_v49, %v12182_v1 }
 0xa99   :  { %14845 = vmatpush3.bf16.msra.mxu1 %v14844_v7  ;;  %v13853_v7 = vld [vmem:[#allocation15 + $0x3] ss:$0 sm:$0xff] }
 0xa9a   :  { %14846 = vmatprep.subr.bf16.mxu1 %v17293_v53 }
 0xa9d   :  { %14848 = vmatpush3.bf16.msra.mxu1 %v14847_v15 }
 0xa9e   :  { %14849 = vmatprep.subr.bf16.mxu1 %v17293_v53 }
 0xaa1   :  { %14851 = vmatpush3.bf16.msra.mxu1 %v14850_v24 }
 0xaa2   :  { %14876 = vmatprep.subr.bf16.mxu1 %v17293_v53 }
 0xb57   :  { %v11885_v6 = vpop.f32.mrb[60].mxu1 }
 0xb58   :  { %v11886_v9 = vadd.f32 %v13851_v44, %v11885_v6  ;;  %v14545_v10 = vpop.f32.mrb[61].mxu1  ;;  %v12184_v6 = vld [vmem:[#allocation13 + $0x2f0] sm:$0xff] }
 0xb5a   :  { %v11889_v36 = vmax.f32 %v11886_v9, 0.0  ;;  %v12185_v9 = vld [vmem:[#allocation13 + $0x2f8] sm:$0xff] }
 0xb5b   :  { %v14898_v10 = vpack.c.bf16 %v12185_v9, %v12184_v6 }
 0xb5c   :  { %14579 = vmatmul.mubr.f32.vlgmr.msra.gmra.mrb[62].mxu0 %v11889_v36  ;;  %v12263_v36 = vld [vmem:[#allocation13 + $0x300] sm:$0xff] }
 0xb5d   :  { %14648 = vmatprep.mubr.msk.f32.mxu0 %vm17292_vm0, %v17291_v26  ;;  %14854 = vmatpush3.bf16.msra.mxu0 %v14853_v12  ;;  %v14901_v24 = vpack.c.bf16 %v12264_v51, %v12263_v36  ;;  %v12268_v12 = vld [vmem:[#allocation13 + $0x328] sm:$0xff]  ;;  %v13857_v36 = vld [vmem:[#allocation15 + $0x7] ss:$0 sm:$0xff] }
 0xb5e   :  { %14855 = vmatprep.subr.bf16.mxu0 %v17293_v53  ;;  %v14907_v43 = vpack.c.bf16 %v12268_v12, %v12267_v29 }
 0xb61   :  { %14857 = vmatpush3.bf16.msra.mxu0 %v14856_v34  ;;  %v12269_v34 = vld [vmem:[#allocation13 + $0x330] sm:$0xff] }
 0xb62   :  { %14858 = vmatprep.subr.bf16.mxu0 %v17293_v53  ;;  %v14910_v5 = vpack.c.bf16 %v12270_v45, %v12269_v34 }
 0xb65   :  { %14860 = vmatpush3.bf16.msra.mxu0 %v14859_v14  ;;  %v12271_v14 = vld [vmem:[#allocation13 + $0x340] sm:$0xff] }
 0xb66   :  { %14861 = vmatprep.subr.bf16.mxu0 %v17293_v53  ;;  %v14913_v18 = vpack.c.bf16 %v12272_v16, %v12271_v14 }
 0xb69   :  { %14863 = vmatpush3.bf16.msra.mxu0 %v14862_v59  ;;  %v12273_v59 = vld [vmem:[#allocation13 + $0x350] sm:$0xff] }
 0xb6a   :  { %14864 = vmatprep.subr.bf16.mxu0 %v17293_v53  ;;  %v14916_v19 = vpack.c.bf16 %v12274_v52, %v12273_v59 }
 0xb6d   :  { %14866 = vmatpush3.bf16.msra.mxu0 %v14865_v20  ;;  %v12275_v20 = vld [vmem:[#allocation13 + $0x360] sm:$0xff] }
 0xb6e   :  { %14867 = vmatprep.subr.bf16.mxu0 %v17293_v53  ;;  %v14919_v0 = vpack.c.bf16 %v12276_v4, %v12275_v20 }
 0xb71   :  { %14869 = vmatpush3.bf16.msra.mxu0 %v14868_v17  ;;  %v13854_v17 = vld [vmem:[#allocation15 + $0x4] ss:$0 sm:$0xff] }
 0xb72   :  { %14870 = vmatprep.subr.bf16.mxu0 %v17293_v53 }
 0xb75   :  { %14872 = vmatpush3.bf16.msra.mxu0 %v14871_v23 }
 0xb76   :  { %14873 = vmatprep.subr.bf16.mxu0 %v17293_v53 }
 0xb79   :  { %14875 = vmatpush3.bf16.msra.mxu0 %v14874_v35 }
 0xb7a   :  { %14900 = vmatprep.subr.bf16.mxu0 %v17293_v53 }
 0xc2f   :  { %v11978_v28 = vpop.f32.mrb[62].mxu0 }
 0xc30   :  { %v11979_v30 = vadd.f32 %v13852_v48, %v11978_v28  ;;  %v14580_v13 = vpop.f32.mrb[63].mxu0  ;;  %v12277_v28 = vld [vmem:[#allocation13 + $0x370] sm:$0xff] }
 0xc32   :  { %v11982_v31 = vmax.f32 %v11979_v30, 0.0  ;;  %v12278_v30 = vld [vmem:[#allocation13 + $0x378] sm:$0xff] }
 0xc33   :  { %v14922_v13 = vpack.c.bf16 %v12278_v30, %v12277_v28 }
 0xc34   :  { %14614 = vmatmul.mubr.f32.vlgmr.msra.gmra.mrb[62].mxu1 %v11982_v31  ;;  %v12356_v31 = vld [vmem:[#allocation13 + $0x380] sm:$0xff] }
 0xc35   :  { %14683 = vmatprep.mubr.msk.f32.mxu1 %vm17292_vm0, %v17291_v26  ;;  %14878 = vmatpush3.bf16.msra.mxu1 %v14877_v38  ;;  %v14925_v35 = vpack.c.bf16 %v12357_v2, %v12356_v31  ;;  %v12361_v38 = vld [vmem:[#allocation13 + $0x3a8] sm:$0xff] }
 0xc36   :  { %14879 = vmatprep.subr.bf16.mxu1 %v17293_v53  ;;  %v14931_v27 = vpack.c.bf16 %v12361_v38, %v12360_v39 }
 0xc39   :  { %14881 = vmatpush3.bf16.msra.mxu1 %v14880_v46  ;;  %v12363_v46 = vld [vmem:[#allocation13 + $0x3b8] sm:$0xff] }
 0xc3a   :  { %14882 = vmatprep.subr.bf16.mxu1 %v17293_v53 }
 0xc3d   :  { %14884 = vmatpush3.bf16.msra.mxu1 %v14883_v41  ;;  %v12365_v41 = vld [vmem:[#allocation13 + $0x3c8] sm:$0xff] }
 0xc3e   :  { %14885 = vmatprep.subr.bf16.mxu1 %v17293_v53  ;;  %v14937_v47 = vpack.c.bf16 %v12365_v41, %v12364_v50 }
 0xc41   :  { %14887 = vmatpush3.bf16.msra.mxu1 %v14886_v54  ;;  %v12367_v54 = vld [vmem:[#allocation13 + $0x3d8] sm:$0xff] }
 0xc42   :  { %14888 = vmatprep.subr.bf16.mxu1 %v17293_v53  ;;  %v14940_v55 = vpack.c.bf16 %v12367_v54, %v12366_v37 }
 0xc45   :  { %14890 = vmatpush3.bf16.msra.mxu1 %v14889_v58  ;;  %v12369_v58 = vld [vmem:[#allocation13 + $0x3e8] sm:$0xff] }
 0xc46   :  { %14891 = vmatprep.subr.bf16.mxu1 %v17293_v53  ;;  %v14943_v57 = vpack.c.bf16 %v12369_v58, %v12368_v56 }
 0xc49   :  { %14893 = vmatpush3.bf16.msra.mxu1 %v14892_v40 }
 0xc4a   :  { %14894 = vmatprep.subr.bf16.mxu1 %v17293_v53 }
 0xc4d   :  { %14896 = vmatpush3.bf16.msra.mxu1 %v14895_v60 }
 0xc4e   :  { %14897 = vmatprep.subr.bf16.mxu1 %v17293_v53 }
 0xc51   :  { %14899 = vmatpush3.bf16.msra.mxu1 %v14898_v10 }
 0xc52   :  { %14924 = vmatprep.subr.bf16.mxu1 %v17293_v53 }
 0xd07   :  { %v12071_v61 = vpop.f32.mrb[62].mxu1 }
 0xd08   :  { %v12072_v63 = vadd.f32 %v13853_v7, %v12071_v61  ;;  %v14615_v15 = vpop.f32.mrb[63].mxu1  ;;  %v12370_v7 = vld [vmem:[#allocation13 + $0x3f0] sm:$0xff]  ;;  %v12371_v61 = vld [vmem:[#allocation13 + $0x3f8] sm:$0xff] }
 0xd09   :  { %v13856_v15 = vld [vmem:[#allocation15 + $0x6] ss:$0 sm:$0xff] }
 0xd0a   :  { %v12075_v44 = vmax.f32 %v12072_v63, 0.0  ;;  %v14946_v63 = vpack.c.bf16 %v12371_v61, %v12370_v7 }
 0xd0c   :  { %14649 = vmatmul.mubr.f32.vlgmr.msra.gmra.mrb[64].mxu0 %v12075_v44 }
 0xd0d   :  { %14718 = vmatprep.mubr.msk.f32.mxu0 %vm17292_vm0, %v17291_v26  ;;  %14902 = vmatpush3.bf16.msra.mxu0 %v14901_v24 }
 0xd0e   :  { %14903 = vmatprep.subr.bf16.mxu0 %v17293_v53 }
 0xd11   :  { %14905 = vmatpush3.bf16.msra.mxu0 %v14904_v11 }
 0xd12   :  { %14906 = vmatprep.subr.bf16.mxu0 %v17293_v53 }
 0xd15   :  { %14908 = vmatpush3.bf16.msra.mxu0 %v14907_v43 }
 0xd16   :  { %14909 = vmatprep.subr.bf16.mxu0 %v17293_v53 }
 0xd19   :  { %14911 = vmatpush3.bf16.msra.mxu0 %v14910_v5 }
 0xd1a   :  { %14912 = vmatprep.subr.bf16.mxu0 %v17293_v53 }
 0xd1d   :  { %14914 = vmatpush3.bf16.msra.mxu0 %v14913_v18 }
 0xd1e   :  { %14915 = vmatprep.subr.bf16.mxu0 %v17293_v53 }
 0xd21   :  { %14917 = vmatpush3.bf16.msra.mxu0 %v14916_v19 }
 0xd22   :  { %14918 = vmatprep.subr.bf16.mxu0 %v17293_v53 }
 0xd25   :  { %14920 = vmatpush3.bf16.msra.mxu0 %v14919_v0 }
 0xd26   :  { %14921 = vmatprep.subr.bf16.mxu0 %v17293_v53 }
 0xd29   :  { %14923 = vmatpush3.bf16.msra.mxu0 %v14922_v13 }
 0xddf   :  { %v12164_v3 = vpop.f32.mrb[64].mxu0 }
 0xde0   :  { %v12165_v21 = vadd.f32 %v13854_v17, %v12164_v3  ;;  %v14650_v23 = vpop.f32.mrb[65].mxu0 }
 0xde2   :  { %v12168_v48 = vmax.f32 %v12165_v21, 0.0 }
 0xde4   :  { %14684 = vmatmul.mubr.f32.vlgmr.msra.gmra.mrb[64].mxu1 %v12168_v48 }
 0xde5   :  { %14753 = vmatprep.mubr.msk.f32.mxu1 %vm17292_vm0, %v17291_v26  ;;  %14926 = vmatpush3.bf16.msra.mxu1 %v14925_v35  ;;  %v12362_v26 = vld [vmem:[#allocation13 + $0x3b0] sm:$0xff] }
 0xde6   :  { %14927 = vmatprep.subr.bf16.mxu1 %v17293_v53  ;;  %v14934_v62 = vpack.c.bf16 %v12363_v46, %v12362_v26 }
 0xde9   :  { %14929 = vmatpush3.bf16.msra.mxu1 %v14928_v22 }
 0xdea   :  { %14930 = vmatprep.subr.bf16.mxu1 %v17293_v53 }
 0xded   :  { %14932 = vmatpush3.bf16.msra.mxu1 %v14931_v27 }
 0xdee   :  { %14933 = vmatprep.subr.bf16.mxu1 %v17293_v53 }
 0xdf1   :  { %14935 = vmatpush3.bf16.msra.mxu1 %v14934_v62 }
 0xdf2   :  { %14936 = vmatprep.subr.bf16.mxu1 %v17293_v53 }
 0xdf5   :  { %14938 = vmatpush3.bf16.msra.mxu1 %v14937_v47 }
 0xdf6   :  { %14939 = vmatprep.subr.bf16.mxu1 %v17293_v53 }
 0xdf9   :  { %14941 = vmatpush3.bf16.msra.mxu1 %v14940_v55 }
 0xdfa   :  { %14942 = vmatprep.subr.bf16.mxu1 %v17293_v53 }
 0xdfd   :  { %14944 = vmatpush3.bf16.msra.mxu1 %v14943_v57 }
 0xdfe   :  { %14945 = vmatprep.subr.bf16.mxu1 %v17293_v53 }
 0xe01   :  { %14947 = vmatpush3.bf16.msra.mxu1 %v14946_v63 }
 0xeb7   :  { %v12257_v40 = vpop.f32.mrb[64].mxu1 }
 0xeb8   :  { %v12258_v1 = vadd.f32 %v13855_v8, %v12257_v40  ;;  %v14685_v49 = vpop.f32.mrb[65].mxu1 }
 0xeba   :  { %v12261_v60 = vmax.f32 %v12258_v1, 0.0 }
 0xebc   :  { %14719 = vmatmul.mubr.f32.vlgmr.msra.gmra.mrb[66].mxu0 %v12261_v60 }
 0xf8f   :  { %v12350_v44 = vpop.f32.mrb[66].mxu0 }
 0xf90   :  { %v12351_v6 = vadd.f32 %v13856_v15, %v12350_v44  ;;  %v14720_v9 = vpop.f32.mrb[67].mxu0 }
 0xf92   :  { %v12354_v10 = vmax.f32 %v12351_v6, 0.0 }
 0xf94   :  { %14754 = vmatmul.mubr.f32.vlgmr.msra.gmra.mrb[66].mxu1 %v12354_v10 }
0x1067   :  { %v12443_v51 = vpop.f32.mrb[66].mxu1 }
0x1068   :  { %v12444_v53 = vadd.f32 %v13857_v36, %v12443_v51  ;;  %v14755_v33 = vpop.f32.mrb[67].mxu1 }
0x106a   :  { %12448 = vst.msk [vmem:[%s17914_s10] sm:$0xff] %vm12447_vm1, %v12444_v53 }
0x106b   :  { %12453 = vsyncpa [#allocation3], 1 }
0x106c   :  { %12454 = vsyncpa [#allocation5], 1 }
0x106d   :  { %12455 = vsyncpa [#allocation8], 1 }
0x106e   :  { %12456 = vsyncpa [#allocation11], 1 }
0x106f   :  { %12457 = vsyncpa [#allocation14], 1 }

</bundles_post_ra>
